<compile_context>
chip_gen: v6e
topology: v6e:2x2x1
jax: 0.10.0
libtpu: 0.0.40
codegen_flags: <defaults>
</compile_context>

<pallas_src>
import functools

import jax
import jax.numpy as jnp
from jax.experimental import pallas as pl
from jax.experimental.pallas import tpu as pltpu

BN_EPS = 1e-5

# ---------------- ResidualBlock config (see TODO above) ----------------
IN_CHANNELS = 4
OUT_CHANNELS = 16
KERNEL_SIZES = (1, 3)
STRIDES = (1, 1)
PADDINGS = (0, 1)


# ---------------- Fused Pallas kernel ----------------
def _residual_block_kernel(x_pad_ref, mask_ref, w1_ref, w2_ref,
                           g1_ref, b1_ref, g2_ref, b2_ref, o_ref, *, k2):
    """Fused ConvBn2d(1x1) -> ConvBn2d(k2 x k2, pad (k2-1)//2) -> + x.

    x_pad_ref : (N, Hp, Wp, Cin)  zero-padded input, NHWC, f32 (Wp 8-aligned)
    mask_ref  : (1, Hp, Wp, C1)   1.0 on the valid interior, 0.0 on the ring
    w1_ref    : (Cin, C1)         conv1 weights (1x1, pre-flattened)
    w2_ref    : (k2*k2*C1, Cout)  conv2 weights (HWIO pre-flattened)
    g*/b*_ref : (1, C)            BN affine parameters
    o_ref     : (N, H, W, Cout)   output (Cout == Cin)
    """
    N, Hp, Wp, Cin = x_pad_ref.shape
    _, H, W, _ = o_ref.shape
    C1 = w1_ref.shape[1]
    Cout = w2_ref.shape[1]
    pad = (Hp - H) // 2                      # left/top padding offset

    m_valid = float(N * H * W)               # BN normalizes over valid pixels
    inv_m = 1.0 / m_valid

    x_pad = x_pad_ref[...]                   # whole padded input in VMEM

    # ---- layer 1: 1x1 conv as ONE matmul over the padded domain + BN ----
    xp_flat = x_pad.reshape(N * Hp * Wp, Cin)
    y1 = jnp.dot(xp_flat, w1_ref[...], preferred_element_type=jnp.float32)

    # One-pass batch stats. Ring rows are exactly zero (zero input, 1x1 conv,
    # no bias) so sums over the padded domain equal sums over the N*H*W valid
    # pixels; divide by the valid count -> exact training-mode BN statistics.
    s1 = jnp.sum(y1, axis=0, keepdims=True)
    s2 = jnp.sum(y1 * y1, axis=0, keepdims=True)
    mean1 = s1 * inv_m
    var1 = s2 * inv_m - mean1 * mean1
    a1 = (y1 - mean1) * jax.lax.rsqrt(var1 + BN_EPS) * g1_ref[...] + b1_ref[...]

    # Re-zero the padding ring (BN's affine made it nonzero); conv2's
    # padding semantics require exact zeros there.
    a1p = a1.reshape(N, Hp, Wp, C1) * mask_ref[...]

    # ---- layer 2: k2 x k2 conv as ONE matmul over concatenated taps + BN ----
    slabs = []
    for kh in range(k2):
        for kw in range(k2):
            slabs.append(
                a1p[:, kh:kh + H, kw:kw + W, :].reshape(N * H * W, C1))
    patches = jnp.concatenate(slabs, axis=-1)          # (N*H*W, k2*k2*C1)
    y2 = jnp.dot(patches, w2_ref[...], preferred_element_type=jnp.float32)

    t1 = jnp.sum(y2, axis=0, keepdims=True)
    t2 = jnp.sum(y2 * y2, axis=0, keepdims=True)
    mean2 = t1 * inv_m
    var2 = t2 * inv_m - mean2 * mean2
    a2 = (y2 - mean2) * jax.lax.rsqrt(var2 + BN_EPS) * g2_ref[...] + b2_ref[...]

    # ---- residual add ----
    x_in = x_pad[:, pad:pad + H, pad:pad + W, :].reshape(N * H * W, Cin)
    out = a2 + x_in

    o_ref[...] = out.reshape(N, H, W, Cout).astype(o_ref.dtype)


# ---------------- Wrapper ----------------
def residual_block_forward(params, x_nchw):
    """Forward pass. Input / output are NCHW (PyTorch convention)."""
    N, Cin, H, W = x_nchw.shape
    k1, k2 = KERNEL_SIZES
    p1, p2 = PADDINGS
    s1, s2 = STRIDES
    assert k1 == 1 and p1 == 0 and s1 == 1 and s2 == 1, "only 1x1/stride-1 conv1 supported"
    assert p2 == (k2 - 1) // 2, "conv2 must be shape-preserving for the residual add"
    C1 = params["w1"].shape[-1]

    x_nhwc = jnp.transpose(x_nchw, (0, 2, 3, 1)).astype(jnp.float32)

    # Zero-pad in the wrapper (XLA); round Wp up so the in-kernel reshapes keep
    # the sublane dimension 8-aligned. The extra right columns are never read.
    Hp = H + 2 * p2
    Wp = ((W + 2 * p2 + 7) // 8) * 8
    x_pad = jnp.pad(x_nhwc, ((0, 0), (p2, Hp - H - p2), (p2, Wp - W - p2), (0, 0)))

    # Validity mask for the padded domain (precomputed once in XLA).
    row_ok = (jnp.arange(Hp) >= p2) & (jnp.arange(Hp) < p2 + H)
    col_ok = (jnp.arange(Wp) >= p2) & (jnp.arange(Wp) < p2 + W)
    mask = (row_ok[:, None] & col_ok[None, :]).astype(jnp.float32)
    mask = jnp.broadcast_to(mask[None, :, :, None], (1, Hp, Wp, C1))

    # Pre-reshape the weights so each conv is a single matmul in the kernel.
    w1r = params["w1"].reshape(Cin, C1)                 # (1,1,Cin,C1) -> (Cin,C1)
    w2r = params["w2"].reshape(k2 * k2 * C1, Cin)       # (k2,k2,C1,Cin) -> (k2*k2*C1,Cin)

    kernel = functools.partial(_residual_block_kernel, k2=k2)
    vmem = pl.BlockSpec(memory_space=pltpu.MemorySpace.VMEM)

    out_nhwc = pl.pallas_call(
        kernel,
        out_shape=jax.ShapeDtypeStruct((N, H, W, Cin), jnp.float32),
        in_specs=[vmem] * 8,
        out_specs=vmem,
    )(x_pad, mask, w1r, w2r,
      params["gamma1"], params["beta1"], params["gamma2"], params["beta2"])

    return jnp.transpose(out_nhwc, (0, 3, 1, 2))        # NHWC -> NCHW


# ---------------- Parameters ----------------
def init_residual_block_params(key, in_channels, out_channels, kernel_sizes):
    """Deterministic init matching the PyTorch module's shapes (HWIO weights).

    Conv biases are omitted: with training-mode BatchNorm immediately after
    each conv, any bias is exactly cancelled by the batch-mean subtraction,
    so the forward output is identical.
    """
    k1, k2 = kernel_sizes
    key, kw1, kw2 = jax.random.split(key, 3)
    bound1 = 1.0 / (in_channels * k1 * k1) ** 0.5
    bound2 = 1.0 / (out_channels * k2 * k2) ** 0.5
    w1 = jax.random.uniform(kw1, (k1, k1, in_channels, out_channels),
                            minval=-bound1, maxval=bound1, dtype=jnp.float32)
    w2 = jax.random.uniform(kw2, (k2, k2, out_channels, in_channels),
                            minval=-bound2, maxval=bound2, dtype=jnp.float32)
    return dict(
        w1=w1, w2=w2,
        gamma1=jnp.ones((1, out_channels), jnp.float32),
        beta1=jnp.zeros((1, out_channels), jnp.float32),
        gamma2=jnp.ones((1, in_channels), jnp.float32),
        beta2=jnp.zeros((1, in_channels), jnp.float32),
    )


# ---------------- Pure-JAX reference (for a sanity check) ----------------
def _reference_forward(params, x_nchw):
    def conv_bn(x, w_hwio, gamma, beta, padding):
        y = jax.lax.conv_general_dilated(
            x, w_hwio, window_strides=(1, 1),
            padding=[(padding, padding), (padding, padding)],
            dimension_numbers=("NCHW", "HWIO", "NCHW"))
        mean = jnp.mean(y, axis=(0, 2, 3), keepdims=True)
        var = jnp.mean((y - mean) ** 2, axis=(0, 2, 3), keepdims=True)
        g = gamma.reshape(1, -1, 1, 1)
        b = beta.reshape(1, -1, 1, 1)
        return (y - mean) * jax.lax.rsqrt(var + BN_EPS) * g + b

    out = conv_bn(x_nchw, params["w1"], params["gamma1"], params["beta1"], PADDINGS[0])
    out = conv_bn(out, params["w2"], params["gamma2"], params["beta2"], PADDINGS[1])
    return out + x_nchw


# ---------------- Main ----------------
if __name__ == "__main__":
    batch, channels, spatial = 2, 4, 16

    key = jax.random.PRNGKey(0)
    key, xk = jax.random.split(key)
    x = jax.random.normal(xk, (batch, channels, spatial, spatial),
                          dtype=jnp.float32)
    params = init_residual_block_params(key, channels, OUT_CHANNELS, KERNEL_SIZES)

    y = jax.jit(residual_block_forward)(params, x)
    y = jax.block_until_ready(y)

    assert y.shape == (batch, channels, spatial, spatial), y.shape
    assert bool(jnp.all(jnp.isfinite(y)))

    # Sanity check against a plain-JAX reference (loose tol: matmul precision).
    y_ref = jax.block_until_ready(jax.jit(_reference_forward)(params, x))
    max_err = float(jnp.max(jnp.abs(y - y_ref)))
    assert max_err < 5e-2, f"mismatch vs reference: {max_err}"

    print("KERNEL_OK")
</pallas_src>

<mosaic_0001>
module attributes {stable_mosaic.version = 11 : i64} {
  func.func @_residual_block_kernel(%arg0: memref<2x18x24x4xf32, #tpu.memory_space<vmem>>, %arg1: memref<1x18x24x16xf32, #tpu.memory_space<vmem>>, %arg2: memref<4x16xf32, #tpu.memory_space<vmem>>, %arg3: memref<144x4xf32, #tpu.memory_space<vmem>>, %arg4: memref<1x16xf32, #tpu.memory_space<vmem>>, %arg5: memref<1x16xf32, #tpu.memory_space<vmem>>, %arg6: memref<1x4xf32, #tpu.memory_space<vmem>>, %arg7: memref<1x4xf32, #tpu.memory_space<vmem>>, %arg8: memref<2x16x16x4xf32, #tpu.memory_space<vmem>>) attributes {dimension_semantics = [], scalar_prefetch = 0 : i64, scratch_operands = 0 : i64, tpu.core_type = #tpu.core_type<tc>} {
    %c0 = arith.constant 0 : index
    %c0_0 = arith.constant 0 : index
    %c0_1 = arith.constant 0 : index
    %c0_2 = arith.constant 0 : index
    %0 = vector.load %arg0[%c0, %c0_0, %c0_1, %c0_2] : memref<2x18x24x4xf32, #tpu.memory_space<vmem>>, vector<2x18x24x4xf32>
    %1 = vector.shape_cast %0 : vector<2x18x24x4xf32> to vector<864x4xf32>
    %c0_3 = arith.constant 0 : index
    %c0_4 = arith.constant 0 : index
    %2 = vector.load %arg2[%c0_3, %c0_4] : memref<4x16xf32, #tpu.memory_space<vmem>>, vector<4x16xf32>
    %cst = arith.constant dense<0.000000e+00> : vector<864x16xf32>
    %3 = tpu.matmul %1, %2, %cst {dimension_numbers = #tpu.dot_dimension_numbers<[1], [0], [0], [1], [0, 0, 1, 1], [], []>} : vector<864x4xf32>, vector<4x16xf32>, vector<864x16xf32> -> vector<864x16xf32>
    %cst_5 = arith.constant dense<0.000000e+00> : vector<16xf32>
    %4 = vector.multi_reduction <add>, %3, %cst_5 [0] : vector<864x16xf32> to vector<16xf32>
    %5 = vector.shape_cast %4 : vector<16xf32> to vector<1x16xf32>
    %6 = arith.mulf %3, %3 : vector<864x16xf32>
    %cst_6 = arith.constant dense<0.000000e+00> : vector<16xf32>
    %7 = vector.multi_reduction <add>, %6, %cst_6 [0] : vector<864x16xf32> to vector<16xf32>
    %8 = vector.shape_cast %7 : vector<16xf32> to vector<1x16xf32>
    %cst_7 = arith.constant 0.001953125 : f32
    %9 = vector.broadcast %cst_7 : f32 to vector<1x16xf32>
    %10 = arith.mulf %5, %9 : vector<1x16xf32>
    %cst_8 = arith.constant 0.001953125 : f32
    %11 = vector.broadcast %cst_8 : f32 to vector<1x16xf32>
    %12 = arith.mulf %8, %11 : vector<1x16xf32>
    %13 = arith.mulf %10, %10 : vector<1x16xf32>
    %14 = arith.subf %12, %13 : vector<1x16xf32>
    %15 = vector.broadcast %10 : vector<1x16xf32> to vector<864x16xf32>
    %16 = arith.subf %3, %15 : vector<864x16xf32>
    %cst_9 = arith.constant 9.99999974E-6 : f32
    %17 = vector.broadcast %cst_9 : f32 to vector<1x16xf32>
    %18 = arith.addf %14, %17 : vector<1x16xf32>
    %19 = math.rsqrt %18 : vector<1x16xf32>
    %20 = vector.broadcast %19 : vector<1x16xf32> to vector<864x16xf32>
    %21 = arith.mulf %16, %20 : vector<864x16xf32>
    %c0_10 = arith.constant 0 : index
    %c0_11 = arith.constant 0 : index
    %22 = vector.load %arg4[%c0_10, %c0_11] : memref<1x16xf32, #tpu.memory_space<vmem>>, vector<1x16xf32>
    %23 = vector.broadcast %22 : vector<1x16xf32> to vector<864x16xf32>
    %24 = arith.mulf %21, %23 : vector<864x16xf32>
    %c0_12 = arith.constant 0 : index
    %c0_13 = arith.constant 0 : index
    %25 = vector.load %arg5[%c0_12, %c0_13] : memref<1x16xf32, #tpu.memory_space<vmem>>, vector<1x16xf32>
    %26 = vector.broadcast %25 : vector<1x16xf32> to vector<864x16xf32>
    %27 = arith.addf %24, %26 : vector<864x16xf32>
    %28 = vector.shape_cast %27 : vector<864x16xf32> to vector<2x18x24x16xf32>
    %c0_14 = arith.constant 0 : index
    %c0_15 = arith.constant 0 : index
    %c0_16 = arith.constant 0 : index
    %c0_17 = arith.constant 0 : index
    %29 = vector.load %arg1[%c0_14, %c0_15, %c0_16, %c0_17] : memref<1x18x24x16xf32, #tpu.memory_space<vmem>>, vector<1x18x24x16xf32>
    %30 = vector.broadcast %29 : vector<1x18x24x16xf32> to vector<2x18x24x16xf32>
    %31 = arith.mulf %28, %30 : vector<2x18x24x16xf32>
    %32 = vector.extract_strided_slice %31 {offsets = [0, 0, 0, 0], sizes = [2, 16, 16, 16], strides = [1, 1, 1, 1]} : vector<2x18x24x16xf32> to vector<2x16x16x16xf32>
    %33 = vector.shape_cast %32 : vector<2x16x16x16xf32> to vector<512x16xf32>
    %34 = vector.extract_strided_slice %31 {offsets = [0, 0, 1, 0], sizes = [2, 16, 16, 16], strides = [1, 1, 1, 1]} : vector<2x18x24x16xf32> to vector<2x16x16x16xf32>
    %35 = vector.shape_cast %34 : vector<2x16x16x16xf32> to vector<512x16xf32>
    %36 = vector.extract_strided_slice %31 {offsets = [0, 0, 2, 0], sizes = [2, 16, 16, 16], strides = [1, 1, 1, 1]} : vector<2x18x24x16xf32> to vector<2x16x16x16xf32>
    %37 = vector.shape_cast %36 : vector<2x16x16x16xf32> to vector<512x16xf32>
    %38 = vector.extract_strided_slice %31 {offsets = [0, 1, 0, 0], sizes = [2, 16, 16, 16], strides = [1, 1, 1, 1]} : vector<2x18x24x16xf32> to vector<2x16x16x16xf32>
    %39 = vector.shape_cast %38 : vector<2x16x16x16xf32> to vector<512x16xf32>
    %40 = vector.extract_strided_slice %31 {offsets = [0, 1, 1, 0], sizes = [2, 16, 16, 16], strides = [1, 1, 1, 1]} : vector<2x18x24x16xf32> to vector<2x16x16x16xf32>
    %41 = vector.shape_cast %40 : vector<2x16x16x16xf32> to vector<512x16xf32>
    %42 = vector.extract_strided_slice %31 {offsets = [0, 1, 2, 0], sizes = [2, 16, 16, 16], strides = [1, 1, 1, 1]} : vector<2x18x24x16xf32> to vector<2x16x16x16xf32>
    %43 = vector.shape_cast %42 : vector<2x16x16x16xf32> to vector<512x16xf32>
    %44 = vector.extract_strided_slice %31 {offsets = [0, 2, 0, 0], sizes = [2, 16, 16, 16], strides = [1, 1, 1, 1]} : vector<2x18x24x16xf32> to vector<2x16x16x16xf32>
    %45 = vector.shape_cast %44 : vector<2x16x16x16xf32> to vector<512x16xf32>
    %46 = vector.extract_strided_slice %31 {offsets = [0, 2, 1, 0], sizes = [2, 16, 16, 16], strides = [1, 1, 1, 1]} : vector<2x18x24x16xf32> to vector<2x16x16x16xf32>
    %47 = vector.shape_cast %46 : vector<2x16x16x16xf32> to vector<512x16xf32>
    %48 = vector.extract_strided_slice %31 {offsets = [0, 2, 2, 0], sizes = [2, 16, 16, 16], strides = [1, 1, 1, 1]} : vector<2x18x24x16xf32> to vector<2x16x16x16xf32>
    %49 = vector.shape_cast %48 : vector<2x16x16x16xf32> to vector<512x16xf32>
    %50 = tpu.concatenate %33, %35, %37, %39, %41, %43, %45, %47, %49 in 1 : vector<512x16xf32>, vector<512x16xf32>, vector<512x16xf32>, vector<512x16xf32>, vector<512x16xf32>, vector<512x16xf32>, vector<512x16xf32>, vector<512x16xf32>, vector<512x16xf32> -> vector<512x144xf32>
    %c0_18 = arith.constant 0 : index
    %c0_19 = arith.constant 0 : index
    %51 = vector.load %arg3[%c0_18, %c0_19] : memref<144x4xf32, #tpu.memory_space<vmem>>, vector<144x4xf32>
    %cst_20 = arith.constant dense<0.000000e+00> : vector<512x4xf32>
    %52 = tpu.matmul %50, %51, %cst_20 {dimension_numbers = #tpu.dot_dimension_numbers<[1], [0], [0], [1], [0, 0, 1, 1], [], []>} : vector<512x144xf32>, vector<144x4xf32>, vector<512x4xf32> -> vector<512x4xf32>
    %cst_21 = arith.constant dense<0.000000e+00> : vector<4xf32>
    %53 = vector.multi_reduction <add>, %52, %cst_21 [0] : vector<512x4xf32> to vector<4xf32>
    %54 = vector.shape_cast %53 : vector<4xf32> to vector<1x4xf32>
    %55 = arith.mulf %52, %52 : vector<512x4xf32>
    %cst_22 = arith.constant dense<0.000000e+00> : vector<4xf32>
    %56 = vector.multi_reduction <add>, %55, %cst_22 [0] : vector<512x4xf32> to vector<4xf32>
    %57 = vector.shape_cast %56 : vector<4xf32> to vector<1x4xf32>
    %cst_23 = arith.constant 0.001953125 : f32
    %58 = vector.broadcast %cst_23 : f32 to vector<1x4xf32>
    %59 = arith.mulf %54, %58 : vector<1x4xf32>
    %cst_24 = arith.constant 0.001953125 : f32
    %60 = vector.broadcast %cst_24 : f32 to vector<1x4xf32>
    %61 = arith.mulf %57, %60 : vector<1x4xf32>
    %62 = arith.mulf %59, %59 : vector<1x4xf32>
    %63 = arith.subf %61, %62 : vector<1x4xf32>
    %64 = vector.broadcast %59 : vector<1x4xf32> to vector<512x4xf32>
    %65 = arith.subf %52, %64 : vector<512x4xf32>
    %cst_25 = arith.constant 9.99999974E-6 : f32
    %66 = vector.broadcast %cst_25 : f32 to vector<1x4xf32>
    %67 = arith.addf %63, %66 : vector<1x4xf32>
    %68 = math.rsqrt %67 : vector<1x4xf32>
    %69 = vector.broadcast %68 : vector<1x4xf32> to vector<512x4xf32>
    %70 = arith.mulf %65, %69 : vector<512x4xf32>
    %c0_26 = arith.constant 0 : index
    %c0_27 = arith.constant 0 : index
    %71 = vector.load %arg6[%c0_26, %c0_27] : memref<1x4xf32, #tpu.memory_space<vmem>>, vector<1x4xf32>
    %72 = vector.broadcast %71 : vector<1x4xf32> to vector<512x4xf32>
    %73 = arith.mulf %70, %72 : vector<512x4xf32>
    %c0_28 = arith.constant 0 : index
    %c0_29 = arith.constant 0 : index
    %74 = vector.load %arg7[%c0_28, %c0_29] : memref<1x4xf32, #tpu.memory_space<vmem>>, vector<1x4xf32>
    %75 = vector.broadcast %74 : vector<1x4xf32> to vector<512x4xf32>
    %76 = arith.addf %73, %75 : vector<512x4xf32>
    %77 = vector.extract_strided_slice %0 {offsets = [0, 1, 1, 0], sizes = [2, 16, 16, 4], strides = [1, 1, 1, 1]} : vector<2x18x24x4xf32> to vector<2x16x16x4xf32>
    %78 = vector.shape_cast %77 : vector<2x16x16x4xf32> to vector<512x4xf32>
    %79 = arith.addf %76, %78 : vector<512x4xf32>
    %80 = vector.shape_cast %79 : vector<512x4xf32> to vector<2x16x16x4xf32>
    %c0_30 = arith.constant 0 : index
    %c0_31 = arith.constant 0 : index
    %c0_32 = arith.constant 0 : index
    %c0_33 = arith.constant 0 : index
    %81 = vector.load %arg8[%c0_30, %c0_31, %c0_32, %c0_33] : memref<2x16x16x4xf32, #tpu.memory_space<vmem>>, vector<2x16x16x4xf32>
    tpu.vector_store %arg8[%c0_30, %c0_31, %c0_32, %c0_33], %80 {strides = array<i32>} : memref<2x16x16x4xf32, #tpu.memory_space<vmem>>, vector<2x16x16x4xf32>,
    return
  }
}

</mosaic_0001>

<bundles_post_ra>
// kernel: residual_block_forward.1
= control target key start
LH: loop header
LB: loop body
LE: loop exit
PB: predicated region body
PF: predicated region fallthrough
CT: control target
= control target key end

     0   :  { %vm463_vm0 = vcmask 1043456   ;;  %vm138_vm1 = vcmask 31744   ;;  %vm2333_vm2 = vcmask 1046528   ;;  %vm1072_vm3 = vcmask 130048   ;;  %s7665_s22 = smov 48   ;;  %s7666_s28 = smov 96   ;;  %s16113_s2 = inlined_call_operand.vmem [shape: f32[4,16], index: 2, kind: input, shape index: {}]   ;;  %s16114_s0 = inlined_call_operand.vmem [shape: f32[2,18,24,4], index: 0, kind: input, shape index: {}]   ;;  %s16115_s4 = inlined_call_operand.vmem [shape: f32[1,16], index: 4, kind: input, shape index: {}]   ;;  %s16116_s5 = inlined_call_operand.vmem [shape: f32[1,16], index: 5, kind: input, shape index: {}]   ;;  %s16117_s1 = inlined_call_operand.vmem [shape: f32[1,18,24,16], index: 1, kind: input, shape index: {}]   ;;  %s16118_s3 = inlined_call_operand.vmem [shape: f32[144,4], index: 3, kind: input, shape index: {}]   ;;  %s16119_s6 = inlined_call_operand.vmem [shape: f32[1,4], index: 6, kind: input, shape index: {}]   ;;  %s16120_s7 = inlined_call_operand.vmem [shape: f32[1,4], index: 7, kind: input, shape index: {}]   ;;  %s16121_s8 = inlined_call_operand.vmem [shape: f32[2,16,16,4], index: 8, kind: output, shape index: {}]  }
   0x1   :  { %v137_v0 = vld [vmem:[%s16113_s2] sm:$0xf]  ;;  %v30_v2 = vld [vmem:[%s16114_s0 + $0x8] sm:$0xff]  ;;  %v31_v3 = vld [vmem:[%s16114_s0 + $0x10] sm:$0xff]  ;;  %vm2494_vm4 = vcmask 1045504   ;;  %s7667_s9 = smov 16  }
   0x2   :  { %v29_v1 = vld [vmem:[%s16114_s0] sm:$0xff]  ;;  %6284 = vmatprep.subr.msk.mxu0 %vm463_vm0, %v137_v0  ;;  %v32_v4 = vld [vmem:[%s16114_s0 + $0x18] sm:$0xff]  ;;  %v34_v8 = vld [vmem:[%s16114_s0 + $0x28] sm:$0xff]  ;;  %s7669_s26 = smov 32   ;;  %s7671_s17 = smov 112   ;;  %vm4115_vm5 = vcmask 261120  }
   0x3   :  { %6286 = vmatprep.mubr.msk.f32.mxu0 %vm138_vm1, %v29_v1  ;;  %v33_v5 = vld [vmem:[%s16114_s0 + $0x20] sm:$0xff]  ;;  %6285 = vmatpush3.msk.msra.mxu0 %vm463_vm0, %v137_v0  ;;  %v5642_v6 = vrot.slane %v32_v4, 1  ;;  %v7743_v9 = vld [vmem:[%s16114_s0 + $0x30] sm:$0xff]  ;;  %v7748_v10 = vld [vmem:[%s16114_s0 + $0x38] sm:$0xff]  ;;  %v5645_v11 = vrot.slane %v34_v8, 1  ;;  %vm4180_vm6 = vcmask 392192  }
   0x4   :  { %v5643_v7 = vrot.slane %v33_v5, 1  ;;  %6287 = vmatmul.mubr.msk.f32.vlgmr.msra.gmra.mxu0 %vm138_vm1, %v30_v2  ;;  %v5647_v12 = vrot.slane %v7743_v9, 1  ;;  %v5648_v13 = vrot.slane %v7748_v10, 1  ;;  %v7756_v14 = vld [vmem:[%s16114_s0 + $0x40] sm:$0xff]  ;;  %v7761_v15 = vld [vmem:[%s16114_s0 + $0x48] sm:$0xff]  ;;  %v7766_v16 = vld [vmem:[%s16114_s0 + $0x50] sm:$0xff] }
   0x5   :  { %6289 = vmatprep.mubr.msk.f32.mxu0 %vm138_vm1, %v31_v3  ;;  %v5650_v18 = vrot.slane %v7756_v14, 1  ;;  %v5652_v19 = vrot.slane %v7761_v15, 1  ;;  %v5653_v20 = vrot.slane %v7766_v16, 1  ;;  %v7778_v21 = vld [vmem:[%s16114_s0 + $0x58] sm:$0xff]  ;;  %v7783_v22 = vld [vmem:[%s16114_s0 + $0x60] sm:$0xff]  ;;  %v7796_v27 = vld [vmem:[%s16114_s0 + $0x68] sm:$0xff] }
   0x6   :  { %v7770_v17 = vsel %vm2333_vm2, %v5642_v6, %v5643_v7  ;;  %v7786_v23 = vsel %vm2333_vm2, %v5643_v7, %v5645_v11  ;;  %v7789_v24 = vsel %vm2333_vm2, %v5647_v12, %v5648_v13  ;;  %v5655_v25 = vrot.slane %v7778_v21, 1  ;;  %v7801_v28 = vld [vmem:[%s16114_s0 + $0x70] sm:$0xff]  ;;  %v7814_v33 = vld [vmem:[%s16114_s0 + $0x78] sm:$0xff]  ;;  %v7819_v34 = vld [vmem:[%s16114_s0 + $0x80] sm:$0xff] }
   0x7   :  { %16737 = vst [vmem:[#allocation2_spill] sm:$0xff] %v7770_v17  ;;  %16738 = vst [vmem:[#allocation3_spill] sm:$0xff] %v7786_v23  ;;  %v5657_v26 = vrot.slane %v7783_v22, 1  ;;  %v7804_v29 = vsel %vm2333_vm2, %v5648_v13, %v5650_v18  ;;  %v7807_v30 = vsel %vm2333_vm2, %v5652_v19, %v5653_v20  ;;  %v5658_v31 = vrot.slane %v7796_v27, 1  ;;  %v7824_v35 = vld [vmem:[%s16114_s0 + $0x88] sm:$0xff]  ;;  %v7836_v40 = vld [vmem:[%s16114_s0 + $0x90] sm:$0xff] }
   0x8   :  { %16739 = vst [vmem:[#allocation4_spill] sm:$0xff] %v7789_v24  ;;  %16740 = vst [vmem:[#allocation5_spill] sm:$0xff] %v7804_v29  ;;  %v5660_v32 = vrot.slane %v7801_v28, 1  ;;  %6290 = vmatmul.mubr.msk.f32.gmra.mxu0 %vm138_vm1, %v32_v4  ;;  %v7828_v36 = vsel %vm2333_vm2, %v5653_v20, %v5655_v25  ;;  %v5662_v37 = vrot.slane %v7814_v33, 1  ;;  %v5663_v38 = vrot.slane %v7819_v34, 1  ;;  %v7841_v41 = vld [vmem:[%s16114_s0 + $0x98] sm:$0xff] }
   0x9   :  { %16741 = vst [vmem:[#allocation6_spill] sm:$0xff] %v7807_v30  ;;  %16742 = vst [vmem:[#allocation7_spill] sm:$0xff] %v7828_v36  ;;  %v5665_v39 = vrot.slane %v7824_v35, 1  ;;  %6292 = vmatprep.mubr.msk.f32.mxu0 %vm138_vm1, %v33_v5  ;;  %v7845_v42 = vsel %vm2333_vm2, %v5657_v26, %v5658_v31  ;;  %v5667_v44 = vrot.slane %v7836_v40, 1  ;;  %v5668_v45 = vrot.slane %v7841_v41, 1  ;;  %v7855_v46 = vld [vmem:[%s16114_s0 + $0xa0] sm:$0xff] }
   0xa   :  { %16743 = vst [vmem:[#allocation8_spill] sm:$0xff] %v7845_v42  ;;  %v7848_v43 = vsel %vm2333_vm2, %v5658_v31, %v5660_v32  ;;  %v7860_v47 = vld [vmem:[%s16114_s0 + $0xa8] sm:$0xff]  ;;  %v7863_v48 = vsel %vm2333_vm2, %v5662_v37, %v5663_v38  ;;  %v5670_v50 = vrot.slane %v7855_v46, 1  ;;  %v7873_v52 = vld [vmem:[%s16114_s0 + $0xb0] sm:$0xff]  ;;  %v7878_v53 = vld [vmem:[%s16114_s0 + $0xb8] sm:$0xff]  ;;  %vm4245_vm7 = vcmask 523264  }
   0xb   :  { %16744 = vst [vmem:[#allocation9_spill] sm:$0xff] %v7848_v43  ;;  %16745 = vst [vmem:[#allocation10_spill] sm:$0xff] %v7863_v48  ;;  %v7866_v49 = vsel %vm2333_vm2, %v5663_v38, %v5665_v39  ;;  %v5672_v51 = vrot.slane %v7860_v47, 1  ;;  %v7883_v54 = vld [vmem:[%s16114_s0 + $0xc0] sm:$0xff]  ;;  %v7886_v55 = vsel %vm2333_vm2, %v5667_v44, %v5668_v45  ;;  %v5673_v56 = vrot.slane %v7873_v52, 1  ;;  %v7894_v59 = vld [vmem:[%s16114_s0 + $0xc8] sm:$0xff] }
   0xc   :  { %16746 = vst [vmem:[#allocation11_spill] sm:$0xff] %v7866_v49  ;;  %16747 = vst [vmem:[#allocation12_spill] sm:$0xff] %v7886_v55  ;;  %v5675_v57 = vrot.slane %v7878_v53, 1  ;;  %v5677_v58 = vrot.slane %v7883_v54, 1  ;;  %v7899_v60 = vld [vmem:[%s16114_s0 + $0xd0] sm:$0xff]  ;;  %v7904_v61 = vld [vmem:[%s16114_s0 + $0xd8] sm:$0xff]  ;;  %6293 = vmatmul.mubr.msk.f32.gmra.mxu0 %vm138_vm1, %v34_v8  ;;  %v7908_v62 = vsel %vm2333_vm2, %v5668_v45, %v5670_v50 }
   0xd   :  { %16748 = vst [vmem:[#allocation13_spill] sm:$0xff] %v7908_v62  ;;  %v5678_v63 = vrot.slane %v7894_v59, 1  ;;  %v5680_v0 = vrot.slane %v7899_v60, 1  ;;  %v5682_v1 = vrot.slane %v7904_v61, 1  ;;  %v57_v2 = vld [vmem:[%s16114_s0 + $0xe0] sm:$0xff]  ;;  %v58_v3 = vld [vmem:[%s16114_s0 + $0xe8] sm:$0xff]  ;;  %6295 = vmatprep.mubr.msk.f32.mxu0 %vm138_vm1, %v7743_v9  ;;  %v7922_v4 = vsel %vm2333_vm2, %v5672_v51, %v5673_v56 }
   0xe   :  { %16749 = vst [vmem:[#allocation14_spill] sm:$0xff] %v7922_v4  ;;  %v7925_v5 = vsel %vm2333_vm2, %v5673_v56, %v5675_v57  ;;  %v5683_v6 = vrot.slane %v57_v2, 1  ;;  %v5685_v7 = vrot.slane %v58_v3, 1  ;;  %v59_v8 = vld [vmem:[%s16114_s0 + $0xf0] sm:$0xff]  ;;  %v60_v11 = vld [vmem:[%s16114_s0 + $0xf8] sm:$0xff]  ;;  %v61_v19 = vld [vmem:[%s16114_s0 + $0x100] sm:$0xff] }
   0xf   :  { %16750 = vst [vmem:[#allocation15_spill] sm:$0xff] %v7925_v5  ;;  %v7934_v12 = vsel %vm2333_vm2, %v5677_v58, %v5678_v63  ;;  %v7937_v9 = vsel %vm2333_vm2, %v5678_v63, %v5680_v0  ;;  %v5687_v13 = vrot.slane %v59_v8, 1  ;;  %v5688_v18 = vrot.slane %v60_v11, 1  ;;  %v62_v20 = vld [vmem:[%s16114_s0 + $0x108] sm:$0xff]  ;;  %v63_v37 = vld [vmem:[%s16114_s0 + $0x110] sm:$0xff]  ;;  %v64_v38 = vld [vmem:[%s16114_s0 + $0x118] sm:$0xff] }
  0x10   :  { %16751 = vst [vmem:[#allocation16_spill] sm:$0xff] %v7934_v12  ;;  %16752 = vst [vmem:[#allocation17_spill] sm:$0xff] %v7937_v9  ;;  %v7946_v25 = vsel %vm2333_vm2, %v5682_v1, %v5683_v6  ;;  %v7949_v26 = vsel %vm2333_vm2, %v5683_v6, %v5685_v7  ;;  %v5690_v31 = vrot.slane %v61_v19, 1  ;;  %v5692_v32 = vrot.slane %v62_v20, 1  ;;  %v65_v39 = vld [vmem:[%s16114_s0 + $0x120] sm:$0xff]  ;;  %6296 = vmatmul.mubr.msk.f32.gmra.mxu0 %vm138_vm1, %v7748_v10  ;;  %v66_v56 = vld [vmem:[%s16114_s0 + $0x128] sm:$0xff] }
  0x11   :  { %16753 = vst [vmem:[#allocation18_spill] sm:$0xff] %v7946_v25  ;;  %16754 = vst [vmem:[#allocation19_spill] sm:$0xff] %v7949_v26  ;;  %v7963_v44 = vsel %vm2333_vm2, %v5687_v13, %v5688_v18  ;;  %v5693_v45 = vrot.slane %v63_v37, 1  ;;  %v5695_v50 = vrot.slane %v64_v38, 1  ;;  %v5697_v51 = vrot.slane %v65_v39, 1  ;;  %v67_v57 = vld [vmem:[%s16114_s0 + $0x130] sm:$0xff]  ;;  %6298 = vmatprep.mubr.msk.f32.mxu0 %vm138_vm1, %v7756_v14 }
  0x12   :  { %16755 = vst [vmem:[#allocation20_spill] sm:$0xff] %v7963_v44  ;;  %v68_v58 = vld [vmem:[%s16114_s0 + $0x138] sm:$0xff]  ;;  %v7977_v10 = vsel %vm2333_vm2, %v5688_v18, %v5690_v31  ;;  %v5698_v63 = vrot.slane %v66_v56, 1  ;;  %v5700_v0 = vrot.slane %v67_v57, 1  ;;  %v7982_v6 = vld [vmem:[%s16114_s0 + $0x140] sm:$0xff]  ;;  %vm4310_vm8 = vcmask 654336  }
  0x13   :  { %16756 = vst [vmem:[#allocation21_spill] sm:$0xff] %v7977_v10  ;;  %v5702_v1 = vrot.slane %v68_v58, 1  ;;  %16757 = vst [vmem:[#allocation22_spill] sm:$0xff] %v7982_v6  ;;  %v7985_v7 = vsel %vm2333_vm2, %v5692_v32, %v5693_v45  ;;  %v7988_v13 = vsel %vm2333_vm2, %v5693_v45, %v5695_v50  ;;  %v16122_v44 = vrot.slane %v7982_v6, 1  ;;  %v95_v32 = vld [vmem:[%s16114_s0 + $0x210] sm:$0xff]  ;;  %v100_v50 = vld [vmem:[%s16114_s0 + $0x238] sm:$0xff] }
  0x14   :  { %16758 = vst [vmem:[#allocation23_spill] sm:$0xff] %v7985_v7  ;;  %16759 = vst [vmem:[#allocation24_spill] sm:$0xff] %v7988_v13  ;;  %v7992_v14 = vsel %vm2333_vm2, %v5697_v51, %v5698_v63  ;;  %v7995_v18 = vsel %vm2333_vm2, %v5698_v63, %v5700_v0  ;;  %6299 = vmatmul.mubr.msk.f32.gmra.mxu0 %vm138_vm1, %v7761_v15  ;;  %v70_v15 = vld [vmem:[%s16114_s0 + $0x148] sm:$0xff]  ;;  %v99_v45 = vld [vmem:[%s16114_s0 + $0x230] sm:$0xff]  ;;  %vm4375_vm9 = vcmask 785408   ;;  %vm4440_vm10 = vcmask 916480  }
  0x15   :  { %16760 = vst [vmem:[#allocation25_spill] sm:$0xff] %v7992_v14  ;;  %16761 = vst [vmem:[#allocation26_spill] sm:$0xff] %v7995_v18  ;;  %v8002_v31 = vsel %vm2333_vm2, %v5702_v1, %v16122_v44  ;;  %6301 = vmatprep.mubr.msk.f32.mxu0 %vm138_vm1, %v7766_v16  ;;  %v71_v16 = vld [vmem:[%s16114_s0 + $0x150] sm:$0xff]  ;;  %v101_v51 = vld [vmem:[%s16114_s0 + $0x240] sm:$0xff] }
  0x16   :  { %16762 = vst [vmem:[#allocation27_spill] sm:$0xff] %v8002_v31  ;;  %v105_v63 = vld [vmem:[%s16114_s0 + $0x260] sm:$0xff]  ;;  %v106_v0 = vld [vmem:[%s16114_s0 + $0x268] sm:$0xff]  ;;  %v107_v1 = vld [vmem:[%s16114_s0 + $0x270] sm:$0xff] }
  0x18   :  { %6302 = vmatmul.mubr.msk.f32.gmra.mxu0 %vm138_vm1, %v7778_v21  ;;  %v72_v21 = vld [vmem:[%s16114_s0 + $0x158] sm:$0xff] }
  0x19   :  { %6304 = vmatprep.mubr.msk.f32.mxu0 %vm138_vm1, %v7783_v22  ;;  %v73_v22 = vld [vmem:[%s16114_s0 + $0x160] sm:$0xff] }
  0x1c   :  { %6305 = vmatmul.mubr.msk.f32.gmra.mxu0 %vm138_vm1, %v7796_v27  ;;  %v74_v27 = vld [vmem:[%s16114_s0 + $0x168] sm:$0xff] }
  0x1d   :  { %6307 = vmatprep.mubr.msk.f32.mxu0 %vm138_vm1, %v7801_v28  ;;  %v75_v28 = vld [vmem:[%s16114_s0 + $0x170] sm:$0xff] }
  0x20   :  { %6308 = vmatmul.mubr.msk.f32.gmra.mxu0 %vm138_vm1, %v7814_v33  ;;  %v76_v33 = vld [vmem:[%s16114_s0 + $0x178] sm:$0xff] }
  0x21   :  { %6310 = vmatprep.mubr.msk.f32.mxu0 %vm138_vm1, %v7819_v34  ;;  %v77_v34 = vld [vmem:[%s16114_s0 + $0x180] sm:$0xff] }
  0x24   :  { %6311 = vmatmul.mubr.msk.f32.gmra.mxu0 %vm138_vm1, %v7824_v35  ;;  %v78_v35 = vld [vmem:[%s16114_s0 + $0x188] sm:$0xff] }
  0x25   :  { %6313 = vmatprep.mubr.msk.f32.mxu0 %vm138_vm1, %v7836_v40  ;;  %v79_v40 = vld [vmem:[%s16114_s0 + $0x190] sm:$0xff] }
  0x28   :  { %6314 = vmatmul.mubr.msk.f32.gmra.mxu0 %vm138_vm1, %v7841_v41  ;;  %v80_v41 = vld [vmem:[%s16114_s0 + $0x198] sm:$0xff] }
  0x29   :  { %6316 = vmatprep.mubr.msk.f32.mxu0 %vm138_vm1, %v7855_v46  ;;  %v81_v46 = vld [vmem:[%s16114_s0 + $0x1a0] sm:$0xff] }
  0x2c   :  { %6317 = vmatmul.mubr.msk.f32.gmra.mxu0 %vm138_vm1, %v7860_v47  ;;  %v82_v47 = vld [vmem:[%s16114_s0 + $0x1a8] sm:$0xff] }
  0x2d   :  { %6319 = vmatprep.mubr.msk.f32.mxu0 %vm138_vm1, %v7873_v52  ;;  %v83_v52 = vld [vmem:[%s16114_s0 + $0x1b0] sm:$0xff] }
  0x30   :  { %6320 = vmatmul.mubr.msk.f32.gmra.mxu0 %vm138_vm1, %v7878_v53  ;;  %v84_v53 = vld [vmem:[%s16114_s0 + $0x1b8] sm:$0xff] }
  0x31   :  { %6322 = vmatprep.mubr.msk.f32.mxu0 %vm138_vm1, %v7883_v54  ;;  %v85_v54 = vld [vmem:[%s16114_s0 + $0x1c0] sm:$0xff] }
  0x34   :  { %6323 = vmatmul.mubr.msk.f32.gmra.mxu0 %vm138_vm1, %v7894_v59  ;;  %v86_v59 = vld [vmem:[%s16114_s0 + $0x1c8] sm:$0xff] }
  0x35   :  { %6325 = vmatprep.mubr.msk.f32.mxu0 %vm138_vm1, %v7899_v60  ;;  %v87_v60 = vld [vmem:[%s16114_s0 + $0x1d0] sm:$0xff] }
  0x38   :  { %6326 = vmatmul.mubr.msk.f32.gmra.mxu0 %vm138_vm1, %v7904_v61  ;;  %v88_v61 = vld [vmem:[%s16114_s0 + $0x1d8] sm:$0xff] }
  0x39   :  { %6328 = vmatprep.mubr.msk.f32.mxu0 %vm138_vm1, %v57_v2  ;;  %v89_v2 = vld [vmem:[%s16114_s0 + $0x1e0] sm:$0xff] }
  0x3c   :  { %6329 = vmatmul.mubr.msk.f32.gmra.mxu0 %vm138_vm1, %v58_v3  ;;  %v90_v3 = vld [vmem:[%s16114_s0 + $0x1e8] sm:$0xff] }
  0x3d   :  { %6331 = vmatprep.mubr.msk.f32.mxu0 %vm138_vm1, %v59_v8  ;;  %v91_v8 = vld [vmem:[%s16114_s0 + $0x1f0] sm:$0xff] }
  0x40   :  { %6332 = vmatmul.mubr.msk.f32.gmra.mxu0 %vm138_vm1, %v60_v11  ;;  %v92_v11 = vld [vmem:[%s16114_s0 + $0x1f8] sm:$0xff] }
  0x41   :  { %6334 = vmatprep.mubr.msk.f32.mxu0 %vm138_vm1, %v61_v19  ;;  %v93_v19 = vld [vmem:[%s16114_s0 + $0x200] sm:$0xff] }
  0x44   :  { %6335 = vmatmul.mubr.msk.f32.gmra.mxu0 %vm138_vm1, %v62_v20  ;;  %v94_v20 = vld [vmem:[%s16114_s0 + $0x208] sm:$0xff] }
  0x45   :  { %6337 = vmatprep.mubr.msk.f32.mxu0 %vm138_vm1, %v63_v37  ;;  %v96_v37 = vld [vmem:[%s16114_s0 + $0x218] sm:$0xff] }
  0x48   :  { %6338 = vmatmul.mubr.msk.f32.gmra.mxu0 %vm138_vm1, %v64_v38  ;;  %v97_v38 = vld [vmem:[%s16114_s0 + $0x220] sm:$0xff] }
  0x49   :  { %6340 = vmatprep.mubr.msk.f32.mxu0 %vm138_vm1, %v65_v39  ;;  %v98_v39 = vld [vmem:[%s16114_s0 + $0x228] sm:$0xff] }
  0x4c   :  { %6341 = vmatmul.mubr.msk.f32.gmra.mxu0 %vm138_vm1, %v66_v56  ;;  %v102_v56 = vld [vmem:[%s16114_s0 + $0x248] sm:$0xff] }
  0x4d   :  { %6343 = vmatprep.mubr.msk.f32.mxu0 %vm138_vm1, %v67_v57  ;;  %v103_v57 = vld [vmem:[%s16114_s0 + $0x250] sm:$0xff] }
  0x50   :  { %6344 = vmatmul.mubr.msk.f32.gmra.mxu0 %vm138_vm1, %v68_v58  ;;  %v104_v58 = vld [vmem:[%s16114_s0 + $0x258] sm:$0xff] }
  0x51   :  { %6346 = vmatprep.mubr.msk.f32.mxu0 %vm138_vm1, %v7982_v6 }
  0x54   :  { %6347 = vmatmul.mubr.msk.f32.gmra.mxu0 %vm138_vm1, %v70_v15  ;;  %v108_v15 = vld [vmem:[%s16114_s0 + $0x278] sm:$0xff] }
  0x55   :  { %6349 = vmatprep.mubr.msk.f32.mxu0 %vm138_vm1, %v71_v16  ;;  %v109_v16 = vld [vmem:[%s16114_s0 + $0x280] sm:$0xff] }
  0x58   :  { %6350 = vmatmul.mubr.msk.f32.gmra.mxu0 %vm138_vm1, %v72_v21  ;;  %v110_v21 = vld [vmem:[%s16114_s0 + $0x288] sm:$0xff] }
  0x59   :  { %6352 = vmatprep.mubr.msk.f32.mxu0 %vm138_vm1, %v73_v22  ;;  %v111_v22 = vld [vmem:[%s16114_s0 + $0x290] sm:$0xff] }
  0x5c   :  { %6353 = vmatmul.mubr.msk.f32.gmra.mxu0 %vm138_vm1, %v74_v27  ;;  %v112_v27 = vld [vmem:[%s16114_s0 + $0x298] sm:$0xff] }
  0x5d   :  { %6355 = vmatprep.mubr.msk.f32.mxu0 %vm138_vm1, %v75_v28  ;;  %v113_v28 = vld [vmem:[%s16114_s0 + $0x2a0] sm:$0xff] }
  0x60   :  { %6356 = vmatmul.mubr.msk.f32.gmra.mxu0 %vm138_vm1, %v76_v33  ;;  %v114_v33 = vld [vmem:[%s16114_s0 + $0x2a8] sm:$0xff] }
  0x61   :  { %6358 = vmatprep.mubr.msk.f32.mxu0 %vm138_vm1, %v77_v34  ;;  %v115_v34 = vld [vmem:[%s16114_s0 + $0x2b0] sm:$0xff] }
  0x64   :  { %6359 = vmatmul.mubr.msk.f32.gmra.mxu0 %vm138_vm1, %v78_v35  ;;  %v116_v35 = vld [vmem:[%s16114_s0 + $0x2b8] sm:$0xff] }
  0x65   :  { %6361 = vmatprep.mubr.msk.f32.mxu0 %vm138_vm1, %v79_v40  ;;  %v117_v40 = vld [vmem:[%s16114_s0 + $0x2c0] sm:$0xff] }
  0x68   :  { %6362 = vmatmul.mubr.msk.f32.gmra.mxu0 %vm138_vm1, %v80_v41  ;;  %v118_v41 = vld [vmem:[%s16114_s0 + $0x2c8] sm:$0xff] }
  0x69   :  { %6364 = vmatprep.mubr.msk.f32.mxu0 %vm138_vm1, %v81_v46  ;;  %v119_v46 = vld [vmem:[%s16114_s0 + $0x2d0] sm:$0xff] }
  0x6c   :  { %6365 = vmatmul.mubr.msk.f32.gmra.mxu0 %vm138_vm1, %v82_v47  ;;  %v120_v47 = vld [vmem:[%s16114_s0 + $0x2d8] sm:$0xff] }
  0x6d   :  { %6367 = vmatprep.mubr.msk.f32.mxu0 %vm138_vm1, %v83_v52  ;;  %v121_v52 = vld [vmem:[%s16114_s0 + $0x2e0] sm:$0xff] }
  0x70   :  { %6368 = vmatmul.mubr.msk.f32.gmra.mxu0 %vm138_vm1, %v84_v53  ;;  %v122_v53 = vld [vmem:[%s16114_s0 + $0x2e8] sm:$0xff] }
  0x71   :  { %6370 = vmatprep.mubr.msk.f32.mxu0 %vm138_vm1, %v85_v54  ;;  %v123_v54 = vld [vmem:[%s16114_s0 + $0x2f0] sm:$0xff] }
  0x74   :  { %6371 = vmatmul.mubr.msk.f32.gmra.mxu0 %vm138_vm1, %v86_v59  ;;  %v124_v59 = vld [vmem:[%s16114_s0 + $0x2f8] sm:$0xff] }
  0x75   :  { %6373 = vmatprep.mubr.msk.f32.mxu0 %vm138_vm1, %v87_v60  ;;  %v125_v60 = vld [vmem:[%s16114_s0 + $0x300] sm:$0xff] }
  0x78   :  { %6374 = vmatmul.mubr.msk.f32.gmra.mxu0 %vm138_vm1, %v88_v61  ;;  %v126_v61 = vld [vmem:[%s16114_s0 + $0x308] sm:$0xff] }
  0x79   :  { %6376 = vmatprep.mubr.msk.f32.mxu0 %vm138_vm1, %v89_v2  ;;  %v127_v2 = vld [vmem:[%s16114_s0 + $0x310] sm:$0xff] }
  0x7c   :  { %6377 = vmatmul.mubr.msk.f32.gmra.mxu0 %vm138_vm1, %v90_v3 }
  0x7d   :  { %6379 = vmatprep.mubr.msk.f32.mxu0 %vm138_vm1, %v91_v8  ;;  %v128_v8 = vld [vmem:[%s16114_s0 + $0x318] sm:$0xff] }
  0x80   :  { %6380 = vmatmul.mubr.msk.f32.gmra.mxu0 %vm138_vm1, %v92_v11 }
  0x81   :  { %6382 = vmatprep.mubr.msk.f32.mxu0 %vm138_vm1, %v93_v19  ;;  %v129_v19 = vld [vmem:[%s16114_s0 + $0x320] sm:$0xff] }
  0x84   :  { %6383 = vmatmul.mubr.msk.f32.gmra.mxu0 %vm138_vm1, %v94_v20 }
  0x85   :  { %6385 = vmatprep.mubr.msk.f32.mxu0 %vm138_vm1, %v95_v32 }
  0x88   :  { %6386 = vmatmul.mubr.msk.f32.gmra.mxu0 %vm138_vm1, %v96_v37 }
  0x89   :  { %6388 = vmatprep.mubr.msk.f32.mxu0 %vm138_vm1, %v97_v38 }
  0x8c   :  { %6389 = vmatmul.mubr.msk.f32.gmra.mxu0 %vm138_vm1, %v98_v39 }
  0x8d   :  { %6391 = vmatprep.mubr.msk.f32.mxu0 %vm138_vm1, %v99_v45 }
  0x90   :  { %6392 = vmatmul.mubr.msk.f32.gmra.mxu0 %vm138_vm1, %v100_v50  ;;  %v130_v50 = vld [vmem:[%s16114_s0 + $0x328] sm:$0xff] }
  0x91   :  { %6394 = vmatprep.mubr.msk.f32.mxu0 %vm138_vm1, %v101_v51 }
  0x94   :  { %6395 = vmatmul.mubr.msk.f32.gmra.mxu0 %vm138_vm1, %v102_v56 }
  0x95   :  { %6397 = vmatprep.mubr.msk.f32.mxu0 %vm138_vm1, %v103_v57  ;;  %v131_v57 = vld [vmem:[%s16114_s0 + $0x330] sm:$0xff] }
  0x98   :  { %6398 = vmatmul.mubr.msk.f32.gmra.mxu0 %vm138_vm1, %v104_v58 }
  0x99   :  { %6400 = vmatprep.mubr.msk.f32.mxu0 %vm138_vm1, %v105_v63 }
  0x9c   :  { %6401 = vmatmul.mubr.msk.f32.gmra.mxu0 %vm138_vm1, %v106_v0 }
  0x9d   :  { %6403 = vmatprep.mubr.msk.f32.mxu0 %vm138_vm1, %v107_v1 }
  0xa0   :  { %6404 = vmatmul.mubr.msk.f32.gmra.mxu0 %vm138_vm1, %v108_v15 }
  0xa1   :  { %6406 = vmatprep.mubr.msk.f32.mxu0 %vm138_vm1, %v109_v16 }
  0xa4   :  { %6407 = vmatmul.mubr.msk.f32.gmra.mxu0 %vm138_vm1, %v110_v21 }
  0xa5   :  { %6409 = vmatprep.mubr.msk.f32.mxu0 %vm138_vm1, %v111_v22 }
  0xa8   :  { %6410 = vmatmul.mubr.msk.f32.gmra.mxu0 %vm138_vm1, %v112_v27 }
  0xa9   :  { %6412 = vmatprep.mubr.msk.f32.mxu0 %vm138_vm1, %v113_v28  ;;  %v132_v28 = vld [vmem:[%s16114_s0 + $0x338] sm:$0xff] }
  0xac   :  { %6413 = vmatmul.mubr.msk.f32.gmra.mxu0 %vm138_vm1, %v114_v33 }
  0xad   :  { %6415 = vmatprep.mubr.msk.f32.mxu0 %vm138_vm1, %v115_v34 }
  0xb0   :  { %6416 = vmatmul.mubr.msk.f32.gmra.mxu0 %vm138_vm1, %v116_v35 }
  0xb1   :  { %6418 = vmatprep.mubr.msk.f32.mxu0 %vm138_vm1, %v117_v40  ;;  %v133_v40 = vld [vmem:[%s16114_s0 + $0x340] sm:$0xff] }
  0xb4   :  { %6419 = vmatmul.mubr.msk.f32.gmra.mxu0 %vm138_vm1, %v118_v41 }
  0xb5   :  { %6421 = vmatprep.mubr.msk.f32.mxu0 %vm138_vm1, %v119_v46 }
  0xb8   :  { %6422 = vmatmul.mubr.msk.f32.gmra.mxu0 %vm138_vm1, %v120_v47 }
  0xb9   :  { %6424 = vmatprep.mubr.msk.f32.mxu0 %vm138_vm1, %v121_v52 }
  0xbc   :  { %6425 = vmatmul.mubr.msk.f32.gmra.mxu0 %vm138_vm1, %v122_v53 }
  0xbd   :  { %6427 = vmatprep.mubr.msk.f32.mxu0 %vm138_vm1, %v123_v54 }
  0xc0   :  { %6428 = vmatmul.mubr.msk.f32.gmra.mxu0 %vm138_vm1, %v124_v59 }
  0xc1   :  { %6430 = vmatprep.mubr.msk.f32.mxu0 %vm138_vm1, %v125_v60 }
  0xc4   :  { %v8284_v3 = vpop.f32.mrf.mxu0  ;;  %6431 = vmatmul.mubr.msk.f32.gmra.mxu0 %vm138_vm1, %v126_v61 }
  0xc5   :  { %6433 = vmatprep.mubr.msk.f32.mxu0 %vm138_vm1, %v127_v2  ;;  %v1295_v20 = vmul.f32 %v8284_v3, %v8284_v3  ;;  %v1074_v39 = vsel %vm1072_vm3, %v8284_v3, 0.0  ;;  %v134_v2 = vld [vmem:[%s16114_s0 + $0x348] sm:$0xff] }
  0xc6   :  { %v8291_v11 = vpop.f32.mrf.mxu0 }
  0xc7   :  { %v1073_v32 = vsel %vm1072_vm3, %v8291_v11, 0.0  ;;  %v1294_v37 = vmul.f32 %v8291_v11, %v8291_v11  ;;  %v1403_v58 = vsel %vm1072_vm3, %v1295_v20, 0.0 }
  0xc8   :  { %v8302_v38 = vpop.f32.mrf.mxu0  ;;  %6434 = vmatmul.mubr.msk.f32.gmra.mxu0 %vm138_vm1, %v128_v8  ;;  %v1075_v51 = vadd.f32 %v1074_v39, %v1073_v32  ;;  %v135_v32 = vld [vmem:[%s16114_s0 + $0x350] sm:$0xff] }
  0xc9   :  { %v1402_v45 = vsel %vm1072_vm3, %v1294_v37, 0.0  ;;  %6436 = vmatprep.mubr.msk.f32.mxu0 %vm138_vm1, %v129_v19  ;;  %v1297_v63 = vmul.f32 %v8302_v38, %v8302_v38  ;;  %v1078_v22 = vsel %vm1072_vm3, %v8302_v38, 0.0 }
  0xca   :  { %v8312_v56 = vpop.f32.mrf.mxu0  ;;  %v1404_v15 = vadd.f32 %v1403_v58, %v1402_v45 }
  0xcb   :  { %v1076_v0 = vsel %vm1072_vm3, %v8312_v56, 0.0  ;;  %v1296_v1 = vmul.f32 %v8312_v56, %v8312_v56  ;;  %v1407_v41 = vsel %vm1072_vm3, %v1297_v63, 0.0 }
  0xcc   :  { %v1077_v16 = vadd.f32 %v1076_v0, %v1075_v51  ;;  %v8324_v21 = vpop.f32.mrf.mxu0  ;;  %6437 = vmatmul.mubr.msk.f32.gmra.mxu0 %vm138_vm1, %v130_v50 }
  0xcd   :  { %v1405_v27 = vsel %vm1072_vm3, %v1296_v1, 0.0  ;;  %6439 = vmatprep.mubr.msk.f32.mxu0 %vm138_vm1, %v131_v57  ;;  %v1299_v46 = vmul.f32 %v8324_v21, %v8324_v21  ;;  %v1082_v60 = vsel %vm1072_vm3, %v8324_v21, 0.0  ;;  %v136_v1 = vld [vmem:[%s16114_s0 + $0x358] sm:$0xff] }
  0xce   :  { %v1079_v33 = vadd.f32 %v1078_v22, %v1077_v16  ;;  %v1406_v34 = vadd.f32 %v1405_v27, %v1404_v15  ;;  %v8334_v35 = vpop.f32.mrf.mxu0 }
  0xcf   :  { %v1080_v47 = vsel %vm1072_vm3, %v8334_v35, 0.0  ;;  %v1298_v52 = vmul.f32 %v8334_v35, %v8334_v35  ;;  %v1411_v37 = vsel %vm1072_vm3, %v1299_v46, 0.0 }
  0xd0   :  { %v1408_v53 = vadd.f32 %v1407_v41, %v1406_v34  ;;  %v1081_v54 = vadd.f32 %v1080_v47, %v1079_v33  ;;  %v8346_v59 = vpop.f32.mrf.mxu0  ;;  %6440 = vmatmul.mubr.msk.f32.gmra.mxu0 %vm138_vm1, %v132_v28 }
  0xd1   :  { %v1409_v61 = vsel %vm1072_vm3, %v1298_v52, 0.0  ;;  %6442 = vmatprep.mubr.msk.f32.mxu0 %vm138_vm1, %v133_v40  ;;  %v1301_v39 = vmul.f32 %v8346_v59, %v8346_v59  ;;  %v1086_v63 = vsel %vm1072_vm3, %v8346_v59, 0.0 }
  0xd2   :  { %v1083_v8 = vadd.f32 %v1082_v60, %v1081_v54  ;;  %v1410_v19 = vadd.f32 %v1409_v61, %v1408_v53  ;;  %v8356_v20 = vpop.f32.mrf.mxu0 }
  0xd3   :  { %v1084_v45 = vsel %vm1072_vm3, %v8356_v20, 0.0  ;;  %v1300_v50 = vmul.f32 %v8356_v20, %v8356_v20  ;;  %v1415_v27 = vsel %vm1072_vm3, %v1301_v39, 0.0 }
  0xd4   :  { %v1412_v51 = vadd.f32 %v1411_v37, %v1410_v19  ;;  %v1085_v57 = vadd.f32 %v1084_v45, %v1083_v8  ;;  %v8368_v58 = vpop.f32.mrf.mxu0  ;;  %6443 = vmatmul.mubr.msk.f32.gmra.mxu0 %vm138_vm1, %v134_v2 }
  0xd5   :  { %v1413_v0 = vsel %vm1072_vm3, %v1300_v50, 0.0  ;;  %6445 = vmatprep.mubr.msk.f32.mxu0 %vm138_vm1, %v135_v32  ;;  %v1303_v28 = vmul.f32 %v8368_v58, %v8368_v58  ;;  %v1090_v47 = vsel %vm1072_vm3, %v8368_v58, 0.0 }
  0xd6   :  { %v1087_v15 = vadd.f32 %v1086_v63, %v1085_v57  ;;  %v1414_v16 = vadd.f32 %v1413_v0, %v1412_v51  ;;  %v8378_v22 = vpop.f32.mrf.mxu0 }
  0xd7   :  { %v1088_v33 = vsel %vm1072_vm3, %v8378_v22, 0.0  ;;  %v1302_v34 = vmul.f32 %v8378_v22, %v8378_v22  ;;  %v1419_v61 = vsel %vm1072_vm3, %v1303_v28, 0.0 }
  0xd8   :  { %v1416_v40 = vadd.f32 %v1415_v27, %v1414_v16  ;;  %v1089_v41 = vadd.f32 %v1088_v33, %v1087_v15  ;;  %v8387_v46 = vpop.f32.mrf.mxu0  ;;  %6446 = vmatmul.mubr.msk.f32.gmra.mxu0 %vm138_vm1, %v136_v1 }
  0xd9   :  { %v1417_v52 = vsel %vm1072_vm3, %v1302_v34, 0.0  ;;  %v1305_v2 = vmul.f32 %v8387_v46, %v8387_v46  ;;  %v1094_v45 = vsel %vm1072_vm3, %v8387_v46, 0.0 }
  0xda   :  { %v1091_v53 = vadd.f32 %v1090_v47, %v1089_v41  ;;  %v1418_v54 = vadd.f32 %v1417_v52, %v1416_v40  ;;  %v8393_v60 = vpop.f32.mrf.mxu0 }
  0xdb   :  { %v1092_v8 = vsel %vm1072_vm3, %v8393_v60, 0.0  ;;  %v1304_v19 = vmul.f32 %v8393_v60, %v8393_v60  ;;  %v1423_v0 = vsel %vm1072_vm3, %v1305_v2, 0.0 }
  0xdc   :  { %v1420_v32 = vadd.f32 %v1419_v61, %v1418_v54  ;;  %v1093_v37 = vadd.f32 %v1092_v8, %v1091_v53  ;;  %v8402_v39 = vpop.f32.mrf.mxu0 }
  0xdd   :  { %v1421_v50 = vsel %vm1072_vm3, %v1304_v19, 0.0  ;;  %v1307_v1 = vmul.f32 %v8402_v39, %v8402_v39  ;;  %v1098_v34 = vsel %vm1072_vm3, %v8402_v39, 0.0 }
  0xde   :  { %v1095_v51 = vadd.f32 %v1094_v45, %v1093_v37  ;;  %v1422_v57 = vadd.f32 %v1421_v50, %v1420_v32  ;;  %v8407_v63 = vpop.f32.mrf.mxu0 }
  0xdf   :  { %v1096_v15 = vsel %vm1072_vm3, %v8407_v63, 0.0  ;;  %v1306_v16 = vmul.f32 %v8407_v63, %v8407_v63  ;;  %v1427_v53 = vsel %vm1072_vm3, %v1307_v1, 0.0 }
  0xe0   :  { %v1424_v27 = vadd.f32 %v1423_v0, %v1422_v57  ;;  %v1097_v28 = vadd.f32 %v1096_v15, %v1095_v51  ;;  %v8416_v33 = vpop.f32.mrf.mxu0 }
  0xe1   :  { %v1425_v40 = vsel %vm1072_vm3, %v1306_v16, 0.0  ;;  %v1309_v54 = vmul.f32 %v8416_v33, %v8416_v33  ;;  %v1102_v37 = vsel %vm1072_vm3, %v8416_v33, 0.0 }
  0xe2   :  { %v1099_v41 = vadd.f32 %v1098_v34, %v1097_v28  ;;  %v1426_v47 = vadd.f32 %v1425_v40, %v1424_v27  ;;  %v8421_v52 = vpop.f32.mrf.mxu0 }
  0xe3   :  { %v1100_v61 = vsel %vm1072_vm3, %v8421_v52, 0.0  ;;  %v1308_v2 = vmul.f32 %v8421_v52, %v8421_v52  ;;  %v1431_v0 = vsel %vm1072_vm3, %v1309_v54, 0.0 }
  0xe4   :  { %v1428_v8 = vadd.f32 %v1427_v53, %v1426_v47  ;;  %v1101_v19 = vadd.f32 %v1100_v61, %v1099_v41  ;;  %v8430_v32 = vpop.f32.mrf.mxu0 }
  0xe5   :  { %v1429_v45 = vsel %vm1072_vm3, %v1308_v2, 0.0  ;;  %v1311_v1 = vmul.f32 %v8430_v32, %v8430_v32  ;;  %v1106_v40 = vsel %vm1072_vm3, %v8430_v32, 0.0 }
  0xe6   :  { %v1103_v50 = vadd.f32 %v1102_v37, %v1101_v19  ;;  %v1430_v51 = vadd.f32 %v1429_v45, %v1428_v8  ;;  %v8435_v57 = vpop.f32.mrf.mxu0 }
  0xe7   :  { %v1104_v15 = vsel %vm1072_vm3, %v8435_v57, 0.0  ;;  %v1310_v16 = vmul.f32 %v8435_v57, %v8435_v57  ;;  %v1435_v61 = vsel %vm1072_vm3, %v1311_v1, 0.0 }
  0xe8   :  { %v1432_v27 = vadd.f32 %v1431_v0, %v1430_v51  ;;  %v1105_v28 = vadd.f32 %v1104_v15, %v1103_v50  ;;  %v8444_v34 = vpop.f32.mrf.mxu0 }
  0xe9   :  { %v1433_v41 = vsel %vm1072_vm3, %v1310_v16, 0.0  ;;  %v1313_v2 = vmul.f32 %v8444_v34, %v8444_v34  ;;  %v1110_v51 = vsel %vm1072_vm3, %v8444_v34, 0.0 }
  0xea   :  { %v1107_v47 = vadd.f32 %v1106_v40, %v1105_v28  ;;  %v1434_v53 = vadd.f32 %v1433_v41, %v1432_v27  ;;  %v8449_v54 = vpop.f32.mrf.mxu0 }
  0xeb   :  { %v1108_v8 = vsel %vm1072_vm3, %v8449_v54, 0.0  ;;  %v1312_v19 = vmul.f32 %v8449_v54, %v8449_v54  ;;  %v1439_v27 = vsel %vm1072_vm3, %v1313_v2, 0.0 }
  0xec   :  { %v1436_v37 = vadd.f32 %v1435_v61, %v1434_v53  ;;  %v1109_v45 = vadd.f32 %v1108_v8, %v1107_v47  ;;  %v8458_v50 = vpop.f32.mrf.mxu0 }
  0xed   :  { %v1437_v0 = vsel %vm1072_vm3, %v1312_v19, 0.0  ;;  %v1315_v28 = vmul.f32 %v8458_v50, %v8458_v50  ;;  %v1114_v8 = vsel %vm1072_vm3, %v8458_v50, 0.0 }
  0xee   :  { %v1111_v15 = vadd.f32 %v1110_v51, %v1109_v45  ;;  %v1438_v1 = vadd.f32 %v1437_v0, %v1436_v37  ;;  %v8463_v16 = vpop.f32.mrf.mxu0 }
  0xef   :  { %v1112_v40 = vsel %vm1072_vm3, %v8463_v16, 0.0  ;;  %v1314_v41 = vmul.f32 %v8463_v16, %v8463_v16  ;;  %v1443_v51 = vsel %vm1072_vm3, %v1315_v28, 0.0 }
  0xf0   :  { %v1440_v47 = vadd.f32 %v1439_v27, %v1438_v1  ;;  %v1113_v53 = vadd.f32 %v1112_v40, %v1111_v15  ;;  %v8472_v61 = vpop.f32.mrf.mxu0 }
  0xf1   :  { %v1441_v19 = vsel %vm1072_vm3, %v1314_v41, 0.0  ;;  %v1317_v0 = vmul.f32 %v8472_v61, %v8472_v61  ;;  %v1118_v41 = vsel %vm1072_vm3, %v8472_v61, 0.0 }
  0xf2   :  { %v1115_v37 = vadd.f32 %v1114_v8, %v1113_v53  ;;  %v1442_v2 = vadd.f32 %v1441_v19, %v1440_v47  ;;  %v8477_v45 = vpop.f32.mrf.mxu0 }
  0xf3   :  { %v1116_v1 = vsel %vm1072_vm3, %v8477_v45, 0.0  ;;  %v1316_v15 = vmul.f32 %v8477_v45, %v8477_v45  ;;  %v1447_v19 = vsel %vm1072_vm3, %v1317_v0, 0.0 }
  0xf4   :  { %v1444_v27 = vadd.f32 %v1443_v51, %v1442_v2  ;;  %v1117_v40 = vadd.f32 %v1116_v1, %v1115_v37  ;;  %v8486_v44 = vpop.f32.mrf.mxu0 }
  0xf5   :  { %v1445_v47 = vsel %vm1072_vm3, %v1316_v15, 0.0  ;;  %v1319_v31 = vmul.f32 %v8486_v44, %v8486_v44  ;;  %v1122_v15 = vsel %vm1072_vm3, %v8486_v44, 0.0 }
  0xf6   :  { %v1119_v53 = vadd.f32 %v1118_v41, %v1117_v40  ;;  %v1446_v28 = vadd.f32 %v1445_v47, %v1444_v27  ;;  %v8491_v8 = vpop.f32.mrf.mxu0 }
  0xf7   :  { %v1120_v2 = vsel %vm1072_vm3, %v8491_v8, 0.0  ;;  %v1318_v37 = vmul.f32 %v8491_v8, %v8491_v8  ;;  %v1451_v47 = vsel %vm1072_vm3, %v1319_v31, 0.0 }
  0xf8   :  { %v1448_v51 = vadd.f32 %v1447_v19, %v1446_v28  ;;  %v1121_v1 = vadd.f32 %v1120_v2, %v1119_v53  ;;  %v8500_v18 = vpop.f32.mrf.mxu0 }
  0xf9   :  { %v1449_v27 = vsel %vm1072_vm3, %v1318_v37, 0.0  ;;  %v1321_v14 = vmul.f32 %v8500_v18, %v8500_v18  ;;  %v1126_v37 = vsel %vm1072_vm3, %v8500_v18, 0.0 }
  0xfa   :  { %v1123_v40 = vadd.f32 %v1122_v15, %v1121_v1  ;;  %v1450_v0 = vadd.f32 %v1449_v27, %v1448_v51  ;;  %v8505_v41 = vpop.f32.mrf.mxu0 }
  0xfb   :  { %v1124_v28 = vsel %vm1072_vm3, %v8505_v41, 0.0  ;;  %v1320_v53 = vmul.f32 %v8505_v41, %v8505_v41  ;;  %v1455_v27 = vsel %vm1072_vm3, %v1321_v14, 0.0 }
  0xfc   :  { %v1452_v19 = vadd.f32 %v1451_v47, %v1450_v0  ;;  %v1125_v2 = vadd.f32 %v1124_v28, %v1123_v40  ;;  %v8514_v13 = vpop.f32.mrf.mxu0 }
  0xfd   :  { %v1453_v51 = vsel %vm1072_vm3, %v1320_v53, 0.0  ;;  %v1323_v7 = vmul.f32 %v8514_v13, %v8514_v13  ;;  %v1130_v53 = vsel %vm1072_vm3, %v8514_v13, 0.0 }
  0xfe   :  { %v1127_v1 = vadd.f32 %v1126_v37, %v1125_v2  ;;  %v1454_v31 = vadd.f32 %v1453_v51, %v1452_v19  ;;  %v8519_v15 = vpop.f32.mrf.mxu0 }
  0xff   :  { %v1128_v0 = vsel %vm1072_vm3, %v8519_v15, 0.0  ;;  %v1322_v40 = vmul.f32 %v8519_v15, %v8519_v15  ;;  %v1459_v51 = vsel %vm1072_vm3, %v1323_v7, 0.0 }
 0x100   :  { %v1456_v47 = vadd.f32 %v1455_v27, %v1454_v31  ;;  %v1129_v28 = vadd.f32 %v1128_v0, %v1127_v1  ;;  %v8528_v10 = vpop.f32.mrf.mxu0 }
 0x101   :  { %v1457_v19 = vsel %vm1072_vm3, %v1322_v40, 0.0  ;;  %v1325_v26 = vmul.f32 %v8528_v10, %v8528_v10  ;;  %v1134_v40 = vsel %vm1072_vm3, %v8528_v10, 0.0 }
 0x102   :  { %v1131_v2 = vadd.f32 %v1130_v53, %v1129_v28  ;;  %v1458_v14 = vadd.f32 %v1457_v19, %v1456_v47  ;;  %v8533_v37 = vpop.f32.mrf.mxu0 }
 0x103   :  { %v1132_v31 = vsel %vm1072_vm3, %v8533_v37, 0.0  ;;  %v1324_v1 = vmul.f32 %v8533_v37, %v8533_v37  ;;  %v1463_v19 = vsel %vm1072_vm3, %v1325_v26, 0.0 }
 0x104   :  { %v1460_v27 = vadd.f32 %v1459_v51, %v1458_v14  ;;  %v1133_v0 = vadd.f32 %v1132_v31, %v1131_v2  ;;  %v8542_v25 = vpop.f32.mrf.mxu0 }
 0x105   :  { %v1461_v47 = vsel %vm1072_vm3, %v1324_v1, 0.0  ;;  %v1327_v9 = vmul.f32 %v8542_v25, %v8542_v25  ;;  %v1138_v1 = vsel %vm1072_vm3, %v8542_v25, 0.0 }
 0x106   :  { %v1135_v28 = vadd.f32 %v1134_v40, %v1133_v0  ;;  %v1462_v7 = vadd.f32 %v1461_v47, %v1460_v27  ;;  %v8547_v53 = vpop.f32.mrf.mxu0 }
 0x107   :  { %v1136_v14 = vsel %vm1072_vm3, %v8547_v53, 0.0  ;;  %v1326_v2 = vmul.f32 %v8547_v53, %v8547_v53  ;;  %v1467_v47 = vsel %vm1072_vm3, %v1327_v9, 0.0 }
 0x108   :  { %v1464_v51 = vadd.f32 %v1463_v19, %v1462_v7  ;;  %v1137_v31 = vadd.f32 %v1136_v14, %v1135_v28  ;;  %v8556_v12 = vpop.f32.mrf.mxu0 }
 0x109   :  { %v1465_v27 = vsel %vm1072_vm3, %v1326_v2, 0.0  ;;  %v1329_v5 = vmul.f32 %v8556_v12, %v8556_v12  ;;  %v1142_v2 = vsel %vm1072_vm3, %v8556_v12, 0.0 }
 0x10a   :  { %v1139_v0 = vadd.f32 %v1138_v1, %v1137_v31  ;;  %v1466_v26 = vadd.f32 %v1465_v27, %v1464_v51  ;;  %v8561_v40 = vpop.f32.mrf.mxu0 }
 0x10b   :  { %v1140_v7 = vsel %vm1072_vm3, %v8561_v40, 0.0  ;;  %v1328_v28 = vmul.f32 %v8561_v40, %v8561_v40  ;;  %v1471_v27 = vsel %vm1072_vm3, %v1329_v5, 0.0 }
 0x10c   :  { %v1468_v19 = vadd.f32 %v1467_v47, %v1466_v26  ;;  %v1141_v14 = vadd.f32 %v1140_v7, %v1139_v0  ;;  %v8570_v4 = vpop.f32.mrf.mxu0 }
 0x10d   :  { %v1469_v51 = vsel %vm1072_vm3, %v1328_v28, 0.0  ;;  %v1331_v62 = vmul.f32 %v8570_v4, %v8570_v4  ;;  %v1146_v28 = vsel %vm1072_vm3, %v8570_v4, 0.0 }
 0x10e   :  { %v1143_v31 = vadd.f32 %v1142_v2, %v1141_v14  ;;  %v1470_v9 = vadd.f32 %v1469_v51, %v1468_v19  ;;  %v8575_v1 = vpop.f32.mrf.mxu0 }
 0x10f   :  { %v1144_v26 = vsel %vm1072_vm3, %v8575_v1, 0.0  ;;  %v1330_v0 = vmul.f32 %v8575_v1, %v8575_v1  ;;  %v1475_v51 = vsel %vm1072_vm3, %v1331_v62, 0.0 }
 0x110   :  { %v1472_v47 = vadd.f32 %v1471_v27, %v1470_v9  ;;  %v1145_v7 = vadd.f32 %v1144_v26, %v1143_v31  ;;  %v8584_v55 = vpop.f32.mrf.mxu0 }
 0x111   :  { %v1473_v19 = vsel %vm1072_vm3, %v1330_v0, 0.0  ;;  %v1333_v49 = vmul.f32 %v8584_v55, %v8584_v55  ;;  %v1150_v0 = vsel %vm1072_vm3, %v8584_v55, 0.0 }
 0x112   :  { %v1147_v14 = vadd.f32 %v1146_v28, %v1145_v7  ;;  %v1474_v5 = vadd.f32 %v1473_v19, %v1472_v47  ;;  %v8589_v2 = vpop.f32.mrf.mxu0 }
 0x113   :  { %v1148_v9 = vsel %vm1072_vm3, %v8589_v2, 0.0  ;;  %v1332_v31 = vmul.f32 %v8589_v2, %v8589_v2  ;;  %v1479_v19 = vsel %vm1072_vm3, %v1333_v49, 0.0 }
 0x114   :  { %v1476_v27 = vadd.f32 %v1475_v51, %v1474_v5  ;;  %v1149_v26 = vadd.f32 %v1148_v9, %v1147_v14  ;;  %v8598_v48 = vpop.f32.mrf.mxu0 }
 0x115   :  { %16763 = vst [vmem:[#allocation28_spill] sm:$0xff] %v8598_v48  ;;  %v1477_v47 = vsel %vm1072_vm3, %v1332_v31, 0.0  ;;  %v1335_v43 = vmul.f32 %v8598_v48, %v8598_v48  ;;  %v1154_v31 = vsel %vm1072_vm3, %v8598_v48, 0.0 }
 0x116   :  { %v1151_v7 = vadd.f32 %v1150_v0, %v1149_v26  ;;  %v1478_v62 = vadd.f32 %v1477_v47, %v1476_v27  ;;  %v8603_v28 = vpop.f32.mrf.mxu0 }
 0x117   :  { %16764 = vst [vmem:[#allocation29_spill] sm:$0xff] %v8603_v28  ;;  %v1152_v5 = vsel %vm1072_vm3, %v8603_v28, 0.0  ;;  %v1334_v14 = vmul.f32 %v8603_v28, %v8603_v28  ;;  %v1483_v47 = vsel %vm1072_vm3, %v1335_v43, 0.0 }
 0x118   :  { %v1480_v51 = vadd.f32 %v1479_v19, %v1478_v62  ;;  %v1153_v9 = vadd.f32 %v1152_v5, %v1151_v7  ;;  %v8612_v42 = vpop.f32.mrf.mxu0 }
 0x119   :  { %16765 = vst [vmem:[#allocation30_spill] sm:$0xff] %v8612_v42  ;;  %v1481_v27 = vsel %vm1072_vm3, %v1334_v14, 0.0  ;;  %v1337_v36 = vmul.f32 %v8612_v42, %v8612_v42  ;;  %v1158_v14 = vsel %vm1072_vm3, %v8612_v42, 0.0 }
 0x11a   :  { %v1155_v26 = vadd.f32 %v1154_v31, %v1153_v9  ;;  %v1482_v49 = vadd.f32 %v1481_v27, %v1480_v51  ;;  %v8617_v0 = vpop.f32.mrf.mxu0 }
 0x11b   :  { %16766 = vst [vmem:[#allocation31_spill] sm:$0xff] %v8617_v0  ;;  %v1156_v62 = vsel %vm1072_vm3, %v8617_v0, 0.0  ;;  %v1336_v7 = vmul.f32 %v8617_v0, %v8617_v0  ;;  %v1487_v27 = vsel %vm1072_vm3, %v1337_v36, 0.0 }
 0x11c   :  { %v1484_v19 = vadd.f32 %v1483_v47, %v1482_v49  ;;  %v1157_v5 = vadd.f32 %v1156_v62, %v1155_v26  ;;  %v8626_v30 = vpop.f32.mrf.mxu0 }
 0x11d   :  { %16767 = vst [vmem:[#allocation32_spill] sm:$0xff] %v8626_v30  ;;  %v1485_v51 = vsel %vm1072_vm3, %v1336_v7, 0.0  ;;  %v1339_v29 = vmul.f32 %v8626_v30, %v8626_v30  ;;  %v1162_v7 = vsel %vm1072_vm3, %v8626_v30, 0.0 }
 0x11e   :  { %v1159_v9 = vadd.f32 %v1158_v14, %v1157_v5  ;;  %v1486_v43 = vadd.f32 %v1485_v51, %v1484_v19  ;;  %v8631_v31 = vpop.f32.mrf.mxu0 }
 0x11f   :  { %16768 = vst [vmem:[#allocation33_spill] sm:$0xff] %v8631_v31  ;;  %v1160_v49 = vsel %vm1072_vm3, %v8631_v31, 0.0  ;;  %v1338_v26 = vmul.f32 %v8631_v31, %v8631_v31  ;;  %v1491_v51 = vsel %vm1072_vm3, %v1339_v29, 0.0 }
 0x120   :  { %v1488_v47 = vadd.f32 %v1487_v27, %v1486_v43  ;;  %v1161_v62 = vadd.f32 %v1160_v49, %v1159_v9  ;;  %v8640_v24 = vpop.f32.mrf.mxu0 }
 0x121   :  { %16769 = vst [vmem:[#allocation34_spill] sm:$0xff] %v8640_v24  ;;  %v1489_v19 = vsel %vm1072_vm3, %v1338_v26, 0.0  ;;  %v1341_v23 = vmul.f32 %v8640_v24, %v8640_v24  ;;  %v1166_v26 = vsel %vm1072_vm3, %v8640_v24, 0.0 }
 0x122   :  { %v1163_v5 = vadd.f32 %v1162_v7, %v1161_v62  ;;  %v1490_v36 = vadd.f32 %v1489_v19, %v1488_v47  ;;  %v8645_v14 = vpop.f32.mrf.mxu0 }
 0x123   :  { %16770 = vst [vmem:[#allocation35_spill] sm:$0xff] %v8645_v14  ;;  %v1164_v43 = vsel %vm1072_vm3, %v8645_v14, 0.0  ;;  %v1340_v9 = vmul.f32 %v8645_v14, %v8645_v14  ;;  %v1495_v19 = vsel %vm1072_vm3, %v1341_v23, 0.0 }
 0x124   :  { %v1492_v27 = vadd.f32 %v1491_v51, %v1490_v36  ;;  %v1165_v49 = vadd.f32 %v1164_v43, %v1163_v5  ;;  %v8654_v17 = vpop.f32.mrf.mxu0 }
 0x125   :  { %16771 = vst [vmem:[#allocation36_spill] sm:$0xff] %v8654_v17  ;;  %v1493_v47 = vsel %vm1072_vm3, %v1340_v9, 0.0  ;;  %v1343_v6 = vmul.f32 %v8654_v17, %v8654_v17  ;;  %v1170_v9 = vsel %vm1072_vm3, %v8654_v17, 0.0 }
 0x126   :  { %v1167_v62 = vadd.f32 %v1166_v26, %v1165_v49  ;;  %v1494_v29 = vadd.f32 %v1493_v47, %v1492_v27  ;;  %v8659_v7 = vpop.f32.mrf.mxu0 }
 0x127   :  { %16772 = vst [vmem:[#allocation37_spill] sm:$0xff] %v8659_v7  ;;  %v1168_v36 = vsel %vm1072_vm3, %v8659_v7, 0.0  ;;  %v1342_v5 = vmul.f32 %v8659_v7, %v8659_v7  ;;  %v1499_v47 = vsel %vm1072_vm3, %v1343_v6, 0.0 }
 0x128   :  { %v1496_v51 = vadd.f32 %v1495_v19, %v1494_v29  ;;  %v1169_v43 = vadd.f32 %v1168_v36, %v1167_v62  ;;  %v8668_v24 = vpop.f32.mrf.mxu0 }
 0x129   :  { %16773 = vst [vmem:[#allocation38_spill] sm:$0xff] %v8668_v24  ;;  %v1497_v27 = vsel %vm1072_vm3, %v1342_v5, 0.0  ;;  %v1345_v14 = vmul.f32 %v8668_v24, %v8668_v24  ;;  %v1174_v5 = vsel %vm1072_vm3, %v8668_v24, 0.0 }
 0x12a   :  { %v1498_v49 = vadd.f32 %v1497_v27, %v1496_v51  ;;  %v8673_v23 = vpop.f32.mrf.mxu0  ;;  %v1171_v26 = vadd.f32 %v1170_v9, %v1169_v43 }
 0x12b   :  { %16774 = vst [vmem:[#allocation39_spill] sm:$0xff] %v8673_v23  ;;  %v1172_v29 = vsel %vm1072_vm3, %v8673_v23, 0.0  ;;  %v1344_v62 = vmul.f32 %v8673_v23, %v8673_v23  ;;  %v1503_v27 = vsel %vm1072_vm3, %v1345_v14, 0.0 }
 0x12c   :  { %v1173_v19 = vadd.f32 %v1172_v29, %v1171_v26  ;;  %v1500_v36 = vadd.f32 %v1499_v47, %v1498_v49  ;;  %v8682_v17 = vpop.f32.mrf.mxu0 }
 0x12d   :  { %16775 = vst [vmem:[#allocation40_spill] sm:$0xff] %v8682_v17  ;;  %v1501_v51 = vsel %vm1072_vm3, %v1344_v62, 0.0  ;;  %v1347_v7 = vmul.f32 %v8682_v17, %v8682_v17  ;;  %v1178_v62 = vsel %vm1072_vm3, %v8682_v17, 0.0 }
 0x12e   :  { %v1502_v43 = vadd.f32 %v1501_v51, %v1500_v36  ;;  %v8687_v6 = vpop.f32.mrf.mxu0  ;;  %v1175_v9 = vadd.f32 %v1174_v5, %v1173_v19 }
 0x12f   :  { %16776 = vst [vmem:[#allocation41_spill] sm:$0xff] %v8687_v6  ;;  %v1176_v26 = vsel %vm1072_vm3, %v8687_v6, 0.0  ;;  %v1346_v49 = vmul.f32 %v8687_v6, %v8687_v6  ;;  %v1507_v51 = vsel %vm1072_vm3, %v1347_v7, 0.0 }
 0x130   :  { %v1177_v47 = vadd.f32 %v1176_v26, %v1175_v9  ;;  %v1504_v29 = vadd.f32 %v1503_v27, %v1502_v43  ;;  %v8696_v24 = vpop.f32.mrf.mxu0 }
 0x131   :  { %16777 = vst [vmem:[#allocation42_spill] sm:$0xff] %v8696_v24  ;;  %v1505_v19 = vsel %vm1072_vm3, %v1346_v49, 0.0  ;;  %v1349_v23 = vmul.f32 %v8696_v24, %v8696_v24  ;;  %v1182_v49 = vsel %vm1072_vm3, %v8696_v24, 0.0 }
 0x132   :  { %v1506_v36 = vadd.f32 %v1505_v19, %v1504_v29  ;;  %v8701_v14 = vpop.f32.mrf.mxu0  ;;  %v1179_v5 = vadd.f32 %v1178_v62, %v1177_v47 }
 0x133   :  { %16778 = vst [vmem:[#allocation43_spill] sm:$0xff] %v8701_v14  ;;  %v1180_v9 = vsel %vm1072_vm3, %v8701_v14, 0.0  ;;  %v1348_v43 = vmul.f32 %v8701_v14, %v8701_v14  ;;  %v1511_v19 = vsel %vm1072_vm3, %v1349_v23, 0.0 }
 0x134   :  { %v1181_v27 = vadd.f32 %v1180_v9, %v1179_v5  ;;  %v1508_v26 = vadd.f32 %v1507_v51, %v1506_v36  ;;  %v8710_v17 = vpop.f32.mrf.mxu0 }
 0x135   :  { %16779 = vst [vmem:[#allocation44_spill] sm:$0xff] %v8710_v17  ;;  %v1509_v47 = vsel %vm1072_vm3, %v1348_v43, 0.0  ;;  %v1351_v6 = vmul.f32 %v8710_v17, %v8710_v17  ;;  %v1186_v43 = vsel %vm1072_vm3, %v8710_v17, 0.0 }
 0x136   :  { %v1510_v29 = vadd.f32 %v1509_v47, %v1508_v26  ;;  %v8715_v7 = vpop.f32.mrf.mxu0  ;;  %v1183_v62 = vadd.f32 %v1182_v49, %v1181_v27 }
 0x137   :  { %16780 = vst [vmem:[#allocation45_spill] sm:$0xff] %v8715_v7  ;;  %v1184_v5 = vsel %vm1072_vm3, %v8715_v7, 0.0  ;;  %v1350_v36 = vmul.f32 %v8715_v7, %v8715_v7  ;;  %v1515_v47 = vsel %vm1072_vm3, %v1351_v6, 0.0 }
 0x138   :  { %v1185_v51 = vadd.f32 %v1184_v5, %v1183_v62  ;;  %v1512_v9 = vadd.f32 %v1511_v19, %v1510_v29  ;;  %v8724_v24 = vpop.f32.mrf.mxu0 }
 0x139   :  { %16781 = vst [vmem:[#allocation46_spill] sm:$0xff] %v8724_v24  ;;  %v1513_v27 = vsel %vm1072_vm3, %v1350_v36, 0.0  ;;  %v1353_v14 = vmul.f32 %v8724_v24, %v8724_v24  ;;  %v1190_v36 = vsel %vm1072_vm3, %v8724_v24, 0.0 }
 0x13a   :  { %v1514_v26 = vadd.f32 %v1513_v27, %v1512_v9  ;;  %v8729_v23 = vpop.f32.mrf.mxu0  ;;  %v1187_v49 = vadd.f32 %v1186_v43, %v1185_v51 }
 0x13b   :  { %16782 = vst [vmem:[#allocation47_spill] sm:$0xff] %v8729_v23  ;;  %v1188_v62 = vsel %vm1072_vm3, %v8729_v23, 0.0  ;;  %v1352_v29 = vmul.f32 %v8729_v23, %v8729_v23  ;;  %v1519_v27 = vsel %vm1072_vm3, %v1353_v14, 0.0 }
 0x13c   :  { %v1189_v19 = vadd.f32 %v1188_v62, %v1187_v49  ;;  %v1516_v5 = vadd.f32 %v1515_v47, %v1514_v26  ;;  %v8738_v17 = vpop.f32.mrf.mxu0 }
 0x13d   :  { %16783 = vst [vmem:[#allocation48_spill] sm:$0xff] %v8738_v17  ;;  %v1517_v51 = vsel %vm1072_vm3, %v1352_v29, 0.0  ;;  %v1355_v7 = vmul.f32 %v8738_v17, %v8738_v17  ;;  %v1194_v29 = vsel %vm1072_vm3, %v8738_v17, 0.0 }
 0x13e   :  { %v1518_v9 = vadd.f32 %v1517_v51, %v1516_v5  ;;  %v8743_v6 = vpop.f32.mrf.mxu0  ;;  %v1191_v43 = vadd.f32 %v1190_v36, %v1189_v19 }
 0x13f   :  { %16784 = vst [vmem:[#allocation49_spill] sm:$0xff] %v8743_v6  ;;  %v1192_v49 = vsel %vm1072_vm3, %v8743_v6, 0.0  ;;  %v1354_v26 = vmul.f32 %v8743_v6, %v8743_v6  ;;  %v1523_v51 = vsel %vm1072_vm3, %v1355_v7, 0.0 }
 0x140   :  { %v1193_v47 = vadd.f32 %v1192_v49, %v1191_v43  ;;  %v1520_v62 = vadd.f32 %v1519_v27, %v1518_v9  ;;  %v8752_v24 = vpop.f32.mrf.mxu0 }
 0x141   :  { %16785 = vst [vmem:[#allocation50_spill] sm:$0xff] %v8752_v24  ;;  %v1521_v19 = vsel %vm1072_vm3, %v1354_v26, 0.0  ;;  %v1357_v23 = vmul.f32 %v8752_v24, %v8752_v24  ;;  %v1198_v26 = vsel %vm1072_vm3, %v8752_v24, 0.0 }
 0x142   :  { %v1522_v5 = vadd.f32 %v1521_v19, %v1520_v62  ;;  %v8757_v14 = vpop.f32.mrf.mxu0  ;;  %v1195_v36 = vadd.f32 %v1194_v29, %v1193_v47 }
 0x143   :  { %16786 = vst [vmem:[#allocation51_spill] sm:$0xff] %v8757_v14  ;;  %v1196_v43 = vsel %vm1072_vm3, %v8757_v14, 0.0  ;;  %v1356_v9 = vmul.f32 %v8757_v14, %v8757_v14  ;;  %v1527_v19 = vsel %vm1072_vm3, %v1357_v23, 0.0 }
 0x144   :  { %v1197_v27 = vadd.f32 %v1196_v43, %v1195_v36  ;;  %v1524_v49 = vadd.f32 %v1523_v51, %v1522_v5  ;;  %v8766_v17 = vpop.f32.mrf.mxu0 }
 0x145   :  { %16787 = vst [vmem:[#allocation52_spill] sm:$0xff] %v8766_v17  ;;  %v1525_v47 = vsel %vm1072_vm3, %v1356_v9, 0.0  ;;  %v1359_v6 = vmul.f32 %v8766_v17, %v8766_v17  ;;  %v1202_v9 = vsel %vm1072_vm3, %v8766_v17, 0.0 }
 0x146   :  { %v1526_v62 = vadd.f32 %v1525_v47, %v1524_v49  ;;  %v8771_v7 = vpop.f32.mrf.mxu0  ;;  %v1199_v29 = vadd.f32 %v1198_v26, %v1197_v27 }
 0x147   :  { %16788 = vst [vmem:[#allocation53_spill] sm:$0xff] %v8771_v7  ;;  %v1200_v36 = vsel %vm1072_vm3, %v8771_v7, 0.0  ;;  %v1358_v5 = vmul.f32 %v8771_v7, %v8771_v7  ;;  %v1531_v47 = vsel %vm1072_vm3, %v1359_v6, 0.0 }
 0x148   :  { %v1201_v51 = vadd.f32 %v1200_v36, %v1199_v29  ;;  %v1528_v43 = vadd.f32 %v1527_v19, %v1526_v62  ;;  %v8780_v24 = vpop.f32.mrf.mxu0 }
 0x149   :  { %16789 = vst [vmem:[#allocation54_spill] sm:$0xff] %v8780_v24  ;;  %v1529_v27 = vsel %vm1072_vm3, %v1358_v5, 0.0  ;;  %v1361_v14 = vmul.f32 %v8780_v24, %v8780_v24  ;;  %v1206_v5 = vsel %vm1072_vm3, %v8780_v24, 0.0 }
 0x14a   :  { %v1530_v49 = vadd.f32 %v1529_v27, %v1528_v43  ;;  %v8785_v23 = vpop.f32.mrf.mxu0  ;;  %v1203_v26 = vadd.f32 %v1202_v9, %v1201_v51 }
 0x14b   :  { %16790 = vst [vmem:[#allocation55_spill] sm:$0xff] %v8785_v23  ;;  %v1204_v29 = vsel %vm1072_vm3, %v8785_v23, 0.0  ;;  %v1360_v62 = vmul.f32 %v8785_v23, %v8785_v23  ;;  %v1535_v27 = vsel %vm1072_vm3, %v1361_v14, 0.0 }
 0x14c   :  { %v1205_v19 = vadd.f32 %v1204_v29, %v1203_v26  ;;  %v1532_v36 = vadd.f32 %v1531_v47, %v1530_v49  ;;  %v8794_v17 = vpop.f32.mrf.mxu0 }
 0x14d   :  { %16791 = vst [vmem:[#allocation56_spill] sm:$0xff] %v8794_v17  ;;  %v1533_v51 = vsel %vm1072_vm3, %v1360_v62, 0.0  ;;  %v1363_v7 = vmul.f32 %v8794_v17, %v8794_v17  ;;  %v1210_v62 = vsel %vm1072_vm3, %v8794_v17, 0.0 }
 0x14e   :  { %v1534_v43 = vadd.f32 %v1533_v51, %v1532_v36  ;;  %v8799_v6 = vpop.f32.mrf.mxu0  ;;  %v1207_v9 = vadd.f32 %v1206_v5, %v1205_v19 }
 0x14f   :  { %16792 = vst [vmem:[#allocation57_spill] sm:$0xff] %v8799_v6  ;;  %v1208_v26 = vsel %vm1072_vm3, %v8799_v6, 0.0  ;;  %v1362_v49 = vmul.f32 %v8799_v6, %v8799_v6  ;;  %v1539_v51 = vsel %vm1072_vm3, %v1363_v7, 0.0 }
 0x150   :  { %v1209_v47 = vadd.f32 %v1208_v26, %v1207_v9  ;;  %v1536_v29 = vadd.f32 %v1535_v27, %v1534_v43  ;;  %v8808_v24 = vpop.f32.mrf.mxu0 }
 0x151   :  { %16793 = vst [vmem:[#allocation58_spill] sm:$0xff] %v8808_v24  ;;  %v1537_v19 = vsel %vm1072_vm3, %v1362_v49, 0.0  ;;  %v1365_v23 = vmul.f32 %v8808_v24, %v8808_v24  ;;  %v1214_v49 = vsel %vm1072_vm3, %v8808_v24, 0.0 }
 0x152   :  { %v1538_v36 = vadd.f32 %v1537_v19, %v1536_v29  ;;  %v8813_v14 = vpop.f32.mrf.mxu0  ;;  %v1211_v5 = vadd.f32 %v1210_v62, %v1209_v47 }
 0x153   :  { %16794 = vst [vmem:[#allocation59_spill] sm:$0xff] %v8813_v14  ;;  %v1212_v9 = vsel %vm1072_vm3, %v8813_v14, 0.0  ;;  %v1364_v43 = vmul.f32 %v8813_v14, %v8813_v14  ;;  %v1543_v19 = vsel %vm1072_vm3, %v1365_v23, 0.0 }
 0x154   :  { %v1213_v27 = vadd.f32 %v1212_v9, %v1211_v5  ;;  %v1540_v26 = vadd.f32 %v1539_v51, %v1538_v36  ;;  %v8822_v17 = vpop.f32.mrf.mxu0 }
 0x155   :  { %16795 = vst [vmem:[#allocation60_spill] sm:$0xff] %v8822_v17  ;;  %v1541_v47 = vsel %vm1072_vm3, %v1364_v43, 0.0  ;;  %v1367_v6 = vmul.f32 %v8822_v17, %v8822_v17  ;;  %v1218_v43 = vsel %vm1072_vm3, %v8822_v17, 0.0 }
 0x156   :  { %v1542_v29 = vadd.f32 %v1541_v47, %v1540_v26  ;;  %v8827_v7 = vpop.f32.mrf.mxu0  ;;  %v1215_v62 = vadd.f32 %v1214_v49, %v1213_v27 }
 0x157   :  { %16796 = vst [vmem:[#allocation61_spill] sm:$0xff] %v8827_v7  ;;  %v1216_v5 = vsel %vm1072_vm3, %v8827_v7, 0.0  ;;  %v1366_v36 = vmul.f32 %v8827_v7, %v8827_v7  ;;  %v1547_v47 = vsel %vm1072_vm3, %v1367_v6, 0.0 }
 0x158   :  { %v1217_v51 = vadd.f32 %v1216_v5, %v1215_v62  ;;  %v1544_v9 = vadd.f32 %v1543_v19, %v1542_v29  ;;  %v8836_v24 = vpop.f32.mrf.mxu0 }
 0x159   :  { %16797 = vst [vmem:[#allocation62_spill] sm:$0xff] %v8836_v24  ;;  %v1545_v27 = vsel %vm1072_vm3, %v1366_v36, 0.0  ;;  %v1369_v14 = vmul.f32 %v8836_v24, %v8836_v24  ;;  %v1222_v36 = vsel %vm1072_vm3, %v8836_v24, 0.0 }
 0x15a   :  { %v1546_v26 = vadd.f32 %v1545_v27, %v1544_v9  ;;  %v8841_v23 = vpop.f32.mrf.mxu0  ;;  %v1219_v49 = vadd.f32 %v1218_v43, %v1217_v51 }
 0x15b   :  { %16798 = vst [vmem:[#allocation63_spill] sm:$0xff] %v8841_v23  ;;  %v1220_v62 = vsel %vm1072_vm3, %v8841_v23, 0.0  ;;  %v1368_v29 = vmul.f32 %v8841_v23, %v8841_v23  ;;  %v1551_v27 = vsel %vm1072_vm3, %v1369_v14, 0.0 }
 0x15c   :  { %v1221_v19 = vadd.f32 %v1220_v62, %v1219_v49  ;;  %v1548_v5 = vadd.f32 %v1547_v47, %v1546_v26  ;;  %v8850_v17 = vpop.f32.mrf.mxu0 }
 0x15d   :  { %16799 = vst [vmem:[#allocation64_spill] sm:$0xff] %v8850_v17  ;;  %v1549_v51 = vsel %vm1072_vm3, %v1368_v29, 0.0  ;;  %v1371_v7 = vmul.f32 %v8850_v17, %v8850_v17  ;;  %v1226_v29 = vsel %vm1072_vm3, %v8850_v17, 0.0 }
 0x15e   :  { %v1550_v9 = vadd.f32 %v1549_v51, %v1548_v5  ;;  %v8855_v6 = vpop.f32.mrf.mxu0  ;;  %v1223_v43 = vadd.f32 %v1222_v36, %v1221_v19 }
 0x15f   :  { %16800 = vst [vmem:[#allocation65_spill] sm:$0xff] %v8855_v6  ;;  %v1224_v49 = vsel %vm1072_vm3, %v8855_v6, 0.0  ;;  %v1370_v26 = vmul.f32 %v8855_v6, %v8855_v6  ;;  %v1555_v51 = vsel %vm1072_vm3, %v1371_v7, 0.0 }
 0x160   :  { %v1225_v47 = vadd.f32 %v1224_v49, %v1223_v43  ;;  %v1552_v62 = vadd.f32 %v1551_v27, %v1550_v9  ;;  %v8864_v24 = vpop.f32.mrf.mxu0 }
 0x161   :  { %16801 = vst [vmem:[#allocation66_spill] sm:$0xff] %v8864_v24  ;;  %v1553_v19 = vsel %vm1072_vm3, %v1370_v26, 0.0  ;;  %v1373_v23 = vmul.f32 %v8864_v24, %v8864_v24  ;;  %v1230_v26 = vsel %vm1072_vm3, %v8864_v24, 0.0 }
 0x162   :  { %v1554_v5 = vadd.f32 %v1553_v19, %v1552_v62  ;;  %v8869_v14 = vpop.f32.mrf.mxu0  ;;  %v1227_v36 = vadd.f32 %v1226_v29, %v1225_v47 }
 0x163   :  { %16802 = vst [vmem:[#allocation67_spill] sm:$0xff] %v8869_v14  ;;  %v1228_v43 = vsel %vm1072_vm3, %v8869_v14, 0.0  ;;  %v1372_v9 = vmul.f32 %v8869_v14, %v8869_v14  ;;  %v1559_v19 = vsel %vm1072_vm3, %v1373_v23, 0.0 }
 0x164   :  { %v1229_v27 = vadd.f32 %v1228_v43, %v1227_v36  ;;  %v1556_v49 = vadd.f32 %v1555_v51, %v1554_v5  ;;  %v8878_v17 = vpop.f32.mrf.mxu0 }
 0x165   :  { %16803 = vst [vmem:[#allocation68_spill] sm:$0xff] %v8878_v17  ;;  %v1557_v47 = vsel %vm1072_vm3, %v1372_v9, 0.0  ;;  %v1375_v6 = vmul.f32 %v8878_v17, %v8878_v17  ;;  %v1234_v9 = vsel %vm1072_vm3, %v8878_v17, 0.0 }
 0x166   :  { %v1558_v62 = vadd.f32 %v1557_v47, %v1556_v49  ;;  %v8883_v7 = vpop.f32.mrf.mxu0  ;;  %v1231_v29 = vadd.f32 %v1230_v26, %v1229_v27 }
 0x167   :  { %16804 = vst [vmem:[#allocation69_spill] sm:$0xff] %v8883_v7  ;;  %v1232_v36 = vsel %vm1072_vm3, %v8883_v7, 0.0  ;;  %v1374_v5 = vmul.f32 %v8883_v7, %v8883_v7  ;;  %v1563_v47 = vsel %vm1072_vm3, %v1375_v6, 0.0 }
 0x168   :  { %v1233_v51 = vadd.f32 %v1232_v36, %v1231_v29  ;;  %v1560_v43 = vadd.f32 %v1559_v19, %v1558_v62  ;;  %v8892_v24 = vpop.f32.mrf.mxu0 }
 0x169   :  { %16805 = vst [vmem:[#allocation70_spill] sm:$0xff] %v8892_v24  ;;  %v1561_v27 = vsel %vm1072_vm3, %v1374_v5, 0.0  ;;  %v1377_v14 = vmul.f32 %v8892_v24, %v8892_v24  ;;  %v1238_v5 = vsel %vm1072_vm3, %v8892_v24, 0.0 }
 0x16a   :  { %v1562_v49 = vadd.f32 %v1561_v27, %v1560_v43  ;;  %v8897_v23 = vpop.f32.mrf.mxu0  ;;  %v1235_v26 = vadd.f32 %v1234_v9, %v1233_v51 }
 0x16b   :  { %16806 = vst [vmem:[#allocation71_spill] sm:$0xff] %v8897_v23  ;;  %v1236_v29 = vsel %vm1072_vm3, %v8897_v23, 0.0  ;;  %v1376_v62 = vmul.f32 %v8897_v23, %v8897_v23  ;;  %v1567_v27 = vsel %vm1072_vm3, %v1377_v14, 0.0 }
 0x16c   :  { %v1237_v19 = vadd.f32 %v1236_v29, %v1235_v26  ;;  %v1564_v36 = vadd.f32 %v1563_v47, %v1562_v49  ;;  %v8906_v17 = vpop.f32.mrf.mxu0 }
 0x16d   :  { %16807 = vst [vmem:[#allocation72_spill] sm:$0xff] %v8906_v17  ;;  %v1565_v51 = vsel %vm1072_vm3, %v1376_v62, 0.0  ;;  %v1379_v7 = vmul.f32 %v8906_v17, %v8906_v17  ;;  %v1242_v62 = vsel %vm1072_vm3, %v8906_v17, 0.0 }
 0x16e   :  { %v1566_v43 = vadd.f32 %v1565_v51, %v1564_v36  ;;  %v8911_v6 = vpop.f32.mrf.mxu0  ;;  %v1239_v9 = vadd.f32 %v1238_v5, %v1237_v19 }
 0x16f   :  { %16808 = vst [vmem:[#allocation73_spill] sm:$0xff] %v8911_v6  ;;  %v1240_v26 = vsel %vm1072_vm3, %v8911_v6, 0.0  ;;  %v1378_v49 = vmul.f32 %v8911_v6, %v8911_v6  ;;  %v1571_v51 = vsel %vm1072_vm3, %v1379_v7, 0.0 }
 0x170   :  { %v1241_v47 = vadd.f32 %v1240_v26, %v1239_v9  ;;  %v1568_v29 = vadd.f32 %v1567_v27, %v1566_v43  ;;  %v8920_v24 = vpop.f32.mrf.mxu0 }
 0x171   :  { %16809 = vst [vmem:[#allocation74_spill] sm:$0xff] %v8920_v24  ;;  %v1569_v19 = vsel %vm1072_vm3, %v1378_v49, 0.0  ;;  %v1381_v23 = vmul.f32 %v8920_v24, %v8920_v24  ;;  %v1246_v49 = vsel %vm1072_vm3, %v8920_v24, 0.0 }
 0x172   :  { %v1570_v36 = vadd.f32 %v1569_v19, %v1568_v29  ;;  %v8925_v14 = vpop.f32.mrf.mxu0  ;;  %v1243_v5 = vadd.f32 %v1242_v62, %v1241_v47 }
 0x173   :  { %16810 = vst [vmem:[#allocation75_spill] sm:$0xff] %v8925_v14  ;;  %v1244_v9 = vsel %vm1072_vm3, %v8925_v14, 0.0  ;;  %v1380_v43 = vmul.f32 %v8925_v14, %v8925_v14  ;;  %v1575_v19 = vsel %vm1072_vm3, %v1381_v23, 0.0 }
 0x174   :  { %v1245_v27 = vadd.f32 %v1244_v9, %v1243_v5  ;;  %v1572_v26 = vadd.f32 %v1571_v51, %v1570_v36  ;;  %v8934_v17 = vpop.f32.mrf.mxu0 }
 0x175   :  { %16811 = vst [vmem:[#allocation76_spill] sm:$0xff] %v8934_v17  ;;  %v1573_v47 = vsel %vm1072_vm3, %v1380_v43, 0.0  ;;  %v1383_v6 = vmul.f32 %v8934_v17, %v8934_v17  ;;  %v1250_v43 = vsel %vm1072_vm3, %v8934_v17, 0.0 }
 0x176   :  { %v1574_v29 = vadd.f32 %v1573_v47, %v1572_v26  ;;  %v8939_v7 = vpop.f32.mrf.mxu0  ;;  %v1247_v62 = vadd.f32 %v1246_v49, %v1245_v27 }
 0x177   :  { %16812 = vst [vmem:[#allocation77_spill] sm:$0xff] %v8939_v7  ;;  %v1248_v5 = vsel %vm1072_vm3, %v8939_v7, 0.0  ;;  %v1382_v36 = vmul.f32 %v8939_v7, %v8939_v7  ;;  %v1579_v47 = vsel %vm1072_vm3, %v1383_v6, 0.0 }
 0x178   :  { %v1249_v51 = vadd.f32 %v1248_v5, %v1247_v62  ;;  %v1576_v9 = vadd.f32 %v1575_v19, %v1574_v29  ;;  %v8948_v24 = vpop.f32.mrf.mxu0 }
 0x179   :  { %16813 = vst [vmem:[#allocation78_spill] sm:$0xff] %v8948_v24  ;;  %v1577_v27 = vsel %vm1072_vm3, %v1382_v36, 0.0  ;;  %v1385_v14 = vmul.f32 %v8948_v24, %v8948_v24  ;;  %v1254_v36 = vsel %vm1072_vm3, %v8948_v24, 0.0 }
 0x17a   :  { %v1578_v26 = vadd.f32 %v1577_v27, %v1576_v9  ;;  %v8953_v23 = vpop.f32.mrf.mxu0  ;;  %v1251_v49 = vadd.f32 %v1250_v43, %v1249_v51 }
 0x17b   :  { %16814 = vst [vmem:[#allocation79_spill] sm:$0xff] %v8953_v23  ;;  %v1252_v62 = vsel %vm1072_vm3, %v8953_v23, 0.0  ;;  %v1384_v29 = vmul.f32 %v8953_v23, %v8953_v23  ;;  %v1583_v27 = vsel %vm1072_vm3, %v1385_v14, 0.0 }
 0x17c   :  { %v1253_v19 = vadd.f32 %v1252_v62, %v1251_v49  ;;  %v1580_v5 = vadd.f32 %v1579_v47, %v1578_v26  ;;  %v8962_v17 = vpop.f32.mrf.mxu0 }
 0x17d   :  { %16815 = vst [vmem:[#allocation80_spill] sm:$0xff] %v8962_v17  ;;  %v1581_v51 = vsel %vm1072_vm3, %v1384_v29, 0.0  ;;  %v1387_v7 = vmul.f32 %v8962_v17, %v8962_v17  ;;  %v1258_v29 = vsel %vm1072_vm3, %v8962_v17, 0.0 }
 0x17e   :  { %v1582_v9 = vadd.f32 %v1581_v51, %v1580_v5  ;;  %v8967_v6 = vpop.f32.mrf.mxu0  ;;  %v1255_v43 = vadd.f32 %v1254_v36, %v1253_v19 }
 0x17f   :  { %16816 = vst [vmem:[#allocation81_spill] sm:$0xff] %v8967_v6  ;;  %v1256_v49 = vsel %vm1072_vm3, %v8967_v6, 0.0  ;;  %v1386_v26 = vmul.f32 %v8967_v6, %v8967_v6  ;;  %v1587_v51 = vsel %vm1072_vm3, %v1387_v7, 0.0 }
 0x180   :  { %v1257_v47 = vadd.f32 %v1256_v49, %v1255_v43  ;;  %v1584_v62 = vadd.f32 %v1583_v27, %v1582_v9  ;;  %v8976_v24 = vpop.f32.mrf.mxu0 }
 0x181   :  { %16817 = vst [vmem:[#allocation82_spill] sm:$0xff] %v8976_v24  ;;  %v1585_v19 = vsel %vm1072_vm3, %v1386_v26, 0.0  ;;  %v1389_v23 = vmul.f32 %v8976_v24, %v8976_v24  ;;  %v1262_v26 = vsel %vm1072_vm3, %v8976_v24, 0.0 }
 0x182   :  { %v1586_v5 = vadd.f32 %v1585_v19, %v1584_v62  ;;  %v8981_v14 = vpop.f32.mrf.mxu0  ;;  %v1259_v36 = vadd.f32 %v1258_v29, %v1257_v47 }
 0x183   :  { %16818 = vst [vmem:[#allocation83_spill] sm:$0xff] %v8981_v14  ;;  %v1260_v43 = vsel %vm1072_vm3, %v8981_v14, 0.0  ;;  %v1388_v9 = vmul.f32 %v8981_v14, %v8981_v14  ;;  %v1591_v19 = vsel %vm1072_vm3, %v1389_v23, 0.0 }
 0x184   :  { %v1261_v27 = vadd.f32 %v1260_v43, %v1259_v36  ;;  %v1588_v49 = vadd.f32 %v1587_v51, %v1586_v5  ;;  %v8990_v17 = vpop.f32.mrf.mxu0 }
 0x185   :  { %16819 = vst [vmem:[#allocation84_spill] sm:$0xff] %v8990_v17  ;;  %v1589_v47 = vsel %vm1072_vm3, %v1388_v9, 0.0  ;;  %v1391_v6 = vmul.f32 %v8990_v17, %v8990_v17  ;;  %v1266_v9 = vsel %vm1072_vm3, %v8990_v17, 0.0 }
 0x186   :  { %v1590_v62 = vadd.f32 %v1589_v47, %v1588_v49  ;;  %v8995_v7 = vpop.f32.mrf.mxu0  ;;  %v1263_v29 = vadd.f32 %v1262_v26, %v1261_v27 }
 0x187   :  { %16820 = vst [vmem:[#allocation85_spill] sm:$0xff] %v8995_v7  ;;  %v1264_v36 = vsel %vm1072_vm3, %v8995_v7, 0.0  ;;  %v1390_v5 = vmul.f32 %v8995_v7, %v8995_v7  ;;  %v1595_v47 = vsel %vm1072_vm3, %v1391_v6, 0.0 }
 0x188   :  { %v1265_v51 = vadd.f32 %v1264_v36, %v1263_v29  ;;  %v1592_v43 = vadd.f32 %v1591_v19, %v1590_v62  ;;  %v9004_v24 = vpop.f32.mrf.mxu0 }
 0x189   :  { %16821 = vst [vmem:[#allocation86_spill] sm:$0xff] %v9004_v24  ;;  %v1593_v27 = vsel %vm1072_vm3, %v1390_v5, 0.0  ;;  %v1393_v14 = vmul.f32 %v9004_v24, %v9004_v24  ;;  %v1270_v5 = vsel %vm1072_vm3, %v9004_v24, 0.0 }
 0x18a   :  { %v1594_v49 = vadd.f32 %v1593_v27, %v1592_v43  ;;  %v9009_v23 = vpop.f32.mrf.mxu0  ;;  %v1267_v26 = vadd.f32 %v1266_v9, %v1265_v51 }
 0x18b   :  { %16822 = vst [vmem:[#allocation87_spill] sm:$0xff] %v9009_v23  ;;  %v1268_v29 = vsel %vm1072_vm3, %v9009_v23, 0.0  ;;  %v1392_v62 = vmul.f32 %v9009_v23, %v9009_v23  ;;  %v1599_v27 = vsel %vm1072_vm3, %v1393_v14, 0.0 }
 0x18c   :  { %v1269_v19 = vadd.f32 %v1268_v29, %v1267_v26  ;;  %v1596_v36 = vadd.f32 %v1595_v47, %v1594_v49  ;;  %v9018_v17 = vpop.f32.mrf.mxu0 }
 0x18d   :  { %16823 = vst [vmem:[#allocation88_spill] sm:$0xff] %v9018_v17  ;;  %v1597_v51 = vsel %vm1072_vm3, %v1392_v62, 0.0  ;;  %v1395_v7 = vmul.f32 %v9018_v17, %v9018_v17  ;;  %v1274_v62 = vsel %vm1072_vm3, %v9018_v17, 0.0 }
 0x18e   :  { %v1598_v43 = vadd.f32 %v1597_v51, %v1596_v36  ;;  %v9023_v6 = vpop.f32.mrf.mxu0  ;;  %v1271_v9 = vadd.f32 %v1270_v5, %v1269_v19 }
 0x18f   :  { %16824 = vst [vmem:[#allocation89_spill] sm:$0xff] %v9023_v6  ;;  %v1272_v26 = vsel %vm1072_vm3, %v9023_v6, 0.0  ;;  %v1394_v49 = vmul.f32 %v9023_v6, %v9023_v6  ;;  %v1603_v51 = vsel %vm1072_vm3, %v1395_v7, 0.0 }
 0x190   :  { %v1273_v47 = vadd.f32 %v1272_v26, %v1271_v9  ;;  %v1600_v29 = vadd.f32 %v1599_v27, %v1598_v43  ;;  %v9032_v24 = vpop.f32.mrf.mxu0 }
 0x191   :  { %16825 = vst [vmem:[#allocation90_spill] sm:$0xff] %v9032_v24  ;;  %v1601_v19 = vsel %vm1072_vm3, %v1394_v49, 0.0  ;;  %v1397_v23 = vmul.f32 %v9032_v24, %v9032_v24  ;;  %v1278_v49 = vsel %vm1072_vm3, %v9032_v24, 0.0 }
 0x192   :  { %v1602_v36 = vadd.f32 %v1601_v19, %v1600_v29  ;;  %v9037_v14 = vpop.f32.mrf.mxu0  ;;  %v1275_v5 = vadd.f32 %v1274_v62, %v1273_v47 }
 0x193   :  { %16826 = vst [vmem:[#allocation91_spill] sm:$0xff] %v9037_v14  ;;  %v1276_v9 = vsel %vm1072_vm3, %v9037_v14, 0.0  ;;  %v1396_v43 = vmul.f32 %v9037_v14, %v9037_v14  ;;  %v1607_v19 = vsel %vm1072_vm3, %v1397_v23, 0.0 }
 0x194   :  { %v1277_v27 = vadd.f32 %v1276_v9, %v1275_v5  ;;  %v1604_v26 = vadd.f32 %v1603_v51, %v1602_v36  ;;  %v9046_v17 = vpop.f32.mrf.mxu0 }
 0x195   :  { %16827 = vst [vmem:[#allocation92_spill] sm:$0xff] %v9046_v17  ;;  %v1605_v47 = vsel %vm1072_vm3, %v1396_v43, 0.0  ;;  %v1399_v6 = vmul.f32 %v9046_v17, %v9046_v17  ;;  %v1282_v43 = vsel %vm1072_vm3, %v9046_v17, 0.0 }
 0x196   :  { %v1606_v29 = vadd.f32 %v1605_v47, %v1604_v26  ;;  %v9051_v7 = vpop.f32.mrf.mxu0  ;;  %v1279_v62 = vadd.f32 %v1278_v49, %v1277_v27 }
 0x197   :  { %16828 = vst [vmem:[#allocation93_spill] sm:$0xff] %v9051_v7  ;;  %v1280_v5 = vsel %vm1072_vm3, %v9051_v7, 0.0  ;;  %v1398_v36 = vmul.f32 %v9051_v7, %v9051_v7  ;;  %v1611_v47 = vsel %vm1072_vm3, %v1399_v6, 0.0 }
 0x198   :  { %v1281_v51 = vadd.f32 %v1280_v5, %v1279_v62  ;;  %v1608_v9 = vadd.f32 %v1607_v19, %v1606_v29  ;;  %v9060_v24 = vpop.f32.mrf.mxu0 }
 0x199   :  { %16829 = vst [vmem:[#allocation94_spill] sm:$0xff] %v9060_v24  ;;  %v1609_v27 = vsel %vm1072_vm3, %v1398_v36, 0.0  ;;  %v1401_v14 = vmul.f32 %v9060_v24, %v9060_v24  ;;  %v1286_v36 = vsel %vm1072_vm3, %v9060_v24, 0.0 }
 0x19a   :  { %v1610_v26 = vadd.f32 %v1609_v27, %v1608_v9  ;;  %v9065_v23 = vpop.f32.mrf.mxu0  ;;  %v1283_v49 = vadd.f32 %v1282_v43, %v1281_v51 }
 0x19b   :  { %v1284_v62 = vsel %vm1072_vm3, %v9065_v23, 0.0  ;;  %v1400_v29 = vmul.f32 %v9065_v23, %v9065_v23  ;;  %v1615_v6 = vsel %vm1072_vm3, %v1401_v14, 0.0  ;;  %v16892_v14 = vld [vmem:[#allocation89_spill] sm:$0xff] }
 0x19c   :  { %v1285_v19 = vadd.f32 %v1284_v62, %v1283_v49  ;;  %v1612_v5 = vadd.f32 %v1611_v47, %v1610_v26 }
 0x19d   :  { %v1613_v9 = vsel %vm1072_vm3, %v1400_v29, 0.0 }
 0x19e   :  { %v1287_v27 = vadd.f32 %v1286_v36, %v1285_v19  ;;  %v1614_v51 = vadd.f32 %v1613_v9, %v1612_v5  ;;  %v16895_v5 = vld [vmem:[#allocation90_spill] sm:$0xff] }
 0x1a0   :  { %v1288_v43 = vrot.slane %v1287_v27, 4  ;;  %v1616_v17 = vadd.f32 %v1615_v6, %v1614_v51  ;;  %v16863_v6 = vld [vmem:[#allocation61_spill] sm:$0xff] }
 0x1a2   :  { %v1289_v7 = vadd.f32 %v1288_v43, %v1287_v27  ;;  %v1617_v30 = vrot.slane %v1616_v17, 4 }
 0x1a4   :  { %v1290_v31 = vrot.slane %v1289_v7, 2  ;;  %v1618_v42 = vadd.f32 %v1617_v30, %v1616_v17  ;;  %v16893_v30 = vld [vmem:[#allocation88_spill] sm:$0xff] }
 0x1a6   :  { %v1291_v0 = vadd.f32 %v1290_v31, %v1289_v7  ;;  %v1619_v48 = vrot.slane %v1618_v42, 2  ;;  %v16896_v7 = vld [vmem:[#allocation93_spill] sm:$0xff] }
 0x1a8   :  { %v1292_v28 = vrot.slane %v1291_v0, 1  ;;  %v1620_v49 = vadd.f32 %v1619_v48, %v1618_v42  ;;  %v9225_v48 = vld [vmem:[%s16115_s4] ss:$0 sm:$0xff]  ;;  %s7670_s4 = smov 80  }
 0x1aa   :  { %v1293_v26 = vadd.f32 %v1292_v28, %v1291_v0  ;;  %v1621_v47 = vrot.slane %v1620_v49, 1 }
 0x1ac   :  { %v1622_v62 = vadd.f32 %v1621_v47, %v1620_v49  ;;  %v9078_v24 = vmul.f32 0.001953125, %v1293_v26  ;;  %v16831_v49 = vld [vmem:[#allocation28_spill] sm:$0xff]  ;;  %v16832_v26 = vld [vmem:[#allocation31_spill] sm:$0xff]  ;;  %v16833_v47 = vld [vmem:[#allocation30_spill] sm:$0xff] }
 0x1ae   :  { %v1624_v29 = vmul.f32 0.001953125, %v1622_v62  ;;  %v1625_v19 = vmul.f32 %v9078_v24, %v9078_v24  ;;  %v16862_v31 = vsub.f32 %v9065_v23, %v9078_v24  ;;  %v16899_v28 = vsub.f32 %v8356_v20, %v9078_v24 }
 0x1af   :  { %v16900_v9 = vsub.f32 %v8346_v59, %v9078_v24  ;;  %v16901_v36 = vsub.f32 %v8291_v11, %v9078_v24  ;;  %v16902_v20 = vsub.f32 %v8284_v3, %v9078_v24  ;;  %v16904_v59 = vsub.f32 %v8312_v56, %v9078_v24 }
 0x1b0   :  { %v1626_v42 = vsub.f32 %v1624_v29, %v1625_v19  ;;  %v16835_v29 = vld [vmem:[#allocation32_spill] sm:$0xff]  ;;  %v16905_v11 = vsub.f32 %v8302_v38, %v9078_v24  ;;  %v16906_v19 = vsub.f32 %v8334_v35, %v9078_v24  ;;  %v16907_v56 = vsub.f32 %v8324_v21, %v9078_v24  ;;  %v9372_v35 = vld [vmem:[%s16117_s1 + $0x38] sm:$0xff] }
 0x1b1   :  { %v16908_v38 = vsub.f32 %v8378_v22, %v9078_v24  ;;  %16910 = vst [vmem:[#allocation30_spill] sm:$0xff] %v9372_v35  ;;  %v16912_v21 = vsub.f32 %v8368_v58, %v9078_v24  ;;  %v16914_v22 = vsub.f32 %v8393_v60, %v9078_v24  ;;  %v16917_v60 = vsub.f32 %v8402_v39, %v9078_v24 }
 0x1b2   :  { %v1735_v27 = vadd.f32 1e-05, %v1626_v42  ;;  %v16830_v42 = vld [vmem:[#allocation29_spill] sm:$0xff] }
 0x1b4   :  { %7597 = vrsqrt.f32 %v1735_v27  ;;  %v16834_v27 = vld [vmem:[#allocation33_spill] sm:$0xff] }
 0x1c1   :  { %v9220_v62 = vpop.eup %7597 }
 0x1c2   :  { %v1843_v0 = vmul.f32 %v9220_v62, %v16862_v31  ;;  %v16897_v31 = vld [vmem:[#allocation92_spill] sm:$0xff]  ;;  %v1743_v51 = vmul.f32 %v9220_v62, %v16899_v28  ;;  %v1744_v17 = vmul.f32 %v9220_v62, %v16900_v9  ;;  %v9324_v23 = vmul.f32 %v9220_v62, %v16901_v36 }
 0x1c3   :  { %v9335_v28 = vmul.f32 %v9220_v62, %v16902_v20  ;;  %v9341_v9 = vmul.f32 %v9220_v62, %v16904_v59  ;;  %v9347_v36 = vmul.f32 %v9220_v62, %v16905_v11  ;;  %v9353_v3 = vmul.f32 %v9220_v62, %v16906_v19 }
 0x1c4   :  { %v9254_v43 = vmul.f32 %v9225_v48, %v1843_v0  ;;  %v9329_v0 = vld [vmem:[%s16116_s5] ss:$0 sm:$0xff]  ;;  %v1858_v20 = vmul.f32 %v9225_v48, %v1743_v51  ;;  %v9361_v59 = vmul.f32 %v9220_v62, %v16907_v56  ;;  %v9367_v11 = vmul.f32 %v9220_v62, %v16908_v38 }
 0x1c5   :  { %16903 = vst [vmem:[#allocation28_spill] sm:$0xff] %v9335_v28  ;;  %v1859_v28 = vmul.f32 %v9225_v48, %v1744_v17  ;;  %v9377_v17 = vld [vmem:[%s16117_s1 + $0x30] sm:$0xff]  ;;  %v9383_v51 = vmul.f32 %v9220_v62, %v16912_v21  ;;  %v9389_v19 = vmul.f32 %v9220_v62, %v16914_v22  ;;  %v16915_v56 = vsub.f32 %v8387_v46, %v9078_v24 }
 0x1c6   :  { %16870 = vst [vmem:[#allocation29_spill] sm:$0xff] %v9254_v43  ;;  %v16898_v43 = vld [vmem:[#allocation94_spill] sm:$0xff]  ;;  %16909 = vst [vmem:[#allocation31_spill] sm:$0xff] %v9367_v11  ;;  %v16916_v11 = vsub.f32 %v8407_v63, %v9078_v24  ;;  %v1973_v21 = vadd.f32 %v9329_v0, %v1858_v20  ;;  %v9409_v22 = vmul.f32 %v9220_v62, %v16917_v60 }
 0x1c7   :  { %16911 = vst [vmem:[#allocation33_spill] sm:$0xff] %v9377_v17  ;;  %16913 = vst [vmem:[#allocation32_spill] sm:$0xff] %v9383_v51  ;;  %v9395_v38 = vmul.f32 %v9220_v62, %v16915_v56  ;;  %v1974_v51 = vadd.f32 %v9329_v0, %v1859_v28  ;;  %v16918_v46 = vsub.f32 %v8421_v52, %v9078_v24 }
 0x1c8   :  { %v9401_v58 = vmul.f32 %v9220_v62, %v16916_v11  ;;  %v16919_v63 = vsub.f32 %v8416_v33, %v9078_v24  ;;  %v16920_v28 = vsub.f32 %v8435_v57, %v9078_v24  ;;  %v16921_v20 = vsub.f32 %v8430_v32, %v9078_v24 }
 0x1c9   :  { %v9415_v56 = vmul.f32 %v9220_v62, %v16918_v46  ;;  %v16922_v60 = vsub.f32 %v8449_v54, %v9078_v24  ;;  %v9442_v46 = vmul.f32 %v9377_v17, %v1973_v21  ;;  %v9445_v57 = vmul.f32 %v9372_v35, %v1974_v51 }
 0x1ca   :  { %v9421_v11 = vmul.f32 %v9220_v62, %v16919_v63  ;;  %v9427_v39 = vmul.f32 %v9220_v62, %v16920_v28  ;;  %v9433_v52 = vmul.f32 %v9220_v62, %v16921_v20  ;;  %v16925_v63 = vsub.f32 %v8444_v34, %v9078_v24 }
 0x1cb   :  { %v9439_v33 = vmul.f32 %v9220_v62, %v16922_v60  ;;  %16923 = vst [vmem:[#allocation61_spill] sm:$0xff] %v9442_v46  ;;  %16924 = vst [vmem:[#allocation89_spill] sm:$0xff] %v9445_v57  ;;  %v16926_v28 = vsub.f32 %v8463_v16, %v9078_v24  ;;  %v16927_v20 = vsub.f32 %v8458_v50, %v9078_v24 }
 0x1cc   :  { %v9451_v32 = vmul.f32 %v9220_v62, %v16925_v63  ;;  %v16928_v51 = vsub.f32 %v8477_v45, %v9078_v24  ;;  %v16929_v60 = vsub.f32 %v8472_v61, %v9078_v24  ;;  %v16930_v63 = vsub.f32 %v8491_v8, %v9078_v24 }
 0x1cd   :  { %v9457_v54 = vmul.f32 %v9220_v62, %v16926_v28  ;;  %v9463_v21 = vmul.f32 %v9220_v62, %v16927_v20  ;;  %v6497_v28 = vpack.i.bf16 %v9445_v57, %v9442_v46  ;;  %v16931_v45 = vsub.f32 %v8486_v44, %v9078_v24 }
 0x1ce   :  { %v9469_v34 = vmul.f32 %v9220_v62, %v16928_v51  ;;  %v9475_v16 = vmul.f32 %v9220_v62, %v16929_v60  ;;  %v9481_v50 = vmul.f32 %v9220_v62, %v16930_v63  ;;  %v16932_v61 = vsub.f32 %v8505_v41, %v9078_v24 }
 0x1cf   :  { %v9489_v20 = vmul.f32 %v9220_v62, %v16931_v45  ;;  %v16933_v8 = vsub.f32 %v8500_v18, %v9078_v24  ;;  %v16934_v63 = vsub.f32 %v8519_v15, %v9078_v24  ;;  %v16935_v45 = vsub.f32 %v8514_v13, %v9078_v24  ;;  %6498 = vrot.lane.b32.xlu1 %v6497_v28, %s7665_s22 }
 0x1d0   :  { %v9495_v51 = vmul.f32 %v9220_v62, %v16932_v61  ;;  %v16936_v61 = vsub.f32 %v8533_v37, %v9078_v24  ;;  %v16938_v13 = vsub.f32 %v8547_v53, %v9078_v24  ;;  %v16939_v37 = vsub.f32 %v8542_v25, %v9078_v24 }
 0x1d1   :  { %v9501_v60 = vmul.f32 %v9220_v62, %v16933_v8  ;;  %v9507_v44 = vmul.f32 %v9220_v62, %v16934_v63  ;;  %v9513_v41 = vmul.f32 %v9220_v62, %v16935_v45  ;;  %v16937_v8 = vsub.f32 %v8528_v10, %v9078_v24 }
 0x1d2   :  { %v9519_v18 = vmul.f32 %v9220_v62, %v16936_v61  ;;  %v9532_v63 = vmul.f32 %v9220_v62, %v16938_v13  ;;  %v9538_v45 = vmul.f32 %v9220_v62, %v16939_v37  ;;  %v16940_v10 = vsub.f32 %v8561_v40, %v9078_v24 }
 0x1d3   :  { %v9525_v15 = vmul.f32 %v9220_v62, %v16937_v8  ;;  %v16941_v28 = vsub.f32 %v8556_v12, %v9078_v24  ;;  %v16942_v8 = vsub.f32 %v8575_v1, %v9078_v24  ;;  %v16943_v13 = vsub.f32 %v8570_v4, %v9078_v24 }
 0x1d4   :  { %v9544_v61 = vmul.f32 %v9220_v62, %v16940_v10  ;;  %v16944_v37 = vsub.f32 %v8589_v2, %v9078_v24  ;;  %v16945_v10 = vsub.f32 %v8584_v55, %v9078_v24 }
 0x1d5   :  { %v9550_v53 = vmul.f32 %v9220_v62, %v16941_v28  ;;  %v9556_v25 = vmul.f32 %v9220_v62, %v16942_v8  ;;  %v9562_v40 = vmul.f32 %v9220_v62, %v16943_v13  ;;  %v16946_v28 = vsub.f32 %v16830_v42, %v9078_v24 }
 0x1d6   :  { %v9568_v12 = vmul.f32 %v9220_v62, %v16944_v37  ;;  %v9574_v1 = vmul.f32 %v9220_v62, %v16945_v10  ;;  %v16947_v8 = vsub.f32 %v16831_v49, %v9078_v24  ;;  %v16948_v13 = vsub.f32 %v16832_v26, %v9078_v24 }
 0x1d7   :  { %v9580_v4 = vmul.f32 %v9220_v62, %v16946_v28  ;;  %v16949_v37 = vsub.f32 %v16833_v47, %v9078_v24  ;;  %v16950_v10 = vsub.f32 %v16834_v27, %v9078_v24  ;;  %v16951_v28 = vsub.f32 %v16835_v29, %v9078_v24 }
 0x1d8   :  { %v9586_v2 = vmul.f32 %v9220_v62, %v16947_v8  ;;  %v9592_v55 = vmul.f32 %v9220_v62, %v16948_v13  ;;  %v16953_v8 = vld [vmem:[#allocation35_spill] sm:$0xff] }
 0x1d9   :  { %v9598_v42 = vmul.f32 %v9220_v62, %v16949_v37  ;;  %v9604_v49 = vmul.f32 %v9220_v62, %v16950_v10  ;;  %v9610_v26 = vmul.f32 %v9220_v62, %v16951_v28  ;;  %v16954_v13 = vsub.f32 %v16953_v8, %v9078_v24  ;;  %v16956_v37 = vld [vmem:[#allocation34_spill] sm:$0xff]  ;;  %v16959_v10 = vld [vmem:[#allocation37_spill] sm:$0xff]  ;;  %v16962_v28 = vld [vmem:[#allocation36_spill] sm:$0xff] }
 0x1da   :  { %v16957_v35 = vsub.f32 %v16956_v37, %v9078_v24  ;;  %v16960_v17 = vsub.f32 %v16959_v10, %v9078_v24  ;;  %v16963_v57 = vsub.f32 %v16962_v28, %v9078_v24 }
 0x1db   :  { %16952 = vst [vmem:[#allocation88_spill] sm:$0xff] %v9610_v26  ;;  %v9616_v47 = vmul.f32 %v9220_v62, %v16954_v13  ;;  %v16965_v13 = vld [vmem:[#allocation39_spill] sm:$0xff] }
 0x1dc   :  { %v9622_v27 = vmul.f32 %v9220_v62, %v16957_v35  ;;  %v9628_v29 = vmul.f32 %v9220_v62, %v16960_v17  ;;  %v9634_v8 = vmul.f32 %v9220_v62, %v16963_v57  ;;  %v16966_v46 = vsub.f32 %v16965_v13, %v9078_v24  ;;  %v16968_v35 = vld [vmem:[#allocation38_spill] sm:$0xff]  ;;  %v16971_v17 = vld [vmem:[#allocation41_spill] sm:$0xff]  ;;  %v16974_v57 = vld [vmem:[#allocation40_spill] sm:$0xff] }
 0x1dd   :  { %16955 = vst [vmem:[#allocation90_spill] sm:$0xff] %v9616_v47  ;;  %v16988_v47 = vld [vmem:[#allocation47_spill] sm:$0xff] }
 0x1de   :  { %16958 = vst [vmem:[#allocation93_spill] sm:$0xff] %v9622_v27  ;;  %16961 = vst [vmem:[#allocation92_spill] sm:$0xff] %v9628_v29  ;;  %v9640_v37 = vmul.f32 %v9220_v62, %v16966_v46  ;;  %v16969_v27 = vsub.f32 %v16968_v35, %v9078_v24  ;;  %v16972_v29 = vsub.f32 %v16971_v17, %v9078_v24  ;;  %v16977_v46 = vld [vmem:[#allocation43_spill] sm:$0xff] }
 0x1df   :  { %16964 = vst [vmem:[#allocation94_spill] sm:$0xff] %v9634_v8  ;;  %v16975_v8 = vsub.f32 %v16974_v57, %v9078_v24 }
 0x1e0   :  { %16967 = vst [vmem:[#allocation35_spill] sm:$0xff] %v9640_v37  ;;  %v9646_v10 = vmul.f32 %v9220_v62, %v16969_v27  ;;  %v9652_v28 = vmul.f32 %v9220_v62, %v16972_v29  ;;  %v16978_v37 = vsub.f32 %v16977_v46, %v9078_v24  ;;  %v16980_v27 = vld [vmem:[#allocation42_spill] sm:$0xff]  ;;  %v16983_v29 = vld [vmem:[#allocation45_spill] sm:$0xff] }
 0x1e1   :  { %v9658_v13 = vmul.f32 %v9220_v62, %v16975_v8  ;;  %v16986_v8 = vld [vmem:[#allocation44_spill] sm:$0xff] }
 0x1e2   :  { %16970 = vst [vmem:[#allocation34_spill] sm:$0xff] %v9646_v10  ;;  %16973 = vst [vmem:[#allocation37_spill] sm:$0xff] %v9652_v28  ;;  %v9664_v35 = vmul.f32 %v9220_v62, %v16978_v37  ;;  %v16981_v10 = vsub.f32 %v16980_v27, %v9078_v24  ;;  %v16984_v28 = vsub.f32 %v16983_v29, %v9078_v24  ;;  %v16990_v27 = vld [vmem:[#allocation46_spill] sm:$0xff]  ;;  %v16993_v29 = vld [vmem:[#allocation49_spill] sm:$0xff] }
 0x1e3   :  { %16976 = vst [vmem:[#allocation36_spill] sm:$0xff] %v9658_v13  ;;  %v16987_v13 = vsub.f32 %v16986_v8, %v9078_v24  ;;  %v16989_v37 = vsub.f32 %v16988_v47, %v9078_v24  ;;  %v16996_v8 = vld [vmem:[#allocation48_spill] sm:$0xff]  ;;  %v16999_v47 = vld [vmem:[#allocation51_spill] sm:$0xff] }
 0x1e4   :  { %16979 = vst [vmem:[#allocation39_spill] sm:$0xff] %v9664_v35  ;;  %v9670_v17 = vmul.f32 %v9220_v62, %v16981_v10  ;;  %v9676_v57 = vmul.f32 %v9220_v62, %v16984_v28  ;;  %v16991_v10 = vsub.f32 %v16990_v27, %v9078_v24  ;;  %v16994_v28 = vsub.f32 %v16993_v29, %v9078_v24 }
 0x1e5   :  { %v1794_v46 = vmul.f32 %v9220_v62, %v16987_v13  ;;  %v1795_v35 = vmul.f32 %v9220_v62, %v16989_v37  ;;  %v16997_v13 = vsub.f32 %v16996_v8, %v9078_v24  ;;  %v17000_v37 = vsub.f32 %v16999_v47, %v9078_v24 }
 0x1e6   :  { %16982 = vst [vmem:[#allocation38_spill] sm:$0xff] %v9670_v17  ;;  %16985 = vst [vmem:[#allocation41_spill] sm:$0xff] %v9676_v57  ;;  %v9690_v17 = vmul.f32 %v9220_v62, %v16991_v10  ;;  %v9696_v57 = vmul.f32 %v9220_v62, %v16994_v28  ;;  %v17002_v10 = vld [vmem:[#allocation50_spill] sm:$0xff]  ;;  %v17005_v28 = vld [vmem:[#allocation53_spill] sm:$0xff] }
 0x1e7   :  { %v9702_v26 = vmul.f32 %v9220_v62, %v16997_v13  ;;  %v9708_v27 = vmul.f32 %v9220_v62, %v17000_v37  ;;  %v17008_v13 = vld [vmem:[#allocation52_spill] sm:$0xff]  ;;  %v17011_v37 = vld [vmem:[#allocation55_spill] sm:$0xff] }
 0x1e8   :  { %16992 = vst [vmem:[#allocation40_spill] sm:$0xff] %v9690_v17  ;;  %16995 = vst [vmem:[#allocation43_spill] sm:$0xff] %v9696_v57  ;;  %v17003_v17 = vsub.f32 %v17002_v10, %v9078_v24  ;;  %v17006_v57 = vsub.f32 %v17005_v28, %v9078_v24 }
 0x1e9   :  { %16998 = vst [vmem:[#allocation42_spill] sm:$0xff] %v9702_v26  ;;  %17001 = vst [vmem:[#allocation45_spill] sm:$0xff] %v9708_v27  ;;  %v17009_v26 = vsub.f32 %v17008_v13, %v9078_v24  ;;  %v17012_v27 = vsub.f32 %v17011_v37, %v9078_v24 }
 0x1ea   :  { %v9714_v29 = vmul.f32 %v9220_v62, %v17003_v17  ;;  %v9720_v8 = vmul.f32 %v9220_v62, %v17006_v57  ;;  %v17014_v17 = vld [vmem:[#allocation54_spill] sm:$0xff]  ;;  %v17017_v57 = vld [vmem:[#allocation57_spill] sm:$0xff] }
 0x1eb   :  { %v9726_v47 = vmul.f32 %v9220_v62, %v17009_v26  ;;  %v9732_v10 = vmul.f32 %v9220_v62, %v17012_v27  ;;  %v17019_v26 = vld [vmem:[#allocation56_spill] sm:$0xff]  ;;  %v17022_v27 = vld [vmem:[#allocation59_spill] sm:$0xff] }
 0x1ec   :  { %17004 = vst [vmem:[#allocation44_spill] sm:$0xff] %v9714_v29  ;;  %17007 = vst [vmem:[#allocation47_spill] sm:$0xff] %v9720_v8  ;;  %v17015_v29 = vsub.f32 %v17014_v17, %v9078_v24  ;;  %v17018_v8 = vsub.f32 %v17017_v57, %v9078_v24 }
 0x1ed   :  { %17010 = vst [vmem:[#allocation46_spill] sm:$0xff] %v9726_v47  ;;  %17013 = vst [vmem:[#allocation49_spill] sm:$0xff] %v9732_v10  ;;  %v17020_v47 = vsub.f32 %v17019_v26, %v9078_v24  ;;  %v17023_v10 = vsub.f32 %v17022_v27, %v9078_v24 }
 0x1ee   :  { %v9738_v28 = vmul.f32 %v9220_v62, %v17015_v29  ;;  %v9744_v13 = vmul.f32 %v9220_v62, %v17018_v8  ;;  %v17025_v29 = vld [vmem:[#allocation58_spill] sm:$0xff]  ;;  %v17028_v8 = vsub.f32 %v16863_v6, %v9078_v24 }
 0x1ef   :  { %v9750_v37 = vmul.f32 %v9220_v62, %v17020_v47  ;;  %v9756_v17 = vmul.f32 %v9220_v62, %v17023_v10  ;;  %v17030_v47 = vld [vmem:[#allocation60_spill] sm:$0xff]  ;;  %v17033_v10 = vld [vmem:[#allocation63_spill] sm:$0xff] }
 0x1f0   :  { %17016 = vst [vmem:[#allocation48_spill] sm:$0xff] %v9738_v28  ;;  %v17026_v28 = vsub.f32 %v17025_v29, %v9078_v24  ;;  %v9768_v26 = vmul.f32 %v9220_v62, %v17028_v8  ;;  %v17039_v8 = vld [vmem:[#allocation65_spill] sm:$0xff] }
 0x1f1   :  { %17021 = vst [vmem:[#allocation51_spill] sm:$0xff] %v9750_v37  ;;  %17024 = vst [vmem:[#allocation50_spill] sm:$0xff] %v9756_v17  ;;  %v17031_v37 = vsub.f32 %v17030_v47, %v9078_v24  ;;  %v17034_v17 = vsub.f32 %v17033_v10, %v9078_v24 }
 0x1f2   :  { %v9762_v57 = vmul.f32 %v9220_v62, %v17026_v28  ;;  %17029 = vst [vmem:[#allocation52_spill] sm:$0xff] %v9768_v26  ;;  %v17036_v28 = vld [vmem:[#allocation62_spill] sm:$0xff]  ;;  %v17040_v26 = vsub.f32 %v17039_v8, %v9078_v24 }
 0x1f3   :  { %v9774_v27 = vmul.f32 %v9220_v62, %v17031_v37  ;;  %v9780_v29 = vmul.f32 %v9220_v62, %v17034_v17  ;;  %v17042_v37 = vld [vmem:[#allocation64_spill] sm:$0xff]  ;;  %v17045_v17 = vld [vmem:[#allocation67_spill] sm:$0xff] }
 0x1f4   :  { %17027 = vst [vmem:[#allocation53_spill] sm:$0xff] %v9762_v57  ;;  %v17037_v57 = vsub.f32 %v17036_v28, %v9078_v24  ;;  %v9792_v47 = vmul.f32 %v9220_v62, %v17040_v26  ;;  %v17051_v26 = vld [vmem:[#allocation69_spill] sm:$0xff] }
 0x1f5   :  { %17032 = vst [vmem:[#allocation55_spill] sm:$0xff] %v9774_v27  ;;  %17035 = vst [vmem:[#allocation54_spill] sm:$0xff] %v9780_v29  ;;  %v17043_v27 = vsub.f32 %v17042_v37, %v9078_v24  ;;  %v17046_v29 = vsub.f32 %v17045_v17, %v9078_v24 }
 0x1f6   :  { %v9786_v6 = vmul.f32 %v9220_v62, %v17037_v57  ;;  %17041 = vst [vmem:[#allocation56_spill] sm:$0xff] %v9792_v47  ;;  %v17048_v57 = vld [vmem:[#allocation66_spill] sm:$0xff]  ;;  %v17052_v47 = vsub.f32 %v17051_v26, %v9078_v24 }
 0x1f7   :  { %v9798_v10 = vmul.f32 %v9220_v62, %v17043_v27  ;;  %v9804_v28 = vmul.f32 %v9220_v62, %v17046_v29  ;;  %v17054_v27 = vld [vmem:[#allocation68_spill] sm:$0xff]  ;;  %v17057_v29 = vld [vmem:[#allocation71_spill] sm:$0xff] }
 0x1f8   :  { %17038 = vst [vmem:[#allocation57_spill] sm:$0xff] %v9786_v6  ;;  %v17049_v6 = vsub.f32 %v17048_v57, %v9078_v24  ;;  %v9816_v37 = vmul.f32 %v9220_v62, %v17052_v47  ;;  %v17063_v47 = vld [vmem:[#allocation73_spill] sm:$0xff] }
 0x1f9   :  { %17044 = vst [vmem:[#allocation59_spill] sm:$0xff] %v9798_v10  ;;  %17047 = vst [vmem:[#allocation58_spill] sm:$0xff] %v9804_v28  ;;  %v17055_v10 = vsub.f32 %v17054_v27, %v9078_v24  ;;  %v17058_v28 = vsub.f32 %v17057_v29, %v9078_v24 }
 0x1fa   :  { %v9810_v8 = vmul.f32 %v9220_v62, %v17049_v6  ;;  %17053 = vst [vmem:[#allocation63_spill] sm:$0xff] %v9816_v37  ;;  %v17060_v6 = vld [vmem:[#allocation70_spill] sm:$0xff]  ;;  %v17064_v37 = vsub.f32 %v17063_v47, %v9078_v24 }
 0x1fb   :  { %v9822_v17 = vmul.f32 %v9220_v62, %v17055_v10  ;;  %v9828_v57 = vmul.f32 %v9220_v62, %v17058_v28  ;;  %v17066_v10 = vld [vmem:[#allocation72_spill] sm:$0xff]  ;;  %v17069_v28 = vld [vmem:[#allocation75_spill] sm:$0xff] }
 0x1fc   :  { %17050 = vst [vmem:[#allocation60_spill] sm:$0xff] %v9810_v8  ;;  %v17061_v8 = vsub.f32 %v17060_v6, %v9078_v24  ;;  %v9840_v27 = vmul.f32 %v9220_v62, %v17064_v37  ;;  %v17075_v37 = vld [vmem:[#allocation77_spill] sm:$0xff] }
 0x1fd   :  { %17056 = vst [vmem:[#allocation62_spill] sm:$0xff] %v9822_v17  ;;  %17059 = vst [vmem:[#allocation65_spill] sm:$0xff] %v9828_v57  ;;  %v17067_v17 = vsub.f32 %v17066_v10, %v9078_v24  ;;  %v17070_v57 = vsub.f32 %v17069_v28, %v9078_v24 }
 0x1fe   :  { %v9834_v26 = vmul.f32 %v9220_v62, %v17061_v8  ;;  %17065 = vst [vmem:[#allocation67_spill] sm:$0xff] %v9840_v27  ;;  %v17072_v8 = vld [vmem:[#allocation74_spill] sm:$0xff]  ;;  %v17076_v27 = vsub.f32 %v17075_v37, %v9078_v24 }
 0x1ff   :  { %v9846_v29 = vmul.f32 %v9220_v62, %v17067_v17  ;;  %v9852_v6 = vmul.f32 %v9220_v62, %v17070_v57  ;;  %v17078_v17 = vld [vmem:[#allocation76_spill] sm:$0xff]  ;;  %v17081_v57 = vld [vmem:[#allocation79_spill] sm:$0xff] }
 0x200   :  { %17062 = vst [vmem:[#allocation64_spill] sm:$0xff] %v9834_v26  ;;  %v17073_v26 = vsub.f32 %v17072_v8, %v9078_v24  ;;  %v9864_v10 = vmul.f32 %v9220_v62, %v17076_v27  ;;  %v17087_v27 = vld [vmem:[#allocation81_spill] sm:$0xff] }
 0x201   :  { %17068 = vst [vmem:[#allocation66_spill] sm:$0xff] %v9846_v29  ;;  %17071 = vst [vmem:[#allocation69_spill] sm:$0xff] %v9852_v6  ;;  %v17079_v29 = vsub.f32 %v17078_v17, %v9078_v24  ;;  %v17082_v6 = vsub.f32 %v17081_v57, %v9078_v24 }
 0x202   :  { %v9858_v47 = vmul.f32 %v9220_v62, %v17073_v26  ;;  %17077 = vst [vmem:[#allocation71_spill] sm:$0xff] %v9864_v10  ;;  %v17084_v26 = vld [vmem:[#allocation78_spill] sm:$0xff]  ;;  %v17088_v10 = vsub.f32 %v17087_v27, %v9078_v24 }
 0x203   :  { %v9870_v28 = vmul.f32 %v9220_v62, %v17079_v29  ;;  %v9876_v8 = vmul.f32 %v9220_v62, %v17082_v6  ;;  %v17090_v29 = vld [vmem:[#allocation80_spill] sm:$0xff]  ;;  %v17093_v6 = vld [vmem:[#allocation83_spill] sm:$0xff] }
 0x204   :  { %17074 = vst [vmem:[#allocation68_spill] sm:$0xff] %v9858_v47  ;;  %v17085_v47 = vsub.f32 %v17084_v26, %v9078_v24  ;;  %v9888_v17 = vmul.f32 %v9220_v62, %v17088_v10  ;;  %v17099_v10 = vld [vmem:[#allocation85_spill] sm:$0xff] }
 0x205   :  { %17080 = vst [vmem:[#allocation70_spill] sm:$0xff] %v9870_v28  ;;  %17083 = vst [vmem:[#allocation73_spill] sm:$0xff] %v9876_v8  ;;  %v17091_v28 = vsub.f32 %v17090_v29, %v9078_v24  ;;  %v17094_v8 = vsub.f32 %v17093_v6, %v9078_v24 }
 0x206   :  { %v9882_v37 = vmul.f32 %v9220_v62, %v17085_v47  ;;  %17089 = vst [vmem:[#allocation75_spill] sm:$0xff] %v9888_v17  ;;  %v17096_v47 = vld [vmem:[#allocation82_spill] sm:$0xff]  ;;  %v17100_v17 = vsub.f32 %v17099_v10, %v9078_v24 }
 0x207   :  { %v9894_v57 = vmul.f32 %v9220_v62, %v17091_v28  ;;  %v9900_v26 = vmul.f32 %v9220_v62, %v17094_v8  ;;  %v17101_v28 = vld [vmem:[#allocation84_spill] sm:$0xff]  ;;  %v17103_v8 = vld [vmem:[#allocation87_spill] sm:$0xff] }
 0x208   :  { %17086 = vst [vmem:[#allocation72_spill] sm:$0xff] %v9882_v37  ;;  %v17097_v37 = vsub.f32 %v17096_v47, %v9078_v24  ;;  %v9912_v29 = vmul.f32 %v9220_v62, %v17100_v17  ;;  %v17108_v17 = vsub.f32 %v16892_v14, %v9078_v24 }
 0x209   :  { %17092 = vst [vmem:[#allocation74_spill] sm:$0xff] %v9894_v57  ;;  %17095 = vst [vmem:[#allocation77_spill] sm:$0xff] %v9900_v26  ;;  %v17102_v57 = vsub.f32 %v17101_v28, %v9078_v24  ;;  %v17104_v26 = vsub.f32 %v17103_v8, %v9078_v24 }
 0x20a   :  { %v9906_v27 = vmul.f32 %v9220_v62, %v17097_v37  ;;  %v17106_v37 = vld [vmem:[#allocation86_spill] sm:$0xff]  ;;  %v9936_v28 = vmul.f32 %v9220_v62, %v17108_v17  ;;  %v17113_v17 = vsub.f32 %v16896_v7, %v9078_v24  ;;  %v1856_v7 = vmul.f32 %v9225_v48, %v9353_v3 }
 0x20b   :  { %v9918_v6 = vmul.f32 %v9220_v62, %v17102_v57  ;;  %v9924_v47 = vmul.f32 %v9220_v62, %v17104_v26  ;;  %v17109_v57 = vsub.f32 %v16893_v30, %v9078_v24  ;;  %v17110_v26 = vld [vmem:[#allocation91_spill] sm:$0xff] }
 0x20c   :  { %17098 = vst [vmem:[#allocation76_spill] sm:$0xff] %v9906_v27  ;;  %v17107_v27 = vsub.f32 %v17106_v37, %v9078_v24  ;;  %v9960_v30 = vmul.f32 %v9220_v62, %v17113_v17  ;;  %v1909_v17 = vmul.f32 %v9225_v48, %v1794_v46  ;;  %v10001_v46 = vmul.f32 %v9225_v48, %v9361_v59 }
 0x20d   :  { %17105 = vst [vmem:[#allocation79_spill] sm:$0xff] %v9924_v47  ;;  %v9942_v8 = vmul.f32 %v9220_v62, %v17109_v57  ;;  %v17111_v47 = vsub.f32 %v17110_v26, %v9078_v24  ;;  %v17115_v57 = vsub.f32 %v16897_v31, %v9078_v24  ;;  %v2078_v31 = vld [vmem:[%s16117_s1 + $0x18] sm:$0xff]  ;;  %v10018_v59 = vmul.f32 %v9225_v48, %v9389_v19 }
 0x20e   :  { %v9930_v10 = vmul.f32 %v9220_v62, %v17107_v27  ;;  %v17112_v27 = vsub.f32 %v16895_v5, %v9078_v24  ;;  %17114 = vst [vmem:[#allocation78_spill] sm:$0xff] %v9960_v30  ;;  %v1910_v30 = vmul.f32 %v9225_v48, %v1795_v35  ;;  %v9997_v35 = vmul.f32 %v9225_v48, %v9341_v9 }
 0x20f   :  { %v9948_v37 = vmul.f32 %v9220_v62, %v17111_v47  ;;  %v9966_v26 = vmul.f32 %v9220_v62, %v17115_v57  ;;  %v17116_v47 = vsub.f32 %v16898_v43, %v9078_v24  ;;  %v9985_v24 = vmul.f32 %v9225_v48, %v9324_v23  ;;  %17121 = vst [vmem:[#allocation82_spill] sm:$0xff] %v10001_v46 }
 0x210   :  { %v9954_v14 = vmul.f32 %v9220_v62, %v17112_v27  ;;  %v1855_v27 = vmul.f32 %v9225_v48, %v9347_v36  ;;  %v17118_v36 = vld [vmem:[#allocation28_spill] sm:$0xff]  ;;  %17120 = vst [vmem:[#allocation83_spill] sm:$0xff] %v9997_v35  ;;  %v1971_v23 = vadd.f32 %v9329_v0, %v1856_v7  ;;  %v2024_v57 = vadd.f32 %v9329_v0, %v1909_v17 }
 0x211   :  { %v9972_v5 = vmul.f32 %v9220_v62, %v17116_v47  ;;  %17117 = vst [vmem:[#allocation81_spill] sm:$0xff] %v9985_v24  ;;  %v2079_v62 = vld [vmem:[%s16117_s1 + $0x20] sm:$0xff]  ;;  %v9993_v3 = vmul.f32 %v9225_v48, %v17118_v36  ;;  %v2025_v47 = vadd.f32 %v9329_v0, %v1910_v30  ;;  %v10022_v7 = vmul.f32 %v9225_v48, %v9395_v38 }
 0x212   :  { %v1970_v43 = vadd.f32 %v9329_v0, %v1855_v27  ;;  %v17122_v27 = vld [vmem:[#allocation31_spill] sm:$0xff]  ;;  %v10024_v17 = vmul.f32 %v2079_v62, %v1971_v23  ;;  %v10026_v30 = vmul.f32 %v2078_v31, %v2024_v57  ;;  %v10040_v19 = vmul.f32 %v9225_v48, %v9415_v56  ;;  %v17140_v23 = vld [vmem:[#allocation88_spill] sm:$0xff]  ;;  %v17141_v57 = vld [vmem:[#allocation90_spill] sm:$0xff] }
 0x213   :  { %17119 = vst [vmem:[#allocation80_spill] sm:$0xff] %v9993_v3  ;;  %v10008_v24 = vmul.f32 %v9225_v48, %v17122_v27  ;;  %v17125_v3 = vld [vmem:[#allocation32_spill] sm:$0xff]  ;;  %17126 = vst [vmem:[#allocation87_spill] sm:$0xff] %v10022_v7  ;;  %v10028_v27 = vmul.f32 %v2079_v62, %v2025_v47  ;;  %v10044_v38 = vmul.f32 %v9225_v48, %v9421_v11  ;;  %v17142_v47 = vld [vmem:[#allocation93_spill] sm:$0xff] }
 0x214   :  { %v10010_v36 = vmul.f32 %v2078_v31, %v1970_v43  ;;  %v10014_v9 = vmul.f32 %v9225_v48, %v17125_v3  ;;  %17127 = vst [vmem:[#allocation86_spill] sm:$0xff] %v10024_v17  ;;  %17128 = vst [vmem:[#allocation91_spill] sm:$0xff] %v10026_v30  ;;  %v10032_v43 = vmul.f32 %v9225_v48, %v9401_v58  ;;  %v17154_v7 = vld [vmem:[#allocation39_spill] sm:$0xff] }
 0x215   :  { %17123 = vst [vmem:[#allocation85_spill] sm:$0xff] %v10008_v24  ;;  %17129 = vst [vmem:[#allocation28_spill] sm:$0xff] %v10028_v27  ;;  %v10036_v3 = vmul.f32 %v9225_v48, %v9409_v22  ;;  %v10048_v31 = vmul.f32 %v9225_v48, %v9427_v39  ;;  %v10054_v62 = vmul.f32 %v9225_v48, %v9433_v52  ;;  %v17156_v24 = vld [vmem:[#allocation38_spill] sm:$0xff] }
 0x216   :  { %17124 = vst [vmem:[#allocation84_spill] sm:$0xff] %v10010_v36  ;;  %17130 = vst [vmem:[#allocation31_spill] sm:$0xff] %v10040_v19  ;;  %v6492_v58 = vpack.i.bf16 %v10024_v17, %v10010_v36  ;;  %v10058_v22 = vmul.f32 %v9225_v48, %v9439_v33  ;;  %v10062_v56 = vmul.f32 %v9225_v48, %v9451_v32  ;;  %v17180_v36 = vld [vmem:[#allocation57_spill] sm:$0xff] }
 0x217   :  { %17131 = vst [vmem:[#allocation32_spill] sm:$0xff] %v10054_v62  ;;  %v10066_v11 = vmul.f32 %v9225_v48, %v9457_v54  ;;  %v10070_v39 = vmul.f32 %v9225_v48, %v9463_v21  ;;  %v10074_v52 = vmul.f32 %v9225_v48, %v9469_v34  ;;  %v10078_v33 = vmul.f32 %v9225_v48, %v9475_v16  ;;  %v17152_v62 = vld [vmem:[#allocation36_spill] sm:$0xff] }
 0x218   :  { %6493 = vrot.lane.b32.xlu0 %v6492_v58, %s7665_s22  ;;  %v10083_v32 = vmul.f32 %v9225_v48, %v9481_v50  ;;  %v10087_v54 = vmul.f32 %v9225_v48, %v9489_v20  ;;  %v10091_v21 = vmul.f32 %v9225_v48, %v9495_v51  ;;  %v10095_v34 = vmul.f32 %v9225_v48, %v9501_v60  ;;  %v17144_v58 = vld [vmem:[#allocation92_spill] sm:$0xff] }
 0x219   :  { %17132 = vst [vmem:[#allocation95_spill] sm:$0xff] %v10078_v33  ;;  %v10099_v16 = vmul.f32 %v9225_v48, %v9507_v44  ;;  %v10103_v50 = vmul.f32 %v9225_v48, %v9513_v41  ;;  %v10107_v20 = vmul.f32 %v9225_v48, %v9519_v18  ;;  %v10111_v51 = vmul.f32 %v9225_v48, %v9525_v15  ;;  %v17150_v33 = vld [vmem:[#allocation37_spill] sm:$0xff] }
 0x21a   :  { %17133 = vst [vmem:[#allocation96_spill] sm:$0xff] %v10091_v21  ;;  %v10115_v60 = vmul.f32 %v9225_v48, %v9532_v63  ;;  %v10119_v44 = vmul.f32 %v9225_v48, %v9538_v45  ;;  %v10123_v41 = vmul.f32 %v9225_v48, %v9544_v61  ;;  %v10127_v18 = vmul.f32 %v9225_v48, %v9550_v53  ;;  %v17178_v21 = vld [vmem:[#allocation55_spill] sm:$0xff] }
 0x21b   :  { %17134 = vst [vmem:[#allocation97_spill] sm:$0xff] %v10103_v50  ;;  %v10131_v15 = vmul.f32 %v9225_v48, %v9556_v25  ;;  %v10135_v63 = vmul.f32 %v9225_v48, %v9562_v40  ;;  %v10139_v45 = vmul.f32 %v9225_v48, %v9568_v12  ;;  %v10143_v61 = vmul.f32 %v9225_v48, %v9574_v1  ;;  %v17148_v50 = vld [vmem:[#allocation34_spill] sm:$0xff] }
 0x21c   :  { %17135 = vst [vmem:[#allocation98_spill] sm:$0xff] %v10115_v60  ;;  %17136 = vst [vmem:[#allocation99_spill] sm:$0xff] %v10127_v18  ;;  %v10147_v53 = vmul.f32 %v9225_v48, %v9580_v4  ;;  %v10151_v25 = vmul.f32 %v9225_v48, %v9586_v2  ;;  %v10155_v40 = vmul.f32 %v9225_v48, %v9592_v55  ;;  %v17146_v18 = vld [vmem:[#allocation35_spill] sm:$0xff]  ;;  %v17177_v60 = vld [vmem:[#allocation52_spill] sm:$0xff] }
 0x21d   :  { %17137 = vst [vmem:[#allocation100_spill] sm:$0xff] %v10139_v45  ;;  %v10159_v12 = vmul.f32 %v9225_v48, %v9598_v42  ;;  %v10163_v1 = vmul.f32 %v9225_v48, %v9604_v49  ;;  %v10167_v4 = vmul.f32 %v9225_v48, %v17140_v23  ;;  %v10171_v2 = vmul.f32 %v9225_v48, %v17141_v57  ;;  %v17174_v45 = vld [vmem:[#allocation50_spill] sm:$0xff] }
 0x21e   :  { %17138 = vst [vmem:[#allocation101_spill] sm:$0xff] %v10151_v25  ;;  %v10175_v55 = vmul.f32 %v9225_v48, %v17142_v47  ;;  %v10179_v42 = vmul.f32 %v9225_v48, %v17144_v58  ;;  %v17145_v25 = vld [vmem:[#allocation94_spill] sm:$0xff]  ;;  %v10187_v23 = vmul.f32 %v9225_v48, %v17146_v18  ;;  %v10191_v57 = vmul.f32 %v9225_v48, %v17148_v50 }
 0x21f   :  { %17139 = vst [vmem:[#allocation102_spill] sm:$0xff] %v10163_v1  ;;  %v10183_v49 = vmul.f32 %v9225_v48, %v17145_v25  ;;  %v10195_v47 = vmul.f32 %v9225_v48, %v17150_v33  ;;  %v10199_v58 = vmul.f32 %v9225_v48, %v17152_v62  ;;  %v10203_v25 = vmul.f32 %v9225_v48, %v17154_v7  ;;  %v17171_v1 = vld [vmem:[#allocation48_spill] sm:$0xff] }
 0x220   :  { %17143 = vst [vmem:[#allocation88_spill] sm:$0xff] %v10175_v55  ;;  %17147 = vst [vmem:[#allocation90_spill] sm:$0xff] %v10187_v23  ;;  %v10207_v18 = vmul.f32 %v9225_v48, %v17156_v24  ;;  %v17158_v23 = vld [vmem:[#allocation41_spill] sm:$0xff]  ;;  %v10277_v17 = vmul.f32 %v9225_v48, %v17180_v36 }
 0x221   :  { %17149 = vst [vmem:[#allocation93_spill] sm:$0xff] %v10191_v57  ;;  %17151 = vst [vmem:[#allocation92_spill] sm:$0xff] %v10195_v47  ;;  %v10211_v50 = vmul.f32 %v9225_v48, %v17158_v23  ;;  %v17160_v57 = vld [vmem:[#allocation40_spill] sm:$0xff]  ;;  %v17162_v47 = vld [vmem:[#allocation43_spill] sm:$0xff] }
 0x222   :  { %17153 = vst [vmem:[#allocation94_spill] sm:$0xff] %v10199_v58  ;;  %17155 = vst [vmem:[#allocation35_spill] sm:$0xff] %v10203_v25  ;;  %v10215_v33 = vmul.f32 %v9225_v48, %v17160_v57  ;;  %v10219_v62 = vmul.f32 %v9225_v48, %v17162_v47  ;;  %v17163_v58 = vld [vmem:[#allocation42_spill] sm:$0xff]  ;;  %v17164_v55 = vld [vmem:[#allocation45_spill] sm:$0xff] }
 0x223   :  { %17157 = vst [vmem:[#allocation34_spill] sm:$0xff] %v10207_v18  ;;  %17159 = vst [vmem:[#allocation37_spill] sm:$0xff] %v10211_v50  ;;  %v10223_v7 = vmul.f32 %v9225_v48, %v17163_v58  ;;  %v10227_v24 = vmul.f32 %v9225_v48, %v17164_v55  ;;  %v17166_v18 = vld [vmem:[#allocation44_spill] sm:$0xff]  ;;  %v17167_v50 = vld [vmem:[#allocation47_spill] sm:$0xff]  ;;  %v10247_v55 = vmul.f32 %v9225_v48, %v17171_v1 }
 0x224   :  { %17161 = vst [vmem:[#allocation36_spill] sm:$0xff] %v10215_v33  ;;  %v10231_v23 = vmul.f32 %v9225_v48, %v17166_v18  ;;  %v10235_v57 = vmul.f32 %v9225_v48, %v17167_v50  ;;  %v17168_v33 = vld [vmem:[#allocation46_spill] sm:$0xff]  ;;  %v17170_v25 = vld [vmem:[#allocation49_spill] sm:$0xff]  ;;  %v10251_v18 = vmul.f32 %v9225_v48, %v9744_v13  ;;  %v10267_v1 = vmul.f32 %v9225_v48, %v17177_v60 }
 0x225   :  { %17165 = vst [vmem:[#allocation39_spill] sm:$0xff] %v10227_v24  ;;  %v10239_v47 = vmul.f32 %v9225_v48, %v17168_v33  ;;  %v10243_v58 = vmul.f32 %v9225_v48, %v17170_v25  ;;  %v17173_v24 = vld [vmem:[#allocation51_spill] sm:$0xff]  ;;  %v10259_v33 = vmul.f32 %v9225_v48, %v17174_v45  ;;  %v10271_v13 = vmul.f32 %v9225_v48, %v17178_v21  ;;  %v17182_v45 = vld [vmem:[#allocation56_spill] sm:$0xff]  ;;  %v17186_v60 = vld [vmem:[#allocation58_spill] sm:$0xff] }
 0x226   :  { %17172 = vst [vmem:[#allocation41_spill] sm:$0xff] %v10251_v18  ;;  %v10255_v50 = vmul.f32 %v9225_v48, %v17173_v24  ;;  %v17179_v18 = vld [vmem:[#allocation54_spill] sm:$0xff]  ;;  %17181 = vst [vmem:[#allocation43_spill] sm:$0xff] %v10277_v17  ;;  %v10281_v19 = vmul.f32 %v9225_v48, %v17182_v45  ;;  %v10289_v46 = vmul.f32 %v9225_v48, %v17186_v60  ;;  %v17188_v21 = vld [vmem:[#allocation60_spill] sm:$0xff] }
 0x227   :  { %17169 = vst [vmem:[#allocation38_spill] sm:$0xff] %v10239_v47  ;;  %v17175_v47 = vld [vmem:[#allocation53_spill] sm:$0xff]  ;;  %v1926_v24 = vmul.f32 %v9225_v48, %v17179_v18  ;;  %v10293_v35 = vmul.f32 %v9225_v48, %v17188_v21  ;;  %v17190_v18 = vld [vmem:[#allocation63_spill] sm:$0xff]  ;;  %v17192_v17 = vld [vmem:[#allocation62_spill] sm:$0xff] }
 0x228   :  { %v10263_v25 = vmul.f32 %v9225_v48, %v17175_v47  ;;  %17183 = vst [vmem:[#allocation42_spill] sm:$0xff] %v10281_v19  ;;  %v17184_v47 = vld [vmem:[#allocation59_spill] sm:$0xff]  ;;  %17187 = vst [vmem:[#allocation44_spill] sm:$0xff] %v10289_v46  ;;  %v10297_v36 = vmul.f32 %v9225_v48, %v17190_v18  ;;  %v10301_v45 = vmul.f32 %v9225_v48, %v17192_v17  ;;  %v17194_v19 = vld [vmem:[#allocation65_spill] sm:$0xff] }
 0x229   :  { %17189 = vst [vmem:[#allocation47_spill] sm:$0xff] %v10293_v35  ;;  %v17198_v46 = vld [vmem:[#allocation67_spill] sm:$0xff]  ;;  %v17200_v35 = vld [vmem:[#allocation66_spill] sm:$0xff] }
 0x22a   :  { %17176 = vst [vmem:[#allocation40_spill] sm:$0xff] %v10263_v25  ;;  %v10285_v25 = vmul.f32 %v9225_v48, %v17184_v47  ;;  %17191 = vst [vmem:[#allocation46_spill] sm:$0xff] %v10297_v36  ;;  %v10305_v47 = vmul.f32 %v9225_v48, %v17194_v19  ;;  %v10313_v21 = vmul.f32 %v9225_v48, %v17198_v46  ;;  %v17202_v36 = vld [vmem:[#allocation69_spill] sm:$0xff] }
 0x22b   :  { %17193 = vst [vmem:[#allocation49_spill] sm:$0xff] %v10301_v45  ;;  %v10317_v18 = vmul.f32 %v9225_v48, %v17200_v35  ;;  %v10321_v17 = vmul.f32 %v9225_v48, %v17202_v36  ;;  %v17204_v45 = vld [vmem:[#allocation68_spill] sm:$0xff] }
 0x22c   :  { %17185 = vst [vmem:[#allocation45_spill] sm:$0xff] %v10285_v25  ;;  %17195 = vst [vmem:[#allocation48_spill] sm:$0xff] %v10305_v47  ;;  %v17196_v25 = vld [vmem:[#allocation64_spill] sm:$0xff]  ;;  %v10325_v19 = vmul.f32 %v9225_v48, %v17204_v45  ;;  %v17206_v47 = vld [vmem:[#allocation71_spill] sm:$0xff] }
 0x22d   :  { %v10309_v60 = vmul.f32 %v9225_v48, %v17196_v25  ;;  %17199 = vst [vmem:[#allocation50_spill] sm:$0xff] %v10313_v21  ;;  %17201 = vst [vmem:[#allocation53_spill] sm:$0xff] %v10317_v18  ;;  %v10329_v25 = vmul.f32 %v9225_v48, %v17206_v47  ;;  %v17210_v21 = vld [vmem:[#allocation73_spill] sm:$0xff]  ;;  %v17211_v18 = vld [vmem:[#allocation72_spill] sm:$0xff] }
 0x22e   :  { %17203 = vst [vmem:[#allocation52_spill] sm:$0xff] %v10321_v17  ;;  %17205 = vst [vmem:[#allocation55_spill] sm:$0xff] %v10325_v19  ;;  %v10337_v35 = vmul.f32 %v9225_v48, %v17210_v21  ;;  %v10341_v36 = vmul.f32 %v9225_v48, %v17211_v18  ;;  %v17212_v17 = vld [vmem:[#allocation75_spill] sm:$0xff]  ;;  %v17214_v19 = vld [vmem:[#allocation74_spill] sm:$0xff]  ;;  %v10361_v18 = vmul.f32 %v9225_v48, %v9912_v29 }
 0x22f   :  { %17197 = vst [vmem:[#allocation51_spill] sm:$0xff] %v10309_v60  ;;  %17207 = vst [vmem:[#allocation54_spill] sm:$0xff] %v10329_v25  ;;  %v17208_v60 = vld [vmem:[#allocation70_spill] sm:$0xff]  ;;  %v10345_v45 = vmul.f32 %v9225_v48, %v17212_v17  ;;  %v10349_v47 = vmul.f32 %v9225_v48, %v17214_v19  ;;  %v17216_v25 = vld [vmem:[#allocation77_spill] sm:$0xff]  ;;  %v10365_v17 = vmul.f32 %v9225_v48, %v9918_v6 }
 0x230   :  { %v10333_v46 = vmul.f32 %v9225_v48, %v17208_v60  ;;  %v10353_v60 = vmul.f32 %v9225_v48, %v17216_v25  ;;  %17220 = vst [vmem:[#allocation63_spill] sm:$0xff] %v10361_v18  ;;  %v10373_v25 = vmul.f32 %v9225_v48, %v9930_v10  ;;  %v10381_v29 = vmul.f32 %v9225_v48, %v9942_v8  ;;  %v17230_v8 = vld [vmem:[#allocation61_spill] sm:$0xff] }
 0x231   :  { %17213 = vst [vmem:[#allocation56_spill] sm:$0xff] %v10345_v45  ;;  %17215 = vst [vmem:[#allocation59_spill] sm:$0xff] %v10349_v47  ;;  %v17222_v45 = vld [vmem:[#allocation79_spill] sm:$0xff]  ;;  %v1954_v6 = vmul.f32 %v9225_v48, %v9948_v37  ;;  %v10391_v10 = vmul.f32 %v9225_v48, %v9966_v26  ;;  %v10413_v26 = vld [vmem:[%s16117_s1 + $0x98] sm:$0xff] }
 0x232   :  { %17209 = vst [vmem:[#allocation57_spill] sm:$0xff] %v10333_v46  ;;  %17217 = vst [vmem:[#allocation58_spill] sm:$0xff] %v10353_v60  ;;  %v17218_v46 = vld [vmem:[#allocation76_spill] sm:$0xff]  ;;  %v10369_v19 = vmul.f32 %v9225_v48, %v17222_v45  ;;  %v17227_v45 = vld [vmem:[#allocation78_spill] sm:$0xff] }
 0x233   :  { %v10357_v21 = vmul.f32 %v9225_v48, %v17218_v46  ;;  %17221 = vst [vmem:[#allocation62_spill] sm:$0xff] %v10365_v17  ;;  %17224 = vst [vmem:[#allocation64_spill] sm:$0xff] %v10373_v25  ;;  %v10377_v46 = vmul.f32 %v9225_v48, %v9936_v28  ;;  %v10395_v28 = vmul.f32 %v9225_v48, %v9972_v5  ;;  %v10510_v60 = vld [vmem:[%s16117_s1 + $0x80] sm:$0xff] }
 0x234   :  { %17223 = vst [vmem:[#allocation65_spill] sm:$0xff] %v10369_v19  ;;  %17226 = vst [vmem:[#allocation66_spill] sm:$0xff] %v10381_v29  ;;  %v1956_v19 = vmul.f32 %v9225_v48, %v17227_v45  ;;  %v2505_v29 = vrot.slane %v17230_v8, 2  ;;  %v2041_v5 = vadd.f32 %v9329_v0, %v1926_v24  ;;  %v1979_v24 = vadd.f32 %v9329_v0, %v10032_v43  ;;  %v10456_v43 = vld [vmem:[%s16117_s1 + $0x48] sm:$0xff] }
 0x235   :  { %17219 = vst [vmem:[#allocation60_spill] sm:$0xff] %v10357_v21  ;;  %17225 = vst [vmem:[#allocation67_spill] sm:$0xff] %v10377_v46  ;;  %v1955_v21 = vmul.f32 %v9225_v48, %v9954_v14  ;;  %v17231_v46 = vld [vmem:[#allocation89_spill] sm:$0xff]  ;;  %v1986_v14 = vadd.f32 %v9329_v0, %v10062_v56  ;;  %v1987_v48 = vadd.f32 %v9329_v0, %v10066_v11 }
 0x236   :  { %17228 = vst [vmem:[#allocation69_spill] sm:$0xff] %v10391_v10  ;;  %17229 = vst [vmem:[#allocation68_spill] sm:$0xff] %v10395_v28  ;;  %v16268_v25 = vrot.slane %v17231_v46, 2 }
 0x237   :  { %v10420_v45 = vmul.f32 %v10413_v26, %v1986_v14  ;;  %v1980_v14 = vadd.f32 %v9329_v0, %v10036_v3  ;;  %v10461_v3 = vld [vmem:[%s16117_s1 + $0x50] sm:$0xff] }
 0x238   :  { %v10402_v37 = vsel %vm2494_vm4, %v2505_v29, %v16268_v25  ;;  %v2095_v29 = vld [vmem:[%s16117_s1 + $0xa0] sm:$0xff] }
 0x239   :  { %17232 = vst [vmem:[#allocation71_spill] sm:$0xff] %v10402_v37  ;;  %6109 = vmatprep.mubr.msk.f32.mxu0 %vm1072_vm3, %v10402_v37  ;;  %17233 = vst [vmem:[#allocation70_spill] sm:$0xff] %v10420_v45  ;;  %v10422_v25 = vmul.f32 %v2095_v29, %v1987_v48  ;;  %v10424_v56 = vmul.f32 %v2095_v29, %v2041_v5  ;;  %v16269_v11 = vrot.slane %v10420_v45, 2  ;;  %v10442_v48 = vld [vmem:[%s16117_s1 + $0x68] sm:$0xff]  ;;  %v10447_v5 = vld [vmem:[%s16117_s1 + $0x60] sm:$0xff] }
 0x23a   :  { %v1977_v29 = vadd.f32 %v9329_v0, %v10018_v59  ;;  %v2070_v59 = vadd.f32 %v9329_v0, %v1955_v21  ;;  %v2071_v37 = vadd.f32 %v9329_v0, %v1956_v19  ;;  %v10477_v46 = vmul.f32 %v10442_v48, %v1980_v14  ;;  %v2125_v21 = vld [vmem:[%s16117_s1 + $0x190] sm:$0xff] }
 0x23b   :  { %17234 = vst [vmem:[#allocation73_spill] sm:$0xff] %v10422_v25  ;;  %17235 = vst [vmem:[#allocation72_spill] sm:$0xff] %v10424_v56  ;;  %v2528_v10 = vrot.slane %v10422_v25, 2  ;;  %v10474_v56 = vmul.f32 %v10447_v5, %v1979_v24  ;;  %v1982_v19 = vadd.f32 %v9329_v0, %v10044_v38  ;;  %v1983_v24 = vadd.f32 %v9329_v0, %v10048_v31  ;;  %v10505_v25 = vld [vmem:[%s16117_s1 + $0x78] sm:$0xff] }
 0x23c   :  { %17238 = vst [vmem:[#allocation77_spill] sm:$0xff] %v10477_v46  ;;  %v10500_v8 = vmul.f32 %v10461_v3, %v1977_v29  ;;  %v1991_v38 = vadd.f32 %v9329_v0, %v10083_v32  ;;  %v1992_v31 = vadd.f32 %v9329_v0, %v10087_v54  ;;  %v10525_v17 = vmul.f32 %v2125_v21, %v2071_v37  ;;  %v10532_v32 = vld [vmem:[%s16117_s1 + $0xc8] sm:$0xff]  ;;  %v10537_v54 = vld [vmem:[%s16117_s1 + $0xc0] sm:$0xff] }
 0x23d   :  { %v10431_v28 = vsel %vm2494_vm4, %v16269_v11, %v2528_v10  ;;  %v1976_v10 = vadd.f32 %v9329_v0, %v10014_v9  ;;  %v1985_v11 = vadd.f32 %v9329_v0, %v10058_v22  ;;  %v10469_v9 = vld [vmem:[%s16117_s1 + $0x180] sm:$0xff]  ;;  %17237 = vst [vmem:[#allocation74_spill] sm:$0xff] %v10474_v56  ;;  %v10482_v22 = vld [vmem:[%s16117_s1 + $0x90] sm:$0xff]  ;;  %v6507_v18 = vpack.i.bf16 %v10477_v46, %v10474_v56  ;;  %v10670_v56 = vld [vmem:[%s16117_s1 + $0x158] sm:$0xff] }
 0x23e   :  { %17236 = vst [vmem:[#allocation75_spill] sm:$0xff] %v10431_v28  ;;  %6118 = vmatprep.mubr.msk.f32.mxu1 %vm1072_vm3, %v10431_v28  ;;  %v2069_v28 = vadd.f32 %v9329_v0, %v1954_v6  ;;  %v10487_v6 = vld [vmem:[%s16117_s1 + $0x188] sm:$0xff]  ;;  %17240 = vst [vmem:[#allocation79_spill] sm:$0xff] %v10500_v8  ;;  %v1989_v37 = vadd.f32 %v9329_v0, %v10074_v52  ;;  %v1997_v52 = vadd.f32 %v9329_v0, %v10107_v20  ;;  %v10583_v20 = vld [vmem:[%s16117_s1 + $0xf0] sm:$0xff] }
 0x23f   :  { %v10497_v14 = vmul.f32 %v10456_v43, %v1976_v10  ;;  %v10520_v29 = vmul.f32 %v10482_v22, %v1985_v11  ;;  %v10523_v47 = vmul.f32 %v10487_v6, %v2070_v59  ;;  %17244 = vst [vmem:[#allocation105_spill] sm:$0xff] %v10525_v17  ;;  %v10544_v11 = vmul.f32 %v10505_v25, %v1982_v19  ;;  %v10555_v17 = vld [vmem:[%s16117_s1 + $0xa8] sm:$0xff] }
 0x240   :  { %v10517_v10 = vmul.f32 %v10469_v9, %v2069_v28  ;;  %v1988_v28 = vadd.f32 %v9329_v0, %v10070_v39  ;;  %v10547_v59 = vmul.f32 %v10510_v60, %v1983_v24  ;;  %6508 = vrot.lane.b32.xlu1 %v6507_v18, %s7665_s22  ;;  %v10560_v39 = vld [vmem:[%s16117_s1 + $0xb0] sm:$0xff]  ;;  %v1998_v19 = vadd.f32 %v9329_v0, %v10111_v51 }
 0x241   :  { %17239 = vst [vmem:[#allocation76_spill] sm:$0xff] %v10497_v14  ;;  %17242 = vst [vmem:[#allocation103_spill] sm:$0xff] %v10520_v29  ;;  %v6502_v21 = vpack.i.bf16 %v10500_v8, %v10497_v14  ;;  %v10567_v18 = vmul.f32 %v10537_v54, %v1991_v38  ;;  %v10570_v24 = vmul.f32 %v10532_v32, %v1992_v31  ;;  %v10601_v14 = vld [vmem:[%s16117_s1 + $0xd8] sm:$0xff] }
 0x242   :  { %17241 = vst [vmem:[#allocation78_spill] sm:$0xff] %v10517_v10  ;;  %17243 = vst [vmem:[#allocation104_spill] sm:$0xff] %v10523_v47  ;;  %v6517_v47 = vpack.i.bf16 %v10420_v45, %v10520_v29  ;;  %v10578_v10 = vld [vmem:[%s16117_s1 + $0xf8] sm:$0xff]  ;;  %v1994_v51 = vadd.f32 %v9329_v0, %v10095_v34  ;;  %v1995_v38 = vadd.f32 %v9329_v0, %v10099_v16  ;;  %v10606_v34 = vld [vmem:[%s16117_s1 + $0xe0] sm:$0xff] }
 0x243   :  { %17245 = vst [vmem:[#allocation106_spill] sm:$0xff] %v10544_v11  ;;  %17246 = vst [vmem:[#allocation107_spill] sm:$0xff] %v10547_v59  ;;  %6503 = vrot.lane.b32.xlu0 %v6502_v21, %s7665_s22  ;;  %v10590_v31 = vmul.f32 %v10555_v17, %v1988_v28  ;;  %v10593_v21 = vmul.f32 %v10560_v39, %v1989_v37  ;;  %v6512_v8 = vpack.i.bf16 %v10547_v59, %v10544_v11  ;;  %v10624_v11 = vld [vmem:[%s16117_s1 + $0x128] sm:$0xff] }
 0x244   :  { %17247 = vst [vmem:[#allocation108_spill] sm:$0xff] %v10567_v18  ;;  %17248 = vst [vmem:[#allocation109_spill] sm:$0xff] %v10570_v24  ;;  %6518 = vrot.lane.b32.xlu1 %v6517_v47, %s7665_s22  ;;  %v2003_v16 = vadd.f32 %v9329_v0, %v10131_v15  ;;  %v2004_v28 = vadd.f32 %v9329_v0, %v10135_v63  ;;  %v10613_v47 = vmul.f32 %v10583_v20, %v1997_v52  ;;  %v10629_v15 = vld [vmem:[%s16117_s1 + $0x120] sm:$0xff] }
 0x245   :  { %17249 = vst [vmem:[#allocation110_spill] sm:$0xff] %v10590_v31  ;;  %17250 = vst [vmem:[#allocation111_spill] sm:$0xff] %v10593_v21  ;;  %v10616_v37 = vmul.f32 %v10578_v10, %v1998_v19  ;;  %v6527_v59 = vpack.i.bf16 %v10570_v24, %v10567_v18  ;;  %v2000_v63 = vadd.f32 %v9329_v0, %v10119_v44  ;;  %v10647_v24 = vld [vmem:[%s16117_s1 + $0x108] sm:$0xff]  ;;  %v10652_v44 = vld [vmem:[%s16117_s1 + $0x110] sm:$0xff] }
 0x246   :  { %17251 = vst [vmem:[#allocation112_spill] sm:$0xff] %v10613_v47  ;;  %v2001_v52 = vadd.f32 %v9329_v0, %v10123_v41  ;;  %v10639_v19 = vmul.f32 %v10606_v34, %v1995_v38  ;;  %v6522_v29 = vpack.i.bf16 %v10593_v21, %v10590_v31  ;;  %v2009_v41 = vadd.f32 %v9329_v0, %v10155_v40  ;;  %v10675_v40 = vld [vmem:[%s16117_s1 + $0x150] sm:$0xff] }
 0x247   :  { %17252 = vst [vmem:[#allocation113_spill] sm:$0xff] %v10616_v37  ;;  %6513 = vrot.lane.b32.xlu0 %v6512_v8, %s7665_s22  ;;  %v10636_v8 = vmul.f32 %v10601_v14, %v1994_v51  ;;  %v2010_v51 = vadd.f32 %v9329_v0, %v10159_v12  ;;  %v10662_v38 = vmul.f32 %v10624_v11, %v2004_v28 }
 0x248   :  { %17254 = vst [vmem:[#allocation115_spill] sm:$0xff] %v10639_v19  ;;  %6528 = vrot.lane.b32.xlu1 %v6527_v59, %s7665_s22  ;;  %v10659_v59 = vmul.f32 %v10629_v15, %v2003_v16  ;;  %v6537_v46 = vpack.i.bf16 %v10616_v37, %v10613_v47  ;;  %v2006_v12 = vadd.f32 %v9329_v0, %v10143_v61  ;;  %v10693_v47 = vld [vmem:[%s16117_s1 + $0x138] sm:$0xff]  ;;  %v10698_v61 = vld [vmem:[%s16117_s1 + $0x140] sm:$0xff] }
 0x249   :  { %17253 = vst [vmem:[#allocation114_spill] sm:$0xff] %v10636_v8  ;;  %17256 = vst [vmem:[#allocation117_spill] sm:$0xff] %v10662_v38  ;;  %v2007_v16 = vadd.f32 %v9329_v0, %v10147_v53  ;;  %v10685_v28 = vmul.f32 %v10652_v44, %v2001_v52  ;;  %v6532_v37 = vpack.i.bf16 %v10639_v19, %v10636_v8 }
 0x24a   :  { %17255 = vst [vmem:[#allocation116_spill] sm:$0xff] %v10659_v59  ;;  %v2015_v53 = vadd.f32 %v9329_v0, %v10179_v42  ;;  %v10708_v52 = vmul.f32 %v10670_v56, %v2010_v51  ;;  %v6547_v19 = vpack.i.bf16 %v10662_v38, %v10659_v59  ;;  %v2013_v8 = vadd.f32 %v9329_v0, %v10171_v2 }
 0x24b   :  { %6523 = vrot.lane.b32.xlu0 %v6522_v29, %s7665_s22  ;;  %v10682_v29 = vmul.f32 %v10647_v24, %v2000_v63  ;;  %17258 = vst [vmem:[#allocation119_spill] sm:$0xff] %v10685_v28  ;;  %v2016_v63 = vadd.f32 %v9329_v0, %v10183_v49  ;;  %v2012_v42 = vadd.f32 %v9329_v0, %v10167_v4  ;;  %v10734_v4 = vld [vmem:[%s16117_s1 + $0x170] sm:$0xff] }
 0x24c   :  { %6538 = vrot.lane.b32.xlu1 %v6537_v46, %s7665_s22  ;;  %v10705_v46 = vmul.f32 %v10675_v40, %v2009_v41  ;;  %17260 = vst [vmem:[#allocation121_spill] sm:$0xff] %v10708_v52  ;;  %v10718_v18 = vmul.f32 %v10693_v47, %v2006_v12  ;;  %v10721_v49 = vmul.f32 %v10698_v61, %v2007_v16  ;;  %v10729_v41 = vld [vmem:[%s16117_s1 + $0x168] sm:$0xff] }
 0x24d   :  { %17257 = vst [vmem:[#allocation118_spill] sm:$0xff] %v10682_v29  ;;  %v2027_v2 = vadd.f32 %v9329_v0, %v10219_v62  ;;  %v2028_v51 = vadd.f32 %v9329_v0, %v10223_v7  ;;  %v10744_v12 = vmul.f32 %v10487_v6, %v2016_v63  ;;  %v10750_v38 = vmul.f32 %v10734_v4, %v2013_v8  ;;  %v17267_v6 = vld [vmem:[#allocation33_spill] sm:$0xff]  ;;  %v17269_v63 = vld [vmem:[#allocation30_spill] sm:$0xff] }
 0x24e   :  { %17259 = vst [vmem:[#allocation120_spill] sm:$0xff] %v10705_v46  ;;  %17261 = vst [vmem:[#allocation122_spill] sm:$0xff] %v10718_v18  ;;  %v6557_v16 = vpack.i.bf16 %v10708_v52, %v10705_v46  ;;  %v10753_v59 = vmul.f32 %v10729_v41, %v2012_v42  ;;  %v6552_v62 = vpack.i.bf16 %v10721_v49, %v10718_v18 }
 0x24f   :  { %6533 = vrot.lane.b32.xlu0 %v6532_v37, %s7665_s22  ;;  %17262 = vst [vmem:[#allocation123_spill] sm:$0xff] %v10721_v49  ;;  %v6542_v37 = vpack.i.bf16 %v10685_v28, %v10682_v29  ;;  %17264 = vst [vmem:[#allocation125_spill] sm:$0xff] %v10744_v12  ;;  %v2033_v7 = vadd.f32 %v9329_v0, %v10243_v58  ;;  %v10766_v8 = vmul.f32 %v17269_v63, %v2028_v51 }
 0x250   :  { %6548 = vrot.lane.b32.xlu1 %v6547_v19, %s7665_s22  ;;  %v10741_v19 = vmul.f32 %v10469_v9, %v2015_v53  ;;  %17265 = vst [vmem:[#allocation126_spill] sm:$0xff] %v10750_v38  ;;  %17266 = vst [vmem:[#allocation127_spill] sm:$0xff] %v10753_v59  ;;  %v2034_v9 = vadd.f32 %v9329_v0, %v10247_v55  ;;  %v10763_v53 = vmul.f32 %v17267_v6, %v2027_v2 }
 0x251   :  { %17270 = vst [vmem:[#allocation30_spill] sm:$0xff] %v10766_v8  ;;  %v2031_v58 = vadd.f32 %v9329_v0, %v10235_v57  ;;  %v6562_v55 = vpack.i.bf16 %v10750_v38, %v10753_v59  ;;  %v2039_v2 = vadd.f32 %v9329_v0, %v10267_v1  ;;  %v2040_v51 = vadd.f32 %v9329_v0, %v10271_v13 }
 0x252   :  { %17263 = vst [vmem:[#allocation124_spill] sm:$0xff] %v10741_v19  ;;  %17268 = vst [vmem:[#allocation33_spill] sm:$0xff] %v10763_v53  ;;  %v6567_v42 = vpack.i.bf16 %v10744_v12, %v10741_v19  ;;  %v2036_v57 = vadd.f32 %v9329_v0, %v10255_v50  ;;  %v2037_v1 = vadd.f32 %v9329_v0, %v10259_v33  ;;  %v17335_v19 = vld [vmem:[#allocation84_spill] sm:$0xff] }
 0x253   :  { %6543 = vrot.lane.b32.xlu0 %v6542_v37, %s7665_s22  ;;  %v2030_v37 = vadd.f32 %v9329_v0, %v10231_v23  ;;  %v6577_v23 = vpack.i.bf16 %v10766_v8, %v10763_v53  ;;  %v10799_v13 = vmul.f32 %v10461_v3, %v2031_v58  ;;  %v10809_v63 = vmul.f32 %v10482_v22, %v2039_v2  ;;  %v17280_v3 = vld [vmem:[#allocation43_spill] sm:$0xff]  ;;  %v17284_v2 = vld [vmem:[#allocation50_spill] sm:$0xff] }
 0x254   :  { %6558 = vrot.lane.b32.xlu1 %v6557_v16, %s7665_s22  ;;  %v10783_v16 = vmul.f32 %v10447_v5, %v2033_v7  ;;  %v17275_v5 = vld [vmem:[#allocation44_spill] sm:$0xff]  ;;  %v10812_v33 = vmul.f32 %v10413_v26, %v2040_v51  ;;  %v10827_v22 = vmul.f32 %v10510_v60, %v2037_v1  ;;  %v2051_v51 = vadd.f32 %v9329_v0, %v17284_v2 }
 0x255   :  { %v10796_v6 = vmul.f32 %v10456_v43, %v2030_v37  ;;  %17274 = vst [vmem:[#allocation131_spill] sm:$0xff] %v10799_v13  ;;  %v2045_v7 = vadd.f32 %v9329_v0, %v17275_v5  ;;  %17277 = vst [vmem:[#allocation44_spill] sm:$0xff] %v10809_v63  ;;  %v17281_v37 = vld [vmem:[#allocation42_spill] sm:$0xff] }
 0x256   :  { %17271 = vst [vmem:[#allocation128_spill] sm:$0xff] %v10783_v16  ;;  %v2043_v58 = vadd.f32 %v9329_v0, %v17281_v37  ;;  %17283 = vst [vmem:[#allocation42_spill] sm:$0xff] %v10827_v22  ;;  %v10846_v60 = vpack.i.bf16 %v10812_v33, %v10809_v63 }
 0x257   :  { %6553 = vrot.lane.b32.xlu0 %v6552_v62, %s7665_s22  ;;  %v10786_v62 = vmul.f32 %v10442_v48, %v2034_v9  ;;  %17273 = vst [vmem:[#allocation130_spill] sm:$0xff] %v10796_v6  ;;  %v6572_v48 = vpack.i.bf16 %v10028_v27, %v10026_v30  ;;  %v17276_v9 = vld [vmem:[#allocation47_spill] sm:$0xff]  ;;  %v6582_v26 = vpack.i.bf16 %v10799_v13, %v10796_v6  ;;  %v17379_v6 = vld [vmem:[#allocation32_spill] sm:$0xff]  ;;  %v17402_v30 = vld [vmem:[#allocation46_spill] sm:$0xff] }
 0x258   :  { %6568 = vrot.lane.b32.xlu1 %v6567_v42, %s7665_s22  ;;  %v2046_v50 = vadd.f32 %v9329_v0, %v17276_v9  ;;  %17278 = vst [vmem:[#allocation47_spill] sm:$0xff] %v10812_v33  ;;  %v2042_v42 = vadd.f32 %v9329_v0, %v17280_v3  ;;  %v10838_v5 = vmul.f32 %v10537_v54, %v2045_v7  ;;  %17288 = vst [vmem:[#allocation133_spill] sm:$0xff] %v10846_v60  ;;  %v17290_v9 = vld [vmem:[#allocation48_spill] sm:$0xff] }
 0x259   :  { %17272 = vst [vmem:[#allocation129_spill] sm:$0xff] %v10786_v62  ;;  %v10817_v43 = vpack.i.bf16 %v10786_v62, %v10783_v16  ;;  %v2049_v3 = vadd.f32 %v9329_v0, %v17290_v9  ;;  %v10856_v54 = vmul.f32 %v10560_v39, %v2043_v58  ;;  %v2057_v7 = vadd.f32 %v9329_v0, %v10337_v35  ;;  %v17298_v35 = vld [vmem:[#allocation54_spill] sm:$0xff] }
 0x25a   :  { %17286 = vst [vmem:[#allocation50_spill] sm:$0xff] %v10838_v5  ;;  %v10853_v37 = vmul.f32 %v10555_v17, %v2042_v42  ;;  %v17297_v42 = vld [vmem:[#allocation55_spill] sm:$0xff]  ;;  %v2055_v2 = vadd.f32 %v9329_v0, %v17298_v35 }
 0x25b   :  { %6563 = vrot.lane.b32.xlu0 %v6562_v55, %s7665_s22  ;;  %17279 = vst [vmem:[#allocation132_spill] sm:$0xff] %v10817_v43  ;;  %v10824_v55 = vmul.f32 %v10505_v25, %v2036_v57  ;;  %v10841_v25 = vmul.f32 %v10532_v32, %v2046_v50  ;;  %v17289_v57 = vld [vmem:[#allocation49_spill] sm:$0xff]  ;;  %17292 = vst [vmem:[#allocation48_spill] sm:$0xff] %v10856_v54  ;;  %v2058_v50 = vadd.f32 %v9329_v0, %v10341_v36 }
 0x25c   :  { %6578 = vrot.lane.b32.xlu1 %v6577_v23, %s7665_s22  ;;  %v17285_v23 = vld [vmem:[#allocation53_spill] sm:$0xff]  ;;  %v2048_v1 = vadd.f32 %v9329_v0, %v17289_v57  ;;  %17291 = vst [vmem:[#allocation49_spill] sm:$0xff] %v10853_v37  ;;  %v2054_v58 = vadd.f32 %v9329_v0, %v17297_v42  ;;  %v10901_v9 = vmul.f32 %v10629_v15, %v2057_v7  ;;  %v17308_v42 = vld [vmem:[#allocation58_spill] sm:$0xff] }
 0x25d   :  { %17282 = vst [vmem:[#allocation43_spill] sm:$0xff] %v10824_v55  ;;  %17287 = vst [vmem:[#allocation53_spill] sm:$0xff] %v10841_v25  ;;  %v10862_v32 = vpack.i.bf16 %v10827_v22, %v10824_v55  ;;  %v10878_v39 = vpack.i.bf16 %v10841_v25, %v10838_v5  ;;  %v2061_v35 = vadd.f32 %v9329_v0, %v17308_v42  ;;  %v17312_v7 = vld [vmem:[#allocation81_spill] sm:$0xff]  ;;  %v17314_v42 = vld [vmem:[#allocation83_spill] sm:$0xff] }
 0x25e   :  { %v10885_v36 = vmul.f32 %v10601_v14, %v2048_v1  ;;  %v10904_v14 = vmul.f32 %v10624_v11, %v2058_v50  ;;  %v17307_v1 = vld [vmem:[#allocation59_spill] sm:$0xff]  ;;  %v10920_v15 = vmul.f32 %v10652_v44, %v2055_v2  ;;  %v1967_v50 = vadd.f32 %v9329_v0, %v17312_v7 }
 0x25f   :  { %6573 = vrot.lane.b32.xlu0 %v6572_v48, %s7665_s22  ;;  %v2052_v48 = vadd.f32 %v9329_v0, %v17285_v23  ;;  %17293 = vst [vmem:[#allocation134_spill] sm:$0xff] %v10862_v32  ;;  %17296 = vst [vmem:[#allocation137_spill] sm:$0xff] %v10878_v39  ;;  %v10937_v44 = vld [vmem:[%s16117_s1 + $0x8] sm:$0xff] }
 0x260   :  { %6588 = vrot.lane.b32.xlu1 %v10817_v43, %s7665_s22  ;;  %17299 = vst [vmem:[#allocation55_spill] sm:$0xff] %v10885_v36  ;;  %17310 = vst [vmem:[#allocation58_spill] sm:$0xff] %v10920_v15 }
 0x261   :  { %v10872_v17 = vmul.f32 %v10578_v10, %v2052_v48  ;;  %v10894_v10 = vpack.i.bf16 %v10856_v54, %v10853_v37  ;;  %v17303_v48 = vld [vmem:[#allocation62_spill] sm:$0xff]  ;;  %v17349_v54 = vld [vmem:[#allocation103_spill] sm:$0xff] }
 0x262   :  { %v2064_v57 = vadd.f32 %v9329_v0, %v17303_v48  ;;  %17305 = vst [vmem:[#allocation62_spill] sm:$0xff] %v10904_v14  ;;  %v17313_v48 = vld [vmem:[#allocation80_spill] sm:$0xff]  ;;  %v2364_v37 = vrot.slane %v17349_v54, 1 }
 0x263   :  { %6583 = vrot.lane.b32.xlu0 %v6582_v26, %s7665_s22  ;;  %v10869_v26 = vmul.f32 %v10583_v20, %v2051_v51  ;;  %17295 = vst [vmem:[#allocation136_spill] sm:$0xff] %v10872_v17  ;;  %v10888_v20 = vmul.f32 %v10606_v34, %v2049_v3  ;;  %17301 = vst [vmem:[#allocation138_spill] sm:$0xff] %v10894_v10  ;;  %v17302_v51 = vld [vmem:[#allocation63_spill] sm:$0xff]  ;;  %v2060_v3 = vadd.f32 %v9329_v0, %v17307_v1  ;;  %v11100_v54 = vld [vmem:[%s16117_s1 + $0x130] sm:$0xff] }
 0x264   :  { %6598 = vrot.lane.b32.xlu1 %v10846_v60, %s7665_s22  ;;  %v2063_v23 = vadd.f32 %v9329_v0, %v17302_v51  ;;  %17304 = vst [vmem:[#allocation63_spill] sm:$0xff] %v10901_v9  ;;  %v10917_v51 = vmul.f32 %v10647_v24, %v2054_v58  ;;  %v1968_v1 = vadd.f32 %v9329_v0, %v17313_v48  ;;  %v10942_v58 = vld [vmem:[%s16117_s1] sm:$0xff] }
 0x265   :  { %17294 = vst [vmem:[#allocation135_spill] sm:$0xff] %v10869_v26  ;;  %17300 = vst [vmem:[#allocation54_spill] sm:$0xff] %v10888_v20  ;;  %v10910_v34 = vpack.i.bf16 %v10872_v17, %v10869_v26  ;;  %v10926_v11 = vpack.i.bf16 %v10888_v20, %v10885_v36  ;;  %v1969_v24 = vadd.f32 %v9329_v0, %v17314_v42  ;;  %v10959_v42 = vld [vmem:[%s16117_s1 + $0x10] sm:$0xff]  ;;  %v17345_v20 = vld [vmem:[#allocation73_spill] sm:$0xff] }
 0x266   :  { %17309 = vst [vmem:[#allocation59_spill] sm:$0xff] %v10917_v51  ;;  %v10945_v2 = vmul.f32 %v10675_v40, %v2063_v23  ;;  %v10948_v7 = vmul.f32 %v10670_v56, %v2064_v57  ;;  %v10954_v48 = vpack.i.bf16 %v10904_v14, %v10901_v9  ;;  %v17319_v40 = vld [vmem:[#allocation67_spill] sm:$0xff]  ;;  %v10966_v56 = vmul.f32 %v10693_v47, %v2060_v3 }
 0x267   :  { %6593 = vrot.lane.b32.xlu0 %v10862_v32, %s7665_s22  ;;  %17306 = vst [vmem:[#allocation139_spill] sm:$0xff] %v10910_v34  ;;  %17311 = vst [vmem:[#allocation140_spill] sm:$0xff] %v10926_v11  ;;  %v2067_v23 = vadd.f32 %v9329_v0, %v17319_v40  ;;  %v10969_v57 = vmul.f32 %v10698_v61, %v2061_v35  ;;  %v10983_v40 = vmul.f32 %v10937_v44, %v1968_v1  ;;  %v17327_v3 = vld [vmem:[#allocation31_spill] sm:$0xff]  ;;  %v17334_v32 = vld [vmem:[#allocation86_spill] sm:$0xff] }
 0x268   :  { %6608 = vrot.lane.b32.xlu1 %v10878_v39, %s7665_s22  ;;  %17315 = vst [vmem:[#allocation81_spill] sm:$0xff] %v10945_v2  ;;  %17316 = vst [vmem:[#allocation80_spill] sm:$0xff] %v10948_v7  ;;  %v10986_v47 = vmul.f32 %v10959_v42, %v1969_v24  ;;  %v10992_v61 = vpack.i.bf16 %v10948_v7, %v10945_v2  ;;  %v1981_v35 = vadd.f32 %v9329_v0, %v17327_v3 }
 0x269   :  { %17317 = vst [vmem:[#allocation83_spill] sm:$0xff] %v10954_v48  ;;  %17321 = vst [vmem:[#allocation67_spill] sm:$0xff] %v10969_v57  ;;  %v11005_v1 = vmul.f32 %v10734_v4, %v2067_v23  ;;  %v11011_v24 = vpack.i.bf16 %v10969_v57, %v10966_v56  ;;  %v6647_v23 = vpack.i.bf16 %v10590_v31, %v10420_v45  ;;  %v2340_v43 = vrot.slane %v17334_v32, 1 }
 0x26a   :  { %17325 = vst [vmem:[#allocation142_spill] sm:$0xff] %v10983_v40  ;;  %17326 = vst [vmem:[#allocation143_spill] sm:$0xff] %v10992_v61  ;;  %v2339_v57 = vrot.slane %v17335_v19, 1  ;;  %v17341_v19 = vld [vmem:[#allocation77_spill] sm:$0xff]  ;;  %v2367_v36 = vrot.slane %v17345_v20, 1  ;;  %v11085_v20 = vld [vmem:[%s16117_s1 + $0x100] sm:$0xff] }
 0x26b   :  { %6603 = vrot.lane.b32.xlu0 %v10894_v10, %s7665_s22  ;;  %v17323_v10 = vld [vmem:[#allocation82_spill] sm:$0xff]  ;;  %17329 = vst [vmem:[#allocation144_spill] sm:$0xff] %v11005_v1  ;;  %17330 = vst [vmem:[#allocation145_spill] sm:$0xff] %v11011_v24 }
 0x26c   :  { %6618 = vrot.lane.b32.xlu1 %v10910_v34, %s7665_s22  ;;  %v17318_v34 = vld [vmem:[#allocation64_spill] sm:$0xff]  ;;  %v1972_v60 = vadd.f32 %v9329_v0, %v17323_v10  ;;  %v10997_v10 = vld [vmem:[%s16117_s1 + $0x28] sm:$0xff] }
 0x26d   :  { %v2066_v39 = vadd.f32 %v9329_v0, %v17318_v34  ;;  %17320 = vst [vmem:[#allocation64_spill] sm:$0xff] %v10966_v56  ;;  %v10980_v34 = vmul.f32 %v10942_v58, %v1967_v50  ;;  %v17337_v56 = vld [vmem:[#allocation96_spill] sm:$0xff] }
 0x26e   :  { %v11022_v4 = vmul.f32 %v10997_v10, %v1972_v60 }
 0x26f   :  { %6613 = vrot.lane.b32.xlu0 %v10926_v11, %s7665_s22  ;;  %v10975_v11 = vpack.i.bf16 %v10920_v15, %v10917_v51  ;;  %17324 = vst [vmem:[#allocation82_spill] sm:$0xff] %v10980_v34  ;;  %v11002_v50 = vmul.f32 %v10729_v41, %v2066_v39  ;;  %v2334_v3 = vrot.slane %v10980_v34, 1  ;;  %v2335_v41 = vrot.slane %v10983_v40, 1  ;;  %v17344_v15 = vld [vmem:[#allocation98_spill] sm:$0xff] }
 0x270   :  { %6628 = vrot.lane.b32.xlu1 %v10954_v48, %s7665_s22  ;;  %v11016_v48 = vld [vmem:[%s16117_s1 + $0x70] sm:$0xff]  ;;  %v2337_v39 = vrot.slane %v10986_v47, 1  ;;  %17331 = vst [vmem:[#allocation146_spill] sm:$0xff] %v11022_v4  ;;  %v1999_v51 = vadd.f32 %v9329_v0, %v17344_v15  ;;  %v2365_v15 = vrot.slane %v10420_v45, 1 }
 0x271   :  { %17322 = vst [vmem:[#allocation141_spill] sm:$0xff] %v10975_v11  ;;  %17328 = vst [vmem:[#allocation31_spill] sm:$0xff] %v11002_v50  ;;  %v2336_v60 = vsel %vm2333_vm2, %v2334_v3, %v2335_v41 }
 0x272   :  { %v2338_v12 = vsel %vm2333_vm2, %v2335_v41, %v2337_v39  ;;  %v11052_v41 = vld [vmem:[%s16117_s1 + $0xd0] sm:$0xff]  ;;  %v11106_v22 = vsel %vm2333_vm2, %v2364_v37, %v2365_v15  ;;  %v11125_v37 = vld [vmem:[%s16117_s1 + $0x160] sm:$0xff] }
 0x273   :  { %6623 = vrot.lane.b32.xlu0 %v10975_v11, %s7665_s22  ;;  %v11034_v11 = vpack.i.bf16 %v11005_v1, %v11002_v50  ;;  %v1993_v1 = vadd.f32 %v9329_v0, %v17337_v56  ;;  %v6697_v32 = vpack.i.bf16 %v2338_v12, %v2336_v60  ;;  %v17338_v50 = vld [vmem:[#allocation74_spill] sm:$0xff]  ;;  %v17342_v12 = vld [vmem:[#allocation109_spill] sm:$0xff]  ;;  %17354 = vst [vmem:[#allocation151_spill] sm:$0xff] %v11106_v22 }
 0x274   :  { %6638 = vrot.lane.b32.xlu1 %v10992_v61, %s7665_s22  ;;  %v11029_v61 = vmul.f32 %v11016_v48, %v1981_v35  ;;  %v17336_v35 = vld [vmem:[#allocation108_spill] sm:$0xff]  ;;  %v2354_v3 = vrot.slane %v17338_v50, 1  ;;  %v17343_v60 = vld [vmem:[#allocation114_spill] sm:$0xff]  ;;  %v2375_v45 = vrot.slane %v17342_v12, 1 }
 0x275   :  { %17333 = vst [vmem:[#allocation148_spill] sm:$0xff] %v11034_v11  ;;  %v17367_v50 = vld [vmem:[#allocation88_spill] sm:$0xff] }
 0x276   :  { %17332 = vst [vmem:[#allocation147_spill] sm:$0xff] %v11029_v61  ;;  %v2357_v56 = vrot.slane %v11029_v61, 1  ;;  %v17361_v61 = vld [vmem:[#allocation35_spill] sm:$0xff] }
 0x277   :  { %6633 = vrot.lane.b32.xlu0 %v11011_v24, %s7665_s22  ;;  %v2342_v24 = vrot.slane %v11022_v4, 1  ;;  %v2355_v4 = vrot.slane %v17341_v19, 1  ;;  %v17364_v19 = vld [vmem:[#allocation37_spill] sm:$0xff] }
 0x278   :  { %6648 = vrot.lane.b32.xlu1 %v6647_v23, %s7666_s28  ;;  %v6652_v23 = vpack.i.bf16 %v17336_v35, %v10593_v21 }
 0x279   :  { %v11055_v39 = vsel %vm2333_vm2, %v2340_v43, %v2342_v24  ;;  %v11069_v24 = vmul.f32 %v11052_v41, %v1993_v1  ;;  %v17350_v1 = vld [vmem:[#allocation115_spill] sm:$0xff] }
 0x27a   :  { %17339 = vst [vmem:[#allocation96_spill] sm:$0xff] %v11055_v39 }
 0x27b   :  { %6643 = vrot.lane.b32.xlu0 %v11034_v11, %s7665_s22  ;;  %v11058_v11 = vsel %vm2333_vm2, %v2339_v57, %v2340_v43  ;;  %17346 = vst [vmem:[#allocation98_spill] sm:$0xff] %v11069_v24  ;;  %v11075_v57 = vsel %vm2333_vm2, %v2354_v3, %v2355_v4 }
 0x27c   :  { %6653 = vrot.lane.b32.xlu1 %v6652_v23, %s7666_s28  ;;  %17340 = vst [vmem:[#allocation149_spill] sm:$0xff] %v11058_v11  ;;  %v6657_v23 = vpack.i.bf16 %v17343_v60, %v17342_v12  ;;  %v6702_v43 = vpack.i.bf16 %v11055_v39, %v11058_v11  ;;  %17347 = vst [vmem:[#allocation73_spill] sm:$0xff] %v11075_v57  ;;  %v17352_v11 = vld [vmem:[#allocation100_spill] sm:$0xff] }
 0x27d   :  { %v2005_v3 = vadd.f32 %v9329_v0, %v17352_v11  ;;  %v11109_v0 = vsel %vm2333_vm2, %v2365_v15, %v2367_v36  ;;  %v2377_v11 = vrot.slane %v11069_v24, 1 }
 0x27e   :  { %17355 = vst [vmem:[#allocation152_spill] sm:$0xff] %v11109_v0  ;;  %v6727_v15 = vpack.i.bf16 %v11109_v0, %v11106_v22  ;;  %v17363_v0 = vld [vmem:[#allocation34_spill] sm:$0xff] }
 0x27f   :  { %6698 = vrot.lane.b32.xlu0 %v6697_v32, %s7667_s9  ;;  %v11078_v32 = vsel %vm2333_vm2, %v2355_v4, %v2357_v56  ;;  %v2374_v56 = vrot.slane %v17336_v35, 1  ;;  %v11128_v36 = vmul.f32 %v11100_v54, %v2005_v3  ;;  %v11137_v24 = vsel %vm2333_vm2, %v2375_v45, %v2377_v11 }
 0x280   :  { %6658 = vrot.lane.b32.xlu1 %v6657_v23, %s7666_s28  ;;  %17348 = vst [vmem:[#allocation150_spill] sm:$0xff] %v11078_v32  ;;  %v17351_v23 = vld [vmem:[#allocation112_spill] sm:$0xff]  ;;  %v6717_v4 = vpack.i.bf16 %v11078_v32, %v11075_v57  ;;  %v11118_v57 = vld [vmem:[%s16116_s5] ss:$0 sm:$0xff]  ;;  %17360 = vst [vmem:[#allocation154_spill] sm:$0xff] %v11137_v24 }
 0x281   :  { %v6662_v39 = vpack.i.bf16 %v17351_v23, %v17350_v1  ;;  %v2021_v3 = vadd.f32 %v11118_v57, %v17361_v61 }
 0x283   :  { %6703 = vrot.lane.b32.xlu0 %v6702_v43, %s7667_s9  ;;  %v11103_v43 = vmul.f32 %v11085_v20, %v1999_v51  ;;  %v17357_v51 = vld [vmem:[#allocation102_spill] sm:$0xff] }
 0x284   :  { %6663 = vrot.lane.b32.xlu1 %v6662_v39, %s7666_s28  ;;  %v17356_v39 = vld [vmem:[#allocation113_spill] sm:$0xff]  ;;  %v2011_v12 = vadd.f32 %v11118_v57, %v17357_v51  ;;  %17358 = vst [vmem:[#allocation102_spill] sm:$0xff] %v11128_v36  ;;  %v2384_v51 = vrot.slane %v17351_v23, 1  ;;  %v2397_v23 = vrot.slane %v11128_v36, 1 }
 0x285   :  { %17353 = vst [vmem:[#allocation100_spill] sm:$0xff] %v11103_v43  ;;  %v6667_v32 = vpack.i.bf16 %v10682_v29, %v17356_v39  ;;  %v2385_v35 = vrot.slane %v17356_v39, 1  ;;  %v2387_v55 = vrot.slane %v11103_v43, 1 }
 0x286   :  { %v11152_v11 = vmul.f32 %v11125_v37, %v2011_v12  ;;  %v17371_v12 = vld [vmem:[#allocation85_spill] sm:$0xff] }
 0x287   :  { %6718 = vrot.lane.b32.xlu0 %v6717_v4, %s7667_s9  ;;  %v11134_v4 = vsel %vm2333_vm2, %v2374_v56, %v2375_v45  ;;  %v2022_v56 = vadd.f32 %v11118_v57, %v17363_v0  ;;  %v2023_v45 = vadd.f32 %v11118_v57, %v17364_v19  ;;  %v2014_v0 = vadd.f32 %v11118_v57, %v17367_v50  ;;  %v2083_v50 = vld [vmem:[%s16117_s1 + $0x40] sm:$0xff] }
 0x288   :  { %6668 = vrot.lane.b32.xlu1 %v6667_v32, %s7666_s28  ;;  %17359 = vst [vmem:[#allocation153_spill] sm:$0xff] %v11134_v4  ;;  %v17362_v32 = vld [vmem:[#allocation116_spill] sm:$0xff]  ;;  %17365 = vst [vmem:[#allocation35_spill] sm:$0xff] %v11152_v11  ;;  %v6737_v43 = vpack.i.bf16 %v11137_v24, %v11134_v4  ;;  %v11163_v13 = vsel %vm2333_vm2, %v2384_v51, %v2385_v35  ;;  %v11166_v19 = vsel %vm2333_vm2, %v2385_v35, %v2387_v55  ;;  %v17372_v4 = vld [vmem:[#allocation39_spill] sm:$0xff] }
 0x289   :  { %v6672_v22 = vpack.i.bf16 %v17362_v32, %v10685_v28  ;;  %v2394_v61 = vrot.slane %v17362_v32, 1  ;;  %17368 = vst [vmem:[#allocation34_spill] sm:$0xff] %v11163_v13  ;;  %17369 = vst [vmem:[#allocation37_spill] sm:$0xff] %v11166_v19  ;;  %v1975_v24 = vadd.f32 %v11118_v57, %v17371_v12  ;;  %v2029_v36 = vadd.f32 %v11118_v57, %v17372_v4 }
 0x28a   :  { %v11178_v32 = vmul.f32 %v10942_v58, %v2021_v3  ;;  %v11187_v35 = vmul.f32 %v10937_v44, %v2022_v56  ;;  %v2405_v51 = vrot.slane %v10708_v52, 1  ;;  %v2407_v12 = vrot.slane %v11152_v11, 1  ;;  %v17378_v11 = vld [vmem:[#allocation87_spill] sm:$0xff] }
 0x28b   :  { %6728 = vrot.lane.b32.xlu0 %v6727_v15, %s7667_s9  ;;  %v17366_v15 = vld [vmem:[#allocation117_spill] sm:$0xff]  ;;  %v2404_v4 = vrot.slane %v10705_v46, 1  ;;  %v6747_v58 = vpack.i.bf16 %v11166_v19, %v11163_v13  ;;  %v11202_v44 = vmul.f32 %v10959_v42, %v2023_v45  ;;  %v11211_v27 = vmul.f32 %v2083_v50, %v2029_v36  ;;  %v17382_v45 = vld [vmem:[#allocation95_spill] sm:$0xff] }
 0x28c   :  { %6673 = vrot.lane.b32.xlu1 %v6672_v22, %s7666_s28  ;;  %v2395_v39 = vrot.slane %v17366_v15, 1  ;;  %v11171_v22 = vld [vmem:[%s16117_s1 + $0x178] sm:$0xff]  ;;  %17373 = vst [vmem:[#allocation85_spill] sm:$0xff] %v11178_v32  ;;  %v6677_v55 = vpack.i.bf16 %v10718_v18, %v17366_v15  ;;  %17374 = vst [vmem:[#allocation39_spill] sm:$0xff] %v11187_v35  ;;  %v1978_v15 = vadd.f32 %v11118_v57, %v17378_v11 }
 0x28d   :  { %17370 = vst [vmem:[#allocation88_spill] sm:$0xff] %v11171_v22  ;;  %17377 = vst [vmem:[#allocation157_spill] sm:$0xff] %v11202_v44  ;;  %v11205_v56 = vmul.f32 %v11171_v22, %v2014_v0  ;;  %v11221_v42 = vld [vmem:[%s16117_s1 + $0x58] sm:$0xff]  ;;  %v1990_v11 = vadd.f32 %v11118_v57, %v17382_v45  ;;  %v11228_v36 = vsel %vm2333_vm2, %v2405_v51, %v2407_v12  ;;  %v2417_v45 = vrot.slane %v11202_v44, 1 }
 0x28e   :  { %v11199_v3 = vsel %vm2333_vm2, %v2395_v39, %v2397_v23  ;;  %17380 = vst [vmem:[#allocation87_spill] sm:$0xff] %v11211_v27  ;;  %v6682_v23 = vpack.i.bf16 %v10705_v46, %v10721_v49  ;;  %17384 = vst [vmem:[#allocation95_spill] sm:$0xff] %v11228_v36  ;;  %v17386_v19 = vld [vmem:[#allocation61_spill] sm:$0xff]  ;;  %v2424_v12 = vrot.slane %v10763_v53, 1  ;;  %v2425_v22 = vrot.slane %v10766_v8, 1 }
 0x28f   :  { %6738 = vrot.lane.b32.xlu0 %v6737_v43, %s7667_s9  ;;  %v11196_v43 = vsel %vm2333_vm2, %v2394_v61, %v2395_v39  ;;  %17376 = vst [vmem:[#allocation156_spill] sm:$0xff] %v11199_v3  ;;  %v11216_v39 = vmul.f32 %v2083_v50, %v1975_v24  ;;  %v17383_v61 = vld [vmem:[#allocation41_spill] sm:$0xff]  ;;  %v11234_v24 = vsel %vm2333_vm2, %v2404_v4, %v2405_v51  ;;  %v2414_v50 = vrot.slane %v11178_v32, 1 }
 0x290   :  { %6678 = vrot.lane.b32.xlu1 %v6677_v55, %s7666_s28  ;;  %17375 = vst [vmem:[#allocation155_spill] sm:$0xff] %v11196_v43  ;;  %v1984_v55 = vadd.f32 %v11118_v57, %v17379_v6  ;;  %v2035_v6 = vadd.f32 %v11118_v57, %v17383_v61  ;;  %v6757_v0 = vpack.i.bf16 %v11199_v3, %v11196_v43  ;;  %17385 = vst [vmem:[#allocation41_spill] sm:$0xff] %v11234_v24  ;;  %v17387_v61 = vld [vmem:[#allocation89_spill] sm:$0xff] }
 0x291   :  { %17381 = vst [vmem:[#allocation32_spill] sm:$0xff] %v11216_v39  ;;  %v2344_v13 = vrot.slane %v17386_v19, 1  ;;  %v2345_v46 = vrot.slane %v17387_v61, 1  ;;  %v11244_v3 = vmul.f32 %v11221_v42, %v1978_v15  ;;  %v6687_v51 = vpack.i.bf16 %v10753_v59, %v10708_v52  ;;  %v17389_v43 = vld [vmem:[#allocation97_spill] sm:$0xff]  ;;  %v11268_v52 = vld [vmem:[%s16117_s1 + $0x88] sm:$0xff] }
 0x292   :  { %v2347_v4 = vrot.slane %v11216_v39, 1  ;;  %v1996_v44 = vadd.f32 %v11118_v57, %v17389_v43  ;;  %v17391_v8 = vld [vmem:[#allocation101_spill] sm:$0xff]  ;;  %v11284_v39 = vsel %vm2333_vm2, %v2424_v12, %v2425_v22  ;;  %v17400_v12 = vld [vmem:[#allocation92_spill] sm:$0xff] }
 0x293   :  { %6748 = vrot.lane.b32.xlu0 %v6747_v58, %s7667_s9  ;;  %v2415_v58 = vrot.slane %v11187_v35, 1  ;;  %17388 = vst [vmem:[#allocation158_spill] sm:$0xff] %v11244_v3  ;;  %v17390_v35 = vld [vmem:[#allocation99_spill] sm:$0xff]  ;;  %v11259_v15 = vadd.f32 %v11118_v57, %v17391_v8  ;;  %v17392_v32 = vld [vmem:[#allocation93_spill] sm:$0xff]  ;;  %v6692_v8 = vpack.i.bf16 %v17386_v19, %v10750_v38  ;;  %v11281_v61 = vsel %vm2333_vm2, %v2344_v13, %v2345_v46 }
 0x294   :  { %6683 = vrot.lane.b32.xlu1 %v6682_v23, %s7666_s28  ;;  %v2427_v23 = vrot.slane %v11211_v27, 1  ;;  %v11255_v53 = vadd.f32 %v11118_v57, %v17390_v35  ;;  %v11271_v27 = vmul.f32 %v11016_v48, %v2035_v6  ;;  %v6767_v35 = vpack.i.bf16 %v11228_v36, %v11234_v24  ;;  %17394 = vst [vmem:[#allocation99_spill] sm:$0xff] %v11281_v61  ;;  %v17396_v48 = vld [vmem:[#allocation76_spill] sm:$0xff]  ;;  %v17399_v13 = vld [vmem:[#allocation79_spill] sm:$0xff]  ;;  %v17401_v24 = vld [vmem:[#allocation94_spill] sm:$0xff] }
 0x295   :  { %v2416_v43 = vsel %vm2333_vm2, %v2414_v50, %v2415_v58  ;;  %17395 = vst [vmem:[#allocation101_spill] sm:$0xff] %v11284_v39  ;;  %v2349_v6 = vrot.slane %v17396_v48, 1  ;;  %v11294_v19 = vsel %vm2333_vm2, %v2345_v46, %v2347_v4  ;;  %v11303_v36 = vadd.f32 %v11118_v57, %v17400_v12 }
 0x296   :  { %17393 = vst [vmem:[#allocation97_spill] sm:$0xff] %v11271_v27  ;;  %17397 = vst [vmem:[#allocation93_spill] sm:$0xff] %v11294_v19  ;;  %v11297_v50 = vsel %vm2333_vm2, %v2425_v22, %v2427_v23  ;;  %v11307_v48 = vadd.f32 %v11118_v57, %v17401_v24  ;;  %v11312_v46 = vmul.f32 %v11268_v52, %v1984_v55  ;;  %v2434_v4 = vrot.slane %v10783_v16, 1 }
 0x297   :  { %6758 = vrot.lane.b32.xlu0 %v6757_v0, %s7667_s9  ;;  %v11263_v0 = vadd.f32 %v11118_v57, %v17392_v32  ;;  %v2418_v32 = vsel %vm2333_vm2, %v2415_v58, %v2417_v45  ;;  %17398 = vst [vmem:[#allocation159_spill] sm:$0xff] %v11297_v50  ;;  %v2350_v58 = vrot.slane %v17399_v13, 1  ;;  %v2352_v45 = vrot.slane %v11244_v3, 1  ;;  %v17404_v3 = vld [vmem:[#allocation52_spill] sm:$0xff] }
 0x298   :  { %6688 = vrot.lane.b32.xlu1 %v6687_v51, %s7666_s28  ;;  %v11290_v51 = vld [vmem:[%s16117_s1 + $0xb8] sm:$0xff]  ;;  %17403 = vst [vmem:[#allocation92_spill] sm:$0xff] %v11312_v46  ;;  %v6777_v22 = vpack.i.bf16 %v2418_v32, %v2416_v43  ;;  %v2435_v23 = vrot.slane %v10786_v62, 1  ;;  %v2437_v12 = vrot.slane %v11271_v27, 1  ;;  %v2053_v13 = vadd.f32 %v11118_v57, %v17404_v3  ;;  %v17407_v32 = vld [vmem:[#allocation106_spill] sm:$0xff]  ;;  %v17408_v3 = vld [vmem:[#allocation107_spill] sm:$0xff] }
 0x299   :  { %v11321_v24 = vmul.f32 %v11290_v51, %v1990_v11  ;;  %v6787_v55 = vpack.i.bf16 %v11297_v50, %v11284_v39  ;;  %v11332_v43 = vsel %vm2333_vm2, %v2350_v58, %v2352_v45  ;;  %v2359_v27 = vrot.slane %v17407_v32, 1  ;;  %v11339_v11 = vld [vmem:[%s16117_s1 + $0xe8] sm:$0xff]  ;;  %v17410_v32 = vld [vmem:[#allocation36_spill] sm:$0xff] }
 0x29a   :  { %17406 = vst [vmem:[#allocation46_spill] sm:$0xff] %v11332_v43  ;;  %v2360_v62 = vrot.slane %v17408_v3, 1  ;;  %v2444_v50 = vrot.slane %v10809_v63, 1  ;;  %v2438_v45 = vsel %vm2333_vm2, %v2435_v23, %v2437_v12  ;;  %v2370_v3 = vrot.slane %v10593_v21, 1 }
 0x29b   :  { %6768 = vrot.lane.b32.xlu0 %v6767_v35, %s7667_s9  ;;  %v2047_v35 = vadd.f32 %v11118_v57, %v17402_v30  ;;  %v6707_v30 = vpack.i.bf16 %v11294_v19, %v11281_v61  ;;  %v2362_v19 = vrot.slane %v11312_v46, 1  ;;  %v2369_v61 = vrot.slane %v10590_v31, 1  ;;  %v17411_v46 = vld [vmem:[#allocation56_spill] sm:$0xff] }
 0x29c   :  { %6693 = vrot.lane.b32.xlu1 %v6692_v8, %s7666_s28  ;;  %v11329_v8 = vsel %vm2333_vm2, %v2349_v6, %v2350_v58  ;;  %v17409_v6 = vld [vmem:[#allocation72_spill] sm:$0xff]  ;;  %v2436_v58 = vsel %vm2333_vm2, %v2434_v4, %v2435_v23  ;;  %v11352_v16 = vadd.f32 %v11118_v57, %v17410_v32  ;;  %v2059_v63 = vadd.f32 %v11118_v57, %v17411_v46 }
 0x29d   :  { %17405 = vst [vmem:[#allocation94_spill] sm:$0xff] %v11329_v8  ;;  %v2447_v39 = vrot.slane %v17409_v6, 1  ;;  %v11361_v4 = vmul.f32 %v11339_v11, %v1996_v44  ;;  %v11364_v23 = vmul.f32 %v11085_v20, %v2053_v13  ;;  %v6712_v12 = vpack.i.bf16 %v11332_v43, %v11329_v8  ;;  %v17420_v43 = vld [vmem:[#allocation65_spill] sm:$0xff] }
 0x29e   :  { %v11370_v32 = vsel %vm2333_vm2, %v2359_v27, %v2360_v62  ;;  %v11380_v44 = vsel %vm2333_vm2, %v2360_v62, %v2362_v19  ;;  %v11386_v46 = vsel %vm2333_vm2, %v2369_v61, %v2370_v3  ;;  %v2454_v27 = vrot.slane %v10838_v5, 1  ;;  %v17419_v61 = vld [vmem:[#allocation38_spill] sm:$0xff] }
 0x29f   :  { %6778 = vrot.lane.b32.xlu0 %v6777_v22, %s7667_s9  ;;  %v2445_v22 = vrot.slane %v10812_v33, 1  ;;  %v11357_v33 = vmul.f32 %v11052_v41, %v2047_v35  ;;  %17412 = vst [vmem:[#allocation52_spill] sm:$0xff] %v11361_v4  ;;  %17413 = vst [vmem:[#allocation72_spill] sm:$0xff] %v11364_v23  ;;  %v11375_v41 = vld [vmem:[%s16117_s1 + $0x118] sm:$0xff]  ;;  %v11377_v35 = vpack.i.bf16 %v2438_v45, %v2436_v58  ;;  %v2464_v8 = vrot.slane %v10869_v26, 1 }
 0x2a0   :  { %6708 = vrot.lane.b32.xlu1 %v6707_v30, %s7667_s9  ;;  %v2372_v30 = vrot.slane %v11321_v24, 1  ;;  %17414 = vst [vmem:[#allocation36_spill] sm:$0xff] %v11370_v32  ;;  %17416 = vst [vmem:[#allocation160_spill] sm:$0xff] %v11380_v44  ;;  %v4520_v58 = vld [vmem:[%s16118_s3 + $0x78] sm:$0xff]  ;;  %v11403_v45 = vadd.f32 %v11118_v57, %v17419_v61  ;;  %v2465_v61 = vrot.slane %v10872_v17, 1 }
 0x2a1   :  { %17415 = vst [vmem:[#allocation56_spill] sm:$0xff] %v11377_v35  ;;  %v2446_v20 = vsel %vm2333_vm2, %v2444_v50, %v2445_v22  ;;  %v2448_v13 = vsel %vm2333_vm2, %v2445_v22, %v2447_v39  ;;  %17417 = vst [vmem:[#allocation161_spill] sm:$0xff] %v11386_v46  ;;  %v2457_v19 = vrot.slane %v11357_v33, 1  ;;  %v2379_v39 = vrot.slane %v17343_v60, 1 }
 0x2a2   :  { %v11394_v62 = vsel %vm2333_vm2, %v2370_v3, %v2372_v30  ;;  %v2380_v50 = vrot.slane %v17350_v1, 1  ;;  %v16423_v22 = vmov 0.0   ;;  %v6722_v3 = vpack.i.bf16 %v11380_v44, %v11370_v32  ;;  %v17422_v32 = vld [vmem:[#allocation40_spill] sm:$0xff] }
 0x2a3   :  { %6788 = vrot.lane.b32.xlu0 %v6787_v55, %s7667_s9  ;;  %v2455_v55 = vrot.slane %v10841_v25, 1  ;;  %17418 = vst [vmem:[#allocation162_spill] sm:$0xff] %v11394_v62  ;;  %4651 = vmatprep.subr.mxu0 %v16423_v22  ;;  %v2382_v30 = vrot.slane %v11361_v4, 1  ;;  %v2467_v1 = vrot.slane %v11364_v23, 1  ;;  %v11427_v44 = vadd.f32 %v11118_v57, %v17422_v32 }
 0x2a4   :  { %6713 = vrot.lane.b32.xlu1 %v6712_v12, %s7667_s9  ;;  %6448 = vmatprep.subr.mxu1 %v16423_v22  ;;  %v11407_v12 = vmul.f32 %v11375_v41, %v11255_v53  ;;  %v2065_v22 = vadd.f32 %v11118_v57, %v17420_v43  ;;  %v17421_v53 = vmov 0.0   ;;  %v11430_v43 = vmul.f32 %v11100_v54, %v2059_v63  ;;  %v2126_v63 = vld [vmem:[%s16117_s1 + $0x198] sm:$0xff] }
 0x2a5   :  { %4652 = vmatpush1.msra.mxu0 %v4520_v58  ;;  %6466 = vmatpush1.msra.mxu1 %v4520_v58  ;;  %v11433_v17 = vpack.i.bf16 %v2448_v13, %v2446_v20  ;;  %v6732_v23 = vpack.i.bf16 %v11394_v62, %v11386_v46  ;;  %v4519_v58 = vld [vmem:[%s16118_s3 + $0x70] sm:$0xff]  ;;  %v2456_v26 = vsel %vm2333_vm2, %v2454_v27, %v2455_v55  ;;  %v2389_v20 = vrot.slane %v10682_v29, 1 }
 0x2a6   :  { %4653 = vmatprep.subr.mxu0 %v17421_v53  ;;  %v2458_v4 = vsel %vm2333_vm2, %v2455_v55, %v2457_v19  ;;  %v11443_v32 = vsel %vm2333_vm2, %v2379_v39, %v2380_v50  ;;  %6449 = vmatprep.subr.mxu1 %v17421_v53  ;;  %v11452_v54 = vsel %vm2333_vm2, %v2380_v50, %v2382_v30  ;;  %v2390_v13 = vrot.slane %v10685_v28, 1  ;;  %v4518_v50 = vld [vmem:[%s16118_s3 + $0x68] sm:$0xff] }
 0x2a7   :  { %6798 = vrot.lane.b32.xlu0 %v11377_v35, %s7667_s9  ;;  %v11423_v35 = vld [vmem:[%s16117_s1 + $0x148] sm:$0xff]  ;;  %17423 = vst [vmem:[#allocation38_spill] sm:$0xff] %v11433_v17  ;;  %17424 = vst [vmem:[#allocation65_spill] sm:$0xff] %v11443_v32  ;;  %4654 = vmatpush1.msra.mxu0 %v4519_v58  ;;  %v2392_v27 = vrot.slane %v11407_v12, 1  ;;  %v11462_v19 = vmul.f32 %v11125_v37, %v2065_v22  ;;  %v2466_v39 = vsel %vm2333_vm2, %v2464_v8, %v2465_v61 }
 0x2a8   :  { %6723 = vrot.lane.b32.xlu1 %v6722_v3, %s7667_s9  ;;  %17425 = vst [vmem:[#allocation40_spill] sm:$0xff] %v11452_v54  ;;  %v11459_v55 = vmul.f32 %v11423_v35, %v11259_v15  ;;  %v2468_v3 = vsel %vm2333_vm2, %v2465_v61, %v2467_v1  ;;  %4655 = vmatprep.subr.mxu0 %v17421_v53  ;;  %v2474_v15 = vrot.slane %v10901_v9, 1  ;;  %v2475_v37 = vrot.slane %v10904_v14, 1 }
 0x2a9   :  { %v11471_v30 = vpack.i.bf16 %v2458_v4, %v2456_v26  ;;  %v2477_v8 = vrot.slane %v11430_v43, 1  ;;  %4656 = vmatpush1.msra.mxu0 %v4518_v50  ;;  %v11479_v1 = vmul.f32 %v2126_v63, %v11263_v0  ;;  %v2409_v22 = vrot.slane %v10753_v59, 1  ;;  %v2128_v4 = vld [vmem:[%s16117_s1 + $0x1a8] sm:$0xff]  ;;  %v11494_v0 = vpop.permute.xlu0 %6493  ;;  %6467 = vmatpush1.msra.mxu1 %v4519_v58 }
 0x2aa   :  { %v2410_v61 = vrot.slane %v10750_v38, 1  ;;  %v6742_v26 = vpack.i.bf16 %v11452_v54, %v11443_v32  ;;  %4657 = vmatprep.subr.mxu0 %v17421_v53  ;;  %17429 = vst [vmem:[#allocation166_spill] sm:$0xff] %v11494_v0  ;;  %v11496_v63 = vpack.i.bf16 %v2468_v3, %v2466_v39  ;;  %v11502_v54 = vsel %vm2333_vm2, %v2390_v13, %v2392_v27  ;;  %v17433_v3 = vld [vmem:[#allocation45_spill] sm:$0xff] }
 0x2ab   :  { %6808 = vrot.lane.b32.xlu0 %v11433_v17, %s7667_s9  ;;  %17426 = vst [vmem:[#allocation163_spill] sm:$0xff] %v11471_v30  ;;  %v11473_v17 = vpop.permute.xlu1 %6498  ;;  %17428 = vst [vmem:[#allocation165_spill] sm:$0xff] %v11479_v1  ;;  %v2399_v32 = vrot.slane %v10718_v18, 1  ;;  %v2400_v62 = vrot.slane %v10721_v49, 1  ;;  %v2402_v46 = vrot.slane %v11459_v55, 1  ;;  %v2484_v59 = vrot.slane %v10945_v2, 1  ;;  %6450 = vmatprep.subr.mxu1 %v17421_v53 }
 0x2ac   :  { %6733 = vrot.lane.b32.xlu1 %v6732_v23, %s7667_s9  ;;  %17427 = vst [vmem:[#allocation164_spill] sm:$0xff] %v11473_v17  ;;  %v2127_v23 = vld [vmem:[%s16117_s1 + $0x1a0] sm:$0xff]  ;;  %17430 = vst [vmem:[#allocation167_spill] sm:$0xff] %v11496_v63  ;;  %v11499_v17 = vsel %vm2333_vm2, %v2389_v20, %v2390_v13  ;;  %v2476_v39 = vsel %vm2333_vm2, %v2474_v15, %v2475_v37  ;;  %v2478_v20 = vsel %vm2333_vm2, %v2475_v37, %v2477_v8 }
 0x2ad   :  { %17431 = vst [vmem:[#allocation168_spill] sm:$0xff] %v11499_v17  ;;  %17432 = vst [vmem:[#allocation169_spill] sm:$0xff] %v11502_v54  ;;  %v2487_v13 = vrot.slane %v11462_v19, 1  ;;  %v2412_v27 = vrot.slane %v11205_v56, 1  ;;  %v2044_v0 = vadd.f32 %v11118_v57, %v17433_v3  ;;  %v11517_v38 = vmul.f32 %v2127_v23, %v11303_v36  ;;  %6468 = vmatpush1.msra.mxu1 %v4518_v50  ;;  %v17443_v23 = vld [vmem:[#allocation28_spill] sm:$0xff] }
 0x2ae   :  { %v11520_v2 = vmul.f32 %v2128_v4, %v11307_v48  ;;  %v11524_v58 = vmul.f32 %v11221_v42, %v11403_v45  ;;  %v11528_v15 = vsel %vm2333_vm2, %v2409_v22, %v2410_v61  ;;  %v6752_v36 = vpack.i.bf16 %v11502_v54, %v11499_v17  ;;  %6451 = vmatprep.subr.mxu1 %v17421_v53 }
 0x2af   :  { %6818 = vrot.lane.b32.xlu0 %v11471_v30, %s7667_s9  ;;  %v2485_v30 = vrot.slane %v10948_v7, 1  ;;  %17434 = vst [vmem:[#allocation45_spill] sm:$0xff] %v11517_v38  ;;  %17435 = vst [vmem:[#allocation170_spill] sm:$0xff] %v11528_v15  ;;  %v11538_v48 = vmul.f32 %v10997_v10, %v11352_v16  ;;  %v11540_v42 = vpack.i.bf16 %v2478_v20, %v2476_v39  ;;  %v2495_v50 = vrot.slane %v10980_v34, 2  ;;  %v4517_v34 = vld [vmem:[%s16118_s3 + $0x60] sm:$0xff] }
 0x2b0   :  { %6743 = vrot.lane.b32.xlu1 %v6742_v26, %s7667_s9  ;;  %v11543_v45 = vsel %vm2333_vm2, %v2399_v32, %v2400_v62  ;;  %v11546_v8 = vsel %vm2333_vm2, %v2400_v62, %v2402_v46  ;;  %v11555_v10 = vsel %vm2333_vm2, %v2410_v61, %v2412_v27  ;;  %v2687_v32 = vrot.slane %v11479_v1, 1  ;;  %4658 = vmatpush1.msra.mxu0 %v4517_v34 }
 0x2b1   :  { %17437 = vst [vmem:[#allocation172_spill] sm:$0xff] %v11540_v42  ;;  %17438 = vst [vmem:[#allocation173_spill] sm:$0xff] %v11543_v45  ;;  %v2486_v22 = vsel %vm2333_vm2, %v2484_v59, %v2485_v30  ;;  %v2488_v16 = vsel %vm2333_vm2, %v2485_v30, %v2487_v13  ;;  %v2496_v46 = vrot.slane %v10983_v40, 2  ;;  %v2498_v62 = vrot.slane %v10986_v47, 2  ;;  %v17442_v59 = vld [vmem:[#allocation91_spill] sm:$0xff]  ;;  %4659 = vmatprep.subr.mxu0 %v17421_v53 }
 0x2b2   :  { %v11532_v37 = vpop.permute.xlu1 %6508  ;;  %17439 = vst [vmem:[#allocation174_spill] sm:$0xff] %v11546_v8  ;;  %17441 = vst [vmem:[#allocation176_spill] sm:$0xff] %v11555_v10  ;;  %v2419_v4 = vrot.slane %v17442_v59, 1  ;;  %v2420_v39 = vrot.slane %v17443_v23, 1  ;;  %v6762_v30 = vpack.i.bf16 %v11546_v8, %v11543_v45  ;;  %v2422_v61 = vrot.slane %v11538_v48, 1  ;;  %6469 = vmatpush1.msra.mxu1 %v4517_v34  ;;  %v17459_v34 = vld [vmem:[#allocation57_spill] sm:$0xff] }
 0x2b3   :  { %6828 = vrot.lane.b32.xlu0 %v11496_v63, %s7667_s9  ;;  %17436 = vst [vmem:[#allocation171_spill] sm:$0xff] %v11532_v37  ;;  %v2688_v13 = vrot.slane %v11517_v38, 1  ;;  %v2690_v27 = vrot.slane %v11520_v2, 1  ;;  %v11574_v47 = vmul.f32 %v11268_v52, %v11427_v44  ;;  %v11576_v3 = vpack.i.bf16 %v2488_v16, %v2486_v22  ;;  %v17449_v37 = vld [vmem:[#allocation131_spill] sm:$0xff]  ;;  %6452 = vmatprep.subr.mxu1 %v17421_v53 }
 0x2b4   :  { %6753 = vrot.lane.b32.xlu1 %v6752_v36, %s7667_s9  ;;  %v6772_v36 = vpack.i.bf16 %v11555_v10, %v11528_v15  ;;  %v2430_v52 = vrot.slane %v17449_v37, 1  ;;  %v2499_v16 = vsel %vm2494_vm4, %v2496_v46, %v2498_v62  ;;  %v11598_v10 = vsel %vm2333_vm2, %v2419_v4, %v2420_v39  ;;  %v17457_v62 = vld [vmem:[#allocation147_spill] sm:$0xff] }
 0x2b5   :  { %v11550_v26 = vpop.permute.xlu0 %6503  ;;  %17445 = vst [vmem:[#allocation178_spill] sm:$0xff] %v11576_v3  ;;  %v11590_v44 = vsel %vm2333_vm2, %v2687_v32, %v2688_v13  ;;  %v11593_v22 = vsel %vm2333_vm2, %v2688_v13, %v2690_v27  ;;  %17452 = vst [vmem:[#allocation181_spill] sm:$0xff] %v11598_v10  ;;  %v11607_v13 = vsel %vm2333_vm2, %v2420_v39, %v2422_v61  ;;  %v17455_v27 = vld [vmem:[#allocation74_spill] sm:$0xff]  ;;  %v2518_v4 = vrot.slane %v17457_v62, 2  ;;  %v17461_v61 = vld [vmem:[#allocation89_spill] sm:$0xff] }
 0x2b6   :  { %17440 = vst [vmem:[#allocation175_spill] sm:$0xff] %v11550_v26  ;;  %v11565_v20 = vpop.permute.xlu1 %6518  ;;  %17450 = vst [vmem:[#allocation179_spill] sm:$0xff] %v11590_v44  ;;  %v11615_v15 = vmul.f32 %v11290_v51, %v2044_v0  ;;  %v6782_v51 = vpack.i.bf16 %v11607_v13, %v11598_v10  ;;  %v17473_v10 = vld [vmem:[#allocation48_spill] sm:$0xff] }
 0x2b7   :  { %6838 = vrot.lane.b32.xlu0 %v11540_v42, %s7667_s9  ;;  %17444 = vst [vmem:[#allocation177_spill] sm:$0xff] %v11565_v20  ;;  %v17446_v42 = vld [vmem:[#allocation32_spill] sm:$0xff]  ;;  %v17448_v20 = vld [vmem:[#allocation130_spill] sm:$0xff]  ;;  %17451 = vst [vmem:[#allocation180_spill] sm:$0xff] %v11593_v22 }
 0x2b8   :  { %v2508_v63 = vrot.slane %v17446_v42, 2  ;;  %6763 = vrot.lane.b32.xlu1 %v6762_v30, %s7667_s9  ;;  %v2429_v26 = vrot.slane %v17448_v20, 1  ;;  %v2497_v42 = vsel %vm2494_vm4, %v2495_v50, %v2496_v46  ;;  %v2432_v30 = vrot.slane %v11524_v58, 1  ;;  %17454 = vst [vmem:[#allocation183_spill] sm:$0xff] %v11607_v13  ;;  %v17458_v22 = vld [vmem:[#allocation51_spill] sm:$0xff] }
 0x2b9   :  { %v11584_v40 = vpop.permute.xlu0 %6513  ;;  %v2515_v50 = vrot.slane %v17455_v27, 2  ;;  %v2050_v44 = vadd.f32 %v11118_v57, %v17458_v22  ;;  %v6857_v39 = vpack.i.bf16 %v2499_v16, %v2497_v42  ;;  %v17471_v42 = vld [vmem:[#allocation103_spill] sm:$0xff]  ;;  %v17472_v16 = vld [vmem:[#allocation49_spill] sm:$0xff]  ;;  %v2450_v13 = vrot.slane %v17473_v10, 1  ;;  %v17493_v10 = vld [vmem:[#allocation58_spill] sm:$0xff] }
 0x2ba   :  { %17447 = vst [vmem:[#allocation32_spill] sm:$0xff] %v11584_v40  ;;  %v11604_v32 = vpop.permute.xlu1 %6528  ;;  %v17456_v40 = vld [vmem:[#allocation77_spill] sm:$0xff]  ;;  %v11629_v22 = vsel %vm2333_vm2, %v2429_v26, %v2430_v52  ;;  %v11634_v0 = vsel %vm2333_vm2, %v2430_v52, %v2432_v30  ;;  %v2442_v26 = vrot.slane %v11574_v47, 1  ;;  %v2525_v52 = vrot.slane %v17471_v42, 2 }
 0x2bb   :  { %6848 = vrot.lane.b32.xlu0 %v11576_v3, %s7667_s9  ;;  %17453 = vst [vmem:[#allocation182_spill] sm:$0xff] %v11604_v32  ;;  %v2516_v46 = vrot.slane %v17456_v40, 2  ;;  %v2056_v3 = vadd.f32 %v11118_v57, %v17459_v34  ;;  %v17462_v40 = vrot.slane %v17461_v61, 2  ;;  %17464 = vst [vmem:[#allocation57_spill] sm:$0xff] %v11629_v22  ;;  %v17466_v34 = vld [vmem:[#allocation43_spill] sm:$0xff]  ;;  %v2449_v30 = vrot.slane %v17472_v16, 1 }
 0x2bc   :  { %6773 = vrot.lane.b32.xlu1 %v6772_v36, %s7667_s9  ;;  %17465 = vst [vmem:[#allocation184_spill] sm:$0xff] %v11634_v0  ;;  %v2439_v27 = vrot.slane %v17466_v34, 1  ;;  %v2452_v45 = vrot.slane %v11615_v15, 1  ;;  %v11665_v42 = vpack.i.bf16 %v11634_v0, %v11629_v22  ;;  %v17484_v0 = vld [vmem:[#allocation109_spill] sm:$0xff]  ;;  %v2470_v16 = vrot.slane %v17493_v10, 1  ;;  %v17498_v10 = vld [vmem:[#allocation75_spill] sm:$0xff] }
 0x2bd   :  { %v11620_v32 = vpop.permute.xlu0 %6523  ;;  %v11626_v62 = vsel %vm2494_vm4, %v17462_v40, %v2508_v63  ;;  %v11642_v40 = vsel %vm2494_vm4, %v2515_v50, %v2516_v46  ;;  %v11645_v63 = vsel %vm2494_vm4, %v2516_v46, %v2518_v4  ;;  %v17476_v50 = vld [vmem:[#allocation71_spill] sm:$0xff]  ;;  %v11661_v4 = vmul.f32 %v11375_v41, %v2056_v3  ;;  %v17483_v3 = vld [vmem:[#allocation108_spill] sm:$0xff] }
 0x2be   :  { %17460 = vst [vmem:[#allocation147_spill] sm:$0xff] %v11620_v32  ;;  %17463 = vst [vmem:[#allocation51_spill] sm:$0xff] %v11626_v62  ;;  %v17467_v32 = vld [vmem:[#allocation42_spill] sm:$0xff]  ;;  %v11639_v36 = vpop.permute.xlu1 %6538  ;;  %v6867_v46 = vpack.i.bf16 %v11626_v62, %v17476_v50  ;;  %v6877_v54 = vpack.i.bf16 %v11645_v63, %v11642_v40  ;;  %v2535_v50 = vrot.slane %v17483_v3, 2  ;;  %v2536_v22 = vrot.slane %v17484_v0, 2 }
 0x2bf   :  { %v2440_v8 = vrot.slane %v17467_v32, 1  ;;  %6858 = vrot.lane.b32.xlu0 %v6857_v39, %s7669_s26  ;;  %17468 = vst [vmem:[#allocation185_spill] sm:$0xff] %v11639_v36  ;;  %17469 = vst [vmem:[#allocation186_spill] sm:$0xff] %v11642_v40  ;;  %v11653_v39 = vmul.f32 %v11339_v11, %v2050_v44  ;;  %v2451_v61 = vsel %vm2333_vm2, %v2449_v30, %v2450_v13  ;;  %v17489_v30 = vld [vmem:[#allocation112_spill] sm:$0xff] }
 0x2c0   :  { %17470 = vst [vmem:[#allocation187_spill] sm:$0xff] %v11645_v63  ;;  %6783 = vrot.lane.b32.xlu1 %v6782_v51, %s7667_s9  ;;  %17477 = vst [vmem:[#allocation190_spill] sm:$0xff] %v11661_v4  ;;  %v2453_v63 = vsel %vm2333_vm2, %v2450_v13, %v2452_v45  ;;  %v2545_v0 = vrot.slane %v17489_v30, 2  ;;  %v17490_v45 = vld [vmem:[#allocation113_spill] sm:$0xff] }
 0x2c1   :  { %17474 = vst [vmem:[#allocation188_spill] sm:$0xff] %v11653_v39  ;;  %v11655_v36 = vpop.permute.xlu0 %6533  ;;  %17478 = vst [vmem:[#allocation191_spill] sm:$0xff] %v11665_v42  ;;  %v2441_v11 = vsel %vm2333_vm2, %v2439_v27, %v2440_v8  ;;  %v2443_v51 = vsel %vm2333_vm2, %v2440_v8, %v2442_v26  ;;  %v17485_v27 = vld [vmem:[#allocation98_spill] sm:$0xff]  ;;  %v4516_v8 = vld [vmem:[%s16118_s3 + $0x58] sm:$0xff]  ;;  %v2462_v3 = vrot.slane %v11653_v39, 1  ;;  %v2546_v13 = vrot.slane %v17490_v45, 2 }
 0x2c2   :  { %17475 = vst [vmem:[#allocation189_spill] sm:$0xff] %v11655_v36  ;;  %v11671_v44 = vpop.permute.xlu1 %6548  ;;  %v17480_v36 = vld [vmem:[#allocation70_spill] sm:$0xff]  ;;  %v2538_v40 = vrot.slane %v17485_v27, 2  ;;  %4660 = vmatpush1.msra.mxu0 %v4516_v8  ;;  %v17491_v27 = vld [vmem:[#allocation100_spill] sm:$0xff]  ;;  %6470 = vmatpush1.msra.mxu1 %v4516_v8  ;;  %v11706_v45 = vpack.i.bf16 %v2443_v51, %v2441_v11  ;;  %v11713_v39 = vpack.i.bf16 %v2453_v63, %v2451_v61 }
 0x2c3   :  { %6868 = vrot.lane.b32.xlu0 %v6867_v46, %s7669_s26  ;;  %17479 = vst [vmem:[#allocation192_spill] sm:$0xff] %v11671_v44  ;;  %v17481_v62 = vrot.slane %v17480_v36, 2  ;;  %v17486_v46 = vld [vmem:[#allocation55_spill] sm:$0xff]  ;;  %v2548_v36 = vrot.slane %v17491_v27, 2  ;;  %4661 = vmatprep.subr.mxu0 %v17421_v53  ;;  %v17497_v27 = vld [vmem:[#allocation66_spill] sm:$0xff]  ;;  %v11716_v8 = vsel %vm2494_vm4, %v2535_v50, %v2536_v22  ;;  %v17503_v51 = vld [vmem:[#allocation116_spill] sm:$0xff]  ;;  %v11729_v61 = vsel %vm2494_vm4, %v2545_v0, %v2546_v13 }
 0x2c4   :  { %v2459_v17 = vrot.slane %v17486_v46, 1  ;;  %6793 = vrot.lane.b32.xlu1 %v11665_v42, %s7667_s9  ;;  %v17492_v44 = vld [vmem:[#allocation59_spill] sm:$0xff]  ;;  %v17494_v42 = vld [vmem:[#allocation60_spill] sm:$0xff]  ;;  %6453 = vmatprep.subr.mxu1 %v17421_v53  ;;  %17499 = vst [vmem:[#allocation66_spill] sm:$0xff] %v11713_v39  ;;  %17500 = vst [vmem:[#allocation75_spill] sm:$0xff] %v11716_v8  ;;  %v2698_v0 = vrot.slane %v11517_v38, 2 }
 0x2c5   :  { %v11677_v41 = vsel %vm2494_vm4, %v2525_v52, %v17481_v62  ;;  %v11688_v26 = vpop.permute.xlu0 %6543  ;;  %v17488_v62 = vld [vmem:[#allocation54_spill] sm:$0xff]  ;;  %v2469_v46 = vrot.slane %v17492_v44, 1  ;;  %17496 = vst [vmem:[#allocation60_spill] sm:$0xff] %v11706_v45  ;;  %v2068_v44 = vadd.f32 %v11118_v57, %v17497_v27  ;;  %v2555_v27 = vrot.slane %v17503_v51, 2  ;;  %17504 = vst [vmem:[#allocation196_spill] sm:$0xff] %v11729_v61  ;;  %v17526_v38 = vld [vmem:[#allocation35_spill] sm:$0xff] }
 0x2c6   :  { %17482 = vst [vmem:[#allocation193_spill] sm:$0xff] %v11677_v41  ;;  %17487 = vst [vmem:[#allocation98_spill] sm:$0xff] %v11688_v26  ;;  %v2460_v52 = vrot.slane %v17488_v62, 1  ;;  %v2472_v26 = vrot.slane %v11661_v4, 1  ;;  %v2062_v62 = vadd.f32 %v11118_v57, %v17494_v42  ;;  %v11704_v30 = vpop.permute.xlu1 %6558  ;;  %v6887_v4 = vpack.i.bf16 %v17498_v10, %v11677_v41 }
 0x2c7   :  { %6878 = vrot.lane.b32.xlu0 %v6877_v54, %s7669_s26  ;;  %17495 = vst [vmem:[#allocation100_spill] sm:$0xff] %v11704_v30  ;;  %v11723_v54 = vsel %vm2494_vm4, %v2536_v22, %v2538_v40  ;;  %v11732_v63 = vsel %vm2494_vm4, %v2546_v13, %v2548_v36  ;;  %v2471_v50 = vsel %vm2333_vm2, %v2469_v46, %v2470_v16  ;;  %v17507_v40 = vld [vmem:[#allocation117_spill] sm:$0xff]  ;;  %v2700_v36 = vrot.slane %v11520_v2, 2  ;;  %v17509_v46 = vld [vmem:[#allocation88_spill] sm:$0xff] }
 0x2c8   :  { %6803 = vrot.lane.b32.xlu1 %v11706_v45, %s7667_s9  ;;  %17502 = vst [vmem:[#allocation195_spill] sm:$0xff] %v11723_v54  ;;  %v2461_v11 = vsel %vm2333_vm2, %v2459_v17, %v2460_v52  ;;  %v2463_v57 = vsel %vm2333_vm2, %v2460_v52, %v2462_v3  ;;  %17505 = vst [vmem:[#allocation197_spill] sm:$0xff] %v11732_v63  ;;  %v2556_v17 = vrot.slane %v17507_v40, 2  ;;  %v17508_v45 = vld [vmem:[#allocation102_spill] sm:$0xff]  ;;  %v2697_v52 = vrot.slane %v11479_v1, 2 }
 0x2c9   :  { %v11718_v42 = vpop.permute.xlu0 %6553  ;;  %v2558_v3 = vrot.slane %v17508_v45, 2  ;;  %v11744_v51 = vmul.f32 %v11423_v35, %v2062_v62  ;;  %v11748_v13 = vmul.f32 %v17509_v46, %v2068_v44  ;;  %v6907_v45 = vpack.i.bf16 %v11732_v63, %v11729_v61  ;;  %v17513_v62 = vld [vmem:[#allocation64_spill] sm:$0xff]  ;;  %v17517_v40 = vld [vmem:[#allocation78_spill] sm:$0xff]  ;;  %v17527_v63 = vld [vmem:[#allocation31_spill] sm:$0xff] }
 0x2ca   :  { %17501 = vst [vmem:[#allocation194_spill] sm:$0xff] %v11718_v42  ;;  %v2473_v42 = vsel %vm2333_vm2, %v2470_v16, %v2472_v26  ;;  %v11737_v22 = vpop.permute.xlu1 %6568  ;;  %v11756_v26 = vpack.i.bf16 %v2463_v57, %v2461_v11  ;;  %v2479_v2 = vrot.slane %v17513_v62, 1  ;;  %v11767_v46 = vsel %vm2494_vm4, %v2555_v27, %v2556_v17  ;;  %v17518_v11 = vld [vmem:[#allocation104_spill] sm:$0xff] }
 0x2cb   :  { %6888 = vrot.lane.b32.xlu0 %v6887_v4, %s7669_s26  ;;  %17506 = vst [vmem:[#allocation198_spill] sm:$0xff] %v11737_v22  ;;  %v6897_v4 = vpack.i.bf16 %v11723_v54, %v11716_v8  ;;  %v11760_v35 = vpack.i.bf16 %v2473_v42, %v2471_v50  ;;  %17515 = vst [vmem:[#allocation201_spill] sm:$0xff] %v11767_v46  ;;  %v11774_v57 = vpack.i.bf16 %v17518_v11, %v17517_v40  ;;  %v17521_v42 = vld [vmem:[#allocation67_spill] sm:$0xff]  ;;  %v4515_v27 = vld [vmem:[%s16118_s3 + $0x50] sm:$0xff] }
 0x2cc   :  { %6813 = vrot.lane.b32.xlu1 %v11713_v39, %s7667_s9  ;;  %17511 = vst [vmem:[#allocation88_spill] sm:$0xff] %v11756_v26  ;;  %v11770_v39 = vsel %vm2494_vm4, %v2556_v17, %v2558_v3  ;;  %v2480_v50 = vrot.slane %v17521_v42, 1  ;;  %v2482_v22 = vrot.slane %v11744_v51, 1  ;;  %v11786_v17 = vsel %vm2494_vm4, %v2698_v0, %v2700_v36  ;;  %4662 = vmatpush1.msra.mxu0 %v4515_v27  ;;  %v17533_v54 = vld [vmem:[#allocation85_spill] sm:$0xff] }
 0x2cd   :  { %v11750_v16 = vpop.permute.xlu0 %6563  ;;  %17512 = vst [vmem:[#allocation199_spill] sm:$0xff] %v11760_v35  ;;  %17516 = vst [vmem:[#allocation202_spill] sm:$0xff] %v11770_v39  ;;  %v2568_v1 = vrot.slane %v17526_v38, 2  ;;  %4663 = vmatprep.subr.mxu0 %v17421_v53  ;;  %6471 = vmatpush1.msra.mxu1 %v4515_v27  ;;  %v2666_v36 = vrot.slane %v17517_v40, 1  ;;  %v2667_v38 = vrot.slane %v17518_v11, 1 }
 0x2ce   :  { %17510 = vst [vmem:[#allocation102_spill] sm:$0xff] %v11750_v16  ;;  %v11764_v44 = vpop.permute.xlu1 %6578  ;;  %17519 = vst [vmem:[#allocation78_spill] sm:$0xff] %v11774_v57  ;;  %v11777_v16 = vsel %vm2494_vm4, %v2697_v52, %v2698_v0  ;;  %v17525_v52 = vld [vmem:[#allocation121_spill] sm:$0xff]  ;;  %v2676_v57 = vrot.slane %v17517_v40, 2  ;;  %v2489_v0 = vrot.slane %v17527_v63, 1  ;;  %6454 = vmatprep.subr.mxu1 %v17421_v53  ;;  %v2481_v61 = vsel %vm2333_vm2, %v2479_v2, %v2480_v50 }
 0x2cf   :  { %6898 = vrot.lane.b32.xlu0 %v6897_v4, %s7669_s26  ;;  %17514 = vst [vmem:[#allocation200_spill] sm:$0xff] %v11764_v44  ;;  %17520 = vst [vmem:[#allocation104_spill] sm:$0xff] %v11777_v16  ;;  %v17522_v4 = vld [vmem:[#allocation120_spill] sm:$0xff]  ;;  %v2566_v16 = vrot.slane %v17525_v52, 2  ;;  %v2677_v44 = vrot.slane %v17518_v11, 2  ;;  %v2483_v27 = vsel %vm2333_vm2, %v2480_v50, %v2482_v22  ;;  %v2492_v40 = vrot.slane %v11748_v13, 1 }
 0x2d0   :  { %v2565_v30 = vrot.slane %v17522_v4, 2  ;;  %17523 = vst [vmem:[#allocation203_spill] sm:$0xff] %v11786_v17  ;;  %6823 = vrot.lane.b32.xlu1 %v11756_v26, %s7667_s9  ;;  %v6917_v4 = vpack.i.bf16 %v11770_v39, %v11767_v46  ;;  %v17529_v26 = vld [vmem:[#allocation144_spill] sm:$0xff]  ;;  %v17531_v39 = vld [vmem:[#allocation105_spill] sm:$0xff]  ;;  %v2668_v11 = vsel %vm2333_vm2, %v2666_v36, %v2667_v38 }
 0x2d1   :  { %v11788_v3 = vpop.permute.xlu0 %6573  ;;  %v2490_v52 = vrot.slane %v17529_v26, 1  ;;  %v2669_v46 = vrot.slane %v17531_v39, 1  ;;  %v11827_v22 = vsel %vm2494_vm4, %v2566_v16, %v2568_v1 }
 0x2d2   :  { %17524 = vst [vmem:[#allocation204_spill] sm:$0xff] %v11788_v3  ;;  %v11802_v17 = vpop.permute.xlu1 %6588  ;;  %v11807_v3 = vsel %vm2494_vm4, %v2676_v57, %v2677_v44  ;;  %v2575_v57 = vrot.slane %v17533_v54, 2  ;;  %v11824_v2 = vsel %vm2494_vm4, %v2565_v30, %v2566_v16  ;;  %17536 = vst [vmem:[#allocation207_spill] sm:$0xff] %v11827_v22  ;;  %v11835_v54 = vpack.i.bf16 %v2483_v27, %v2481_v61  ;;  %v17543_v16 = vld [vmem:[#allocation146_spill] sm:$0xff] }
 0x2d3   :  { %6908 = vrot.lane.b32.xlu0 %v6907_v45, %s7669_s26  ;;  %17528 = vst [vmem:[#allocation35_spill] sm:$0xff] %v11802_v17  ;;  %17530 = vst [vmem:[#allocation205_spill] sm:$0xff] %v11807_v3  ;;  %v2679_v45 = vrot.slane %v17531_v39, 2  ;;  %v17534_v3 = vld [vmem:[#allocation39_spill] sm:$0xff]  ;;  %v2670_v63 = vsel %vm2333_vm2, %v2667_v38, %v2669_v46  ;;  %v17537_v39 = vld [vmem:[#allocation157_spill] sm:$0xff]  ;;  %v2491_v36 = vsel %vm2333_vm2, %v2489_v0, %v2490_v52 }
 0x2d4   :  { %6833 = vrot.lane.b32.xlu1 %v11760_v35, %s7667_s9  ;;  %v2576_v26 = vrot.slane %v17534_v3, 2  ;;  %17535 = vst [vmem:[#allocation206_spill] sm:$0xff] %v11824_v2  ;;  %v2578_v50 = vrot.slane %v17537_v39, 2  ;;  %17540 = vst [vmem:[#allocation209_spill] sm:$0xff] %v11835_v54  ;;  %v2493_v30 = vsel %vm2333_vm2, %v2490_v52, %v2492_v40  ;;  %v17542_v38 = vld [vmem:[#allocation86_spill] sm:$0xff]  ;;  %v2503_v3 = vrot.slane %v17543_v16, 2 }
 0x2d5   :  { %v11815_v17 = vpop.permute.xlu0 %6583  ;;  %v11839_v46 = vsel %vm2494_vm4, %v2677_v44, %v2679_v45  ;;  %v2501_v1 = vrot.slane %v17542_v38, 2  ;;  %v17544_v39 = vld [vmem:[#allocation84_spill] sm:$0xff]  ;;  %v6927_v61 = vpack.i.bf16 %v11827_v22, %v11824_v2  ;;  %v17546_v0 = vld [vmem:[#allocation33_spill] sm:$0xff]  ;;  %v17547_v27 = vld [vmem:[#allocation30_spill] sm:$0xff] }
 0x2d6   :  { %17532 = vst [vmem:[#allocation105_spill] sm:$0xff] %v11815_v17  ;;  %v11830_v17 = vpack.i.bf16 %v2670_v63, %v2668_v11  ;;  %v11833_v35 = vpop.permute.xlu1 %6598  ;;  %17541 = vst [vmem:[#allocation210_spill] sm:$0xff] %v11839_v46  ;;  %v2500_v63 = vrot.slane %v17544_v39, 2  ;;  %v2579_v44 = vsel %vm2494_vm4, %v2576_v26, %v2578_v50  ;;  %v2585_v52 = vrot.slane %v17546_v0, 2  ;;  %v17548_v45 = vld [vmem:[#allocation87_spill] sm:$0xff]  ;;  %v17551_v46 = vld [vmem:[#allocation76_spill] sm:$0xff] }
 0x2d7   :  { %6918 = vrot.lane.b32.xlu0 %v6917_v4, %s7669_s26  ;;  %17539 = vst [vmem:[#allocation208_spill] sm:$0xff] %v11833_v35  ;;  %v2577_v4 = vsel %vm2494_vm4, %v2575_v57, %v2576_v26  ;;  %v2586_v40 = vrot.slane %v17547_v27, 2  ;;  %v2588_v16 = vrot.slane %v17548_v45, 2  ;;  %v11864_v57 = vsel %vm2494_vm4, %v2501_v1, %v2503_v3  ;;  %v17554_v50 = vld [vmem:[#allocation158_spill] sm:$0xff]  ;;  %v17557_v27 = vld [vmem:[#allocation129_spill] sm:$0xff] }
 0x2d8   :  { %17538 = vst [vmem:[#allocation157_spill] sm:$0xff] %v11830_v17  ;;  %6843 = vrot.lane.b32.xlu1 %v11835_v54, %s7667_s9  ;;  %v2510_v17 = vrot.slane %v17551_v46, 2  ;;  %v17552_v54 = vld [vmem:[#allocation79_spill] sm:$0xff]  ;;  %17553 = vst [vmem:[#allocation212_spill] sm:$0xff] %v11864_v57  ;;  %v11867_v26 = vsel %vm2494_vm4, %v2500_v63, %v2501_v1  ;;  %v2513_v38 = vrot.slane %v17554_v50, 2  ;;  %v2596_v3 = vrot.slane %v17557_v27, 2 }
 0x2d9   :  { %v11845_v11 = vpop.permute.xlu0 %6593  ;;  %v2511_v39 = vrot.slane %v17552_v54, 2  ;;  %v11880_v1 = vsel %vm2494_vm4, %v2585_v52, %v2586_v40  ;;  %v11883_v63 = vsel %vm2494_vm4, %v2586_v40, %v2588_v16  ;;  %v17560_v50 = vld [vmem:[#allocation97_spill] sm:$0xff]  ;;  %v17564_v40 = vld [vmem:[#allocation106_spill] sm:$0xff] }
 0x2da   :  { %17545 = vst [vmem:[#allocation146_spill] sm:$0xff] %v11845_v11  ;;  %v11857_v35 = vpop.permute.xlu1 %6608  ;;  %v11859_v11 = vpack.i.bf16 %v2493_v30, %v2491_v36  ;;  %v6937_v36 = vpack.i.bf16 %v2579_v44, %v2577_v4  ;;  %v17556_v30 = vld [vmem:[#allocation128_spill] sm:$0xff]  ;;  %17558 = vst [vmem:[#allocation213_spill] sm:$0xff] %v11880_v1  ;;  %v2598_v22 = vrot.slane %v17560_v50, 2  ;;  %v6862_v4 = vpack.i.bf16 %v11864_v57, %v11867_v26  ;;  %v17565_v50 = vld [vmem:[#allocation107_spill] sm:$0xff] }
 0x2db   :  { %6928 = vrot.lane.b32.xlu0 %v6927_v61, %s7669_s26  ;;  %17549 = vst [vmem:[#allocation87_spill] sm:$0xff] %v11857_v35  ;;  %v4514_v61 = vld [vmem:[%s16118_s3 + $0x48] sm:$0xff]  ;;  %v2595_v35 = vrot.slane %v17556_v30, 2  ;;  %17559 = vst [vmem:[#allocation214_spill] sm:$0xff] %v11883_v63  ;;  %v11893_v44 = vsel %vm2494_vm4, %v2510_v17, %v2511_v39  ;;  %v11897_v52 = vsel %vm2494_vm4, %v2511_v39, %v2513_v38  ;;  %v2520_v16 = vrot.slane %v17564_v40, 2  ;;  %v17570_v38 = vld [vmem:[#allocation44_spill] sm:$0xff] }
 0x2dc   :  { %17550 = vst [vmem:[#allocation211_spill] sm:$0xff] %v11859_v11  ;;  %6853 = vrot.lane.b32.xlu1 %v11859_v11, %s7667_s9  ;;  %4664 = vmatpush1.msra.mxu0 %v4514_v61  ;;  %17562 = vst [vmem:[#allocation215_spill] sm:$0xff] %v11893_v44  ;;  %v2521_v30 = vrot.slane %v17565_v50, 2  ;;  %v11911_v11 = vsel %vm2494_vm4, %v2596_v3, %v2598_v22  ;;  %v2605_v39 = vrot.slane %v17570_v38, 2  ;;  %v17571_v57 = vld [vmem:[#allocation47_spill] sm:$0xff]  ;;  %v2608_v50 = vrot.slane %v17409_v6, 2 }
 0x2dd   :  { %v11873_v45 = vpop.permute.xlu0 %6603  ;;  %4665 = vmatprep.subr.mxu0 %v17421_v53  ;;  %6472 = vmatpush1.msra.mxu1 %v4514_v61  ;;  %17563 = vst [vmem:[#allocation216_spill] sm:$0xff] %v11897_v52  ;;  %v17566_v61 = vld [vmem:[#allocation92_spill] sm:$0xff]  ;;  %v11908_v17 = vsel %vm2494_vm4, %v2595_v35, %v2596_v3  ;;  %17569 = vst [vmem:[#allocation218_spill] sm:$0xff] %v11911_v11  ;;  %v2606_v40 = vrot.slane %v17571_v57, 2  ;;  %v6872_v35 = vpack.i.bf16 %v11897_v52, %v11893_v44 }
 0x2de   :  { %17555 = vst [vmem:[#allocation158_spill] sm:$0xff] %v11873_v45  ;;  %v11888_v45 = vpop.permute.xlu1 %6618  ;;  %6455 = vmatprep.subr.mxu1 %v17421_v53  ;;  %v2523_v27 = vrot.slane %v17566_v61, 2  ;;  %17568 = vst [vmem:[#allocation217_spill] sm:$0xff] %v11908_v17  ;;  %v2530_v61 = vrot.slane %v10590_v31, 2  ;;  %v11924_v22 = vsel %vm2494_vm4, %v2520_v16, %v2521_v30  ;;  %v2533_v38 = vrot.slane %v11321_v24, 2 }
 0x2df   :  { %6938 = vrot.lane.b32.xlu0 %v6937_v36, %s7669_s26  ;;  %17561 = vst [vmem:[#allocation97_spill] sm:$0xff] %v11888_v45  ;;  %v6947_v45 = vpack.i.bf16 %v11883_v63, %v11880_v1  ;;  %17573 = vst [vmem:[#allocation220_spill] sm:$0xff] %v11924_v22  ;;  %v2616_v57 = vrot.slane %v10841_v25, 2  ;;  %v11940_v16 = vsel %vm2494_vm4, %v2605_v39, %v2606_v40  ;;  %v2618_v24 = vrot.slane %v11357_v33, 2  ;;  %v17581_v25 = vld [vmem:[#allocation52_spill] sm:$0xff] }
 0x2e0   :  { %6863 = vrot.lane.b32.xlu1 %v6862_v4, %s7669_s26  ;;  %v11927_v3 = vsel %vm2494_vm4, %v2521_v30, %v2523_v27  ;;  %17576 = vst [vmem:[#allocation223_spill] sm:$0xff] %v11940_v16  ;;  %v11943_v27 = vsel %vm2494_vm4, %v2606_v40, %v2608_v50  ;;  %v2540_v39 = vrot.slane %v17343_v60, 2  ;;  %v17580_v40 = vld [vmem:[#allocation115_spill] sm:$0xff]  ;;  %v2543_v33 = vrot.slane %v17581_v25, 2  ;;  %v17587_v60 = vld [vmem:[#allocation136_spill] sm:$0xff] }
 0x2e1   :  { %v11902_v36 = vpop.permute.xlu0 %6613  ;;  %17574 = vst [vmem:[#allocation221_spill] sm:$0xff] %v11927_v3  ;;  %17577 = vst [vmem:[#allocation224_spill] sm:$0xff] %v11943_v27  ;;  %v2541_v50 = vrot.slane %v17580_v40, 2  ;;  %v17586_v25 = vld [vmem:[#allocation135_spill] sm:$0xff]  ;;  %v2626_v40 = vrot.slane %v17587_v60, 2 }
 0x2e2   :  { %17567 = vst [vmem:[#allocation92_spill] sm:$0xff] %v11902_v36  ;;  %v2531_v36 = vrot.slane %v10593_v21, 2  ;;  %v11919_v4 = vpop.permute.xlu1 %6628  ;;  %v17588_v21 = vld [vmem:[#allocation72_spill] sm:$0xff] }
 0x2e3   :  { %6948 = vrot.lane.b32.xlu0 %v6947_v45, %s7669_s26  ;;  %17572 = vst [vmem:[#allocation219_spill] sm:$0xff] %v11919_v4  ;;  %v11935_v45 = vpack.i.bf16 %v11911_v11, %v11908_v17  ;;  %v2615_v4 = vrot.slane %v10838_v5, 2  ;;  %v2625_v17 = vrot.slane %v17586_v25, 2  ;;  %v2628_v31 = vrot.slane %v17588_v21, 2 }
 0x2e4   :  { %6873 = vrot.lane.b32.xlu1 %v6872_v35, %s7669_s26  ;;  %v11947_v30 = vsel %vm2494_vm4, %v2530_v61, %v2531_v36  ;;  %v11956_v5 = vsel %vm2494_vm4, %v2531_v36, %v2533_v38  ;;  %v4513_v61 = vld [vmem:[%s16118_s3 + $0x40] sm:$0xff]  ;;  %v11975_v38 = vsel %vm2494_vm4, %v2616_v57, %v2618_v24  ;;  %v2551_v24 = vrot.slane %v10685_v28, 2 }
 0x2e5   :  { %v11930_v6 = vpop.permute.xlu0 %6623  ;;  %17578 = vst [vmem:[#allocation225_spill] sm:$0xff] %v11947_v30  ;;  %v11972_v36 = vsel %vm2494_vm4, %v2615_v4, %v2616_v57  ;;  %4666 = vmatpush1.msra.mxu0 %v4513_v61  ;;  %17585 = vst [vmem:[#allocation229_spill] sm:$0xff] %v11975_v38  ;;  %6473 = vmatpush1.msra.mxu1 %v4513_v61  ;;  %v6892_v4 = vpack.i.bf16 %v11956_v5, %v11947_v30  ;;  %v2550_v57 = vrot.slane %v10682_v29, 2 }
 0x2e6   :  { %17575 = vst [vmem:[#allocation222_spill] sm:$0xff] %v11930_v6  ;;  %v11951_v35 = vpop.permute.xlu1 %6638  ;;  %v6882_v6 = vpack.i.bf16 %v11927_v3, %v11924_v22  ;;  %17584 = vst [vmem:[#allocation228_spill] sm:$0xff] %v11972_v36  ;;  %4667 = vmatprep.subr.mxu0 %v17421_v53  ;;  %6456 = vmatprep.subr.mxu1 %v17421_v53  ;;  %v11994_v21 = vsel %vm2494_vm4, %v2541_v50, %v2543_v33  ;;  %v2553_v61 = vrot.slane %v11407_v12, 2 }
 0x2e7   :  { %6958 = vrot.lane.b32.xlu0 %v11935_v45, %s7669_s26  ;;  %17579 = vst [vmem:[#allocation226_spill] sm:$0xff] %v11951_v35  ;;  %v11969_v35 = vpack.i.bf16 %v11943_v27, %v11940_v16  ;;  %17590 = vst [vmem:[#allocation230_spill] sm:$0xff] %v11994_v21  ;;  %v12002_v60 = vpack.i.bf16 %v11975_v38, %v11972_v36  ;;  %v2635_v27 = vrot.slane %v10901_v9, 2  ;;  %v2636_v16 = vrot.slane %v10904_v14, 2 }
 0x2e8   :  { %6883 = vrot.lane.b32.xlu1 %v6882_v6, %s7669_s26  ;;  %v2638_v12 = vrot.slane %v11430_v43, 2  ;;  %v12023_v9 = vsel %vm2494_vm4, %v2551_v24, %v2553_v61  ;;  %v2563_v43 = vrot.slane %v11459_v55, 2  ;;  %v17600_v61 = vld [vmem:[#allocation81_spill] sm:$0xff]  ;;  %v2646_v36 = vrot.slane %v10948_v7, 2 }
 0x2e9   :  { %v11964_v11 = vpop.permute.xlu0 %6633  ;;  %17583 = vst [vmem:[#allocation227_spill] sm:$0xff] %v11969_v35  ;;  %17592 = vst [vmem:[#allocation232_spill] sm:$0xff] %v12002_v60  ;;  %v2645_v38 = vrot.slane %v17600_v61, 2  ;;  %v2648_v55 = vrot.slane %v11462_v19, 2 }
 0x2ea   :  { %17582 = vst [vmem:[#allocation52_spill] sm:$0xff] %v11964_v11  ;;  %v11983_v6 = vpop.permute.xlu1 %6648  ;;  %v11991_v11 = vsel %vm2494_vm4, %v2540_v39, %v2541_v50  ;;  %v12007_v39 = vsel %vm2494_vm4, %v2625_v17, %v2626_v40  ;;  %v12010_v50 = vsel %vm2494_vm4, %v2626_v40, %v2628_v31  ;;  %17596 = vst [vmem:[#allocation236_spill] sm:$0xff] %v12023_v9  ;;  %v2560_v17 = vrot.slane %v10718_v18, 2  ;;  %v17601_v18 = vld [vmem:[#allocation126_spill] sm:$0xff] }
 0x2eb   :  { %6968 = vrot.lane.b32.xlu0 %v11969_v35, %s7669_s26  ;;  %17589 = vst [vmem:[#allocation72_spill] sm:$0xff] %v11991_v11  ;;  %17593 = vst [vmem:[#allocation233_spill] sm:$0xff] %v12007_v39  ;;  %v2561_v31 = vrot.slane %v10721_v49, 2  ;;  %v12033_v14 = vpack.i.bf16 %v12010_v50, %v12007_v39  ;;  %v2571_v49 = vrot.slane %v17601_v18, 2 }
 0x2ec   :  { %6893 = vrot.lane.b32.xlu1 %v6892_v4, %s7669_s26  ;;  %17594 = vst [vmem:[#allocation234_spill] sm:$0xff] %v12010_v50  ;;  %v6902_v4 = vpack.i.bf16 %v11994_v21, %v11991_v11  ;;  %v2573_v50 = vrot.slane %v11205_v56, 2 }
 0x2ed   :  { %v11997_v25 = vpop.permute.xlu0 %6643  ;;  %17597 = vst [vmem:[#allocation237_spill] sm:$0xff] %v12033_v14  ;;  %v12057_v19 = vsel %vm2494_vm4, %v2560_v17, %v2561_v31  ;;  %v12060_v61 = vsel %vm2494_vm4, %v2561_v31, %v2563_v43  ;;  %v12075_v17 = vsel %vm2494_vm4, %v2646_v36, %v2648_v55 }
 0x2ee   :  { %17591 = vst [vmem:[#allocation231_spill] sm:$0xff] %v11997_v25  ;;  %v12015_v33 = vpop.permute.xlu1 %6653  ;;  %v12020_v25 = vsel %vm2494_vm4, %v2550_v57, %v2551_v24  ;;  %v12036_v57 = vsel %vm2494_vm4, %v2635_v27, %v2636_v16  ;;  %v12039_v24 = vsel %vm2494_vm4, %v2636_v16, %v2638_v12  ;;  %v17602_v12 = vld [vmem:[#allocation127_spill] sm:$0xff]  ;;  %17603 = vst [vmem:[#allocation240_spill] sm:$0xff] %v12057_v19 }
 0x2ef   :  { %6978 = vrot.lane.b32.xlu0 %v12002_v60, %s7669_s26  ;;  %17595 = vst [vmem:[#allocation235_spill] sm:$0xff] %v12020_v25  ;;  %17598 = vst [vmem:[#allocation238_spill] sm:$0xff] %v12036_v57  ;;  %v6912_v16 = vpack.i.bf16 %v12023_v9, %v12020_v25  ;;  %v2570_v7 = vrot.slane %v17602_v12, 2  ;;  %v12068_v39 = vpack.i.bf16 %v12039_v24, %v12036_v57  ;;  %v2593_v57 = vrot.slane %v11524_v58, 2  ;;  %v17624_v60 = vld [vmem:[#allocation54_spill] sm:$0xff] }
 0x2f0   :  { %6903 = vrot.lane.b32.xlu1 %v6902_v4, %s7669_s26  ;;  %17599 = vst [vmem:[#allocation239_spill] sm:$0xff] %v12039_v24  ;;  %v4512_v4 = vld [vmem:[%s16118_s3 + $0x38] sm:$0xff]  ;;  %17604 = vst [vmem:[#allocation241_spill] sm:$0xff] %v12060_v61  ;;  %v12078_v31 = vsel %vm2494_vm4, %v2571_v49, %v2573_v50  ;;  %v2581_v24 = vrot.slane %v17443_v23, 2  ;;  %v7027_v58 = vpack.i.bf16 %v11677_v41, %v11927_v3  ;;  %v2600_v3 = vrot.slane %v17466_v34, 2 }
 0x2f1   :  { %v12028_v40 = vpop.permute.xlu0 %6698  ;;  %4668 = vmatpush1.msra.mxu0 %v4512_v4  ;;  %6474 = vmatpush1.msra.mxu1 %v4512_v4  ;;  %17605 = vst [vmem:[#allocation242_spill] sm:$0xff] %v12068_v39  ;;  %17607 = vst [vmem:[#allocation244_spill] sm:$0xff] %v12075_v17  ;;  %v6922_v4 = vpack.i.bf16 %v12060_v61, %v12057_v19  ;;  %v17614_v23 = vld [vmem:[#allocation161_spill] sm:$0xff]  ;;  %v7047_v34 = vpack.i.bf16 %v11947_v30, %v17498_v10  ;;  %v2621_v29 = vrot.slane %v17624_v60, 2 }
 0x2f2   :  { %v12051_v27 = vpop.permute.xlu1 %6658  ;;  %4669 = vmatprep.subr.mxu0 %v17421_v53  ;;  %6457 = vmatprep.subr.mxu1 %v17421_v53  ;;  %17608 = vst [vmem:[#allocation245_spill] sm:$0xff] %v12078_v31 }
 0x2f3   :  { %6988 = vrot.lane.b32.xlu0 %v12033_v14, %s7669_s26  ;;  %v12072_v14 = vsel %vm2494_vm4, %v2645_v38, %v2646_v36  ;;  %v2580_v38 = vrot.slane %v17442_v59, 2  ;;  %v2583_v36 = vrot.slane %v11538_v48, 2  ;;  %v2601_v59 = vrot.slane %v17467_v32, 2  ;;  %v17618_v32 = vld [vmem:[#allocation48_spill] sm:$0xff] }
 0x2f4   :  { %6913 = vrot.lane.b32.xlu1 %v6912_v16, %s7669_s26  ;;  %17606 = vst [vmem:[#allocation243_spill] sm:$0xff] %v12072_v14  ;;  %v12087_v16 = vsel %vm2494_vm4, %v2570_v7, %v2571_v49  ;;  %v12097_v50 = vpack.i.bf16 %v12075_v17, %v12072_v14  ;;  %v2591_v17 = vrot.slane %v17449_v37, 2 }
 0x2f5   :  { %v12063_v56 = vpop.permute.xlu0 %6703  ;;  %17609 = vst [vmem:[#allocation246_spill] sm:$0xff] %v12087_v16  ;;  %v6932_v7 = vpack.i.bf16 %v12078_v31, %v12087_v16  ;;  %v12107_v48 = vsel %vm2494_vm4, %v2580_v38, %v2581_v24  ;;  %v2603_v38 = vrot.slane %v11574_v47, 2 }
 0x2f6   :  { %v12082_v43 = vpop.permute.xlu1 %6663  ;;  %17610 = vst [vmem:[#allocation247_spill] sm:$0xff] %v12097_v50  ;;  %v12132_v41 = vsel %vm2494_vm4, %v2591_v17, %v2593_v57  ;;  %v2613_v57 = vrot.slane %v11615_v15, 2  ;;  %v2611_v15 = vrot.slane %v17618_v32, 2  ;;  %v17623_v32 = vld [vmem:[#allocation55_spill] sm:$0xff] }
 0x2f7   :  { %6998 = vrot.lane.b32.xlu0 %v12068_v39, %s7669_s26  ;;  %v12110_v39 = vsel %vm2494_vm4, %v2581_v24, %v2583_v36  ;;  %17612 = vst [vmem:[#allocation249_spill] sm:$0xff] %v12132_v41 }
 0x2f8   :  { %6923 = vrot.lane.b32.xlu1 %v6922_v4, %s7669_s26  ;;  %v2590_v4 = vrot.slane %v17448_v20, 2  ;;  %v6942_v36 = vpack.i.bf16 %v12110_v39, %v12107_v48  ;;  %v12180_v10 = vsel %vm2494_vm4, %v2611_v15, %v2613_v57 }
 0x2f9   :  { %v12092_v55 = vpop.permute.xlu0 %6718  ;;  %17622 = vst [vmem:[#allocation251_spill] sm:$0xff] %v12180_v10 }
 0x2fa   :  { %v12102_v49 = vpop.permute.xlu1 %6668 }
 0x2fb   :  { %7008 = vrot.lane.b32.xlu0 %v12097_v50, %s7669_s26  ;;  %v4511_v50 = vld [vmem:[%s16118_s3 + $0x30] sm:$0xff] }
 0x2fc   :  { %6933 = vrot.lane.b32.xlu1 %v6932_v7, %s7669_s26  ;;  %4670 = vmatpush1.msra.mxu0 %v4511_v50  ;;  %v12129_v7 = vsel %vm2494_vm4, %v2590_v4, %v2591_v17  ;;  %v12155_v4 = vsel %vm2494_vm4, %v2600_v3, %v2601_v59 }
 0x2fd   :  { %v12114_v14 = vpop.permute.xlu0 %6728  ;;  %17611 = vst [vmem:[#allocation248_spill] sm:$0xff] %v12129_v7  ;;  %4671 = vmatprep.subr.mxu0 %v17421_v53  ;;  %6475 = vmatpush1.msra.mxu1 %v4511_v50  ;;  %v12152_v50 = vpack.i.bf16 %v12132_v41, %v12129_v7  ;;  %v17619_v41 = vld [vmem:[#allocation188_spill] sm:$0xff] }
 0x2fe   :  { %v12124_v24 = vpop.permute.xlu1 %6673  ;;  %6458 = vmatprep.subr.mxu1 %v17421_v53  ;;  %v2623_v7 = vrot.slane %v17619_v41, 2  ;;  %v17626_v41 = vld [vmem:[#allocation153_spill] sm:$0xff] }
 0x2ff   :  { %7028 = vrot.lane.b32.xlu0 %v7027_v58, %s7670_s4  ;;  %v17613_v58 = vld [vmem:[#allocation152_spill] sm:$0xff] }
 0x300   :  { %6943 = vrot.lane.b32.xlu1 %v6942_v36, %s7669_s26  ;;  %v12142_v12 = vpack.i.bf16 %v17614_v23, %v17613_v58  ;;  %17615 = vst [vmem:[#allocation152_spill] sm:$0xff] %v12155_v4  ;;  %v12158_v23 = vsel %vm2494_vm4, %v2601_v59, %v2603_v38  ;;  %v17617_v36 = vld [vmem:[#allocation49_spill] sm:$0xff] }
 0x301   :  { %v12137_v47 = vpop.permute.xlu0 %6738  ;;  %17616 = vst [vmem:[#allocation161_spill] sm:$0xff] %v12158_v23  ;;  %v2610_v58 = vrot.slane %v17617_v36, 2  ;;  %v12174_v59 = vpack.i.bf16 %v12158_v23, %v12155_v4  ;;  %v2620_v36 = vrot.slane %v17623_v32, 2  ;;  %v17627_v23 = vld [vmem:[#allocation190_spill] sm:$0xff] }
 0x302   :  { %v12148_v17 = vpop.permute.xlu1 %6678  ;;  %v2633_v57 = vrot.slane %v17627_v23, 2 }
 0x303   :  { %7033 = vrot.lane.b32.xlu0 %v12142_v12, %s7671_s17  ;;  %17620 = vst [vmem:[#allocation188_spill] sm:$0xff] %v12174_v59  ;;  %v12177_v38 = vsel %vm2494_vm4, %v2610_v58, %v2611_v15  ;;  %v4510_v58 = vld [vmem:[%s16118_s3 + $0x28] sm:$0xff]  ;;  %v12205_v32 = vsel %vm2494_vm4, %v2620_v36, %v2621_v29 }
 0x304   :  { %6953 = vrot.lane.b32.xlu1 %v12152_v50, %s7669_s26  ;;  %17621 = vst [vmem:[#allocation250_spill] sm:$0xff] %v12177_v38  ;;  %v12202_v60 = vpack.i.bf16 %v12180_v10, %v12177_v38  ;;  %4672 = vmatpush1.msra.mxu0 %v4510_v58  ;;  %17630 = vst [vmem:[#allocation190_spill] sm:$0xff] %v12205_v32  ;;  %v7067_v10 = vpack.i.bf16 %v11716_v8, %v11956_v5 }
 0x305   :  { %v12164_v18 = vpop.permute.xlu0 %6748  ;;  %6476 = vmatpush1.msra.mxu1 %v4510_v58  ;;  %4673 = vmatprep.subr.mxu0 %v17421_v53 }
 0x306   :  { %v12170_v3 = vpop.permute.xlu1 %6683  ;;  %17629 = vst [vmem:[#allocation153_spill] sm:$0xff] %v12202_v60  ;;  %6459 = vmatprep.subr.mxu1 %v17421_v53 }
 0x307   :  { %7048 = vrot.lane.b32.xlu0 %v7047_v34, %s7670_s4  ;;  %v17625_v34 = vld [vmem:[#allocation162_spill] sm:$0xff] }
 0x308   :  { %6963 = vrot.lane.b32.xlu1 %v12174_v59, %s7669_s26  ;;  %v12190_v35 = vpack.i.bf16 %v17626_v41, %v17625_v34  ;;  %v12208_v34 = vsel %vm2494_vm4, %v2621_v29, %v2623_v7  ;;  %v17632_v41 = vld [vmem:[#allocation59_spill] sm:$0xff]  ;;  %v17633_v59 = vld [vmem:[#allocation58_spill] sm:$0xff]  ;;  %v2643_v7 = vrot.slane %v11744_v51, 2  ;;  %v2640_v51 = vrot.slane %v17513_v62, 2 }
 0x309   :  { %v12184_v28 = vpop.permute.xlu0 %6758  ;;  %17631 = vst [vmem:[#allocation252_spill] sm:$0xff] %v12208_v34  ;;  %v2630_v4 = vrot.slane %v17632_v41, 2  ;;  %v2631_v23 = vrot.slane %v17633_v59, 2  ;;  %v4509_v29 = vld [vmem:[%s16118_s3 + $0x20] sm:$0xff]  ;;  %v12229_v58 = vpack.i.bf16 %v12208_v34, %v12205_v32  ;;  %v4508_v59 = vld [vmem:[%s16118_s3 + $0x18] sm:$0xff] }
 0x30a   :  { %v12198_v15 = vpop.permute.xlu1 %6688  ;;  %6477 = vmatpush1.msra.mxu1 %v4509_v29  ;;  %4674 = vmatpush1.msra.mxu0 %v4509_v29  ;;  %v17639_v32 = vld [vmem:[#allocation154_spill] sm:$0xff] }
 0x30b   :  { %7053 = vrot.lane.b32.xlu0 %v12190_v35, %s7671_s17  ;;  %17628 = vst [vmem:[#allocation162_spill] sm:$0xff] %v12198_v15  ;;  %17635 = vst [vmem:[#allocation254_spill] sm:$0xff] %v12229_v58  ;;  %v12235_v41 = vsel %vm2494_vm4, %v2630_v4, %v2631_v23  ;;  %v12238_v38 = vsel %vm2494_vm4, %v2631_v23, %v2633_v57  ;;  %6460 = vmatprep.subr.mxu1 %v17421_v53  ;;  %v4507_v4 = vld [vmem:[%s16118_s3 + $0x10] sm:$0xff]  ;;  %v2653_v57 = vrot.slane %v11748_v13, 2  ;;  %v17645_v13 = vld [vmem:[#allocation31_spill] sm:$0xff] }
 0x30c   :  { %6973 = vrot.lane.b32.xlu1 %v12202_v60, %s7669_s26  ;;  %17636 = vst [vmem:[#allocation255_spill] sm:$0xff] %v12235_v41  ;;  %17637 = vst [vmem:[#allocation256_spill] sm:$0xff] %v12238_v38  ;;  %v17640_v60 = vld [vmem:[#allocation65_spill] sm:$0xff]  ;;  %6478 = vmatpush1.msra.mxu1 %v4508_v59  ;;  %v2650_v62 = vrot.slane %v17645_v13, 2 }
 0x30d   :  { %v12213_v30 = vpop.permute.xlu0 %6768  ;;  %v12249_v8 = vpack.i.bf16 %v17640_v60, %v17639_v32  ;;  %6461 = vmatprep.subr.mxu1 %v17421_v53  ;;  %4675 = vmatprep.subr.mxu0 %v17421_v53  ;;  %v12263_v60 = vpack.i.bf16 %v12238_v38, %v12235_v41  ;;  %v4506_v32 = vld [vmem:[%s16118_s3 + $0x8] sm:$0xff] }
 0x30e   :  { %v12225_v36 = vpop.permute.xlu1 %6693  ;;  %6479 = vmatpush1.msra.mxu1 %v4507_v4  ;;  %4676 = vmatpush1.msra.mxu0 %v4508_v59  ;;  %v17648_v41 = vld [vmem:[#allocation195_spill] sm:$0xff] }
 0x30f   :  { %7068 = vrot.lane.b32.xlu0 %v7067_v10, %s7670_s4  ;;  %17634 = vst [vmem:[#allocation253_spill] sm:$0xff] %v12225_v36  ;;  %v2641_v10 = vrot.slane %v17521_v42, 2  ;;  %17642 = vst [vmem:[#allocation65_spill] sm:$0xff] %v12263_v60  ;;  %6462 = vmatprep.subr.mxu1 %v17421_v53 }
 0x310   :  { %6983 = vrot.lane.b32.xlu1 %v12229_v58, %s7669_s26  ;;  %v17646_v58 = vld [vmem:[#allocation144_spill] sm:$0xff]  ;;  %6480 = vmatpush1.msra.mxu1 %v4506_v32 }
 0x311   :  { %v12243_v34 = vpop.permute.xlu0 %6778  ;;  %v12269_v29 = vsel %vm2494_vm4, %v2640_v51, %v2641_v10  ;;  %v12272_v42 = vsel %vm2494_vm4, %v2641_v10, %v2643_v7  ;;  %6463 = vmatprep.subr.mxu1 %v17421_v53  ;;  %v4505_v7 = vld [vmem:[%s16118_s3] sm:$0xff]  ;;  %4677 = vmatprep.subr.mxu0 %v17421_v53  ;;  %v4522_v10 = vld [vmem:[%s16118_s3 + $0x88] sm:$0xff] }
 0x312   :  { %17638 = vst [vmem:[#allocation257_spill] sm:$0xff] %v12243_v34  ;;  %v12259_v23 = vpop.permute.xlu1 %6708  ;;  %17643 = vst [vmem:[#allocation258_spill] sm:$0xff] %v12269_v29  ;;  %v2651_v34 = vrot.slane %v17646_v58, 2  ;;  %v12293_v51 = vpack.i.bf16 %v12272_v42, %v12269_v29  ;;  %6481 = vmatpush1.msra.mxu1 %v4505_v7  ;;  %4678 = vmatpush1.msra.mxu0 %v4507_v4  ;;  %v17655_v29 = vld [vmem:[#allocation34_spill] sm:$0xff] }
 0x313   :  { %7073 = vrot.lane.b32.xlu0 %v12249_v8, %s7671_s17  ;;  %17641 = vst [vmem:[#allocation154_spill] sm:$0xff] %v12259_v23  ;;  %17644 = vst [vmem:[#allocation259_spill] sm:$0xff] %v12272_v42  ;;  %v7087_v23 = vpack.i.bf16 %v11991_v11, %v17648_v41  ;;  %6464 = vmatprep.subr.mxu1 %v17421_v53  ;;  %v17654_v42 = vld [vmem:[#allocation40_spill] sm:$0xff] }
 0x314   :  { %6993 = vrot.lane.b32.xlu1 %v12263_v60, %s7669_s26  ;;  %17650 = vst [vmem:[#allocation262_spill] sm:$0xff] %v12293_v51  ;;  %v12299_v58 = vsel %vm2494_vm4, %v2650_v62, %v2651_v34  ;;  %v12302_v13 = vsel %vm2494_vm4, %v2651_v34, %v2653_v57  ;;  %v12311_v60 = vpack.i.bf16 %v17655_v29, %v17654_v42  ;;  %v4521_v62 = vld [vmem:[%s16118_s3 + $0x80] sm:$0xff]  ;;  %v17658_v57 = vld [vmem:[#allocation196_spill] sm:$0xff]  ;;  %s7672_s3 = smov 64  }
 0x315   :  { %v12277_v38 = vpop.permute.xlu0 %6788  ;;  %17651 = vst [vmem:[#allocation263_spill] sm:$0xff] %v12299_v58  ;;  %17652 = vst [vmem:[#allocation264_spill] sm:$0xff] %v12302_v13  ;;  %6482 = vmatpush2.msra.mxu1 %v4522_v10  ;;  %4679 = vmatprep.subr.mxu0 %v17421_v53  ;;  %v12324_v4 = vpack.i.bf16 %v12302_v13, %v12299_v58  ;;  %v7107_v29 = vpack.i.bf16 %v17658_v57, %v11994_v21  ;;  %v17660_v13 = vld [vmem:[#allocation151_spill] sm:$0xff]  ;;  %v17666_v21 = vld [vmem:[#allocation89_spill] sm:$0xff] }
 0x316   :  { %17647 = vst [vmem:[#allocation260_spill] sm:$0xff] %v12277_v38  ;;  %v12289_v59 = vpop.permute.xlu1 %6713  ;;  %6465 = vmatprep.subr.mxu1 %v17421_v53  ;;  %4680 = vmatpush1.msra.mxu0 %v4506_v32 }
 0x317   :  { %7088 = vrot.lane.b32.xlu0 %v7087_v23, %s7670_s4  ;;  %17649 = vst [vmem:[#allocation261_spill] sm:$0xff] %v12289_v59  ;;  %17656 = vst [vmem:[#allocation40_spill] sm:$0xff] %v12324_v4  ;;  %6483 = vmatpush2.msra.mxu1 %v4521_v62 }
 0x318   :  { %7003 = vrot.lane.b32.xlu1 %v12293_v51, %s7669_s26  ;;  %4681 = vmatprep.subr.mxu0 %v17421_v53  ;;  %v17659_v51 = vld [vmem:[#allocation160_spill] sm:$0xff] }
 0x319   :  { %v12305_v23 = vpop.permute.xlu0 %6798  ;;  %4682 = vmatpush1.msra.mxu0 %v4505_v7  ;;  %v7017_v58 = vpack.i.bf16 %v17660_v13, %v17659_v51 }
 0x31a   :  { %17653 = vst [vmem:[#allocation265_spill] sm:$0xff] %v12305_v23  ;;  %v12320_v34 = vpop.permute.xlu1 %6723  ;;  %4711 = vmatprep.subr.mxu0 %v17421_v53 }
 0x31b   :  { %7093 = vrot.lane.b32.xlu0 %v12311_v60, %s7671_s17  ;;  %4712 = vmatpush2.msra.mxu0 %v4522_v10  ;;  %v17668_v10 = vld [vmem:[#allocation197_spill] sm:$0xff] }
 0x31c   :  { %7013 = vrot.lane.b32.xlu1 %v12324_v4, %s7669_s26  ;;  %v17663_v4 = vld [vmem:[#allocation168_spill] sm:$0xff]  ;;  %4713 = vmatprep.subr.mxu0 %v17421_v53 }
 0x31d   :  { %v12326_v42 = vpop.permute.xlu0 %6808  ;;  %4714 = vmatpush2.msra.mxu0 %v4521_v62  ;;  %v17671_v62 = vld [vmem:[#allocation169_spill] sm:$0xff] }
 0x31e   :  { %17657 = vst [vmem:[#allocation34_spill] sm:$0xff] %v12326_v42  ;;  %v12334_v23 = vpop.permute.xlu1 %6733  ;;  %v17662_v42 = vld [vmem:[#allocation37_spill] sm:$0xff] }
 0x31f   :  { %7108 = vrot.lane.b32.xlu0 %v7107_v29, %s7670_s4  ;;  %v7112_v57 = vpack.i.bf16 %v17663_v4, %v17662_v42  ;;  %v17665_v29 = vld [vmem:[#allocation124_spill] sm:$0xff]  ;;  %v17672_v42 = vld [vmem:[#allocation155_spill] sm:$0xff] }
 0x320   :  { %7018 = vrot.lane.b32.xlu1 %v7017_v58, %s7672_s3  ;;  %v7022_v11 = vpack.i.bf16 %v17666_v21, %v17665_v29  ;;  %v7127_v58 = vpack.i.bf16 %v12020_v25, %v17668_v10 }
 0x321   :  { %v12339_v32 = vpop.permute.xlu0 %6818 }
 0x322   :  { %17661 = vst [vmem:[#allocation160_spill] sm:$0xff] %v12339_v32  ;;  %v12346_v7 = vpop.permute.xlu1 %6743  ;;  %v7132_v32 = vpack.i.bf16 %v17672_v42, %v17671_v62  ;;  %v17679_v62 = vld [vmem:[#allocation156_spill] sm:$0xff]  ;;  %v17680_v42 = vld [vmem:[#allocation173_spill] sm:$0xff] }
 0x323   :  { %7113 = vrot.lane.b32.xlu0 %v7112_v57, %s7671_s17  ;;  %17664 = vst [vmem:[#allocation151_spill] sm:$0xff] %v12346_v7 }
 0x324   :  { %7023 = vrot.lane.b32.xlu1 %v7022_v11, %s7666_s28  ;;  %v17674_v11 = vld [vmem:[#allocation125_spill] sm:$0xff] }
 0x325   :  { %v12350_v59 = vpop.permute.xlu0 %6828  ;;  %v7042_v7 = vpack.i.bf16 %v17551_v46, %v17674_v11 }
 0x326   :  { %17667 = vst [vmem:[#allocation37_spill] sm:$0xff] %v12350_v59  ;;  %v12356_v4 = vpop.permute.xlu1 %6753 }
 0x327   :  { %7128 = vrot.lane.b32.xlu0 %v7127_v58, %s7670_s4  ;;  %17669 = vst [vmem:[#allocation168_spill] sm:$0xff] %v12356_v4  ;;  %v17676_v58 = vld [vmem:[#allocation201_spill] sm:$0xff] }
 0x328   :  { %7038 = vrot.lane.b32.xlu1 %v12142_v12, %s7672_s3 }
 0x329   :  { %v12358_v53 = vpop.permute.xlu0 %6838 }
 0x32a   :  { %17670 = vst [vmem:[#allocation124_spill] sm:$0xff] %v12358_v53  ;;  %v12365_v59 = vpop.permute.xlu1 %6763  ;;  %v7147_v53 = vpack.i.bf16 %v17676_v58, %v12023_v9  ;;  %v17684_v9 = vld [vmem:[#allocation202_spill] sm:$0xff] }
 0x32b   :  { %7133 = vrot.lane.b32.xlu0 %v7132_v32, %s7671_s17  ;;  %17673 = vst [vmem:[#allocation169_spill] sm:$0xff] %v12365_v59  ;;  %v12383_v59 = vpack.i.bf16 %v17680_v42, %v17679_v62  ;;  %v17686_v42 = vld [vmem:[#allocation174_spill] sm:$0xff] }
 0x32c   :  { %7043 = vrot.lane.b32.xlu1 %v7042_v7, %s7666_s28 }
 0x32d   :  { %v12369_v25 = vpop.permute.xlu0 %6848 }
 0x32e   :  { %17675 = vst [vmem:[#allocation155_spill] sm:$0xff] %v12369_v25  ;;  %v12375_v12 = vpop.permute.xlu1 %6773  ;;  %v17682_v25 = vld [vmem:[#allocation165_spill] sm:$0xff] }
 0x32f   :  { %7148 = vrot.lane.b32.xlu0 %v7147_v53, %s7670_s4  ;;  %17677 = vst [vmem:[#allocation125_spill] sm:$0xff] %v12375_v12  ;;  %v7062_v58 = vpack.i.bf16 %v17552_v54, %v17682_v25 }
 0x330   :  { %7058 = vrot.lane.b32.xlu1 %v12190_v35, %s7672_s3 }
 0x331   :  { %v12377_v10 = vpop.permute.xlu0 %6858 }
 0x332   :  { %17678 = vst [vmem:[#allocation266_spill] sm:$0xff] %v12377_v10  ;;  %v12387_v7 = vpop.permute.xlu1 %6783  ;;  %v7167_v10 = vpack.i.bf16 %v12057_v19, %v17684_v9  ;;  %v17690_v19 = vld [vmem:[#allocation74_spill] sm:$0xff] }
 0x333   :  { %7153 = vrot.lane.b32.xlu0 %v12383_v59, %s7671_s17  ;;  %17681 = vst [vmem:[#allocation156_spill] sm:$0xff] %v12387_v7  ;;  %v17687_v7 = vld [vmem:[#allocation41_spill] sm:$0xff] }
 0x334   :  { %7063 = vrot.lane.b32.xlu1 %v7062_v58, %s7666_s28  ;;  %v12405_v12 = vpack.i.bf16 %v17687_v7, %v17686_v42  ;;  %v17689_v58 = vld [vmem:[#allocation45_spill] sm:$0xff]  ;;  %v17692_v42 = vld [vmem:[#allocation95_spill] sm:$0xff] }
 0x335   :  { %v12391_v53 = vpop.permute.xlu0 %6868  ;;  %v7082_v9 = vpack.i.bf16 %v17690_v19, %v17689_v58 }
 0x336   :  { %17683 = vst [vmem:[#allocation173_spill] sm:$0xff] %v12391_v53  ;;  %v12397_v35 = vpop.permute.xlu1 %6793 }
 0x337   :  { %7168 = vrot.lane.b32.xlu0 %v7167_v10, %s7670_s4  ;;  %17685 = vst [vmem:[#allocation165_spill] sm:$0xff] %v12397_v35  ;;  %v7187_v35 = vpack.i.bf16 %v11824_v2, %v12060_v61  ;;  %v17696_v2 = vld [vmem:[#allocation207_spill] sm:$0xff] }
 0x338   :  { %7078 = vrot.lane.b32.xlu1 %v12249_v8, %s7672_s3 }
 0x339   :  { %v12399_v62 = vpop.permute.xlu0 %6878 }
 0x33a   :  { %v12409_v25 = vpop.permute.xlu1 %6803 }
 0x33b   :  { %7173 = vrot.lane.b32.xlu0 %v12405_v12, %s7671_s17  ;;  %17688 = vst [vmem:[#allocation174_spill] sm:$0xff] %v12409_v25  ;;  %v17693_v25 = vld [vmem:[#allocation170_spill] sm:$0xff] }
 0x33c   :  { %7083 = vrot.lane.b32.xlu1 %v7082_v9, %s7666_s28  ;;  %v7192_v53 = vpack.i.bf16 %v17693_v25, %v17692_v42  ;;  %v17695_v9 = vld [vmem:[#allocation77_spill] sm:$0xff] }
 0x33d   :  { %v12413_v10 = vpop.permute.xlu0 %6888  ;;  %v7102_v46 = vpack.i.bf16 %v17695_v9, %v17546_v0 }
 0x33e   :  { %v12419_v8 = vpop.permute.xlu1 %6813 }
 0x33f   :  { %7188 = vrot.lane.b32.xlu0 %v7187_v35, %s7670_s4  ;;  %17691 = vst [vmem:[#allocation41_spill] sm:$0xff] %v12419_v8  ;;  %v7202_v35 = vpack.i.bf16 %v11867_v26, %v17696_v2  ;;  %v12450_v26 = vld [vmem:[%s16116_s5] ss:$0 sm:$0xff] }
 0x340   :  { %7098 = vrot.lane.b32.xlu1 %v12311_v60, %s7672_s3  ;;  %v17702_v2 = vld [vmem:[#allocation90_spill] sm:$0xff] }
 0x341   :  { %v12421_v7 = vpop.permute.xlu0 %6898 }
 0x342   :  { %v12428_v58 = vpop.permute.xlu1 %6823 }
 0x343   :  { %7193 = vrot.lane.b32.xlu0 %v7192_v53, %s7671_s17  ;;  %17694 = vst [vmem:[#allocation45_spill] sm:$0xff] %v12428_v58  ;;  %v17700_v53 = vld [vmem:[#allocation176_spill] sm:$0xff]  ;;  %v17701_v58 = vld [vmem:[#allocation99_spill] sm:$0xff] }
 0x344   :  { %7103 = vrot.lane.b32.xlu1 %v7102_v46, %s7666_s28  ;;  %v12445_v54 = vpack.i.bf16 %v17701_v58, %v17700_v53  ;;  %v2017_v46 = vadd.f32 %v12450_v26, %v17702_v2  ;;  %v17705_v58 = vld [vmem:[#allocation106_spill] sm:$0xff]  ;;  %v7603_v2 = vld [vmem:[%s16117_s1 + $0x190] sm:$0xff] }
 0x345   :  { %v12434_v61 = vpop.permute.xlu0 %6908 }
 0x346   :  { %17697 = vst [vmem:[#allocation74_spill] sm:$0xff] %v12434_v61  ;;  %v12438_v60 = vpop.permute.xlu1 %6833  ;;  %v17706_v61 = vld [vmem:[#allocation212_spill] sm:$0xff]  ;;  %v2179_v21 = vmul.f32 %v7603_v2, %v2017_v46  ;;  %v17712_v46 = vld [vmem:[#allocation107_spill] sm:$0xff] }
 0x347   :  { %7203 = vrot.lane.b32.xlu0 %v7202_v35, %s7670_s4  ;;  %17698 = vst [vmem:[#allocation95_spill] sm:$0xff] %v12438_v60  ;;  %v2661_v35 = vrot.slane %v17665_v29, 1  ;;  %v2662_v60 = vrot.slane %v17674_v11, 1  ;;  %v7217_v0 = vpack.i.bf16 %v17706_v61, %v12087_v16  ;;  %v17710_v61 = vld [vmem:[#allocation93_spill] sm:$0xff] }
 0x348   :  { %7118 = vrot.lane.b32.xlu1 %v7112_v57, %s7672_s3 }
 0x349   :  { %v12440_v8 = vpop.permute.xlu0 %6918  ;;  %v2663_v41 = vsel %vm2333_vm2, %v2661_v35, %v2662_v60  ;;  %v7142_v35 = vpack.i.bf16 %v17712_v46, %v17448_v20 }
 0x34a   :  { %17699 = vst [vmem:[#allocation170_spill] sm:$0xff] %v12440_v8  ;;  %v12458_v57 = vpop.permute.xlu1 %6843  ;;  %v17704_v8 = vld [vmem:[#allocation30_spill] sm:$0xff]  ;;  %v12478_v16 = vpack.i.bf16 %v17710_v61, %v2663_v41  ;;  %v2671_v41 = vrot.slane %v17665_v29, 2  ;;  %v2672_v61 = vrot.slane %v17674_v11, 2 }
 0x34b   :  { %7208 = vrot.lane.b32.xlu0 %v12445_v54, %s7671_s17  ;;  %17703 = vst [vmem:[#allocation77_spill] sm:$0xff] %v12458_v57  ;;  %v7122_v53 = vpack.i.bf16 %v17705_v58, %v17704_v8 }
 0x34d   :  { %v12464_v4 = vpop.permute.xlu0 %6928  ;;  %7123 = vrot.lane.b32.xlu1 %v7122_v53, %s7666_s28 }
 0x34e   :  { %17707 = vst [vmem:[#allocation176_spill] sm:$0xff] %v12464_v4  ;;  %v12472_v57 = vpop.permute.xlu1 %6853  ;;  %v2664_v4 = vrot.slane %v2179_v21, 1 }
 0x34f   :  { %7218 = vrot.lane.b32.xlu0 %v7217_v0, %s7670_s4  ;;  %17708 = vst [vmem:[#allocation99_spill] sm:$0xff] %v12472_v57  ;;  %v17713_v0 = vld [vmem:[#allocation71_spill] sm:$0xff] }
 0x350   :  { %v7232_v2 = vpack.i.bf16 %v17713_v0, %v12078_v31  ;;  %v17717_v0 = vld [vmem:[#allocation94_spill] sm:$0xff] }
 0x351   :  { %v12474_v38 = vpop.permute.xlu0 %6938  ;;  %7138 = vrot.lane.b32.xlu1 %v7132_v32, %s7672_s3  ;;  %v2665_v32 = vsel %vm2333_vm2, %v2662_v60, %v2664_v4  ;;  %v17719_v4 = vld [vmem:[#allocation103_spill] sm:$0xff]  ;;  %v17724_v31 = vld [vmem:[#allocation46_spill] sm:$0xff] }
 0x352   :  { %17709 = vst [vmem:[#allocation90_spill] sm:$0xff] %v12474_v38  ;;  %v12482_v53 = vpop.permute.xlu1 %6863  ;;  %v12502_v20 = vpack.i.bf16 %v17717_v0, %v2665_v32  ;;  %v7162_v11 = vpack.i.bf16 %v17719_v4, %v17449_v37  ;;  %v2674_v32 = vrot.slane %v2179_v21, 2 }
 0x353   :  { %7223 = vrot.lane.b32.xlu0 %v12478_v16, %s7671_s17  ;;  %17711 = vst [vmem:[#allocation106_spill] sm:$0xff] %v12482_v53 }
 0x355   :  { %v12488_v57 = vpop.permute.xlu0 %6948  ;;  %7143 = vrot.lane.b32.xlu1 %v7142_v35, %s7666_s28  ;;  %v12505_v35 = vsel %vm2494_vm4, %v2671_v41, %v2672_v61 }
 0x356   :  { %17714 = vst [vmem:[#allocation212_spill] sm:$0xff] %v12488_v57  ;;  %v12495_v38 = vpop.permute.xlu1 %6873  ;;  %17718 = vst [vmem:[#allocation71_spill] sm:$0xff] %v12505_v35 }
 0x357   :  { %7233 = vrot.lane.b32.xlu0 %v7232_v2, %s7670_s4  ;;  %17715 = vst [vmem:[#allocation93_spill] sm:$0xff] %v12495_v38  ;;  %v17735_v38 = vld [vmem:[#allocation96_spill] sm:$0xff] }
 0x359   :  { %v12497_v53 = vpop.permute.xlu0 %6958  ;;  %7158 = vrot.lane.b32.xlu1 %v12383_v59, %s7672_s3  ;;  %v17721_v59 = vld [vmem:[#allocation51_spill] sm:$0xff] }
 0x35a   :  { %17716 = vst [vmem:[#allocation107_spill] sm:$0xff] %v12497_v53  ;;  %v12509_v29 = vpop.permute.xlu1 %6883  ;;  %v7247_v2 = vpack.i.bf16 %v17721_v59, %v12505_v35  ;;  %v17723_v53 = vld [vmem:[#allocation179_spill] sm:$0xff]  ;;  %v17734_v59 = vld [vmem:[#allocation73_spill] sm:$0xff] }
 0x35b   :  { %7238 = vrot.lane.b32.xlu0 %v12502_v20, %s7671_s17  ;;  %v7252_v37 = vpack.i.bf16 %v17724_v31, %v17723_v53 }
 0x35d   :  { %v12513_v60 = vpop.permute.xlu0 %6968  ;;  %7163 = vrot.lane.b32.xlu1 %v7162_v11, %s7666_s28 }
 0x35e   :  { %17720 = vst [vmem:[#allocation94_spill] sm:$0xff] %v12513_v60  ;;  %v12519_v41 = vpop.permute.xlu1 %6893  ;;  %v12528_v60 = vsel %vm2494_vm4, %v2672_v61, %v2674_v32  ;;  %v17731_v61 = vld [vmem:[#allocation29_spill] sm:$0xff] }
 0x35f   :  { %7248 = vrot.lane.b32.xlu0 %v7247_v2, %s7670_s4  ;;  %17725 = vst [vmem:[#allocation179_spill] sm:$0xff] %v12528_v60  ;;  %v17728_v2 = vld [vmem:[#allocation132_spill] sm:$0xff] }
 0x361   :  { %v12521_v0 = vpop.permute.xlu0 %6978  ;;  %7178 = vrot.lane.b32.xlu1 %v12405_v12, %s7672_s3  ;;  %v17729_v12 = vld [vmem:[#allocation149_spill] sm:$0xff] }
 0x362   :  { %17722 = vst [vmem:[#allocation103_spill] sm:$0xff] %v12521_v0  ;;  %v12531_v11 = vpop.permute.xlu1 %6903  ;;  %v7262_v0 = vpack.i.bf16 %v11893_v44, %v12528_v60  ;;  %v7197_v35 = vpack.i.bf16 %v17729_v12, %v17692_v42  ;;  %v7212_v60 = vpack.i.bf16 %v17735_v38, %v17693_v25 }
 0x363   :  { %7253 = vrot.lane.b32.xlu0 %v7252_v37, %s7671_s17  ;;  %17726 = vst [vmem:[#allocation46_spill] sm:$0xff] %v12531_v11  ;;  %v2073_v37 = vadd.f32 %v12450_v26, %v17731_v61  ;;  %v17738_v61 = vld [vmem:[#allocation68_spill] sm:$0xff]  ;;  %v17744_v11 = vld [vmem:[#allocation181_spill] sm:$0xff] }
 0x365   :  { %v12533_v21 = vpop.permute.xlu0 %6988  ;;  %7183 = vrot.lane.b32.xlu1 %v17728_v2, %s7666_s28 }
 0x366   :  { %17727 = vst [vmem:[#allocation267_spill] sm:$0xff] %v12533_v21  ;;  %v12542_v53 = vpop.permute.xlu1 %6913  ;;  %v17733_v21 = vld [vmem:[#allocation180_spill] sm:$0xff] }
 0x367   :  { %7263 = vrot.lane.b32.xlu0 %v7262_v0, %s7670_s4  ;;  %17730 = vst [vmem:[#allocation132_spill] sm:$0xff] %v12542_v53  ;;  %v7267_v2 = vpack.i.bf16 %v17734_v59, %v17733_v21  ;;  %v7604_v0 = vld [vmem:[%s16117_s1 + $0x1a0] sm:$0xff]  ;;  %v17743_v53 = vld [vmem:[#allocation183_spill] sm:$0xff]  ;;  %v7272_v21 = vpack.i.bf16 %v17724_v31, %v17744_v11 }
 0x368   :  { %v12559_v12 = vmul.f32 %v7604_v0, %v2073_v37  ;;  %v7277_v37 = vpack.i.bf16 %v11897_v52, %v12107_v48  ;;  %v7287_v44 = vpack.i.bf16 %v17734_v59, %v17743_v53  ;;  %v17749_v59 = vld [vmem:[#allocation101_spill] sm:$0xff]  ;;  %v17750_v53 = vld [vmem:[#allocation150_spill] sm:$0xff]  ;;  %v17753_v48 = vld [vmem:[#allocation159_spill] sm:$0xff] }
 0x369   :  { %v12546_v32 = vpop.permute.xlu0 %6998  ;;  %7198 = vrot.lane.b32.xlu1 %v7197_v35, %s7672_s3  ;;  %v7282_v0 = vpack.i.bf16 %v17750_v53, %v17749_v59  ;;  %v17755_v52 = vld [vmem:[#allocation187_spill] sm:$0xff]  ;;  %v17756_v59 = vld [vmem:[#allocation57_spill] sm:$0xff] }
 0x36a   :  { %17732 = vst [vmem:[#allocation149_spill] sm:$0xff] %v12546_v32  ;;  %v12554_v42 = vpop.permute.xlu1 %6923  ;;  %17737 = vst [vmem:[#allocation180_spill] sm:$0xff] %v12559_v12  ;;  %v12563_v32 = vadd.f32 %v12450_v26, %v17738_v61  ;;  %v7307_v38 = vpack.i.bf16 %v17755_v52, %v11880_v1  ;;  %v7312_v53 = vpack.i.bf16 %v17659_v51, %v17756_v59  ;;  %v17757_v11 = vld [vmem:[#allocation147_spill] sm:$0xff]  ;;  %v17761_v51 = vld [vmem:[#allocation189_spill] sm:$0xff] }
 0x36b   :  { %7268 = vrot.lane.b32.xlu0 %v7267_v2, %s7671_s17  ;;  %17736 = vst [vmem:[#allocation29_spill] sm:$0xff] %v12554_v42  ;;  %v17748_v42 = vld [vmem:[#allocation32_spill] sm:$0xff] }
 0x36d   :  { %v12569_v2 = vpop.permute.xlu0 %7008  ;;  %7213 = vrot.lane.b32.xlu1 %v7212_v60, %s7672_s3 }
 0x36e   :  { %17741 = vst [vmem:[#allocation73_spill] sm:$0xff] %v12569_v2  ;;  %v17746_v2 = vld [vmem:[#allocation177_spill] sm:$0xff]  ;;  %v12584_v60 = vpop.permute.xlu1 %6933 }
 0x36f   :  { %7278 = vrot.lane.b32.xlu0 %v7277_v37, %s7670_s4  ;;  %17747 = vst [vmem:[#allocation96_spill] sm:$0xff] %v12584_v60  ;;  %v17752_v37 = vld [vmem:[#allocation186_spill] sm:$0xff]  ;;  %v17754_v60 = vld [vmem:[#allocation36_spill] sm:$0xff] }
 0x370   :  { %v7292_v57 = vpack.i.bf16 %v17752_v37, %v12110_v39  ;;  %v12601_v61 = vpack.i.bf16 %v17754_v60, %v17753_v48  ;;  %v7322_v39 = vpack.i.bf16 %v11924_v22, %v11883_v63  ;;  %v17759_v37 = vld [vmem:[#allocation184_spill] sm:$0xff]  ;;  %v17760_v48 = vld [vmem:[#allocation185_spill] sm:$0xff] }
 0x371   :  { %v12593_v25 = vpop.permute.xlu0 %7028  ;;  %7228 = vrot.lane.b32.xlu1 %v12445_v54, %s7672_s3 }
 0x372   :  { %v12610_v54 = vpop.permute.xlu1 %6943 }
 0x373   :  { %7283 = vrot.lane.b32.xlu0 %v7282_v0, %s7671_s17  ;;  %17758 = vst [vmem:[#allocation68_spill] sm:$0xff] %v12610_v54 }
 0x375   :  { %v12618_v52 = vpop.permute.xlu0 %7033  ;;  %7243 = vrot.lane.b32.xlu1 %v12478_v16, %s7672_s3 }
 0x376   :  { %v12625_v8 = vpop.permute.xlu1 %6953 }
 0x377   :  { %7293 = vrot.lane.b32.xlu0 %v7292_v57, %s7670_s4  ;;  %17762 = vst [vmem:[#allocation183_spill] sm:$0xff] %v12625_v8  ;;  %v17766_v57 = vld [vmem:[#allocation69_spill] sm:$0xff]  ;;  %v7606_v8 = vld [vmem:[%s16117_s1 + $0x1a8] sm:$0xff] }
 0x378   :  { %v2072_v35 = vadd.f32 %v12450_v26, %v17766_v57  ;;  %v7605_v26 = vld [vmem:[%s16117_s1 + $0x198] sm:$0xff] }
 0x379   :  { %v12629_v31 = vpop.permute.xlu0 %7048  ;;  %7258 = vrot.lane.b32.xlu1 %v12502_v20, %s7672_s3  ;;  %v17768_v20 = vld [vmem:[#allocation194_spill] sm:$0xff] }
 0x37a   :  { %v12637_v59 = vpop.permute.xlu1 %6963  ;;  %v12654_v57 = vmul.f32 %v7605_v26, %v2072_v35  ;;  %v17782_v26 = vld [vmem:[#allocation82_spill] sm:$0xff] }
 0x37b   :  { %7298 = vrot.lane.b32.xlu0 %v12601_v61, %s7671_s17  ;;  %17765 = vst [vmem:[#allocation181_spill] sm:$0xff] %v12637_v59 }
 0x37c   :  { %17770 = vst [vmem:[#allocation32_spill] sm:$0xff] %v12654_v57  ;;  %v2692_v22 = vrot.slane %v12654_v57, 1  ;;  %v6731_v57 = vunpack.i.h.bf16 %v12114_v14 }
 0x37d   :  { %v12643_v63 = vpop.permute.xlu0 %7053  ;;  %7273 = vrot.lane.b32.xlu1 %v7272_v21, %s7672_s3  ;;  %v12660_v21 = vmul.f32 %v7606_v8, %v12563_v32  ;;  %v2693_v8 = vrot.slane %v12559_v12, 1  ;;  %v6700_v12 = vunpack.i.l.bf16 %v12028_v40 }
 0x37e   :  { %v12649_v1 = vpop.permute.xlu1 %6973 }
 0x37f   :  { %7308 = vrot.lane.b32.xlu0 %v7307_v38, %s7670_s4  ;;  %17769 = vst [vmem:[#allocation177_spill] sm:$0xff] %v12649_v1  ;;  %17771 = vst [vmem:[#allocation101_spill] sm:$0xff] %v12660_v21  ;;  %v2695_v32 = vrot.slane %v12660_v21, 1  ;;  %v6706_v38 = vunpack.i.h.bf16 %v12063_v56  ;;  %v12691_v59 = vsel %vm2333_vm2, %v2692_v22, %v2693_v8  ;;  %v17781_v22 = vld [vmem:[#allocation142_spill] sm:$0xff] }
 0x380   :  { %17779 = vst [vmem:[#allocation36_spill] sm:$0xff] %v12691_v59  ;;  %v17792_v59 = vld [vmem:[#allocation108_spill] sm:$0xff] }
 0x381   :  { %v12663_v16 = vpop.permute.xlu0 %7068  ;;  %7288 = vrot.lane.b32.xlu1 %v7287_v44, %s7672_s3 }
 0x382   :  { %v12669_v35 = vpop.permute.xlu1 %6983 }
 0x383   :  { %7313 = vrot.lane.b32.xlu0 %v7312_v53, %s7671_s17  ;;  %17774 = vst [vmem:[#allocation150_spill] sm:$0xff] %v12669_v35  ;;  %v6701_v53 = vunpack.i.h.bf16 %v12028_v40  ;;  %v12694_v35 = vsel %vm2333_vm2, %v2693_v8, %v2695_v32  ;;  %v6721_v8 = vunpack.i.h.bf16 %v12092_v55  ;;  %v6720_v32 = vunpack.i.l.bf16 %v12092_v55  ;;  %v17785_v55 = vld [vmem:[#allocation86_spill] sm:$0xff] }
 0x384   :  { %17780 = vst [vmem:[#allocation57_spill] sm:$0xff] %v12694_v35  ;;  %v12713_v40 = vsel %vm1072_vm3, %v17782_v26, %v6700_v12  ;;  %v12727_v35 = vsel %vm1072_vm3, %v17785_v55, %v6706_v38  ;;  %v6741_v12 = vunpack.i.h.bf16 %v12137_v47  ;;  %v6740_v26 = vunpack.i.l.bf16 %v12137_v47 }
 0x385   :  { %v12675_v54 = vpop.permute.xlu0 %7073  ;;  %7303 = vrot.lane.b32.xlu1 %v7282_v0, %s7672_s3  ;;  %v12707_v1 = vsel %vm1072_vm3, %v17781_v22, %v6701_v53  ;;  %v17783_v0 = vpack.i.bf16 %v17660_v13, %v17759_v37  ;;  %17786 = vst [vmem:[#allocation184_spill] sm:$0xff] %v12727_v35  ;;  %v6725_v13 = vunpack.i.l.bf16 %v12320_v34  ;;  %v6881_v37 = vunpack.i.h.bf16 %v12399_v62  ;;  %v17788_v22 = vld [vmem:[#allocation191_spill] sm:$0xff]  ;;  %v17798_v35 = vld [vmem:[#allocation113_spill] sm:$0xff] }
 0x386   :  { %v12686_v21 = vpop.permute.xlu1 %6993  ;;  %v4060_v47 = vsel %vm1072_vm3, %v17695_v9, %v6721_v8  ;;  %v17793_v8 = vld [vmem:[#allocation134_spill] sm:$0xff]  ;;  %v17796_v38 = vunpack.i.l.bf16 %v17746_v2 }
 0x387   :  { %7323 = vrot.lane.b32.xlu0 %v7322_v39, %s7670_s4  ;;  %17778 = vst [vmem:[#allocation159_spill] sm:$0xff] %v12686_v21  ;;  %v6705_v39 = vunpack.i.l.bf16 %v12063_v56  ;;  %v17787_v56 = vld [vmem:[#allocation84_spill] sm:$0xff] }
 0x389   :  { %v12700_v21 = vpop.permute.xlu0 %7088  ;;  %7318 = vrot.lane.b32.xlu1 %v12601_v61, %s7672_s3  ;;  %v6730_v61 = vunpack.i.l.bf16 %v12114_v14  ;;  %v12733_v14 = vsel %vm1072_vm3, %v17787_v56, %v6705_v39  ;;  %v12747_v39 = vsel %vm1072_vm3, %v17690_v19, %v6720_v32  ;;  %v6885_v56 = vunpack.i.l.bf16 %v12509_v29  ;;  %v17791_v32 = vld [vmem:[#allocation109_spill] sm:$0xff] }
 0x38a   :  { %v12722_v53 = vpop.permute.xlu1 %7003  ;;  %v12766_v55 = vsel %vm1072_vm3, %v17791_v32, %v6741_v12  ;;  %v6750_v12 = vunpack.i.l.bf16 %v12164_v18  ;;  %v6761_v32 = vunpack.i.h.bf16 %v12184_v28 }
 0x38b   :  { %7328 = vrot.lane.b32.xlu0 %v17783_v0, %s7671_s17  ;;  %17784 = vst [vmem:[#allocation147_spill] sm:$0xff] %v12722_v53  ;;  %v17789_v53 = vld [vmem:[#allocation70_spill] sm:$0xff] }
 0x38c   :  { %v12754_v44 = vsel %vm1072_vm3, %v17789_v53, %v6731_v57  ;;  %v12770_v57 = vsel %vm1072_vm3, %v17792_v59, %v6740_v26  ;;  %v6760_v59 = vunpack.i.l.bf16 %v12184_v28  ;;  %v17794_v53 = vld [vmem:[#allocation56_spill] sm:$0xff]  ;;  %v6890_v28 = vunpack.i.l.bf16 %v12413_v10 }
 0x38d   :  { %v12738_v0 = vpop.permute.xlu0 %7093  ;;  %7333 = vrot.lane.b32.xlu1 %v17788_v22, %s7672_s3  ;;  %v4063_v22 = vsel %vm1072_vm3, %v17719_v4, %v6730_v61  ;;  %v6751_v4 = vunpack.i.h.bf16 %v12164_v18  ;;  %v4125_v61 = vsel %vm4115_vm5, %v4060_v47, %v6881_v37  ;;  %v17795_v18 = vunpack.i.h.bf16 %v17748_v42 }
 0x38e   :  { %v12760_v9 = vpop.permute.xlu1 %7013 }
 0x38f   :  { %7343 = vrot.lane.b32.xlu0 %v12152_v50, %s7670_s4  ;;  %17790 = vst [vmem:[#allocation185_spill] sm:$0xff] %v12760_v9  ;;  %v4061_v50 = vsel %vm1072_vm3, %v17705_v58, %v6725_v13  ;;  %v6726_v13 = vunpack.i.h.bf16 %v12320_v34  ;;  %v6886_v34 = vunpack.i.h.bf16 %v12509_v29  ;;  %v12814_v29 = vsel %vm1072_vm3, %v17798_v35, %v6751_v4  ;;  %v17801_v35 = vld [vmem:[#allocation133_spill] sm:$0xff] }
 0x390   :  { %v4126_v26 = vsel %vm4115_vm5, %v4061_v50, %v6885_v56  ;;  %v7031_v56 = vunpack.i.h.bf16 %v12593_v25  ;;  %v7030_v50 = vunpack.i.l.bf16 %v12593_v25  ;;  %v7035_v25 = vunpack.i.l.bf16 %v12618_v52 }
 0x391   :  { %v12777_v19 = vpop.permute.xlu0 %7108  ;;  %7338 = vrot.lane.b32.xlu1 %v17793_v8, %s7666_s28  ;;  %v4190_v8 = vsel %vm4180_vm6, %v4125_v61, %v17795_v18  ;;  %v4191_v9 = vsel %vm4180_vm6, %v4126_v26, %v17796_v38 }
 0x392   :  { %v7019_v58 = vpop.permute.xlu1 %7018 }
 0x393   :  { %7348 = vrot.lane.b32.xlu0 %v17794_v53, %s7671_s17  ;;  %v7021_v37 = vunpack.i.h.bf16 %v7019_v58  ;;  %v7020_v47 = vunpack.i.l.bf16 %v7019_v58 }
 0x395   :  { %v12797_v60 = vpop.permute.xlu0 %7113  ;;  %7353 = vrot.lane.b32.xlu1 %v17794_v53, %s7672_s3  ;;  %v4255_v58 = vsel %vm4245_vm7, %v4190_v8, %v7020_v47  ;;  %v4256_v61 = vsel %vm4245_vm7, %v4191_v9, %v7021_v37  ;;  %v17799_v47 = vld [vmem:[#allocation112_spill] sm:$0xff]  ;;  %v17800_v8 = vunpack.i.l.bf16 %v11983_v6 }
 0x396   :  { %v12808_v38 = vpop.permute.xlu1 %7023  ;;  %v4320_v26 = vsel %vm4310_vm8, %v4255_v58, %v7030_v50  ;;  %v4321_v53 = vsel %vm4310_vm8, %v4256_v61, %v7031_v56  ;;  %v12818_v9 = vsel %vm1072_vm3, %v17799_v47, %v6750_v12  ;;  %v4062_v50 = vsel %vm1072_vm3, %v17712_v46, %v6726_v13  ;;  %v17802_v12 = vld [vmem:[#allocation117_spill] sm:$0xff]  ;;  %v17803_v47 = vld [vmem:[#allocation116_spill] sm:$0xff] }
 0x397   :  { %7363 = vrot.lane.b32.xlu0 %v11935_v45, %s7670_s4  ;;  %17797 = vst [vmem:[#allocation189_spill] sm:$0xff] %v12808_v38  ;;  %v4385_v45 = vsel %vm4375_vm9, %v4320_v26, %v17800_v8  ;;  %v4128_v56 = vsel %vm4115_vm5, %v4063_v22, %v6890_v28  ;;  %v12835_v61 = vsel %vm1072_vm3, %v17802_v12, %v6761_v32  ;;  %v17804_v46 = vunpack.i.h.bf16 %v11983_v6 }
 0x398   :  { %v4450_v4 = vsel %vm4440_vm10, %v4385_v45, %v7035_v25  ;;  %v12839_v26 = vsel %vm1072_vm3, %v17803_v47, %v6760_v59  ;;  %v4127_v8 = vsel %vm4115_vm5, %v4062_v50, %v6886_v34  ;;  %v6771_v13 = vunpack.i.h.bf16 %v12213_v30  ;;  %v17805_v45 = vld [vmem:[#allocation60_spill] sm:$0xff] }
 0x399   :  { %v12828_v58 = vpop.permute.xlu0 %7128  ;;  %7358 = vrot.lane.b32.xlu1 %v17801_v35, %s7666_s28  ;;  %4761 = vmatmul.mubr.f32.vlgmr.msra.gmra.mxu1 %v4450_v4  ;;  %v4386_v22 = vsel %vm4375_vm9, %v4321_v53, %v17804_v46  ;;  %v6770_v28 = vunpack.i.l.bf16 %v12213_v30  ;;  %v6735_v25 = vunpack.i.l.bf16 %v12334_v23  ;;  %v7036_v32 = vunpack.i.h.bf16 %v12618_v52  ;;  %v17806_v35 = vld [vmem:[#allocation225_spill] sm:$0xff] }
 0x39a   :  { %v7039_v59 = vpop.permute.xlu1 %7038  ;;  %6119 = vmatprep.mubr.msk.f32.mxu1 %vm1072_vm3, %v17806_v35  ;;  %v6891_v34 = vunpack.i.h.bf16 %v12413_v10  ;;  %v17807_v53 = vunpack.i.l.bf16 %v17757_v11  ;;  %v7051_v30 = vunpack.i.h.bf16 %v12629_v31  ;;  %v7050_v12 = vunpack.i.l.bf16 %v12629_v31 }
 0x39b   :  { %7368 = vrot.lane.b32.xlu0 %v17805_v45, %s7671_s17  ;;  %v7041_v6 = vunpack.i.h.bf16 %v7039_v59  ;;  %v7040_v50 = vunpack.i.l.bf16 %v7039_v59  ;;  %v17808_v52 = vunpack.i.h.bf16 %v17746_v2  ;;  %v4451_v10 = vsel %vm4440_vm10, %v4386_v22, %v7036_v32  ;;  %v17814_v59 = vld [vmem:[#allocation110_spill] sm:$0xff] }
 0x39c   :  { %v4193_v4 = vsel %vm4180_vm6, %v4128_v56, %v17807_v53  ;;  %v6895_v35 = vunpack.i.l.bf16 %v12519_v41  ;;  %v7055_v31 = vunpack.i.l.bf16 %v12643_v63 }
 0x39d   :  { %v4192_v47 = vsel %vm4180_vm6, %v4127_v8, %v17808_v52  ;;  %v12862_v46 = vpop.permute.xlu0 %7133  ;;  %7373 = vrot.lane.b32.xlu1 %v17805_v45, %s7672_s3  ;;  %v4258_v53 = vsel %vm4245_vm7, %v4193_v4, %v7041_v6  ;;  %4766 = vmatmul.mubr.f32.gmra.mxu1 %v4451_v10  ;;  %v17809_v8 = vld [vmem:[#allocation188_spill] sm:$0xff]  ;;  %v17811_v45 = vld [vmem:[#allocation121_spill] sm:$0xff]  ;;  %v17813_v10 = vunpack.i.l.bf16 %v12015_v33 }
 0x39e   :  { %v4257_v56 = vsel %vm4245_vm7, %v4192_v47, %v7040_v50  ;;  %v12875_v52 = vpop.permute.xlu1 %7043  ;;  %6120 = vmatprep.mubr.msk.f32.mxu1 %vm1072_vm3, %v11956_v5  ;;  %v4323_v32 = vsel %vm4310_vm8, %v4258_v53, %v7051_v30  ;;  %v12883_v6 = vsel %vm1072_vm3, %v17811_v45, %v6771_v13  ;;  %v17812_v50 = vld [vmem:[#allocation120_spill] sm:$0xff]  ;;  %v4129_v30 = vsel %vm4115_vm5, %v12754_v44, %v6891_v34  ;;  %v17816_v53 = vld [vmem:[#allocation257_spill] sm:$0xff] }
 0x39f   :  { %7383 = vrot.lane.b32.xlu0 %v17809_v8, %s7670_s4  ;;  %17810 = vst [vmem:[#allocation69_spill] sm:$0xff] %v12875_v52  ;;  %v4322_v22 = vsel %vm4310_vm8, %v4257_v56, %v7050_v12  ;;  %v12887_v4 = vsel %vm1072_vm3, %v17812_v50, %v6770_v28  ;;  %v4065_v12 = vsel %vm1072_vm3, %v17814_v59, %v6735_v25  ;;  %v17815_v56 = vld [vmem:[#allocation138_spill] sm:$0xff]  ;;  %v6781_v45 = vunpack.i.h.bf16 %v17816_v53 }
 0x3a0   :  { %v4387_v8 = vsel %vm4375_vm9, %v4322_v22, %v17813_v10  ;;  %v6780_v50 = vunpack.i.l.bf16 %v17816_v53  ;;  %v4130_v22 = vsel %vm4115_vm5, %v4065_v12, %v6895_v35  ;;  %v17817_v10 = vunpack.i.h.bf16 %v12015_v33  ;;  %v17818_v59 = vld [vmem:[#allocation154_spill] sm:$0xff]  ;;  %v17820_v53 = vld [vmem:[#allocation75_spill] sm:$0xff] }
 0x3a1   :  { %v12898_v13 = vpop.permute.xlu0 %7148  ;;  %7378 = vrot.lane.b32.xlu1 %v17815_v56, %s7666_s28  ;;  %v4452_v28 = vsel %vm4440_vm10, %v4387_v8, %v7055_v31  ;;  %v6711_v44 = vunpack.i.h.bf16 %v17818_v59  ;;  %v6710_v34 = vunpack.i.l.bf16 %v17818_v59  ;;  %v6736_v5 = vunpack.i.h.bf16 %v12334_v23  ;;  %v17819_v31 = vld [vmem:[#allocation38_spill] sm:$0xff] }
 0x3a2   :  { %4771 = vmatmul.mubr.f32.gmra.mxu1 %v4452_v28  ;;  %v4388_v25 = vsel %vm4375_vm9, %v4323_v32, %v17817_v10  ;;  %v7056_v56 = vunpack.i.h.bf16 %v12643_v63  ;;  %v7059_v8 = vpop.permute.xlu1 %7058  ;;  %v6900_v35 = vunpack.i.l.bf16 %v12421_v7  ;;  %v17821_v32 = vunpack.i.h.bf16 %v17757_v11  ;;  %v17822_v63 = vld [vmem:[#allocation182_spill] sm:$0xff] }
 0x3a3   :  { %7388 = vrot.lane.b32.xlu0 %v17819_v31, %s7671_s17  ;;  %6121 = vmatprep.mubr.msk.f32.mxu1 %vm1072_vm3, %v17820_v53  ;;  %v7061_v33 = vunpack.i.h.bf16 %v7059_v8  ;;  %v7060_v12 = vunpack.i.l.bf16 %v7059_v8  ;;  %v7071_v10 = vunpack.i.h.bf16 %v12663_v16  ;;  %v7070_v23 = vunpack.i.l.bf16 %v12663_v16  ;;  %v17824_v8 = vld [vmem:[#allocation260_spill] sm:$0xff]  ;;  %v17825_v16 = vld [vmem:[#allocation39_spill] sm:$0xff] }
 0x3a4   :  { %v4194_v28 = vsel %vm4180_vm6, %v4129_v30, %v17821_v32  ;;  %v17823_v59 = vunpack.i.l.bf16 %v17822_v63  ;;  %v4453_v53 = vsel %vm4440_vm10, %v4388_v25, %v7056_v56  ;;  %v6791_v37 = vunpack.i.h.bf16 %v17824_v8  ;;  %v17828_v25 = vld [vmem:[#allocation195_spill] sm:$0xff] }
 0x3a5   :  { %v12926_v2 = vpop.permute.xlu0 %7153  ;;  %7393 = vrot.lane.b32.xlu1 %v17819_v31, %s7672_s3  ;;  %v6896_v11 = vunpack.i.h.bf16 %v12519_v41  ;;  %v4259_v30 = vsel %vm4245_vm7, %v4194_v28, %v7060_v12  ;;  %v12937_v18 = vsel %vm1072_vm3, %v17825_v16, %v6781_v45  ;;  %v17830_v45 = vld [vmem:[#allocation89_spill] sm:$0xff]  ;;  %v17832_v16 = vunpack.i.l.bf16 %v12051_v27 }
 0x3a6   :  { %v4195_v47 = vsel %vm4180_vm6, %v4130_v22, %v17823_v59  ;;  %4776 = vmatmul.mubr.f32.gmra.mxu1 %v4453_v53  ;;  %v7075_v22 = vunpack.i.l.bf16 %v12675_v54  ;;  %v17826_v59 = vld [vmem:[#allocation227_spill] sm:$0xff]  ;;  %v12942_v31 = vpop.permute.xlu1 %7063  ;;  %v4324_v41 = vsel %vm4310_vm8, %v4259_v30, %v7070_v23  ;;  %v12954_v12 = vsel %vm1072_vm3, %v17830_v45, %v6711_v44  ;;  %v17831_v28 = vld [vmem:[#allocation61_spill] sm:$0xff] }
 0x3a7   :  { %v4260_v32 = vsel %vm4245_vm7, %v4195_v47, %v7061_v33  ;;  %7403 = vrot.lane.b32.xlu0 %v17826_v59, %s7670_s4  ;;  %17827 = vst [vmem:[#allocation194_spill] sm:$0xff] %v12942_v31  ;;  %6122 = vmatprep.mubr.msk.f32.mxu1 %vm1072_vm3, %v17828_v25  ;;  %v17829_v47 = vld [vmem:[#allocation85_spill] sm:$0xff]  ;;  %v12958_v53 = vsel %vm1072_vm3, %v17831_v28, %v6710_v34  ;;  %v6790_v23 = vunpack.i.l.bf16 %v17824_v8  ;;  %v17833_v30 = vld [vmem:[#allocation111_spill] sm:$0xff]  ;;  %v17835_v25 = vld [vmem:[#allocation30_spill] sm:$0xff] }
 0x3a8   :  { %v4325_v56 = vsel %vm4310_vm8, %v4260_v32, %v7071_v10  ;;  %v12950_v33 = vsel %vm1072_vm3, %v17829_v47, %v6780_v50  ;;  %v4389_v59 = vsel %vm4375_vm9, %v4324_v41, %v17832_v16  ;;  %v4066_v10 = vsel %vm1072_vm3, %v17833_v30, %v6736_v5  ;;  %v17834_v44 = vld [vmem:[#allocation137_spill] sm:$0xff]  ;;  %v17838_v28 = vld [vmem:[#allocation151_spill] sm:$0xff]  ;;  %v17844_v31 = vld [vmem:[#allocation46_spill] sm:$0xff] }
 0x3a9   :  { %v4132_v50 = vsel %vm4115_vm5, %v12770_v57, %v6900_v35  ;;  %v12968_v32 = vpop.permute.xlu0 %7168  ;;  %7398 = vrot.lane.b32.xlu1 %v17834_v44, %s7666_s28  ;;  %v4454_v34 = vsel %vm4440_vm10, %v4389_v59, %v7075_v22  ;;  %v12975_v47 = vsel %vm1072_vm3, %v17835_v25, %v6791_v37  ;;  %v17836_v41 = vld [vmem:[#allocation261_spill] sm:$0xff]  ;;  %v4131_v8 = vsel %vm4115_vm5, %v4066_v10, %v6896_v11  ;;  %v17839_v37 = vld [vmem:[#allocation66_spill] sm:$0xff]  ;;  %v17840_v44 = vld [vmem:[#allocation72_spill] sm:$0xff] }
 0x3aa   :  { %v6716_v45 = vunpack.i.h.bf16 %v17836_v41  ;;  %4781 = vmatmul.mubr.f32.gmra.mxu1 %v4454_v34  ;;  %v17837_v5 = vunpack.i.h.bf16 %v12051_v27  ;;  %v6715_v35 = vunpack.i.l.bf16 %v17836_v41  ;;  %v6746_v16 = vunpack.i.h.bf16 %v17838_v28  ;;  %v7079_v59 = vpop.permute.xlu1 %7078 }
 0x3ab   :  { %v6745_v30 = vunpack.i.l.bf16 %v17838_v28  ;;  %v7076_v22 = vunpack.i.h.bf16 %v12675_v54  ;;  %7408 = vrot.lane.b32.xlu0 %v17839_v37, %s7671_s17  ;;  %6123 = vmatprep.mubr.msk.f32.mxu1 %vm1072_vm3, %v17840_v44  ;;  %v6901_v11 = vunpack.i.h.bf16 %v12421_v7  ;;  %v7081_v27 = vunpack.i.h.bf16 %v7079_v59 }
 0x3ac   :  { %v4390_v57 = vsel %vm4375_vm9, %v4325_v56, %v17837_v5  ;;  %v7080_v10 = vunpack.i.l.bf16 %v7079_v59  ;;  %v17841_v56 = vunpack.i.l.bf16 %v17761_v51  ;;  %v7091_v25 = vunpack.i.h.bf16 %v12700_v21  ;;  %v17843_v59 = vld [vmem:[#allocation168_spill] sm:$0xff] }
 0x3ad   :  { %v7090_v41 = vunpack.i.l.bf16 %v12700_v21  ;;  %v17842_v54 = vunpack.i.h.bf16 %v17822_v63  ;;  %v12999_v28 = vpop.permute.xlu0 %7173  ;;  %7413 = vrot.lane.b32.xlu1 %v17839_v37, %s7672_s3  ;;  %v4455_v7 = vsel %vm4440_vm10, %v4390_v57, %v7076_v22  ;;  %v6756_v44 = vunpack.i.h.bf16 %v17843_v59  ;;  %v17845_v21 = vld [vmem:[#allocation33_spill] sm:$0xff]  ;;  %v17848_v57 = vld [vmem:[#allocation230_spill] sm:$0xff] }
 0x3ae   :  { %v4197_v34 = vsel %vm4180_vm6, %v4132_v50, %v17841_v56  ;;  %v6905_v52 = vunpack.i.l.bf16 %v17844_v31  ;;  %4786 = vmatmul.mubr.f32.gmra.mxu1 %v4455_v7  ;;  %v13010_v63 = vsel %vm1072_vm3, %v17845_v21, %v6790_v23  ;;  %v13015_v37 = vpop.permute.xlu1 %7083  ;;  %v17850_v23 = vld [vmem:[#allocation76_spill] sm:$0xff]  ;;  %v17851_v7 = vld [vmem:[#allocation115_spill] sm:$0xff] }
 0x3af   :  { %v4196_v5 = vsel %vm4180_vm6, %v4131_v8, %v17842_v54  ;;  %v4262_v56 = vsel %vm4245_vm7, %v4197_v34, %v7081_v27  ;;  %v7095_v8 = vunpack.i.l.bf16 %v12738_v0  ;;  %v17846_v54 = vld [vmem:[#allocation153_spill] sm:$0xff]  ;;  %17847 = vst [vmem:[#allocation142_spill] sm:$0xff] %v13015_v37  ;;  %6124 = vmatprep.mubr.msk.f32.mxu1 %vm1072_vm3, %v17848_v57  ;;  %v17849_v27 = vld [vmem:[#allocation79_spill] sm:$0xff]  ;;  %v4070_v21 = vsel %vm1072_vm3, %v17851_v7, %v6746_v16  ;;  %v17853_v57 = vld [vmem:[#allocation114_spill] sm:$0xff] }
 0x3b0   :  { %v4261_v50 = vsel %vm4245_vm7, %v4196_v5, %v7080_v10  ;;  %7423 = vrot.lane.b32.xlu0 %v17846_v54, %s7670_s4  ;;  %v4327_v10 = vsel %vm4310_vm8, %v4262_v56, %v7091_v25  ;;  %v13023_v34 = vsel %vm1072_vm3, %v17849_v27, %v6716_v45  ;;  %v13027_v5 = vsel %vm1072_vm3, %v17850_v23, %v6715_v35  ;;  %v17854_v35 = vld [vmem:[#allocation140_spill] sm:$0xff]  ;;  %v17855_v16 = vld [vmem:[#allocation119_spill] sm:$0xff]  ;;  %v17858_v7 = vld [vmem:[#allocation125_spill] sm:$0xff] }
 0x3b1   :  { %v4326_v22 = vsel %vm4310_vm8, %v4261_v50, %v7090_v41  ;;  %v17852_v54 = vunpack.i.l.bf16 %v12082_v43  ;;  %v4069_v41 = vsel %vm1072_vm3, %v17853_v57, %v6745_v30  ;;  %v6755_v25 = vunpack.i.l.bf16 %v17843_v59  ;;  %v13039_v50 = vpop.permute.xlu0 %7188  ;;  %7418 = vrot.lane.b32.xlu1 %v17854_v35, %s7666_s28  ;;  %v17860_v35 = vld [vmem:[#allocation196_spill] sm:$0xff] }
 0x3b2   :  { %v4133_v45 = vsel %vm4115_vm5, %v12766_v55, %v6901_v11  ;;  %v13046_v27 = vsel %vm1072_vm3, %v17855_v16, %v6756_v44  ;;  %v4134_v30 = vsel %vm4115_vm5, %v4069_v41, %v6905_v52  ;;  %v17857_v59 = vunpack.i.h.bf16 %v12082_v43  ;;  %v17859_v44 = vld [vmem:[#allocation163_spill] sm:$0xff]  ;;  %v17861_v52 = vld [vmem:[#allocation74_spill] sm:$0xff] }
 0x3b3   :  { %v4391_v37 = vsel %vm4375_vm9, %v4326_v22, %v17852_v54  ;;  %v17856_v22 = vld [vmem:[#allocation169_spill] sm:$0xff]  ;;  %v6776_v54 = vunpack.i.h.bf16 %v17858_v7  ;;  %v6775_v57 = vunpack.i.l.bf16 %v17858_v7  ;;  %v6910_v41 = vunpack.i.l.bf16 %v17861_v52 }
 0x3b4   :  { %v4456_v56 = vsel %vm4440_vm10, %v4391_v37, %v7095_v8  ;;  %v6766_v23 = vunpack.i.h.bf16 %v17856_v22  ;;  %v4392_v55 = vsel %vm4375_vm9, %v4327_v10, %v17857_v59  ;;  %v6765_v11 = vunpack.i.l.bf16 %v17856_v22  ;;  %7428 = vrot.lane.b32.xlu0 %v17859_v44, %s7671_s17  ;;  %v7099_v37 = vpop.permute.xlu1 %7098 }
 0x3b5   :  { %4791 = vmatmul.mubr.f32.gmra.mxu1 %v4456_v56  ;;  %v7096_v8 = vunpack.i.h.bf16 %v12738_v0  ;;  %v7101_v43 = vunpack.i.h.bf16 %v7099_v37  ;;  %v7100_v56 = vunpack.i.l.bf16 %v7099_v37  ;;  %v17862_v10 = vunpack.i.h.bf16 %v17761_v51  ;;  %v13070_v38 = vpop.permute.xlu0 %7193  ;;  %7433 = vrot.lane.b32.xlu1 %v17859_v44, %s7672_s3  ;;  %v17864_v37 = vld [vmem:[#allocation266_spill] sm:$0xff] }
 0x3b6   :  { %6125 = vmatprep.mubr.msk.f32.mxu1 %vm1072_vm3, %v17860_v35  ;;  %v7111_v22 = vunpack.i.h.bf16 %v12777_v19  ;;  %v7110_v59 = vunpack.i.l.bf16 %v12777_v19  ;;  %v17863_v0 = vunpack.i.l.bf16 %v17760_v48  ;;  %v6860_v36 = vunpack.i.l.bf16 %v17864_v37  ;;  %v17865_v19 = vld [vmem:[#allocation118_spill] sm:$0xff] }
 0x3b7   :  { %v4198_v16 = vsel %vm4180_vm6, %v4133_v45, %v17862_v10  ;;  %v4457_v35 = vsel %vm4440_vm10, %v4392_v55, %v7096_v8  ;;  %v6906_v51 = vunpack.i.h.bf16 %v17844_v31  ;;  %v13081_v15 = vsel %vm1072_vm3, %v17865_v19, %v6755_v25  ;;  %v17867_v55 = vld [vmem:[#allocation197_spill] sm:$0xff]  ;;  %v17869_v25 = vld [vmem:[#allocation122_spill] sm:$0xff] }
 0x3b8   :  { %v4199_v7 = vsel %vm4180_vm6, %v4134_v30, %v17863_v0  ;;  %v4263_v45 = vsel %vm4245_vm7, %v4198_v16, %v7100_v56  ;;  %v7115_v30 = vunpack.i.l.bf16 %v12797_v60  ;;  %v17866_v0 = vld [vmem:[#allocation232_spill] sm:$0xff]  ;;  %v13086_v44 = vpop.permute.xlu1 %7103  ;;  %v13098_v16 = vsel %vm1072_vm3, %v17869_v25, %v6765_v11  ;;  %v17873_v11 = vld [vmem:[#allocation139_spill] sm:$0xff]  ;;  %v17876_v25 = vld [vmem:[#allocation173_spill] sm:$0xff] }
 0x3b9   :  { %v4264_v10 = vsel %vm4245_vm7, %v4199_v7, %v7101_v43  ;;  %4796 = vmatmul.mubr.f32.gmra.mxu1 %v4457_v35  ;;  %7443 = vrot.lane.b32.xlu0 %v17866_v0, %s7670_s4  ;;  %v4328_v31 = vsel %vm4310_vm8, %v4263_v45, %v7110_v59  ;;  %v17868_v43 = vld [vmem:[#allocation123_spill] sm:$0xff]  ;;  %v17870_v7 = vld [vmem:[#allocation126_spill] sm:$0xff]  ;;  %v17871_v19 = vunpack.i.l.bf16 %v12102_v49  ;;  %v13114_v45 = vpop.permute.xlu0 %7203 }
 0x3ba   :  { %6126 = vmatprep.mubr.msk.f32.mxu1 %vm1072_vm3, %v17867_v55  ;;  %v4329_v8 = vsel %vm4310_vm8, %v4264_v10, %v7111_v22  ;;  %v13094_v56 = vsel %vm1072_vm3, %v17868_v43, %v6766_v23  ;;  %v13102_v35 = vsel %vm1072_vm3, %v17870_v7, %v6776_v54  ;;  %v17872_v55 = vld [vmem:[#allocation127_spill] sm:$0xff]  ;;  %v6861_v22 = vunpack.i.h.bf16 %v17864_v37  ;;  %7438 = vrot.lane.b32.xlu1 %v17873_v11, %s7666_s28 }
 0x3bb   :  { %v4393_v0 = vsel %vm4375_vm9, %v4328_v31, %v17871_v19  ;;  %v13109_v59 = vsel %vm1072_vm3, %v17872_v55, %v6775_v57  ;;  %v4136_v23 = vsel %vm4115_vm5, %v12818_v9, %v6910_v41  ;;  %v13121_v10 = vsel %vm4115_vm5, %v12713_v40, %v6860_v36  ;;  %v17874_v31 = vld [vmem:[#allocation156_spill] sm:$0xff] }
 0x3bc   :  { %v4458_v54 = vsel %vm4440_vm10, %v4393_v0, %v7115_v30  ;;  %v6786_v43 = vunpack.i.h.bf16 %v17874_v31  ;;  %v4135_v57 = vsel %vm4115_vm5, %v4070_v21, %v6906_v51  ;;  %v17875_v37 = vunpack.i.h.bf16 %v12102_v49  ;;  %v17877_v36 = vld [vmem:[#allocation88_spill] sm:$0xff]  ;;  %v7119_v40 = vpop.permute.xlu1 %7118  ;;  %v17878_v0 = vld [vmem:[#allocation235_spill] sm:$0xff] }
 0x3bd   :  { %4801 = vmatmul.mubr.f32.gmra.mxu1 %v4458_v54  ;;  %v6785_v41 = vunpack.i.l.bf16 %v17874_v31  ;;  %v6871_v7 = vunpack.i.h.bf16 %v17876_v25  ;;  %v6870_v19 = vunpack.i.l.bf16 %v17876_v25  ;;  %v7116_v30 = vunpack.i.h.bf16 %v12797_v60  ;;  %7448 = vrot.lane.b32.xlu0 %v17877_v36, %s7671_s17  ;;  %v13145_v25 = vpop.permute.xlu0 %7208 }
 0x3be   :  { %v4394_v9 = vsel %vm4375_vm9, %v4329_v8, %v17875_v37  ;;  %6127 = vmatprep.mubr.msk.f32.mxu1 %vm1072_vm3, %v17878_v0  ;;  %v6911_v21 = vunpack.i.h.bf16 %v17861_v52  ;;  %v7121_v49 = vunpack.i.h.bf16 %v7119_v40  ;;  %v7120_v51 = vunpack.i.l.bf16 %v7119_v40  ;;  %v17879_v8 = vld [vmem:[#allocation98_spill] sm:$0xff]  ;;  %7453 = vrot.lane.b32.xlu1 %v17877_v36, %s7672_s3  ;;  %v17882_v0 = vld [vmem:[#allocation132_spill] sm:$0xff] }
 0x3bf   :  { %v17880_v55 = vunpack.i.l.bf16 %v17879_v8  ;;  %v7131_v54 = vunpack.i.h.bf16 %v12828_v58  ;;  %v7130_v31 = vunpack.i.l.bf16 %v12828_v58  ;;  %v17881_v60 = vunpack.i.h.bf16 %v17760_v48 }
 0x3c0   :  { %v4459_v52 = vsel %vm4440_vm10, %v4394_v9, %v7116_v30  ;;  %v4117_v40 = vsel %vm4115_vm5, %v12707_v1, %v6861_v22  ;;  %v6880_v48 = vunpack.i.l.bf16 %v12399_v62  ;;  %v13159_v36 = vpop.permute.xlu1 %7123  ;;  %v17884_v9 = vld [vmem:[#allocation236_spill] sm:$0xff] }
 0x3c1   :  { %v4201_v11 = vsel %vm4180_vm6, %v4136_v23, %v17880_v55  ;;  %v4200_v37 = vsel %vm4180_vm6, %v4135_v57, %v17881_v60  ;;  %v6915_v23 = vunpack.i.l.bf16 %v17882_v0  ;;  %4806 = vmatmul.mubr.f32.gmra.mxu1 %v4459_v52  ;;  %v7135_v57 = vunpack.i.l.bf16 %v12862_v46  ;;  %v17883_v60 = vld [vmem:[#allocation254_spill] sm:$0xff]  ;;  %v17885_v30 = vld [vmem:[#allocation28_spill] sm:$0xff] }
 0x3c2   :  { %v4265_v55 = vsel %vm4245_vm7, %v4200_v37, %v7120_v51  ;;  %v4266_v58 = vsel %vm4245_vm7, %v4201_v11, %v7121_v49  ;;  %7463 = vrot.lane.b32.xlu0 %v17883_v60, %s7670_s4  ;;  %6128 = vmatprep.mubr.msk.f32.mxu1 %vm1072_vm3, %v17884_v9  ;;  %v13167_v49 = vsel %vm1072_vm3, %v17885_v30, %v6786_v43  ;;  %v17886_v51 = vld [vmem:[#allocation91_spill] sm:$0xff]  ;;  %v17887_v37 = vunpack.i.l.bf16 %v12124_v24  ;;  %v17918_v43 = vld [vmem:[#allocation65_spill] sm:$0xff] }
 0x3c3   :  { %v4330_v1 = vsel %vm4310_vm8, %v4265_v55, %v7130_v31  ;;  %v4331_v22 = vsel %vm4310_vm8, %v4266_v58, %v7131_v54  ;;  %v13171_v62 = vsel %vm1072_vm3, %v17886_v51, %v6785_v41  ;;  %v4137_v11 = vsel %vm4115_vm5, %v12814_v29, %v6911_v21  ;;  %v17888_v55 = vld [vmem:[#allocation165_spill] sm:$0xff]  ;;  %v13183_v58 = vpop.permute.xlu0 %7218  ;;  %v17890_v21 = vld [vmem:[#allocation170_spill] sm:$0xff]  ;;  %v17892_v30 = vld [vmem:[#allocation167_spill] sm:$0xff] }
 0x3c4   :  { %v4395_v52 = vsel %vm4375_vm9, %v4330_v1, %v17887_v37  ;;  %v4121_v31 = vsel %vm4115_vm5, %v12954_v12, %v6871_v7  ;;  %v4120_v54 = vsel %vm4115_vm5, %v12958_v53, %v6870_v19  ;;  %v17889_v41 = vld [vmem:[#allocation141_spill] sm:$0xff]  ;;  %v6920_v9 = vunpack.i.l.bf16 %v17890_v21  ;;  %v7139_v51 = vpop.permute.xlu1 %7138 }
 0x3c5   :  { %7458 = vrot.lane.b32.xlu1 %v17889_v41, %s7666_s28  ;;  %v4460_v60 = vsel %vm4440_vm10, %v4395_v52, %v7135_v57  ;;  %v4138_v1 = vsel %vm4115_vm5, %v13081_v15, %v6915_v23  ;;  %v17891_v12 = vunpack.i.h.bf16 %v12124_v24  ;;  %v13197_v7 = vsel %vm4115_vm5, %v12747_v39, %v6880_v48  ;;  %v17894_v23 = vld [vmem:[#allocation201_spill] sm:$0xff]  ;;  %v17895_v24 = vld [vmem:[#allocation176_spill] sm:$0xff] }
 0x3c6   :  { %4811 = vmatmul.mubr.f32.gmra.mxu1 %v4460_v60  ;;  %v6921_v19 = vunpack.i.h.bf16 %v17890_v21  ;;  %v7136_v57 = vunpack.i.h.bf16 %v12862_v46  ;;  %7468 = vrot.lane.b32.xlu0 %v17892_v30, %s7671_s17  ;;  %v17893_v37 = vunpack.i.h.bf16 %v17879_v8  ;;  %v6916_v39 = vunpack.i.h.bf16 %v17882_v0  ;;  %v17896_v60 = vld [vmem:[#allocation192_spill] sm:$0xff] }
 0x3c7   :  { %v4396_v53 = vsel %vm4375_vm9, %v4331_v22, %v17891_v12  ;;  %6129 = vmatprep.mubr.msk.f32.mxu1 %vm1072_vm3, %v17894_v23  ;;  %v6930_v22 = vunpack.i.l.bf16 %v17895_v24  ;;  %v7141_v48 = vunpack.i.h.bf16 %v7139_v51  ;;  %v7140_v52 = vunpack.i.l.bf16 %v7139_v51  ;;  %v13215_v8 = vpop.permute.xlu0 %7223 }
 0x3c8   :  { %v4202_v15 = vsel %vm4180_vm6, %v4137_v11, %v17893_v37  ;;  %v7151_v41 = vunpack.i.h.bf16 %v12898_v13  ;;  %v7150_v46 = vunpack.i.l.bf16 %v12898_v13  ;;  %v17897_v21 = vunpack.i.l.bf16 %v17896_v60 }
 0x3c9   :  { %7473 = vrot.lane.b32.xlu1 %v17892_v30, %s7672_s3  ;;  %v4461_v11 = vsel %vm4440_vm10, %v4396_v53, %v7136_v57  ;;  %v4140_v0 = vsel %vm4115_vm5, %v12839_v26, %v6920_v9  ;;  %v6931_v51 = vunpack.i.h.bf16 %v17895_v24  ;;  %v4267_v37 = vsel %vm4245_vm7, %v4202_v15, %v7140_v52  ;;  %v17899_v30 = vld [vmem:[#allocation202_spill] sm:$0xff] }
 0x3ca   :  { %v4203_v12 = vsel %vm4180_vm6, %v4138_v1, %v17897_v21  ;;  %4816 = vmatmul.mubr.f32.gmra.mxu1 %v4461_v11  ;;  %v7155_v23 = vunpack.i.l.bf16 %v12926_v2  ;;  %v17898_v1 = vld [vmem:[#allocation237_spill] sm:$0xff]  ;;  %v13228_v21 = vpop.permute.xlu1 %7143  ;;  %v4332_v53 = vsel %vm4310_vm8, %v4267_v37, %v7150_v46  ;;  %v17900_v9 = vld [vmem:[#allocation166_spill] sm:$0xff]  ;;  %v4141_v24 = vsel %vm4115_vm5, %v12835_v61, %v6921_v19  ;;  %v17904_v46 = vld [vmem:[#allocation175_spill] sm:$0xff] }
 0x3cb   :  { %v4268_v13 = vsel %vm4245_vm7, %v4203_v12, %v7141_v48  ;;  %7483 = vrot.lane.b32.xlu0 %v17898_v1, %s7670_s4  ;;  %6130 = vmatprep.mubr.msk.f32.mxu1 %vm1072_vm3, %v17899_v30  ;;  %v17901_v57 = vunpack.i.l.bf16 %v17900_v9  ;;  %v17902_v48 = vunpack.i.l.bf16 %v12148_v17  ;;  %v17903_v12 = vunpack.i.h.bf16 %v17900_v9  ;;  %v13261_v19 = vpop.permute.xlu0 %7233 }
 0x3cc   :  { %v4333_v26 = vsel %vm4310_vm8, %v4268_v13, %v7151_v41  ;;  %v17905_v41 = vunpack.i.l.bf16 %v17904_v46  ;;  %v4139_v61 = vsel %vm4115_vm5, %v13046_v27, %v6916_v39  ;;  %v17906_v13 = vld [vmem:[#allocation83_spill] sm:$0xff]  ;;  %v17907_v1 = vunpack.i.l.bf16 %v17768_v20 }
 0x3cd   :  { %v13238_v15 = vsel %vm4180_vm6, %v13121_v10, %v17901_v57  ;;  %v4397_v52 = vsel %vm4375_vm9, %v4332_v53, %v17902_v48  ;;  %v13248_v11 = vsel %vm4180_vm6, %v4117_v40, %v17903_v12  ;;  %v13257_v10 = vsel %vm4115_vm5, %v12887_v4, %v6930_v22  ;;  %7478 = vrot.lane.b32.xlu1 %v17906_v13, %s7666_s28  ;;  %v17908_v4 = vld [vmem:[#allocation90_spill] sm:$0xff] }
 0x3ce   :  { %v13253_v37 = vsel %vm4180_vm6, %v4120_v54, %v17905_v41  ;;  %v4462_v40 = vsel %vm4440_vm10, %v4397_v52, %v7155_v23  ;;  %v4205_v30 = vsel %vm4180_vm6, %v4140_v0, %v17907_v1  ;;  %v13271_v54 = vsel %vm4115_vm5, %v12883_v6, %v6931_v51  ;;  %v17911_v57 = vld [vmem:[#allocation106_spill] sm:$0xff]  ;;  %v17912_v51 = vld [vmem:[#allocation199_spill] sm:$0xff]  ;;  %v7159_v52 = vpop.permute.xlu1 %7158 }
 0x3cf   :  { %v6941_v22 = vunpack.i.h.bf16 %v17908_v4  ;;  %4821 = vmatmul.mubr.f32.gmra.mxu1 %v4462_v40  ;;  %v17909_v27 = vunpack.i.h.bf16 %v12148_v17  ;;  %v17910_v53 = vunpack.i.h.bf16 %v17904_v46  ;;  %v6940_v23 = vunpack.i.l.bf16 %v17908_v4  ;;  %7488 = vrot.lane.b32.xlu0 %v17912_v51, %s7671_s17  ;;  %v17913_v17 = vld [vmem:[#allocation240_spill] sm:$0xff]  ;;  %v17916_v40 = vld [vmem:[#allocation29_spill] sm:$0xff] }
 0x3d0   :  { %v6866_v0 = vunpack.i.h.bf16 %v17911_v57  ;;  %v6865_v48 = vunpack.i.l.bf16 %v17911_v57  ;;  %v7156_v6 = vunpack.i.h.bf16 %v12926_v2  ;;  %6131 = vmatprep.mubr.msk.f32.mxu1 %vm1072_vm3, %v17913_v17  ;;  %v7161_v46 = vunpack.i.h.bf16 %v7159_v52 }
 0x3d1   :  { %v4398_v39 = vsel %vm4375_vm9, %v4333_v26, %v17909_v27  ;;  %v13280_v9 = vsel %vm4180_vm6, %v4121_v31, %v17910_v53  ;;  %v17914_v26 = vld [vmem:[#allocation212_spill] sm:$0xff]  ;;  %v7160_v31 = vunpack.i.l.bf16 %v7159_v52  ;;  %v17915_v41 = vunpack.i.h.bf16 %v17896_v60  ;;  %v13297_v27 = vpop.permute.xlu0 %7238  ;;  %7493 = vrot.lane.b32.xlu1 %v17912_v51, %s7672_s3  ;;  %v17917_v52 = vld [vmem:[#allocation93_spill] sm:$0xff] }
 0x3d2   :  { %v6951_v12 = vunpack.i.h.bf16 %v17914_v26  ;;  %v6925_v1 = vunpack.i.l.bf16 %v17916_v40  ;;  %v7171_v4 = vunpack.i.h.bf16 %v12968_v32  ;;  %v7170_v2 = vunpack.i.l.bf16 %v12968_v32  ;;  %v13310_v29 = vpop.permute.xlu1 %7163  ;;  %v17919_v51 = vld [vmem:[#allocation241_spill] sm:$0xff] }
 0x3d3   :  { %v4204_v13 = vsel %vm4180_vm6, %v4139_v61, %v17915_v41  ;;  %v4463_v53 = vsel %vm4440_vm10, %v4398_v39, %v7156_v6  ;;  %v6950_v57 = vunpack.i.l.bf16 %v17914_v26  ;;  %v6876_v17 = vunpack.i.h.bf16 %v17917_v52  ;;  %7503 = vrot.lane.b32.xlu0 %v17918_v43, %s7670_s4 }
 0x3d4   :  { %v4269_v60 = vsel %vm4245_vm7, %v4204_v13, %v7160_v31  ;;  %v4270_v61 = vsel %vm4245_vm7, %v4205_v30, %v7161_v46  ;;  %4826 = vmatmul.mubr.f32.gmra.mxu1 %v4463_v53  ;;  %v6875_v41 = vunpack.i.l.bf16 %v17917_v52  ;;  %v7175_v32 = vunpack.i.l.bf16 %v12999_v28  ;;  %v17927_v52 = vld [vmem:[#allocation206_spill] sm:$0xff] }
 0x3d5   :  { %6132 = vmatprep.mubr.msk.f32.mxu1 %vm1072_vm3, %v17919_v51  ;;  %v4334_v39 = vsel %vm4310_vm8, %v4269_v60, %v7170_v2  ;;  %v4335_v6 = vsel %vm4310_vm8, %v4270_v61, %v7171_v4  ;;  %v4148_v30 = vsel %vm4115_vm5, %v12950_v33, %v6940_v23  ;;  %v4149_v26 = vsel %vm4115_vm5, %v12937_v18, %v6941_v22  ;;  %v13330_v2 = vpop.permute.xlu0 %7248  ;;  %v17922_v33 = vld [vmem:[#allocation145_spill] sm:$0xff] }
 0x3d6   :  { %v17920_v46 = vunpack.i.l.bf16 %v12170_v3  ;;  %v17921_v43 = vunpack.i.h.bf16 %v17768_v20  ;;  %v4118_v53 = vsel %vm4115_vm5, %v12733_v14, %v6865_v48  ;;  %v4142_v4 = vsel %vm4115_vm5, %v13098_v16, %v6925_v1  ;;  %7498 = vrot.lane.b32.xlu1 %v17922_v33, %s7666_s28  ;;  %v17932_v33 = vld [vmem:[#allocation242_spill] sm:$0xff] }
 0x3d7   :  { %v17923_v22 = vunpack.i.l.bf16 %v17748_v42  ;;  %v13345_v14 = vsel %vm4115_vm5, %v13010_v63, %v6950_v57  ;;  %v6926_v16 = vunpack.i.h.bf16 %v17916_v40  ;;  %v17925_v48 = vunpack.i.h.bf16 %v12170_v3  ;;  %v17926_v57 = vld [vmem:[#allocation172_spill] sm:$0xff]  ;;  %v7179_v40 = vpop.permute.xlu1 %7178 }
 0x3d8   :  { %v4399_v31 = vsel %vm4375_vm9, %v4334_v39, %v17920_v46  ;;  %v4206_v13 = vsel %vm4180_vm6, %v4141_v24, %v17921_v43  ;;  %v17924_v24 = vld [vmem:[#allocation184_spill] sm:$0xff]  ;;  %v13353_v42 = vsel %vm4115_vm5, %v12975_v47, %v6951_v12  ;;  %v7176_v63 = vunpack.i.h.bf16 %v12999_v28  ;;  %7508 = vrot.lane.b32.xlu0 %v17926_v57, %s7671_s17 }
 0x3d9   :  { %v4464_v18 = vsel %vm4440_vm10, %v4399_v31, %v7175_v32  ;;  %v13339_v20 = vsel %vm4180_vm6, %v13197_v7, %v17923_v22  ;;  %v4119_v23 = vsel %vm4115_vm5, %v17924_v24, %v6866_v0  ;;  %v4400_v1 = vsel %vm4375_vm9, %v4335_v6, %v17925_v48  ;;  %v17928_v3 = vld [vmem:[#allocation96_spill] sm:$0xff]  ;;  %v17933_v22 = vld [vmem:[#allocation207_spill] sm:$0xff] }
 0x3da   :  { %4831 = vmatmul.mubr.f32.gmra.mxu1 %v4464_v18  ;;  %v4123_v7 = vsel %vm4115_vm5, %v13023_v34, %v6876_v17  ;;  %v4122_v0 = vsel %vm4115_vm5, %v13027_v5, %v6875_v41  ;;  %v6935_v60 = vunpack.i.l.bf16 %v17928_v3  ;;  %v7181_v61 = vunpack.i.h.bf16 %v7179_v40  ;;  %v17929_v12 = vld [vmem:[#allocation100_spill] sm:$0xff]  ;;  %v13371_v41 = vpop.permute.xlu0 %7253  ;;  %7513 = vrot.lane.b32.xlu1 %v17926_v57, %s7672_s3 }
 0x3db   :  { %6133 = vmatprep.mubr.msk.f32.mxu1 %vm1072_vm3, %v17927_v52  ;;  %v7180_v47 = vunpack.i.l.bf16 %v7179_v40  ;;  %v17930_v32 = vunpack.i.l.bf16 %v17929_v12  ;;  %v6936_v17 = vunpack.i.h.bf16 %v17928_v3  ;;  %v7191_v5 = vunpack.i.h.bf16 %v13039_v50  ;;  %v17931_v6 = vld [vmem:[#allocation68_spill] sm:$0xff]  ;;  %v13385_v18 = vpop.permute.xlu1 %7183 }
 0x3dc   :  { %v7190_v28 = vunpack.i.l.bf16 %v13039_v50  ;;  %v4465_v51 = vsel %vm4440_vm10, %v4400_v1, %v7176_v63  ;;  %v4143_v39 = vsel %vm4115_vm5, %v13094_v56, %v6926_v16  ;;  %v6946_v46 = vunpack.i.h.bf16 %v17931_v6  ;;  %7523 = vrot.lane.b32.xlu0 %v17932_v33, %s7670_s4  ;;  %v17934_v16 = vld [vmem:[#allocation162_spill] sm:$0xff]  ;;  %v17948_v33 = vld [vmem:[#allocation209_spill] sm:$0xff] }
 0x3dd   :  { %v4207_v34 = vsel %vm4180_vm6, %v4142_v4, %v17930_v32  ;;  %v4271_v31 = vsel %vm4245_vm7, %v4206_v13, %v7180_v47  ;;  %v6945_v4 = vunpack.i.l.bf16 %v17931_v6  ;;  %v7195_v50 = vunpack.i.l.bf16 %v13070_v38  ;;  %v17936_v63 = vld [vmem:[#allocation102_spill] sm:$0xff]  ;;  %v17940_v32 = vld [vmem:[#allocation164_spill] sm:$0xff] }
 0x3de   :  { %v4272_v43 = vsel %vm4245_vm7, %v4207_v34, %v7181_v61  ;;  %4836 = vmatmul.mubr.f32.gmra.mxu1 %v4465_v51  ;;  %v4336_v56 = vsel %vm4310_vm8, %v4271_v31, %v7190_v28  ;;  %v4146_v13 = vsel %vm4115_vm5, %v13109_v59, %v6935_v60  ;;  %v17935_v48 = vunpack.i.l.bf16 %v17934_v16  ;;  %v13408_v47 = vpop.permute.xlu0 %7263  ;;  %v17939_v59 = vld [vmem:[#allocation143_spill] sm:$0xff]  ;;  %v17945_v6 = vld [vmem:[#allocation204_spill] sm:$0xff] }
 0x3df   :  { %6134 = vmatprep.mubr.msk.f32.mxu1 %vm1072_vm3, %v17933_v22  ;;  %v4337_v24 = vsel %vm4310_vm8, %v4272_v43, %v7191_v5  ;;  %v17937_v57 = vunpack.i.l.bf16 %v17936_v63  ;;  %v17938_v52 = vunpack.i.h.bf16 %v17936_v63  ;;  %v4147_v61 = vsel %vm4115_vm5, %v13102_v35, %v6936_v17  ;;  %7518 = vrot.lane.b32.xlu1 %v17939_v59, %s7666_s28  ;;  %v7199_v22 = vpop.permute.xlu1 %7198 }
 0x3e0   :  { %v4401_v1 = vsel %vm4375_vm9, %v4336_v56, %v17935_v48  ;;  %v17941_v34 = vunpack.i.l.bf16 %v17940_v32  ;;  %v17942_v5 = vunpack.i.h.bf16 %v17940_v32  ;;  %v17943_v35 = vunpack.i.h.bf16 %v17929_v12  ;;  %7528 = vrot.lane.b32.xlu0 %v17948_v33, %s7671_s17  ;;  %v17949_v56 = vld [vmem:[#allocation246_spill] sm:$0xff] }
 0x3e1   :  { %v4209_v40 = vsel %vm4180_vm6, %v13257_v10, %v17937_v57  ;;  %v13404_v3 = vsel %vm4180_vm6, %v13271_v54, %v17938_v52  ;;  %v4466_v60 = vsel %vm4440_vm10, %v4401_v1, %v7195_v50  ;;  %v17944_v28 = vunpack.i.h.bf16 %v17934_v16 }
 0x3e2   :  { %v13416_v10 = vsel %vm4180_vm6, %v4118_v53, %v17941_v34  ;;  %v13421_v54 = vsel %vm4180_vm6, %v4119_v23, %v17942_v5  ;;  %4841 = vmatmul.mubr.f32.gmra.mxu1 %v4466_v60  ;;  %v4208_v17 = vsel %vm4180_vm6, %v4143_v39, %v17943_v35  ;;  %v17946_v31 = vunpack.i.l.bf16 %v17945_v6  ;;  %v13465_v57 = vpop.permute.xlu0 %7268  ;;  %v17956_v60 = vld [vmem:[#allocation200_spill] sm:$0xff] }
 0x3e3   :  { %v4402_v51 = vsel %vm4375_vm9, %v4337_v24, %v17944_v28  ;;  %v17947_v53 = vunpack.i.h.bf16 %v17945_v6  ;;  %v4151_v23 = vsel %vm4115_vm5, %v13167_v49, %v6946_v46  ;;  %v4150_v12 = vsel %vm4115_vm5, %v13171_v62, %v6945_v4  ;;  %6135 = vmatprep.mubr.msk.f32.mxu1 %vm1072_vm3, %v17949_v56  ;;  %7533 = vrot.lane.b32.xlu1 %v17948_v33, %s7672_s3 }
 0x3e4   :  { %v13432_v43 = vsel %vm4180_vm6, %v4148_v30, %v17946_v31  ;;  %v7196_v39 = vunpack.i.h.bf16 %v13070_v38  ;;  %v17950_v30 = vld [vmem:[#allocation198_spill] sm:$0xff]  ;;  %v7201_v16 = vunpack.i.h.bf16 %v7199_v22  ;;  %v7200_v48 = vunpack.i.l.bf16 %v7199_v22  ;;  %v17953_v38 = vld [vmem:[#allocation171_spill] sm:$0xff] }
 0x3e5   :  { %v13437_v50 = vsel %vm4180_vm6, %v4149_v26, %v17947_v53  ;;  %v17951_v24 = vunpack.i.l.bf16 %v17950_v30  ;;  %v17952_v49 = vunpack.i.h.bf16 %v17950_v30  ;;  %v17954_v46 = vunpack.i.l.bf16 %v17953_v38 }
 0x3e6   :  { %v7206_v1 = vunpack.i.h.bf16 %v13114_v45  ;;  %v7205_v63 = vunpack.i.l.bf16 %v13114_v45  ;;  %v17955_v52 = vunpack.i.h.bf16 %v17953_v38  ;;  %v4273_v59 = vsel %vm4245_vm7, %v4208_v17, %v7200_v48  ;;  %v7214_v17 = vpop.permute.xlu1 %7213  ;;  %v13504_v30 = vpop.permute.xlu0 %7278 }
 0x3e7   :  { %v13451_v26 = vsel %vm4180_vm6, %v4146_v13, %v17951_v24  ;;  %v13456_v62 = vsel %vm4180_vm6, %v4147_v61, %v17952_v49  ;;  %v13461_v4 = vsel %vm4180_vm6, %v4122_v0, %v17954_v46  ;;  %v4467_v13 = vsel %vm4440_vm10, %v4402_v51, %v7196_v39  ;;  %v17960_v51 = vld [vmem:[#allocation245_spill] sm:$0xff]  ;;  %v17964_v24 = vld [vmem:[#allocation148_spill] sm:$0xff] }
 0x3e8   :  { %v13473_v61 = vsel %vm4180_vm6, %v4123_v7, %v17955_v52  ;;  %v4246_v0 = vsel %vm4245_vm7, %v13238_v15, %v7201_v16  ;;  %4846 = vmatmul.mubr.f32.gmra.mxu1 %v4467_v13  ;;  %v17957_v45 = vunpack.i.l.bf16 %v17956_v60  ;;  %v17958_v34 = vunpack.i.h.bf16 %v17956_v60  ;;  %v17959_v15 = vld [vmem:[#allocation262_spill] sm:$0xff]  ;;  %7538 = vrot.lane.b32.xlu1 %v17964_v24, %s7666_s28  ;;  %v17965_v49 = vld [vmem:[#allocation189_spill] sm:$0xff] }
 0x3e9   :  { %v7211_v35 = vunpack.i.h.bf16 %v13145_v25  ;;  %v7210_v7 = vunpack.i.l.bf16 %v13145_v25  ;;  %v4311_v28 = vsel %vm4310_vm8, %v4246_v0, %v7206_v1  ;;  %7543 = vrot.lane.b32.xlu0 %v17959_v15, %s7670_s4  ;;  %6136 = vmatprep.mubr.msk.f32.mxu1 %vm1072_vm3, %v17960_v51  ;;  %v4338_v6 = vsel %vm4310_vm8, %v4273_v59, %v7205_v63  ;;  %v17966_v52 = vld [vmem:[#allocation178_spill] sm:$0xff]  ;;  %v17967_v59 = vld [vmem:[#allocation51_spill] sm:$0xff] }
 0x3ea   :  { %v13481_v32 = vsel %vm4180_vm6, %v4150_v12, %v17957_v45  ;;  %v13486_v5 = vsel %vm4180_vm6, %v4151_v23, %v17958_v34  ;;  %v7216_v31 = vunpack.i.h.bf16 %v7214_v17  ;;  %v7215_v53 = vunpack.i.l.bf16 %v7214_v17  ;;  %v17961_v12 = vld [vmem:[#allocation253_spill] sm:$0xff]  ;;  %v7229_v0 = vpop.permute.xlu1 %7228  ;;  %v13529_v15 = vpop.permute.xlu0 %7283 }
 0x3eb   :  { %v17962_v23 = vunpack.i.h.bf16 %v17961_v12  ;;  %v17963_v33 = vunpack.i.l.bf16 %v17961_v12  ;;  %v7221_v22 = vunpack.i.h.bf16 %v13183_v58  ;;  %v7220_v56 = vunpack.i.l.bf16 %v13183_v58 }
 0x3ec   :  { %v7026_v38 = vunpack.i.h.bf16 %v17965_v49  ;;  %v7025_v46 = vunpack.i.l.bf16 %v17965_v49  ;;  %v4247_v1 = vsel %vm4245_vm7, %v13248_v11, %v7216_v31  ;;  %v4274_v63 = vsel %vm4245_vm7, %v4209_v40, %v7215_v53  ;;  %v17968_v40 = vld [vmem:[#allocation71_spill] sm:$0xff]  ;;  %7553 = vrot.lane.b32.xlu1 %v17966_v52, %s7672_s3 }
 0x3ed   :  { %v4376_v39 = vsel %vm4375_vm9, %v4311_v28, %v17962_v23  ;;  %v4403_v25 = vsel %vm4375_vm9, %v4338_v6, %v17963_v33  ;;  %v7226_v58 = vunpack.i.h.bf16 %v13215_v8  ;;  %v7225_v13 = vunpack.i.l.bf16 %v13215_v8  ;;  %7548 = vrot.lane.b32.xlu0 %v17966_v52, %s7671_s17  ;;  %v17969_v6 = vld [vmem:[#allocation69_spill] sm:$0xff]  ;;  %v17970_v33 = vld [vmem:[#allocation247_spill] sm:$0xff] }
 0x3ee   :  { %v4441_v16 = vsel %vm4440_vm10, %v4376_v39, %v7211_v35  ;;  %v4468_v48 = vsel %vm4440_vm10, %v4403_v25, %v7210_v7  ;;  %v4312_v60 = vsel %vm4310_vm8, %v4247_v1, %v7221_v22  ;;  %v4339_v45 = vsel %vm4310_vm8, %v4274_v63, %v7220_v56  ;;  %v7244_v25 = vpop.permute.xlu1 %7243  ;;  %v17971_v22 = vld [vmem:[#allocation215_spill] sm:$0xff]  ;;  %v17973_v1 = vld [vmem:[#allocation78_spill] sm:$0xff] }
 0x3ef   :  { %4716 = vmatmul.mubr.f32.vlgmr.msra.gmra.mxu0 %v4441_v16  ;;  %4851 = vmatmul.mubr.f32.gmra.mxu1 %v4468_v48  ;;  %v7231_v11 = vunpack.i.h.bf16 %v7229_v0  ;;  %v7230_v34 = vunpack.i.l.bf16 %v7229_v0  ;;  %v4377_v35 = vsel %vm4375_vm9, %v4312_v60, %v7026_v38  ;;  %v4404_v8 = vsel %vm4375_vm9, %v4339_v45, %v7025_v46  ;;  %v13555_v46 = vpop.permute.xlu0 %7293 }
 0x3f0   :  { %6110 = vmatprep.mubr.msk.f32.mxu0 %vm1072_vm3, %v17967_v59  ;;  %6137 = vmatprep.mubr.msk.f32.mxu1 %vm1072_vm3, %v17968_v40  ;;  %v7236_v7 = vunpack.i.h.bf16 %v13261_v19  ;;  %v7235_v28 = vunpack.i.l.bf16 %v13261_v19  ;;  %v4442_v17 = vsel %vm4440_vm10, %v4377_v35, %v7226_v58  ;;  %v4469_v51 = vsel %vm4440_vm10, %v4404_v8, %v7225_v13  ;;  %v17974_v13 = vld [vmem:[#allocation194_spill] sm:$0xff]  ;;  %v17976_v40 = vld [vmem:[#allocation216_spill] sm:$0xff] }
 0x3f1   :  { %v7046_v31 = vunpack.i.h.bf16 %v17969_v6  ;;  %v7045_v53 = vunpack.i.l.bf16 %v17969_v6  ;;  %v4248_v12 = vsel %vm4245_vm7, %v13416_v10, %v7231_v11  ;;  %v4275_v23 = vsel %vm4245_vm7, %v13404_v3, %v7230_v34  ;;  %7563 = vrot.lane.b32.xlu0 %v17970_v33, %s7670_s4  ;;  %v17972_v3 = vld [vmem:[#allocation179_spill] sm:$0xff]  ;;  %7558 = vrot.lane.b32.xlu1 %v17973_v1, %s7666_s28 }
 0x3f2   :  { %v7241_v19 = vunpack.i.h.bf16 %v13297_v27  ;;  %v7240_v39 = vunpack.i.l.bf16 %v13297_v27  ;;  %v4313_v56 = vsel %vm4310_vm8, %v4248_v12, %v7236_v7  ;;  %v4340_v10 = vsel %vm4310_vm8, %v4275_v23, %v7235_v28  ;;  %v17975_v11 = vld [vmem:[#allocation211_spill] sm:$0xff]  ;;  %v7259_v34 = vpop.permute.xlu1 %7258  ;;  %v17978_v12 = vld [vmem:[#allocation142_spill] sm:$0xff] }
 0x3f3   :  { %4721 = vmatmul.mubr.f32.gmra.mxu0 %v4442_v17  ;;  %4856 = vmatmul.mubr.f32.gmra.mxu1 %v4469_v51  ;;  %v7246_v24 = vunpack.i.h.bf16 %v7244_v25  ;;  %v7245_v16 = vunpack.i.l.bf16 %v7244_v25  ;;  %v4378_v48 = vsel %vm4375_vm9, %v4313_v56, %v7046_v31  ;;  %v4405_v27 = vsel %vm4375_vm9, %v4340_v10, %v7045_v53  ;;  %v13581_v6 = vpop.permute.xlu0 %7298  ;;  %v17980_v10 = vld [vmem:[#allocation186_spill] sm:$0xff] }
 0x3f4   :  { %6111 = vmatprep.mubr.msk.f32.mxu0 %vm1072_vm3, %v17971_v22  ;;  %6138 = vmatprep.mubr.msk.f32.mxu1 %vm1072_vm3, %v17972_v3  ;;  %v7251_v49 = vunpack.i.h.bf16 %v13330_v2  ;;  %v7250_v38 = vunpack.i.l.bf16 %v13330_v2  ;;  %v4443_v63 = vsel %vm4440_vm10, %v4378_v48, %v7241_v19  ;;  %v4470_v58 = vsel %vm4440_vm10, %v4405_v27, %v7240_v39  ;;  %v17979_v22 = vld [vmem:[#allocation32_spill] sm:$0xff] }
 0x3f5   :  { %v7066_v52 = vunpack.i.h.bf16 %v17974_v13  ;;  %v7065_v0 = vunpack.i.l.bf16 %v17974_v13  ;;  %v4249_v59 = vsel %vm4245_vm7, %v13421_v54, %v7246_v24  ;;  %v4276_v60 = vsel %vm4245_vm7, %v13451_v26, %v7245_v16  ;;  %7568 = vrot.lane.b32.xlu0 %v17975_v11, %s7671_s17  ;;  %v17977_v26 = vld [vmem:[#allocation104_spill] sm:$0xff]  ;;  %7573 = vrot.lane.b32.xlu1 %v17975_v11, %s7672_s3 }
 0x3f6   :  { %v7256_v2 = vunpack.i.h.bf16 %v13371_v41  ;;  %v7255_v45 = vunpack.i.l.bf16 %v13371_v41  ;;  %v4314_v35 = vsel %vm4310_vm8, %v4249_v59, %v7251_v49  ;;  %v4341_v54 = vsel %vm4310_vm8, %v4276_v60, %v7250_v38  ;;  %v7274_v56 = vpop.permute.xlu1 %7273  ;;  %v17982_v60 = vld [vmem:[#allocation40_spill] sm:$0xff] }
 0x3f7   :  { %4726 = vmatmul.mubr.f32.gmra.mxu0 %v4443_v63  ;;  %4861 = vmatmul.mubr.f32.gmra.mxu1 %v4470_v58  ;;  %v7261_v8 = vunpack.i.h.bf16 %v7259_v34  ;;  %v7260_v7 = vunpack.i.l.bf16 %v7259_v34  ;;  %v4379_v28 = vsel %vm4375_vm9, %v4314_v35, %v7066_v52  ;;  %v4406_v41 = vsel %vm4375_vm9, %v4341_v54, %v7065_v0  ;;  %v13607_v38 = vpop.permute.xlu0 %7308 }
 0x3f8   :  { %6112 = vmatprep.mubr.msk.f32.mxu0 %vm1072_vm3, %v17976_v40  ;;  %6139 = vmatprep.mubr.msk.f32.mxu1 %vm1072_vm3, %v17977_v26  ;;  %v7266_v17 = vunpack.i.h.bf16 %v13408_v47  ;;  %v7265_v51 = vunpack.i.l.bf16 %v13408_v47  ;;  %v4444_v31 = vsel %vm4440_vm10, %v4379_v28, %v7256_v2  ;;  %v4471_v53 = vsel %vm4440_vm10, %v4406_v41, %v7255_v45  ;;  %v17983_v45 = vld [vmem:[#allocation187_spill] sm:$0xff] }
 0x3f9   :  { %v7086_v23 = vunpack.i.h.bf16 %v17978_v12  ;;  %v7085_v19 = vunpack.i.l.bf16 %v17978_v12  ;;  %v4250_v39 = vsel %vm4245_vm7, %v13253_v37, %v7261_v8  ;;  %v4277_v33 = vsel %vm4245_vm7, %v13456_v62, %v7260_v7  ;;  %3791 = vrot.lane.b32.xlu0 %v17979_v22, %s7666_s28  ;;  %v17981_v62 = vld [vmem:[#allocation203_spill] sm:$0xff]  ;;  %7578 = vrot.lane.b32.xlu1 %v17973_v1, %s7665_s22  ;;  %v17985_v7 = vld [vmem:[#allocation205_spill] sm:$0xff] }
 0x3fa   :  { %v7271_v47 = vunpack.i.h.bf16 %v13465_v57  ;;  %v7270_v25 = vunpack.i.l.bf16 %v13465_v57  ;;  %v4315_v24 = vsel %vm4310_vm8, %v4250_v39, %v7266_v17  ;;  %v4342_v37 = vsel %vm4310_vm8, %v4277_v33, %v7265_v51  ;;  %v7289_v2 = vpop.permute.xlu1 %7288  ;;  %v17986_v12 = vld [vmem:[#allocation157_spill] sm:$0xff] }
 0x3fb   :  { %4731 = vmatmul.mubr.f32.gmra.mxu0 %v4444_v31  ;;  %4866 = vmatmul.mubr.f32.gmra.mxu1 %v4471_v53  ;;  %v7276_v16 = vunpack.i.h.bf16 %v7274_v56  ;;  %v7275_v3 = vunpack.i.l.bf16 %v7274_v56  ;;  %v4380_v48 = vsel %vm4375_vm9, %v4315_v24, %v7086_v23  ;;  %v4407_v57 = vsel %vm4375_vm9, %v4342_v37, %v7085_v19  ;;  %v7314_v8 = vpop.permute.xlu0 %7313  ;;  %v17987_v19 = vld [vmem:[#allocation220_spill] sm:$0xff] }
 0x3fc   :  { %6113 = vmatprep.mubr.msk.f32.mxu0 %vm1072_vm3, %v17980_v10  ;;  %6140 = vmatprep.mubr.msk.f32.mxu1 %vm1072_vm3, %v17981_v62  ;;  %v7281_v27 = vunpack.i.h.bf16 %v13504_v30  ;;  %v7280_v49 = vunpack.i.l.bf16 %v13504_v30  ;;  %v4445_v63 = vsel %vm4440_vm10, %v4380_v48, %v7271_v47  ;;  %v4472_v58 = vsel %vm4440_vm10, %v4407_v57, %v7270_v25  ;;  %v17989_v24 = vld [vmem:[#allocation36_spill] sm:$0xff] }
 0x3fd   :  { %v7106_v13 = vunpack.i.h.bf16 %v13086_v44  ;;  %v7105_v52 = vunpack.i.l.bf16 %v13086_v44  ;;  %v4251_v0 = vsel %vm4245_vm7, %v13280_v9, %v7276_v16  ;;  %v4278_v59 = vsel %vm4245_vm7, %v13432_v43, %v7275_v3  ;;  %7583 = vrot.lane.b32.xlu0 %v17982_v60, %s7670_s4  ;;  %v17984_v43 = vld [vmem:[#allocation213_spill] sm:$0xff]  ;;  %3599 = vrot.lane.b32.xlu1 %v17985_v7, %s7670_s4  ;;  %v17992_v60 = vld [vmem:[#allocation180_spill] sm:$0xff] }
 0x3fe   :  { %v7286_v30 = vunpack.i.h.bf16 %v13529_v15  ;;  %v7285_v1 = vunpack.i.l.bf16 %v13529_v15  ;;  %v4316_v44 = vsel %vm4310_vm8, %v4251_v0, %v7281_v27  ;;  %v4343_v9 = vsel %vm4310_vm8, %v4278_v59, %v7280_v49  ;;  %v7304_v23 = vpop.permute.xlu1 %7303 }
 0x3ff   :  { %4736 = vmatmul.mubr.f32.gmra.mxu0 %v4445_v63  ;;  %4871 = vmatmul.mubr.f32.gmra.mxu1 %v4472_v58  ;;  %v7291_v11 = vunpack.i.h.bf16 %v7289_v2  ;;  %v7290_v34 = vunpack.i.l.bf16 %v7289_v2  ;;  %v4381_v40 = vsel %vm4375_vm9, %v4316_v44, %v7106_v13  ;;  %v4408_v15 = vsel %vm4375_vm9, %v4343_v9, %v7105_v52  ;;  %v7324_v10 = vpop.permute.xlu0 %7323  ;;  %v17990_v63 = vld [vmem:[#allocation221_spill] sm:$0xff]  ;;  %v17991_v52 = vld [vmem:[#allocation248_spill] sm:$0xff] }
 0x400   :  { %6114 = vmatprep.mubr.msk.f32.mxu0 %vm1072_vm3, %v17983_v45  ;;  %6141 = vmatprep.mubr.msk.f32.mxu1 %vm1072_vm3, %v17984_v43  ;;  %v7296_v35 = vunpack.i.h.bf16 %v13555_v46  ;;  %v7295_v54 = vunpack.i.l.bf16 %v13555_v46  ;;  %v4446_v26 = vsel %vm4440_vm10, %v4381_v40, %v7286_v30  ;;  %v4473_v28 = vsel %vm4440_vm10, %v4408_v15, %v7285_v1  ;;  %v17993_v15 = vld [vmem:[#allocation210_spill] sm:$0xff] }
 0x401   :  { %v7126_v41 = vunpack.i.h.bf16 %v13159_v36  ;;  %v7125_v17 = vunpack.i.l.bf16 %v13159_v36  ;;  %v4252_v51 = vsel %vm4245_vm7, %v13461_v4, %v7291_v11  ;;  %v4279_v31 = vsel %vm4245_vm7, %v13437_v50, %v7290_v34  ;;  %7588 = vrot.lane.b32.xlu0 %v17986_v12, %s7671_s17  ;;  %v17988_v50 = vld [vmem:[#allocation214_spill] sm:$0xff]  ;;  %3983 = vrot.lane.b32.xlu1 %v17989_v24, %s7671_s17  ;;  %v18002_v24 = vld [vmem:[#allocation35_spill] sm:$0xff] }
 0x402   :  { %v7301_v46 = vunpack.i.h.bf16 %v13581_v6  ;;  %v7300_v53 = vunpack.i.l.bf16 %v13581_v6  ;;  %v4317_v36 = vsel %vm4310_vm8, %v4252_v51, %v7296_v35  ;;  %v4344_v4 = vsel %vm4310_vm8, %v4279_v31, %v7295_v54  ;;  %v17994_v54 = vld [vmem:[#allocation193_spill] sm:$0xff] }
 0x403   :  { %4741 = vmatmul.mubr.f32.gmra.mxu0 %v4446_v26  ;;  %4876 = vmatmul.mubr.f32.gmra.mxu1 %v4473_v28  ;;  %v7306_v39 = vunpack.i.h.bf16 %v7304_v23  ;;  %v7305_v33 = vunpack.i.l.bf16 %v7304_v23  ;;  %v4382_v47 = vsel %vm4375_vm9, %v4317_v36, %v7126_v41  ;;  %v4409_v6 = vsel %vm4375_vm9, %v4344_v4, %v7125_v17  ;;  %v7329_v1 = vpop.permute.xlu0 %7328  ;;  %v17995_v28 = vld [vmem:[#allocation249_spill] sm:$0xff]  ;;  %v17999_v36 = vld [vmem:[#allocation183_spill] sm:$0xff] }
 0x404   :  { %6115 = vmatprep.mubr.msk.f32.mxu0 %vm1072_vm3, %v17987_v19  ;;  %6142 = vmatprep.mubr.msk.f32.mxu1 %vm1072_vm3, %v17988_v50  ;;  %v7311_v25 = vunpack.i.h.bf16 %v13607_v38  ;;  %v7310_v56 = vunpack.i.l.bf16 %v13607_v38  ;;  %v4447_v37 = vsel %vm4440_vm10, %v4382_v47, %v7301_v46  ;;  %v4474_v16 = vsel %vm4440_vm10, %v4409_v6, %v7300_v53  ;;  %v7319_v38 = vpop.permute.xlu1 %7318  ;;  %v17996_v17 = vld [vmem:[#allocation105_spill] sm:$0xff] }
 0x405   :  { %v7146_v3 = vunpack.i.h.bf16 %v13228_v21  ;;  %v7145_v62 = vunpack.i.l.bf16 %v13228_v21  ;;  %v4253_v48 = vsel %vm4245_vm7, %v13473_v61, %v7306_v39  ;;  %v4280_v57 = vsel %vm4245_vm7, %v13481_v32, %v7305_v33  ;;  %7593 = vrot.lane.b32.xlu0 %v17986_v12, %s7672_s3  ;;  %3793 = vrot.lane.b32.xlu1 %v17992_v60, %s7666_s28 }
 0x406   :  { %v7316_v27 = vunpack.i.h.bf16 %v7314_v8  ;;  %v7315_v49 = vunpack.i.l.bf16 %v7314_v8  ;;  %v4318_v58 = vsel %vm4310_vm8, %v4253_v48, %v7311_v25  ;;  %v4345_v21 = vsel %vm4310_vm8, %v4280_v57, %v7310_v56  ;;  %v18001_v56 = vld [vmem:[#allocation217_spill] sm:$0xff] }
 0x407   :  { %4746 = vmatmul.mubr.f32.gmra.mxu0 %v4447_v37  ;;  %4881 = vmatmul.mubr.f32.gmra.mxu1 %v4474_v16  ;;  %v7321_v13 = vunpack.i.h.bf16 %v7319_v38  ;;  %v7320_v61 = vunpack.i.l.bf16 %v7319_v38  ;;  %v4383_v32 = vsel %vm4375_vm9, %v4318_v58, %v7146_v3  ;;  %v4410_v0 = vsel %vm4375_vm9, %v4345_v21, %v7145_v62  ;;  %v7344_v12 = vpop.permute.xlu0 %7343  ;;  %v18004_v62 = vld [vmem:[#allocation130_spill] sm:$0xff]  ;;  %v18006_v38 = vld [vmem:[#allocation131_spill] sm:$0xff] }
 0x408   :  { %6116 = vmatprep.mubr.msk.f32.mxu0 %vm1072_vm3, %v17990_v63  ;;  %6143 = vmatprep.mubr.msk.f32.mxu1 %vm1072_vm3, %v17991_v52  ;;  %v7326_v59 = vunpack.i.h.bf16 %v7324_v10  ;;  %v7325_v30 = vunpack.i.l.bf16 %v7324_v10  ;;  %v4448_v2 = vsel %vm4440_vm10, %v4383_v32, %v7316_v27  ;;  %v4475_v45 = vsel %vm4440_vm10, %v4410_v0, %v7315_v49  ;;  %v7334_v35 = vpop.permute.xlu1 %7333 }
 0x409   :  { %v7166_v44 = vunpack.i.h.bf16 %v13310_v29  ;;  %v7165_v9 = vunpack.i.l.bf16 %v13310_v29  ;;  %v4254_v11 = vsel %vm4245_vm7, %v13339_v20, %v7321_v13  ;;  %v4281_v34 = vsel %vm4245_vm7, %v13486_v5, %v7320_v61  ;;  %3601 = vrot.lane.b32.xlu0 %v17993_v15, %s7670_s4  ;;  %v18007_v61 = vld [vmem:[#allocation265_spill] sm:$0xff] }
 0x40a   :  { %v7331_v43 = vunpack.i.h.bf16 %v7329_v1  ;;  %v7330_v40 = vunpack.i.l.bf16 %v7329_v1  ;;  %v4319_v8 = vsel %vm4310_vm8, %v4254_v11, %v7326_v59  ;;  %v4346_v29 = vsel %vm4310_vm8, %v4281_v34, %v7325_v30 }
 0x40b   :  { %4751 = vmatmul.mubr.f32.gmra.mxu0 %v4448_v2  ;;  %4886 = vmatmul.mubr.f32.gmra.mxu1 %v4475_v45  ;;  %v7336_v26 = vunpack.i.h.bf16 %v7334_v35  ;;  %v7335_v20 = vunpack.i.l.bf16 %v7334_v35  ;;  %v4384_v5 = vsel %vm4375_vm9, %v4319_v8, %v7166_v44  ;;  %v4411_v41 = vsel %vm4375_vm9, %v4346_v29, %v7165_v9  ;;  %v7349_v57 = vpop.permute.xlu0 %7348  ;;  %v18008_v44 = vld [vmem:[#allocation107_spill] sm:$0xff]  ;;  %v18009_v29 = vld [vmem:[#allocation218_spill] sm:$0xff] }
 0x40c   :  { %6117 = vmatprep.mubr.msk.f32.mxu0 %vm1072_vm3, %v17994_v54  ;;  %6144 = vmatprep.mubr.msk.f32.mxu1 %vm1072_vm3, %v17995_v28  ;;  %v17997_v51 = vunpack.i.l.bf16 %v17996_v17  ;;  %v17998_v46 = vunpack.i.h.bf16 %v17996_v17  ;;  %v4449_v23 = vsel %vm4440_vm10, %v4384_v5, %v7331_v43  ;;  %v4476_v19 = vsel %vm4440_vm10, %v4411_v41, %v7330_v40  ;;  %v13714_v25 = vpop.permute.xlu1 %7338  ;;  %v18010_v17 = vld [vmem:[#allocation129_spill] sm:$0xff] }
 0x40d   :  { %v6955_v4 = vunpack.i.l.bf16 %v17999_v36  ;;  %v7346_v33 = vunpack.i.h.bf16 %v7344_v12  ;;  %v7345_v50 = vunpack.i.l.bf16 %v7344_v12  ;;  %v7185_v47 = vunpack.i.l.bf16 %v13385_v18 }
 0x40e   :  { %v4217_v31 = vsel %vm4180_vm6, %v13345_v14, %v17997_v51  ;;  %v4218_v53 = vsel %vm4180_vm6, %v13353_v42, %v17998_v46  ;;  %v6956_v14 = vunpack.i.h.bf16 %v17999_v36  ;;  %v18000_v42 = vld [vmem:[#allocation57_spill] sm:$0xff]  ;;  %v6591_v37 = vunpack.i.h.bf16 %v18002_v24 }
 0x40f   :  { %v4282_v39 = vsel %vm4245_vm7, %v4217_v31, %v7335_v20  ;;  %4756 = vmatmul.mubr.f32.gmra.mxu0 %v4449_v23  ;;  %4891 = vmatmul.mubr.f32.gmra.mxu1 %v4476_v19  ;;  %v4283_v6 = vsel %vm4245_vm7, %v4218_v53, %v7336_v26  ;;  %v6590_v16 = vunpack.i.l.bf16 %v18002_v24  ;;  %v18003_v3 = vunpack.i.l.bf16 %v17888_v55  ;;  %v7364_v43 = vpop.permute.xlu0 %7363  ;;  %v18011_v31 = vld [vmem:[#allocation128_spill] sm:$0xff] }
 0x410   :  { %3985 = vrot.lane.b32.xlu0 %v18000_v42, %s7671_s17  ;;  %6145 = vmatprep.mubr.msk.f32.mxu1 %vm1072_vm3, %v18001_v56  ;;  %v4347_v10 = vsel %vm4310_vm8, %v4282_v39, %v7345_v50  ;;  %v18005_v49 = vunpack.i.h.bf16 %v17888_v55  ;;  %v7350_v21 = vunpack.i.l.bf16 %v7349_v57  ;;  %v4348_v13 = vsel %vm4310_vm8, %v4283_v6, %v7346_v33  ;;  %v7354_v30 = vpop.permute.xlu1 %7353  ;;  %v18013_v33 = vld [vmem:[#allocation146_spill] sm:$0xff] }
 0x411   :  { %v4089_v48 = vsel %vm1072_vm3, %v18004_v62, %v18003_v3  ;;  %v4412_v27 = vsel %vm4375_vm9, %v4347_v10, %v7185_v47  ;;  %v6801_v52 = vunpack.i.h.bf16 %v18007_v61  ;;  %v6800_v32 = vunpack.i.l.bf16 %v18007_v61  ;;  %v18014_v47 = vld [vmem:[#allocation174_spill] sm:$0xff] }
 0x412   :  { %v4090_v63 = vsel %vm1072_vm3, %v18006_v38, %v18005_v49  ;;  %v4154_v58 = vsel %vm4115_vm5, %v4089_v48, %v6955_v4  ;;  %v7186_v59 = vunpack.i.h.bf16 %v13385_v18  ;;  %v7351_v1 = vunpack.i.h.bf16 %v7349_v57  ;;  %v18012_v4 = vld [vmem:[#allocation152_spill] sm:$0xff]  ;;  %v18015_v49 = vld [vmem:[#allocation181_spill] sm:$0xff] }
 0x413   :  { %v4155_v0 = vsel %vm4115_vm5, %v4090_v63, %v6956_v14  ;;  %v7356_v2 = vunpack.i.h.bf16 %v7354_v30  ;;  %v7355_v55 = vunpack.i.l.bf16 %v7354_v30  ;;  %v4477_v45 = vsel %vm4440_vm10, %v4412_v27, %v7350_v21  ;;  %v7369_v53 = vpop.permute.xlu0 %7368  ;;  %v18016_v21 = vld [vmem:[#allocation161_spill] sm:$0xff]  ;;  %v18017_v30 = vld [vmem:[#allocation208_spill] sm:$0xff] }
 0x414   :  { %v6961_v9 = vunpack.i.h.bf16 %v18008_v44  ;;  %v6960_v11 = vunpack.i.l.bf16 %v18008_v44  ;;  %v4219_v34 = vsel %vm4180_vm6, %v4154_v58, %v6590_v16  ;;  %4896 = vmatmul.mubr.f32.gmra.mxu1 %v4477_v45  ;;  %v4413_v40 = vsel %vm4375_vm9, %v4348_v13, %v7186_v59  ;;  %v13747_v28 = vpop.permute.xlu1 %7358 }
 0x415   :  { %v4220_v35 = vsel %vm4180_vm6, %v4155_v0, %v6591_v37  ;;  %v4284_v18 = vsel %vm4245_vm7, %v4219_v34, %v7355_v55  ;;  %v7366_v54 = vunpack.i.h.bf16 %v7364_v43  ;;  %v7365_v8 = vunpack.i.l.bf16 %v7364_v43  ;;  %6146 = vmatprep.mubr.msk.f32.mxu1 %vm1072_vm3, %v18009_v29  ;;  %v18018_v55 = vld [vmem:[#allocation43_spill] sm:$0xff] }
 0x416   :  { %v7340_v26 = vunpack.i.l.bf16 %v13714_v25  ;;  %v4285_v20 = vsel %vm4245_vm7, %v4220_v35, %v7356_v2  ;;  %v4478_v5 = vsel %vm4440_vm10, %v4413_v40, %v7351_v1  ;;  %v4092_v51 = vsel %vm1072_vm3, %v18010_v17, %v6801_v52  ;;  %v18020_v35 = vld [vmem:[#allocation223_spill] sm:$0xff] }
 0x417   :  { %v4349_v41 = vsel %vm4310_vm8, %v4284_v18, %v7365_v8  ;;  %v4091_v46 = vsel %vm1072_vm3, %v18011_v31, %v6800_v32  ;;  %v4157_v19 = vsel %vm4115_vm5, %v4092_v51, %v6961_v9  ;;  %v7370_v36 = vunpack.i.l.bf16 %v7369_v53  ;;  %v7384_v57 = vpop.permute.xlu0 %7383 }
 0x418   :  { %4901 = vmatmul.mubr.f32.gmra.mxu1 %v4478_v5  ;;  %v4414_v12 = vsel %vm4375_vm9, %v4349_v41, %v7340_v26  ;;  %v4156_v23 = vsel %vm4115_vm5, %v4091_v46, %v6960_v11  ;;  %v4350_v39 = vsel %vm4310_vm8, %v4285_v20, %v7366_v54  ;;  %v6596_v50 = vunpack.i.h.bf16 %v18013_v33  ;;  %v7374_v56 = vpop.permute.xlu1 %7373  ;;  %v18019_v11 = vld [vmem:[#allocation42_spill] sm:$0xff] }
 0x419   :  { %6147 = vmatprep.mubr.msk.f32.mxu1 %vm1072_vm3, %v18012_v4  ;;  %v6595_v14 = vunpack.i.l.bf16 %v18013_v33  ;;  %v6806_v6 = vunpack.i.h.bf16 %v18014_v47  ;;  %v7341_v42 = vunpack.i.h.bf16 %v13714_v25  ;;  %v7371_v10 = vunpack.i.h.bf16 %v7369_v53  ;;  %v18021_v54 = vld [vmem:[#allocation34_spill] sm:$0xff] }
 0x41a   :  { %v7376_v24 = vunpack.i.h.bf16 %v7374_v56  ;;  %v7375_v37 = vunpack.i.l.bf16 %v7374_v56  ;;  %v4479_v16 = vsel %vm4440_vm10, %v4414_v12, %v7370_v36  ;;  %v6805_v3 = vunpack.i.l.bf16 %v18014_v47  ;;  %v18022_v46 = vld [vmem:[#allocation94_spill] sm:$0xff] }
 0x41b   :  { %v4221_v62 = vsel %vm4180_vm6, %v4156_v23, %v6595_v14  ;;  %v4222_v48 = vsel %vm4180_vm6, %v4157_v19, %v6596_v50  ;;  %v4415_v27 = vsel %vm4375_vm9, %v4350_v39, %v7341_v42  ;;  %v6965_v38 = vunpack.i.l.bf16 %v18015_v49  ;;  %v7389_v44 = vpop.permute.xlu0 %7388  ;;  %v18023_v50 = vld [vmem:[#allocation224_spill] sm:$0xff] }
 0x41c   :  { %4906 = vmatmul.mubr.f32.gmra.mxu1 %v4479_v16  ;;  %v4286_v25 = vsel %vm4245_vm7, %v4221_v62, %v7375_v37  ;;  %v7386_v63 = vunpack.i.h.bf16 %v7384_v57  ;;  %v7385_v58 = vunpack.i.l.bf16 %v7384_v57  ;;  %v6966_v13 = vunpack.i.h.bf16 %v18015_v49  ;;  %v13777_v32 = vpop.permute.xlu1 %7378  ;;  %v18025_v37 = vld [vmem:[#allocation44_spill] sm:$0xff]  ;;  %v18026_v49 = vld [vmem:[#allocation250_spill] sm:$0xff] }
 0x41d   :  { %6148 = vmatprep.mubr.msk.f32.mxu1 %vm1072_vm3, %v18016_v21  ;;  %v7360_v61 = vunpack.i.l.bf16 %v13747_v28  ;;  %v4287_v52 = vsel %vm4245_vm7, %v4222_v48, %v7376_v24  ;;  %v4480_v0 = vsel %vm4440_vm10, %v4415_v27, %v7371_v10  ;;  %v6601_v1 = vunpack.i.h.bf16 %v18017_v30  ;;  %v18024_v10 = vld [vmem:[#allocation47_spill] sm:$0xff]  ;;  %v18028_v21 = vld [vmem:[#allocation41_spill] sm:$0xff] }
 0x41e   :  { %v4351_v59 = vsel %vm4310_vm8, %v4286_v25, %v7385_v58  ;;  %v6600_v2 = vunpack.i.l.bf16 %v18017_v30  ;;  %v4093_v45 = vsel %vm1072_vm3, %v18018_v55, %v6805_v3  ;;  %v4094_v34 = vsel %vm1072_vm3, %v18019_v11, %v6806_v6  ;;  %v18027_v25 = vld [vmem:[#allocation158_spill] sm:$0xff]  ;;  %v18029_v11 = vld [vmem:[#allocation177_spill] sm:$0xff] }
 0x41f   :  { %v4416_v9 = vsel %vm4375_vm9, %v4351_v59, %v7360_v61  ;;  %v4158_v43 = vsel %vm4115_vm5, %v4093_v45, %v6965_v38  ;;  %v7390_v40 = vunpack.i.l.bf16 %v7389_v44  ;;  %v4352_v18 = vsel %vm4310_vm8, %v4287_v52, %v7386_v63  ;;  %v7404_v19 = vpop.permute.xlu0 %7403 }
 0x420   :  { %4911 = vmatmul.mubr.f32.gmra.mxu1 %v4480_v0  ;;  %v6811_v8 = vunpack.i.h.bf16 %v18021_v54  ;;  %v6810_v29 = vunpack.i.l.bf16 %v18021_v54  ;;  %v4159_v26 = vsel %vm4115_vm5, %v4094_v34, %v6966_v13  ;;  %v7361_v20 = vunpack.i.h.bf16 %v13747_v28  ;;  %v7394_v5 = vpop.permute.xlu1 %7393 }
 0x421   :  { %6149 = vmatprep.mubr.msk.f32.mxu1 %vm1072_vm3, %v18020_v35  ;;  %v7391_v41 = vunpack.i.h.bf16 %v7389_v44  ;;  %v7396_v17 = vunpack.i.h.bf16 %v7394_v5  ;;  %v7395_v51 = vunpack.i.l.bf16 %v7394_v5  ;;  %v4481_v31 = vsel %vm4440_vm10, %v4416_v9, %v7390_v40  ;;  %v18030_v35 = vld [vmem:[#allocation251_spill] sm:$0xff] }
 0x422   :  { %v6971_v53 = vunpack.i.h.bf16 %v18022_v46  ;;  %v6970_v12 = vunpack.i.l.bf16 %v18022_v46  ;;  %v4223_v23 = vsel %vm4180_vm6, %v4158_v43, %v6600_v2  ;;  %v4417_v36 = vsel %vm4375_vm9, %v4352_v18, %v7361_v20  ;;  %v18031_v5 = vld [vmem:[#allocation87_spill] sm:$0xff] }
 0x423   :  { %v4224_v4 = vsel %vm4180_vm6, %v4159_v26, %v6601_v1  ;;  %v4288_v28 = vsel %vm4245_vm7, %v4223_v23, %v7395_v51  ;;  %v7406_v39 = vunpack.i.h.bf16 %v7404_v19  ;;  %v7405_v33 = vunpack.i.l.bf16 %v7404_v19  ;;  %v7409_v3 = vpop.permute.xlu0 %7408  ;;  %v18032_v51 = vld [vmem:[#allocation49_spill] sm:$0xff] }
 0x424   :  { %4916 = vmatmul.mubr.f32.gmra.mxu1 %v4481_v31  ;;  %v7380_v14 = vunpack.i.l.bf16 %v13777_v32  ;;  %v4289_v47 = vsel %vm4245_vm7, %v4224_v4, %v7396_v17  ;;  %v13807_v6 = vpop.permute.xlu1 %7398  ;;  %v4482_v42 = vsel %vm4440_vm10, %v4417_v36, %v7391_v41  ;;  %v4096_v24 = vsel %vm1072_vm3, %v18024_v10, %v6811_v8  ;;  %v18034_v4 = vld [vmem:[#allocation228_spill] sm:$0xff] }
 0x425   :  { %6150 = vmatprep.mubr.msk.f32.mxu1 %vm1072_vm3, %v18023_v50  ;;  %v4353_v56 = vsel %vm4310_vm8, %v4288_v28, %v7405_v33  ;;  %v4095_v16 = vsel %vm1072_vm3, %v18025_v37, %v6810_v29  ;;  %v4161_v57 = vsel %vm4115_vm5, %v4096_v24, %v6971_v53  ;;  %v7410_v27 = vunpack.i.l.bf16 %v7409_v3 }
 0x426   :  { %v4418_v62 = vsel %vm4375_vm9, %v4353_v56, %v7380_v14  ;;  %v4160_v48 = vsel %vm4115_vm5, %v4095_v16, %v6970_v12  ;;  %v4354_v38 = vsel %vm4310_vm8, %v4289_v47, %v7406_v39  ;;  %v6606_v63 = vunpack.i.h.bf16 %v18027_v25  ;;  %v18033_v12 = vld [vmem:[#allocation48_spill] sm:$0xff]  ;;  %v18036_v16 = vld [vmem:[#allocation103_spill] sm:$0xff] }
 0x427   :  { %v6605_v58 = vunpack.i.l.bf16 %v18027_v25  ;;  %v6816_v13 = vunpack.i.h.bf16 %v18028_v21  ;;  %v7381_v61 = vunpack.i.h.bf16 %v13777_v32  ;;  %v7411_v0 = vunpack.i.h.bf16 %v7409_v3  ;;  %v7424_v44 = vpop.permute.xlu0 %7423  ;;  %v18035_v39 = vld [vmem:[#allocation160_spill] sm:$0xff] }
 0x428   :  { %4921 = vmatmul.mubr.f32.gmra.mxu1 %v4482_v42  ;;  %v7414_v52 = vpop.permute.xlu1 %7413  ;;  %v4483_v1 = vsel %vm4440_vm10, %v4418_v62, %v7410_v27  ;;  %v6815_v2 = vunpack.i.l.bf16 %v18028_v21  ;;  %v4226_v45 = vsel %vm4180_vm6, %v4161_v57, %v6606_v63  ;;  %v6975_v34 = vunpack.i.l.bf16 %v18029_v11  ;;  %v18037_v63 = vld [vmem:[#allocation229_spill] sm:$0xff] }
 0x429   :  { %6151 = vmatprep.mubr.msk.f32.mxu1 %vm1072_vm3, %v18026_v49  ;;  %v7416_v59 = vunpack.i.h.bf16 %v7414_v52  ;;  %v7415_v30 = vunpack.i.l.bf16 %v7414_v52  ;;  %v4225_v55 = vsel %vm4180_vm6, %v4160_v48, %v6605_v58  ;;  %v4419_v9 = vsel %vm4375_vm9, %v4354_v38, %v7381_v61 }
 0x42a   :  { %v7426_v43 = vunpack.i.h.bf16 %v7424_v44  ;;  %v7425_v40 = vunpack.i.l.bf16 %v7424_v44  ;;  %v6976_v18 = vunpack.i.h.bf16 %v18029_v11  ;;  %v7400_v54 = vunpack.i.l.bf16 %v13807_v6  ;;  %v18040_v11 = vld [vmem:[#allocation190_spill] sm:$0xff] }
 0x42b   :  { %v4290_v32 = vsel %vm4245_vm7, %v4225_v55, %v7415_v30  ;;  %v4291_v8 = vsel %vm4245_vm7, %v4226_v45, %v7416_v59  ;;  %v4484_v26 = vsel %vm4440_vm10, %v4419_v9, %v7411_v0  ;;  %v6611_v41 = vunpack.i.h.bf16 %v18031_v5  ;;  %v7429_v46 = vpop.permute.xlu0 %7428  ;;  %v18038_v0 = vld [vmem:[#allocation53_spill] sm:$0xff]  ;;  %v18039_v30 = vld [vmem:[#allocation50_spill] sm:$0xff] }
 0x42c   :  { %4926 = vmatmul.mubr.f32.gmra.mxu1 %v4483_v1  ;;  %v13837_v29 = vpop.permute.xlu1 %7418  ;;  %v4355_v20 = vsel %vm4310_vm8, %v4290_v32, %v7425_v40  ;;  %v6610_v17 = vunpack.i.l.bf16 %v18031_v5  ;;  %v4097_v31 = vsel %vm1072_vm3, %v18032_v51, %v6815_v2  ;;  %v4098_v23 = vsel %vm1072_vm3, %v18033_v12, %v6816_v13  ;;  %v18041_v32 = vld [vmem:[#allocation92_spill] sm:$0xff]  ;;  %v18043_v12 = vld [vmem:[#allocation150_spill] sm:$0xff] }
 0x42d   :  { %6152 = vmatprep.mubr.msk.f32.mxu1 %vm1072_vm3, %v18030_v35  ;;  %v4420_v53 = vsel %vm4375_vm9, %v4355_v20, %v7400_v54  ;;  %v4162_v19 = vsel %vm4115_vm5, %v4097_v31, %v6975_v34  ;;  %v7430_v36 = vunpack.i.l.bf16 %v7429_v46  ;;  %v4356_v28 = vsel %vm4310_vm8, %v4291_v8, %v7426_v43  ;;  %v18042_v35 = vld [vmem:[#allocation45_spill] sm:$0xff] }
 0x42e   :  { %v6821_v33 = vunpack.i.h.bf16 %v18035_v39  ;;  %v6820_v50 = vunpack.i.l.bf16 %v18035_v39  ;;  %v4163_v14 = vsel %vm4115_vm5, %v4098_v23, %v6976_v18  ;;  %v7401_v47 = vunpack.i.h.bf16 %v13807_v6 }
 0x42f   :  { %v7431_v56 = vunpack.i.h.bf16 %v7429_v46  ;;  %v4485_v37 = vsel %vm4440_vm10, %v4420_v53, %v7430_v36  ;;  %v6981_v3 = vunpack.i.h.bf16 %v18036_v16  ;;  %v6980_v62 = vunpack.i.l.bf16 %v18036_v16  ;;  %v7444_v57 = vpop.permute.xlu0 %7443 }
 0x430   :  { %4931 = vmatmul.mubr.f32.gmra.mxu1 %v4484_v26  ;;  %v7434_v42 = vpop.permute.xlu1 %7433  ;;  %v4227_v48 = vsel %vm4180_vm6, %v4162_v19, %v6610_v17  ;;  %v4421_v27 = vsel %vm4375_vm9, %v4356_v28, %v7401_v47  ;;  %v4228_v49 = vsel %vm4180_vm6, %v4163_v14, %v6611_v41  ;;  %v7446_v38 = vunpack.i.h.bf16 %v7444_v57 }
 0x431   :  { %6153 = vmatprep.mubr.msk.f32.mxu1 %vm1072_vm3, %v18034_v4  ;;  %v7436_v10 = vunpack.i.h.bf16 %v7434_v42  ;;  %v7435_v24 = vunpack.i.l.bf16 %v7434_v42  ;;  %v7445_v25 = vunpack.i.l.bf16 %v7444_v57  ;;  %v7420_v58 = vunpack.i.l.bf16 %v13837_v29  ;;  %v18044_v4 = vld [vmem:[#allocation252_spill] sm:$0xff]  ;;  %v18045_v42 = vld [vmem:[#allocation97_spill] sm:$0xff] }
 0x432   :  { %v4486_v61 = vsel %vm4440_vm10, %v4421_v27, %v7431_v56  ;;  %v4100_v59 = vsel %vm1072_vm3, %v18038_v0, %v6821_v33  ;;  %v4099_v1 = vsel %vm1072_vm3, %v18039_v30, %v6820_v50  ;;  %v6616_v43 = vunpack.i.h.bf16 %v18041_v32 }
 0x433   :  { %v4292_v6 = vsel %vm4245_vm7, %v4227_v48, %v7435_v24  ;;  %v4293_v21 = vsel %vm4245_vm7, %v4228_v49, %v7436_v10  ;;  %v7449_v2 = vpop.permute.xlu0 %7448  ;;  %v4164_v45 = vsel %vm4115_vm5, %v4099_v1, %v6980_v62  ;;  %v4165_v44 = vsel %vm4115_vm5, %v4100_v59, %v6981_v3  ;;  %v18046_v24 = vld [vmem:[#allocation55_spill] sm:$0xff]  ;;  %v18047_v62 = vld [vmem:[#allocation54_spill] sm:$0xff]  ;;  %v18048_v49 = vld [vmem:[#allocation233_spill] sm:$0xff] }
 0x434   :  { %4936 = vmatmul.mubr.f32.gmra.mxu1 %v4485_v37  ;;  %v13867_v13 = vpop.permute.xlu1 %7438  ;;  %v4357_v52 = vsel %vm4310_vm8, %v4292_v6, %v7445_v25  ;;  %v7450_v9 = vunpack.i.l.bf16 %v7449_v2  ;;  %v4358_v34 = vsel %vm4310_vm8, %v4293_v21, %v7446_v38  ;;  %v6615_v40 = vunpack.i.l.bf16 %v18041_v32  ;;  %v18049_v38 = vld [vmem:[#allocation37_spill] sm:$0xff]  ;;  %v18050_v1 = vld [vmem:[#allocation267_spill] sm:$0xff] }
 0x435   :  { %6154 = vmatprep.mubr.msk.f32.mxu1 %vm1072_vm3, %v18037_v63  ;;  %v4422_v55 = vsel %vm4375_vm9, %v4357_v52, %v7420_v58  ;;  %v6826_v18 = vunpack.i.h.bf16 %v18042_v35  ;;  %v7421_v54 = vunpack.i.h.bf16 %v13837_v29  ;;  %v7451_v26 = vunpack.i.h.bf16 %v7449_v2 }
 0x436   :  { %v4487_v41 = vsel %vm4440_vm10, %v4422_v55, %v7450_v9  ;;  %v6825_v17 = vunpack.i.l.bf16 %v18042_v35  ;;  %v4229_v51 = vsel %vm4180_vm6, %v4164_v45, %v6615_v40  ;;  %v4230_v31 = vsel %vm4180_vm6, %v4165_v44, %v6616_v43  ;;  %v18051_v43 = vld [vmem:[#allocation234_spill] sm:$0xff] }
 0x437   :  { %v7464_v46 = vpop.permute.xlu0 %7463  ;;  %v4423_v53 = vsel %vm4375_vm9, %v4358_v34, %v7421_v54  ;;  %v6985_v23 = vunpack.i.l.bf16 %v18043_v12  ;;  %v6986_v28 = vunpack.i.h.bf16 %v18043_v12  ;;  %v7440_v39 = vunpack.i.l.bf16 %v13867_v13  ;;  %v18054_v12 = vld [vmem:[#allocation255_spill] sm:$0xff] }
 0x438   :  { %4941 = vmatmul.mubr.f32.gmra.mxu1 %v4486_v61  ;;  %v7454_v8 = vpop.permute.xlu1 %7453  ;;  %v7466_v19 = vunpack.i.h.bf16 %v7464_v46  ;;  %v7465_v36 = vunpack.i.l.bf16 %v7464_v46  ;;  %v4488_v14 = vsel %vm4440_vm10, %v4423_v53, %v7451_v26  ;;  %v6621_v56 = vunpack.i.h.bf16 %v18045_v42  ;;  %v18052_v26 = vld [vmem:[#allocation136_spill] sm:$0xff] }
 0x439   :  { %6155 = vmatprep.mubr.msk.f32.mxu1 %vm1072_vm3, %v18040_v11  ;;  %v7456_v20 = vunpack.i.h.bf16 %v7454_v8  ;;  %v7455_v5 = vunpack.i.l.bf16 %v7454_v8  ;;  %v6620_v10 = vunpack.i.l.bf16 %v18045_v42  ;;  %v4101_v37 = vsel %vm1072_vm3, %v18046_v24, %v6825_v17 }
 0x43a   :  { %v4102_v48 = vsel %vm1072_vm3, %v18047_v62, %v6826_v18  ;;  %v4166_v57 = vsel %vm4115_vm5, %v4101_v37, %v6985_v23  ;;  %v6831_v25 = vunpack.i.h.bf16 %v18049_v38  ;;  %v6830_v63 = vunpack.i.l.bf16 %v18049_v38  ;;  %v18057_v62 = vld [vmem:[#allocation159_spill] sm:$0xff] }
 0x43b   :  { %v4294_v29 = vsel %vm4245_vm7, %v4229_v51, %v7455_v5  ;;  %v4295_v33 = vsel %vm4245_vm7, %v4230_v31, %v7456_v20  ;;  %v7469_v16 = vpop.permute.xlu0 %7468  ;;  %v4167_v58 = vsel %vm4115_vm5, %v4102_v48, %v6986_v28  ;;  %v7441_v21 = vunpack.i.h.bf16 %v13867_v13  ;;  %v18053_v5 = vld [vmem:[#allocation135_spill] sm:$0xff] }
 0x43c   :  { %4946 = vmatmul.mubr.f32.gmra.mxu1 %v4487_v41  ;;  %v13897_v50 = vpop.permute.xlu1 %7458  ;;  %v4359_v47 = vsel %vm4310_vm8, %v4294_v29, %v7465_v36  ;;  %v7470_v27 = vunpack.i.l.bf16 %v7469_v16  ;;  %v4360_v6 = vsel %vm4310_vm8, %v4295_v33, %v7466_v19  ;;  %v7471_v52 = vunpack.i.h.bf16 %v7469_v16  ;;  %v18055_v29 = vld [vmem:[#allocation222_spill] sm:$0xff] }
 0x43d   :  { %6156 = vmatprep.mubr.msk.f32.mxu1 %vm1072_vm3, %v18044_v4  ;;  %v4424_v3 = vsel %vm4375_vm9, %v4359_v47, %v7440_v39  ;;  %v6991_v2 = vunpack.i.h.bf16 %v18050_v1  ;;  %v6990_v55 = vunpack.i.l.bf16 %v18050_v1  ;;  %v4231_v45 = vsel %vm4180_vm6, %v4166_v57, %v6620_v10  ;;  %v18056_v4 = vld [vmem:[#allocation95_spill] sm:$0xff] }
 0x43e   :  { %v4489_v30 = vsel %vm4440_vm10, %v4424_v3, %v7470_v27  ;;  %v4425_v9 = vsel %vm4375_vm9, %v4360_v6, %v7441_v21  ;;  %v4232_v11 = vsel %vm4180_vm6, %v4167_v58, %v6621_v56  ;;  %v7460_v40 = vunpack.i.l.bf16 %v13897_v50 }
 0x43f   :  { %v7484_v44 = vpop.permute.xlu0 %7483  ;;  %v4490_v54 = vsel %vm4440_vm10, %v4425_v9, %v7471_v52  ;;  %v4104_v20 = vsel %vm1072_vm3, %v18052_v26, %v6831_v25  ;;  %v4103_v41 = vsel %vm1072_vm3, %v18053_v5, %v6830_v63  ;;  %v6626_v19 = vunpack.i.h.bf16 %v18055_v29 }
 0x440   :  { %4951 = vmatmul.mubr.f32.gmra.mxu1 %v4488_v14  ;;  %v7474_v61 = vpop.permute.xlu1 %7473  ;;  %v7486_v34 = vunpack.i.h.bf16 %v7484_v44  ;;  %v7485_v32 = vunpack.i.l.bf16 %v7484_v44  ;;  %v4168_v31 = vsel %vm4115_vm5, %v4103_v41, %v6990_v55  ;;  %v4169_v46 = vsel %vm4115_vm5, %v4104_v20, %v6991_v2  ;;  %v18061_v55 = vld [vmem:[#allocation58_spill] sm:$0xff]  ;;  %v18064_v41 = vld [vmem:[#allocation149_spill] sm:$0xff] }
 0x441   :  { %6157 = vmatprep.mubr.msk.f32.mxu1 %vm1072_vm3, %v18048_v49  ;;  %v7476_v0 = vunpack.i.h.bf16 %v7474_v61  ;;  %v7475_v59 = vunpack.i.l.bf16 %v7474_v61  ;;  %v6625_v36 = vunpack.i.l.bf16 %v18055_v29  ;;  %v6836_v28 = vunpack.i.h.bf16 %v18056_v4  ;;  %v18058_v49 = vld [vmem:[#allocation256_spill] sm:$0xff]  ;;  %v18059_v61 = vld [vmem:[#allocation219_spill] sm:$0xff] }
 0x442   :  { %v7461_v39 = vunpack.i.h.bf16 %v13897_v50  ;;  %v6835_v10 = vunpack.i.l.bf16 %v18056_v4  ;;  %v4234_v37 = vsel %vm4180_vm6, %v4169_v46, %v6626_v19  ;;  %v6995_v48 = vunpack.i.l.bf16 %v18057_v62  ;;  %v18065_v19 = vld [vmem:[#allocation239_spill] sm:$0xff] }
 0x443   :  { %v4296_v13 = vsel %vm4245_vm7, %v4231_v45, %v7475_v59  ;;  %v4297_v35 = vsel %vm4245_vm7, %v4232_v11, %v7476_v0  ;;  %v7489_v17 = vpop.permute.xlu0 %7488  ;;  %v4233_v24 = vsel %vm4180_vm6, %v4168_v31, %v6625_v36  ;;  %v6996_v6 = vunpack.i.h.bf16 %v18057_v62  ;;  %v18060_v59 = vld [vmem:[#allocation59_spill] sm:$0xff]  ;;  %v18062_v11 = vld [vmem:[#allocation238_spill] sm:$0xff] }
 0x444   :  { %4956 = vmatmul.mubr.f32.gmra.mxu1 %v4489_v30  ;;  %v13927_v18 = vpop.permute.xlu1 %7478  ;;  %v4361_v8 = vsel %vm4310_vm8, %v4296_v13, %v7485_v32  ;;  %v7490_v53 = vunpack.i.l.bf16 %v7489_v17  ;;  %v4362_v23 = vsel %vm4310_vm8, %v4297_v35, %v7486_v34  ;;  %v7491_v14 = vunpack.i.h.bf16 %v7489_v17  ;;  %v18063_v34 = vld [vmem:[#allocation124_spill] sm:$0xff]  ;;  %v18068_v62 = vld [vmem:[#allocation258_spill] sm:$0xff] }
 0x445   :  { %6158 = vmatprep.mubr.msk.f32.mxu1 %vm1072_vm3, %v18051_v43  ;;  %v4426_v51 = vsel %vm4375_vm9, %v4361_v8, %v7460_v40  ;;  %v4427_v3 = vsel %vm4375_vm9, %v4362_v23, %v7461_v39  ;;  %v7480_v38 = vunpack.i.l.bf16 %v13927_v18  ;;  %v6631_v52 = vunpack.i.h.bf16 %v18059_v61 }
 0x446   :  { %v4491_v56 = vsel %vm4440_vm10, %v4426_v51, %v7490_v53  ;;  %v4492_v58 = vsel %vm4440_vm10, %v4427_v3, %v7491_v14  ;;  %v6630_v0 = vunpack.i.l.bf16 %v18059_v61  ;;  %v4105_v30 = vsel %vm1072_vm3, %v18060_v59, %v6835_v10  ;;  %v18066_v14 = vld [vmem:[#allocation62_spill] sm:$0xff] }
 0x447   :  { %v7504_v16 = vpop.permute.xlu0 %7503  ;;  %v4106_v45 = vsel %vm1072_vm3, %v18061_v55, %v6836_v28  ;;  %v4170_v44 = vsel %vm4115_vm5, %v4105_v30, %v6995_v48  ;;  %v6841_v32 = vunpack.i.h.bf16 %v18063_v34  ;;  %v6840_v43 = vunpack.i.l.bf16 %v18063_v34  ;;  %v18071_v55 = vld [vmem:[#allocation147_spill] sm:$0xff] }
 0x448   :  { %4961 = vmatmul.mubr.f32.gmra.mxu1 %v4490_v54  ;;  %v7494_v33 = vpop.permute.xlu1 %7493  ;;  %v7506_v57 = vunpack.i.h.bf16 %v7504_v16  ;;  %v7505_v27 = vunpack.i.l.bf16 %v7504_v16  ;;  %v4171_v40 = vsel %vm4115_vm5, %v4106_v45, %v6996_v6  ;;  %v7481_v35 = vunpack.i.h.bf16 %v13927_v18 }
 0x449   :  { %6159 = vmatprep.mubr.msk.f32.mxu1 %vm1072_vm3, %v18054_v12  ;;  %v7496_v47 = vunpack.i.h.bf16 %v7494_v33  ;;  %v7495_v42 = vunpack.i.l.bf16 %v7494_v33  ;;  %v7001_v17 = vunpack.i.h.bf16 %v18064_v41  ;;  %v7000_v51 = vunpack.i.l.bf16 %v18064_v41 }
 0x44a   :  { %v4235_v31 = vsel %vm4180_vm6, %v4170_v44, %v6630_v0  ;;  %v4236_v12 = vsel %vm4180_vm6, %v4171_v40, %v6631_v52  ;;  %v7005_v45 = vunpack.i.l.bf16 %v18071_v55 }
 0x44b   :  { %v4298_v50 = vsel %vm4245_vm7, %v4233_v24, %v7495_v42  ;;  %v4299_v25 = vsel %vm4245_vm7, %v4234_v37, %v7496_v47  ;;  %v7509_v1 = vpop.permute.xlu0 %7508  ;;  %v4108_v47 = vsel %vm1072_vm3, %v18066_v14, %v6841_v32  ;;  %v18067_v42 = vld [vmem:[#allocation63_spill] sm:$0xff] }
 0x44c   :  { %4966 = vmatmul.mubr.f32.gmra.mxu1 %v4491_v56  ;;  %v13957_v63 = vpop.permute.xlu1 %7498  ;;  %v4363_v21 = vsel %vm4310_vm8, %v4298_v50, %v7505_v27  ;;  %v7510_v9 = vunpack.i.l.bf16 %v7509_v1  ;;  %v4364_v13 = vsel %vm4310_vm8, %v4299_v25, %v7506_v57  ;;  %v7511_v8 = vunpack.i.h.bf16 %v7509_v1  ;;  %v18069_v50 = vld [vmem:[#allocation52_spill] sm:$0xff] }
 0x44d   :  { %6160 = vmatprep.mubr.msk.f32.mxu1 %vm1072_vm3, %v18058_v49  ;;  %v4428_v2 = vsel %vm4375_vm9, %v4363_v21, %v7480_v38  ;;  %v4429_v53 = vsel %vm4375_vm9, %v4364_v13, %v7481_v35  ;;  %v7500_v36 = vunpack.i.l.bf16 %v13957_v63  ;;  %v4107_v56 = vsel %vm1072_vm3, %v18067_v42, %v6840_v43  ;;  %v18070_v49 = vld [vmem:[#allocation77_spill] sm:$0xff] }
 0x44e   :  { %v4493_v5 = vsel %vm4440_vm10, %v4428_v2, %v7510_v9  ;;  %v4494_v39 = vsel %vm4440_vm10, %v4429_v53, %v7511_v8  ;;  %v4172_v37 = vsel %vm4115_vm5, %v4107_v56, %v7000_v51  ;;  %v4173_v16 = vsel %vm4115_vm5, %v4108_v47, %v7001_v17  ;;  %v18076_v53 = vld [vmem:[#allocation226_spill] sm:$0xff] }
 0x44f   :  { %v7524_v46 = vpop.permute.xlu0 %7523  ;;  %v6636_v57 = vunpack.i.h.bf16 %v18069_v50  ;;  %v6635_v27 = vunpack.i.l.bf16 %v18069_v50  ;;  %v6846_v6 = vunpack.i.h.bf16 %v18070_v49  ;;  %v7501_v38 = vunpack.i.h.bf16 %v13957_v63 }
 0x450   :  { %4971 = vmatmul.mubr.f32.gmra.mxu1 %v4492_v58  ;;  %v7514_v54 = vpop.permute.xlu1 %7513  ;;  %v7526_v23 = vunpack.i.h.bf16 %v7524_v46  ;;  %v7525_v29 = vunpack.i.l.bf16 %v7524_v46  ;;  %v6845_v0 = vunpack.i.l.bf16 %v18070_v49  ;;  %v7006_v13 = vunpack.i.h.bf16 %v18071_v55 }
 0x451   :  { %6161 = vmatprep.mubr.msk.f32.mxu1 %vm1072_vm3, %v18062_v11  ;;  %v7516_v26 = vunpack.i.h.bf16 %v7514_v54  ;;  %v7515_v20 = vunpack.i.l.bf16 %v7514_v54  ;;  %v4237_v59 = vsel %vm4180_vm6, %v4172_v37, %v6635_v27  ;;  %v4238_v30 = vsel %vm4180_vm6, %v4173_v16, %v6636_v57  ;;  %v18072_v11 = vld [vmem:[#allocation259_spill] sm:$0xff]  ;;  %v18073_v54 = vld [vmem:[#allocation64_spill] sm:$0xff] }
 0x452   :  { %v4109_v8 = vsel %vm1072_vm3, %v18073_v54, %v6845_v0  ;;  %v18077_v16 = vld [vmem:[#allocation244_spill] sm:$0xff]  ;;  %v18080_v0 = vld [vmem:[#allocation73_spill] sm:$0xff] }
 0x453   :  { %v4300_v18 = vsel %vm4245_vm7, %v4235_v31, %v7515_v20  ;;  %v4301_v4 = vsel %vm4245_vm7, %v4236_v12, %v7516_v26  ;;  %v7529_v10 = vpop.permute.xlu0 %7528  ;;  %v4174_v17 = vsel %vm4115_vm5, %v4109_v8, %v7005_v45  ;;  %v18075_v31 = vld [vmem:[#allocation243_spill] sm:$0xff]  ;;  %v6641_v12 = vunpack.i.h.bf16 %v18076_v53 }
 0x454   :  { %4976 = vmatmul.mubr.f32.gmra.mxu1 %v4493_v5  ;;  %v7519_v28 = vpop.permute.xlu1 %7518  ;;  %v4365_v33 = vsel %vm4310_vm8, %v4300_v18, %v7525_v29  ;;  %v7530_v3 = vunpack.i.l.bf16 %v7529_v10  ;;  %v4366_v48 = vsel %vm4310_vm8, %v4301_v4, %v7526_v23  ;;  %v7531_v58 = vunpack.i.h.bf16 %v7529_v10  ;;  %v18074_v5 = vld [vmem:[#allocation67_spill] sm:$0xff] }
 0x455   :  { %6162 = vmatprep.mubr.msk.f32.mxu1 %vm1072_vm3, %v18065_v19  ;;  %v4430_v24 = vsel %vm4375_vm9, %v4365_v33, %v7500_v36  ;;  %v4431_v2 = vsel %vm4375_vm9, %v4366_v48, %v7501_v38  ;;  %v7520_v34 = vunpack.i.l.bf16 %v7519_v28  ;;  %v4110_v41 = vsel %vm1072_vm3, %v18074_v5, %v6846_v6  ;;  %v18078_v38 = vld [vmem:[#allocation155_spill] sm:$0xff] }
 0x456   :  { %v4495_v52 = vsel %vm4440_vm10, %v4430_v24, %v7530_v3  ;;  %v4496_v40 = vsel %vm4440_vm10, %v4431_v2, %v7531_v58  ;;  %v6640_v18 = vunpack.i.l.bf16 %v18076_v53  ;;  %v4175_v23 = vsel %vm4115_vm5, %v4110_v41, %v7006_v13  ;;  %v18083_v8 = vld [vmem:[#allocation231_spill] sm:$0xff] }
 0x457   :  { %v7521_v29 = vunpack.i.h.bf16 %v7519_v28  ;;  %v4240_v56 = vsel %vm4180_vm6, %v4175_v23, %v6641_v12 }
 0x458   :  { %4981 = vmatmul.mubr.f32.gmra.mxu1 %v4494_v39  ;;  %v7534_v25 = vpop.permute.xlu1 %7533  ;;  %v4239_v14 = vsel %vm4180_vm6, %v4174_v17, %v6640_v18  ;;  %v18084_v17 = vld [vmem:[#allocation80_spill] sm:$0xff] }
 0x459   :  { %6163 = vmatprep.mubr.msk.f32.mxu1 %vm1072_vm3, %v18068_v62  ;;  %v7536_v21 = vunpack.i.h.bf16 %v7534_v25  ;;  %v7535_v61 = vunpack.i.l.bf16 %v7534_v25  ;;  %v14035_v28 = vpop.f32.mrf.mxu1  ;;  %v6850_v25 = vunpack.i.l.bf16 %v18078_v38 }
 0x45b   :  { %v7544_v1 = vpop.permute.xlu0 %7543  ;;  %v4302_v63 = vsel %vm4245_vm7, %v4237_v59, %v7535_v61  ;;  %v4303_v32 = vsel %vm4245_vm7, %v4238_v30, %v7536_v21  ;;  %v4764_v57 = vpop.f32.mrf.mxu1  ;;  %v18079_v21 = vld [vmem:[#allocation263_spill] sm:$0xff]  ;;  %v7010_v59 = vunpack.i.l.bf16 %v18080_v0 }
 0x45c   :  { %4986 = vmatmul.mubr.f32.gmra.mxu1 %v4495_v52  ;;  %v7546_v44 = vunpack.i.h.bf16 %v7544_v1  ;;  %v7545_v9 = vunpack.i.l.bf16 %v7544_v1  ;;  %v7539_v43 = vpop.permute.xlu1 %7538 }
 0x45d   :  { %6164 = vmatprep.mubr.msk.f32.mxu1 %vm1072_vm3, %v18072_v11  ;;  %v7540_v3 = vunpack.i.l.bf16 %v7539_v43  ;;  %v14046_v61 = vpop.f32.mrf.mxu1  ;;  %v7541_v30 = vunpack.i.h.bf16 %v7539_v43  ;;  %v18081_v11 = vld [vmem:[#allocation81_spill] sm:$0xff]  ;;  %v7011_v43 = vunpack.i.h.bf16 %v18080_v0 }
 0x45e   :  { %v4367_v35 = vsel %vm4310_vm8, %v4302_v63, %v7545_v9  ;;  %v4368_v46 = vsel %vm4310_vm8, %v4303_v32, %v7546_v44  ;;  %v6851_v9 = vunpack.i.h.bf16 %v18078_v38  ;;  %v4111_v13 = vsel %vm1072_vm3, %v18081_v11, %v6850_v25 }
 0x45f   :  { %v7549_v26 = vpop.permute.xlu0 %7548  ;;  %v4432_v20 = vsel %vm4375_vm9, %v4367_v35, %v7520_v34  ;;  %v4433_v42 = vsel %vm4375_vm9, %v4368_v46, %v7521_v29  ;;  %v4769_v45 = vpop.f32.mrf.mxu1  ;;  %v18082_v34 = vld [vmem:[#allocation264_spill] sm:$0xff]  ;;  %v6646_v29 = vunpack.i.h.bf16 %v18083_v8 }
 0x460   :  { %4991 = vmatmul.mubr.f32.gmra.mxu1 %v4496_v40  ;;  %v7550_v51 = vunpack.i.l.bf16 %v7549_v26  ;;  %v7554_v19 = vpop.permute.xlu1 %7553  ;;  %v7551_v36 = vunpack.i.h.bf16 %v7549_v26  ;;  %v4176_v40 = vsel %vm4115_vm5, %v4111_v13, %v7010_v59  ;;  %v6645_v26 = vunpack.i.l.bf16 %v18083_v8 }
 0x461   :  { %6165 = vmatprep.mubr.msk.f32.mxu1 %vm1072_vm3, %v18075_v31  ;;  %v7556_v4 = vunpack.i.h.bf16 %v7554_v19  ;;  %v7555_v39 = vunpack.i.l.bf16 %v7554_v19  ;;  %v2702_v59 = vrot.slane %v17979_v22, 2 }
 0x462   :  { %v4497_v33 = vsel %vm4440_vm10, %v4432_v20, %v7550_v51  ;;  %v4498_v50 = vsel %vm4440_vm10, %v4433_v42, %v7551_v36  ;;  %v14059_v32 = vpop.f32.mrf.mxu1  ;;  %v4112_v51 = vsel %vm1072_vm3, %v18084_v17, %v6851_v9  ;;  %v4241_v31 = vsel %vm4180_vm6, %v4176_v40, %v6645_v26  ;;  %v18089_v26 = vld [vmem:[#allocation101_spill] sm:$0xff] }
 0x463   :  { %v7564_v47 = vpop.permute.xlu0 %7563  ;;  %v4304_v10 = vsel %vm4245_vm7, %v4239_v14, %v7555_v39  ;;  %v4305_v62 = vsel %vm4245_vm7, %v4240_v56, %v7556_v4  ;;  %v4177_v12 = vsel %vm4115_vm5, %v4112_v51, %v7011_v43  ;;  %v18086_v56 = vld [vmem:[#allocation185_spill] sm:$0xff] }
 0x464   :  { %4996 = vmatmul.mubr.f32.gmra.mxu1 %v4497_v33  ;;  %v7566_v24 = vunpack.i.h.bf16 %v7564_v47  ;;  %v7565_v37 = vunpack.i.l.bf16 %v7564_v47  ;;  %v14038_v48 = vpop.permute.xlu1 %7558  ;;  %v4774_v5 = vpop.f32.mrf.mxu1  ;;  %v18085_v33 = vld [vmem:[#allocation99_spill] sm:$0xff] }
 0x465   :  { %6166 = vmatprep.mubr.msk.f32.mxu1 %vm1072_vm3, %v18077_v16  ;;  %v6855_v14 = vunpack.i.l.bf16 %v18085_v33  ;;  %v7560_v47 = vunpack.i.l.bf16 %v14038_v48 }
 0x466   :  { %v4369_v27 = vsel %vm4310_vm8, %v4304_v10, %v7565_v37  ;;  %v4370_v52 = vsel %vm4310_vm8, %v4305_v62, %v7566_v24  ;;  %v14070_v53 = vpop.f32.mrf.mxu1  ;;  %v7015_v10 = vunpack.i.l.bf16 %v18086_v56  ;;  %v4242_v24 = vsel %vm4180_vm6, %v4177_v12, %v6646_v29 }
 0x467   :  { %v7569_v49 = vpop.permute.xlu0 %7568  ;;  %v4434_v6 = vsel %vm4375_vm9, %v4369_v27, %v7540_v3  ;;  %v4435_v44 = vsel %vm4375_vm9, %v4370_v52, %v7541_v30  ;;  %v7016_v3 = vunpack.i.h.bf16 %v18086_v56  ;;  %v7561_v52 = vunpack.i.h.bf16 %v14038_v48 }
 0x468   :  { %5001 = vmatmul.mubr.f32.gmra.mxu1 %v4498_v50  ;;  %v7570_v58 = vunpack.i.l.bf16 %v7569_v49  ;;  %v7574_v1 = vpop.permute.xlu1 %7573  ;;  %v7571_v2 = vunpack.i.h.bf16 %v7569_v49  ;;  %v4779_v4 = vpop.f32.mrf.mxu1  ;;  %v2703_v30 = vrot.slane %v17992_v60, 2 }
 0x469   :  { %6167 = vmatprep.mubr.msk.f32.mxu1 %vm1072_vm3, %v18079_v21  ;;  %v7575_v35 = vunpack.i.l.bf16 %v7574_v1  ;;  %v7576_v18 = vunpack.i.h.bf16 %v7574_v1  ;;  %v18088_v1 = vld [vmem:[#allocation144_spill] sm:$0xff] }
 0x46a   :  { %v4499_v55 = vsel %vm4440_vm10, %v4434_v6, %v7570_v58  ;;  %v4500_v20 = vsel %vm4440_vm10, %v4435_v44, %v7571_v2  ;;  %v14081_v16 = vpop.f32.mrf.mxu1  ;;  %v18087_v58 = vld [vmem:[#allocation31_spill] sm:$0xff] }
 0x46b   :  { %v14051_v63 = vpop.permute.xlu0 %3791  ;;  %v4306_v23 = vsel %vm4245_vm7, %v4241_v31, %v7575_v35  ;;  %v4307_v62 = vsel %vm4245_vm7, %v4242_v24, %v7576_v18  ;;  %v4113_v21 = vsel %vm1072_vm3, %v18087_v58, %v6855_v14 }
 0x46c   :  { %5006 = vmatmul.mubr.f32.gmra.mxu1 %v4499_v55  ;;  %v7579_v54 = vpop.permute.xlu1 %7578  ;;  %v4784_v38 = vpop.f32.mrf.mxu1  ;;  %v4178_v55 = vsel %vm4115_vm5, %v4113_v21, %v7015_v10 }
 0x46d   :  { %6168 = vmatprep.mubr.msk.f32.mxu1 %vm1072_vm3, %v18082_v34  ;;  %v7580_v50 = vunpack.i.l.bf16 %v7579_v54  ;;  %v7581_v27 = vunpack.i.h.bf16 %v7579_v54 }
 0x46e   :  { %v14098_v11 = vpop.f32.mrf.mxu1 }
 0x46f   :  { %v7584_v41 = vpop.permute.xlu0 %7583  ;;  %v4243_v13 = vsel %vm4180_vm6, %v4178_v55, %v7580_v50 }
 0x470   :  { %5011 = vmatmul.mubr.f32.gmra.mxu1 %v4500_v20  ;;  %v7585_v46 = vunpack.i.l.bf16 %v7584_v41  ;;  %v7586_v19 = vunpack.i.h.bf16 %v7584_v41  ;;  %v3600_v36 = vpop.permute.xlu1 %3599  ;;  %v4789_v40 = vpop.f32.mrf.mxu1  ;;  %v2705_v20 = vrot.slane %v18089_v26, 2 }
 0x471   :  { %6169 = vmatprep.mubr.msk.f32.mxu1 %vm1072_vm3, %v17985_v7  ;;  %v6856_v7 = vunpack.i.h.bf16 %v18085_v33 }
 0x472   :  { %v4371_v39 = vsel %vm4310_vm8, %v4306_v23, %v7585_v46  ;;  %v4372_v25 = vsel %vm4310_vm8, %v4307_v62, %v7586_v19  ;;  %v2706_v18 = vsel %vm2494_vm4, %v2703_v30, %v2705_v20 }
 0x473   :  { %v7589_v42 = vpop.permute.xlu0 %7588  ;;  %v4436_v57 = vsel %vm4375_vm9, %v4371_v39, %v7560_v47  ;;  %v4114_v2 = vsel %vm1072_vm3, %v18088_v1, %v6856_v7  ;;  %v4437_v22 = vsel %vm4375_vm9, %v4372_v25, %v7561_v52 }
 0x474   :  { %v7590_v37 = vunpack.i.l.bf16 %v7589_v42  ;;  %v7591_v49 = vunpack.i.h.bf16 %v7589_v42  ;;  %v3984_v45 = vpop.permute.xlu1 %3983  ;;  %v4179_v48 = vsel %vm4115_vm5, %v4114_v2, %v7016_v3 }
 0x475   :  { %v4244_v34 = vsel %vm4180_vm6, %v4179_v48, %v7581_v27  ;;  %v14111_v5 = vpop.f32.mrf.mxu1 }
 0x476   :  { %v4501_v6 = vsel %vm4440_vm10, %v4436_v57, %v7590_v37  ;;  %v4502_v43 = vsel %vm4440_vm10, %v4437_v22, %v7591_v49 }
 0x477   :  { %v7594_v0 = vpop.permute.xlu0 %7593  ;;  %5016 = vmatmul.mubr.f32.gmra.mxu1 %v4501_v6  ;;  %v4794_v46 = vpop.f32.mrf.mxu1 }
 0x478   :  { %v7596_v44 = vunpack.i.h.bf16 %v7594_v0  ;;  %v7595_v9 = vunpack.i.l.bf16 %v7594_v0  ;;  %6170 = vmatprep.mubr.msk.f32.mxu1 %vm1072_vm3, %v17993_v15  ;;  %v2704_v15 = vsel %vm2494_vm4, %v2702_v59, %v2703_v30  ;;  %v3794_v51 = vpop.permute.xlu1 %3793 }
 0x479   :  { %v14119_v23 = vpop.f32.mrf.mxu1 }
 0x47a   :  { %v4308_v60 = vsel %vm4245_vm7, %v4243_v13, %v7595_v9  ;;  %v4309_v54 = vsel %vm4245_vm7, %v4244_v34, %v7596_v44 }
 0x47b   :  { %v3602_v35 = vpop.permute.xlu0 %3601  ;;  %5021 = vmatmul.mubr.f32.gmra.mxu1 %v4502_v43  ;;  %v4373_v8 = vsel %vm4310_vm8, %v4308_v60, %v3600_v36  ;;  %v4799_v36 = vpop.f32.mrf.mxu1 }
 0x47c   :  { %6171 = vmatprep.mubr.msk.f32.mxu1 %vm1072_vm3, %v2704_v15  ;;  %v4438_v41 = vsel %vm4375_vm9, %v4373_v8, %v14051_v63  ;;  %v4374_v31 = vsel %vm4310_vm8, %v4309_v54, %v3602_v35 }
 0x47d   :  { %v4503_v17 = vsel %vm4440_vm10, %v4438_v41, %v3984_v45  ;;  %v4439_v29 = vsel %vm4375_vm9, %v4374_v31, %v3794_v51  ;;  %v14123_v63 = vpop.f32.mrf.mxu1 }
 0x47f   :  { %5026 = vmatmul.mubr.f32.gmra.mxu1 %v4503_v17  ;;  %v4804_v4 = vpop.f32.mrf.mxu1 }
 0x480   :  { %6172 = vmatprep.mubr.msk.f32.mxu1 %vm1072_vm3, %v2706_v18 }
 0x481   :  { %v14125_v39 = vpop.f32.mrf.mxu1 }
 0x482   :  { %v3986_v12 = vpop.permute.xlu0 %3985 }
 0x483   :  { %v4504_v19 = vsel %vm4440_vm10, %v4439_v29, %v3986_v12  ;;  %v4809_v33 = vpop.f32.mrf.mxu1 }
 0x484   :  { %5031 = vmatmul.mubr.f32.gmra.mxu1 %v4504_v19 }
 0x486   :  { %v14127_v14 = vpop.f32.mrf.mxu1 }
 0x488   :  { %v4814_v47 = vpop.f32.mrf.mxu1 }
 0x48a   :  { %v14129_v42 = vpop.f32.mrf.mxu1 }
 0x48c   :  { %v4819_v7 = vpop.f32.mrf.mxu1 }
 0x48f   :  { %v14131_v56 = vpop.f32.mrf.mxu1 }
 0x491   :  { %v4824_v10 = vpop.f32.mrf.mxu1 }
 0x494   :  { %v14133_v24 = vpop.f32.mrf.mxu1 }
 0x496   :  { %v4829_v37 = vpop.f32.mrf.mxu1 }
 0x49a   :  { %v14135_v3 = vpop.f32.mrf.mxu1 }
 0x49c   :  { %v4834_v62 = vpop.f32.mrf.mxu1 }
 0x49e   :  { %v14137_v50 = vpop.f32.mrf.mxu1 }
 0x4a0   :  { %v4839_v57 = vpop.f32.mrf.mxu1 }
 0x4a2   :  { %v14139_v27 = vpop.f32.mrf.mxu1 }
 0x4a4   :  { %v4844_v49 = vpop.f32.mrf.mxu1 }
 0x4a8   :  { %v14141_v6 = vpop.f32.mrf.mxu1 }
 0x4aa   :  { %v4849_v38 = vpop.f32.mrf.mxu1 }
 0x4af   :  { %v14143_v25 = vpop.f32.mrf.mxu0  ;;  %v14145_v58 = vpop.f32.mrf.mxu1 }
 0x4b0   :  { %18090 = vst [vmem:[#allocation82_spill] sm:$0xff] %v14145_v58  ;;  %v5169_v40 = vmul.f32 %v14143_v25, %v14143_v25  ;;  %v5036_v26 = vsel %vm138_vm1, %v14143_v25, 0.0 }
 0x4b1   :  { %v4719_v21 = vpop.f32.mrf.mxu0  ;;  %v4854_v52 = vpop.f32.mrf.mxu1 }
 0x4b2   :  { %v5233_v12 = vsel %vm138_vm1, %v5169_v40, 0.0 }
 0x4b3   :  { %v14147_v0 = vpop.f32.mrf.mxu0  ;;  %v14149_v59 = vpop.f32.mrf.mxu1 }
 0x4b4   :  { %18091 = vst [vmem:[#allocation86_spill] sm:$0xff] %v14149_v59  ;;  %v5170_v60 = vmul.f32 %v14147_v0, %v14147_v0  ;;  %v5037_v35 = vsel %vm138_vm1, %v14147_v0, 0.0 }
 0x4b5   :  { %v4724_v30 = vpop.f32.mrf.mxu0  ;;  %v4859_v1 = vpop.f32.mrf.mxu1  ;;  %v5038_v51 = vadd.f32 %v5037_v35, %v5036_v26 }
 0x4b6   :  { %v5234_v20 = vsel %vm138_vm1, %v5170_v60, 0.0 }
 0x4b7   :  { %v14151_v2 = vpop.f32.mrf.mxu0  ;;  %v14153_v55 = vpop.f32.mrf.mxu1  ;;  %v5235_v36 = vadd.f32 %v5234_v20, %v5233_v12 }
 0x4b8   :  { %18092 = vst [vmem:[#allocation84_spill] sm:$0xff] %v14153_v55  ;;  %v5171_v54 = vmul.f32 %v14151_v2, %v14151_v2  ;;  %v5039_v41 = vsel %vm138_vm1, %v14151_v2, 0.0 }
 0x4b9   :  { %v4729_v45 = vpop.f32.mrf.mxu0  ;;  %v4864_v44 = vpop.f32.mrf.mxu1  ;;  %v5040_v4 = vadd.f32 %v5039_v41, %v5038_v51 }
 0x4ba   :  { %v5236_v18 = vsel %vm138_vm1, %v5171_v54, 0.0 }
 0x4bb   :  { %v14155_v9 = vpop.f32.mrf.mxu0  ;;  %v14157_v48 = vpop.f32.mrf.mxu1  ;;  %v5237_v62 = vadd.f32 %v5236_v18, %v5235_v36 }
 0x4bc   :  { %18093 = vst [vmem:[#allocation191_spill] sm:$0xff] %v14157_v48  ;;  %v5172_v17 = vmul.f32 %v14155_v9, %v14155_v9  ;;  %v5041_v29 = vsel %vm138_vm1, %v14155_v9, 0.0 }
 0x4bd   :  { %v4734_v13 = vpop.f32.mrf.mxu0  ;;  %v4869_v22 = vpop.f32.mrf.mxu1  ;;  %v5042_v57 = vadd.f32 %v5041_v29, %v5040_v4 }
 0x4be   :  { %v5238_v7 = vsel %vm138_vm1, %v5172_v17, 0.0 }
 0x4bf   :  { %v14161_v34 = vpop.f32.mrf.mxu0  ;;  %v14163_v43 = vpop.f32.mrf.mxu1  ;;  %v5239_v1 = vadd.f32 %v5238_v7, %v5237_v62 }
 0x4c0   :  { %18094 = vst [vmem:[#allocation70_spill] sm:$0xff] %v14163_v43  ;;  %v5173_v19 = vmul.f32 %v14161_v34, %v14161_v34  ;;  %v5043_v10 = vsel %vm138_vm1, %v14161_v34, 0.0 }
 0x4c1   :  { %v4739_v15 = vpop.f32.mrf.mxu0  ;;  %v4874_v8 = vpop.f32.mrf.mxu1  ;;  %v5044_v45 = vadd.f32 %v5043_v10, %v5042_v57 }
 0x4c2   :  { %v5240_v21 = vsel %vm138_vm1, %v5173_v19, 0.0 }
 0x4c3   :  { %v14178_v31 = vpop.f32.mrf.mxu0  ;;  %v14180_v46 = vpop.f32.mrf.mxu1  ;;  %v5241_v40 = vadd.f32 %v5240_v21, %v5239_v1  ;;  %v5053_v21 = vsel %vm138_vm1, %v14035_v28, 0.0 }
 0x4c4   :  { %18095 = vst [vmem:[#allocation109_spill] sm:$0xff] %v14180_v46  ;;  %v5174_v37 = vmul.f32 %v14178_v31, %v14178_v31  ;;  %v5045_v52 = vsel %vm138_vm1, %v14178_v31, 0.0 }
 0x4c5   :  { %v4744_v33 = vpop.f32.mrf.mxu0  ;;  %v4879_v47 = vpop.f32.mrf.mxu1  ;;  %v5046_v35 = vadd.f32 %v5045_v52, %v5044_v45  ;;  %v5179_v52 = vmul.f32 %v14046_v61, %v14046_v61 }
 0x4c6   :  { %v5242_v22 = vsel %vm138_vm1, %v5174_v37, 0.0  ;;  %v5178_v33 = vmul.f32 %v14035_v28, %v14035_v28 }
 0x4c7   :  { %v14193_v49 = vpop.f32.mrf.mxu0  ;;  %v14195_v38 = vpop.f32.mrf.mxu1  ;;  %v5243_v41 = vadd.f32 %v5242_v22, %v5241_v40  ;;  %v5180_v22 = vmul.f32 %v14059_v32, %v14059_v32 }
 0x4c8   :  { %18096 = vst [vmem:[#allocation108_spill] sm:$0xff] %v14195_v38  ;;  %v5175_v30 = vmul.f32 %v14193_v49, %v14193_v49  ;;  %v5047_v60 = vsel %vm138_vm1, %v14193_v49, 0.0 }
 0x4c9   :  { %v4749_v44 = vpop.f32.mrf.mxu0  ;;  %v4884_v13 = vpop.f32.mrf.mxu1  ;;  %v5048_v17 = vadd.f32 %v5047_v60, %v5046_v35  ;;  %v5252_v35 = vsel %vm138_vm1, %v5179_v52, 0.0  ;;  %v5063_v52 = vsel %vm138_vm1, %v14098_v11, 0.0 }
 0x4ca   :  { %v5244_v8 = vsel %vm138_vm1, %v5175_v30, 0.0  ;;  %v5250_v44 = vsel %vm138_vm1, %v5178_v33, 0.0  ;;  %v5055_v13 = vsel %vm138_vm1, %v14046_v61, 0.0 }
 0x4cb   :  { %v14205_v54 = vpop.f32.mrf.mxu0  ;;  %v14207_v15 = vpop.f32.mrf.mxu1  ;;  %v5245_v29 = vadd.f32 %v5244_v8, %v5243_v41  ;;  %v5057_v8 = vsel %vm138_vm1, %v14059_v32, 0.0 }
 0x4cc   :  { %18097 = vst [vmem:[#allocation134_spill] sm:$0xff] %v14207_v15  ;;  %v5049_v26 = vsel %vm138_vm1, %v14205_v54, 0.0  ;;  %v5176_v20 = vmul.f32 %v14205_v54, %v14205_v54 }
 0x4cd   :  { %v4754_v51 = vpop.f32.mrf.mxu0  ;;  %v4889_v12 = vpop.f32.mrf.mxu1  ;;  %v5050_v19 = vadd.f32 %v5049_v26, %v5048_v17  ;;  %v5181_v26 = vmul.f32 %v14070_v53, %v14070_v53 }
 0x4ce   :  { %v5246_v18 = vsel %vm138_vm1, %v5176_v20, 0.0  ;;  %v5254_v51 = vsel %vm138_vm1, %v5180_v22, 0.0  ;;  %v5059_v12 = vsel %vm138_vm1, %v14070_v53, 0.0  ;;  %v5065_v22 = vsel %vm138_vm1, %v14111_v5, 0.0 }
 0x4cf   :  { %v14215_v36 = vpop.f32.mrf.mxu0  ;;  %v14217_v4 = vpop.f32.mrf.mxu1  ;;  %v5247_v10 = vadd.f32 %v5246_v18, %v5245_v29  ;;  %v5182_v18 = vmul.f32 %v14081_v16, %v14081_v16 }
 0x4d0   :  { %18098 = vst [vmem:[#allocation56_spill] sm:$0xff] %v14217_v4  ;;  %v5051_v47 = vsel %vm138_vm1, %v14215_v36, 0.0  ;;  %v5177_v7 = vmul.f32 %v14215_v36, %v14215_v36 }
 0x4d1   :  { %v5052_v37 = vadd.f32 %v5051_v47, %v5050_v19  ;;  %v4759_v62 = vpop.f32.mrf.mxu0  ;;  %v4894_v57 = vpop.f32.mrf.mxu1  ;;  %v5256_v47 = vsel %vm138_vm1, %v5181_v26, 0.0 }
 0x4d2   :  { %v5248_v30 = vsel %vm138_vm1, %v5177_v7, 0.0  ;;  %v5061_v7 = vsel %vm138_vm1, %v14081_v16, 0.0 }
 0x4d3   :  { %v5054_v1 = vadd.f32 %v5053_v21, %v5052_v37  ;;  %v5249_v45 = vadd.f32 %v5248_v30, %v5247_v10  ;;  %v5183_v10 = vmul.f32 %v14098_v11, %v14098_v11  ;;  %v5258_v21 = vsel %vm138_vm1, %v5182_v18, 0.0 }
 0x4d4   :  { %v14240_v20 = vpop.f32.mrf.mxu1  ;;  %v5184_v30 = vmul.f32 %v14111_v5, %v14111_v5 }
 0x4d5   :  { %v5056_v60 = vadd.f32 %v5055_v13, %v5054_v1  ;;  %v5251_v40 = vadd.f32 %v5250_v44, %v5249_v45  ;;  %18099 = vst [vmem:[#allocation113_spill] sm:$0xff] %v14240_v20  ;;  %v5260_v13 = vsel %vm138_vm1, %v5183_v10, 0.0 }
 0x4d6   :  { %v4899_v29 = vpop.f32.mrf.mxu1  ;;  %v5262_v26 = vsel %vm138_vm1, %v5184_v30, 0.0 }
 0x4d7   :  { %v5058_v41 = vadd.f32 %v5057_v8, %v5056_v60  ;;  %v5253_v17 = vadd.f32 %v5252_v35, %v5251_v40  ;;  %v5185_v60 = vmul.f32 %v14119_v23, %v14119_v23 }
 0x4d8   :  { %v14252_v37 = vpop.f32.mrf.mxu1 }
 0x4d9   :  { %v5060_v19 = vadd.f32 %v5059_v12, %v5058_v41  ;;  %v5255_v33 = vadd.f32 %v5254_v51, %v5253_v17  ;;  %18100 = vst [vmem:[#allocation112_spill] sm:$0xff] %v14252_v37  ;;  %v5067_v41 = vsel %vm138_vm1, %v14119_v23, 0.0  ;;  %v5186_v17 = vmul.f32 %v14123_v63, %v14123_v63 }
 0x4da   :  { %v4904_v1 = vpop.f32.mrf.mxu1  ;;  %v5264_v29 = vsel %vm138_vm1, %v5185_v60, 0.0 }
 0x4db   :  { %v5062_v62 = vadd.f32 %v5061_v7, %v5060_v19  ;;  %v5257_v57 = vadd.f32 %v5256_v47, %v5255_v33  ;;  %v5069_v19 = vsel %vm138_vm1, %v14123_v63, 0.0  ;;  %v5187_v33 = vmul.f32 %v14125_v39, %v14125_v39 }
 0x4dc   :  { %v14264_v40 = vpop.f32.mrf.mxu1 }
 0x4dd   :  { %v5064_v45 = vadd.f32 %v5063_v52, %v5062_v62  ;;  %v5259_v44 = vadd.f32 %v5258_v21, %v5257_v57  ;;  %18101 = vst [vmem:[#allocation133_spill] sm:$0xff] %v14264_v40  ;;  %v5266_v62 = vsel %vm138_vm1, %v5186_v17, 0.0  ;;  %v5071_v57 = vsel %vm138_vm1, %v14125_v39, 0.0 }
 0x4de   :  { %v4909_v51 = vpop.f32.mrf.mxu1  ;;  %v5188_v21 = vmul.f32 %v14127_v14, %v14127_v14 }
 0x4df   :  { %v5066_v35 = vadd.f32 %v5065_v22, %v5064_v45  ;;  %v5261_v8 = vadd.f32 %v5260_v13, %v5259_v44  ;;  %v5268_v45 = vsel %vm138_vm1, %v5187_v33, 0.0  ;;  %v5073_v44 = vsel %vm138_vm1, %v14127_v14, 0.0 }
 0x4e0   :  { %v14276_v47 = vpop.f32.mrf.mxu1  ;;  %v5189_v13 = vmul.f32 %v14129_v42, %v14129_v42 }
 0x4e1   :  { %v5068_v12 = vadd.f32 %v5067_v41, %v5066_v35  ;;  %v5263_v18 = vadd.f32 %v5262_v26, %v5261_v8  ;;  %18102 = vst [vmem:[#allocation117_spill] sm:$0xff] %v14276_v47  ;;  %v5270_v8 = vsel %vm138_vm1, %v5188_v21, 0.0  ;;  %v5075_v26 = vsel %vm138_vm1, %v14129_v42, 0.0 }
 0x4e2   :  { %v4914_v52 = vpop.f32.mrf.mxu1  ;;  %v5190_v41 = vmul.f32 %v14131_v56, %v14131_v56  ;;  %v5192_v21 = vmul.f32 %v14135_v3, %v14135_v3 }
 0x4e3   :  { %v5070_v7 = vadd.f32 %v5069_v19, %v5068_v12  ;;  %v5265_v10 = vadd.f32 %v5264_v29, %v5263_v18  ;;  %v5272_v18 = vsel %vm138_vm1, %v5189_v13, 0.0  ;;  %v5077_v29 = vsel %vm138_vm1, %v14131_v56, 0.0 }
 0x4e4   :  { %v14288_v22 = vpop.f32.mrf.mxu1  ;;  %v5191_v19 = vmul.f32 %v14133_v24, %v14133_v24  ;;  %v5193_v13 = vmul.f32 %v14137_v50, %v14137_v50 }
 0x4e5   :  { %v5072_v30 = vadd.f32 %v5071_v57, %v5070_v7  ;;  %v5267_v1 = vadd.f32 %v5266_v62, %v5265_v10  ;;  %18103 = vst [vmem:[#allocation116_spill] sm:$0xff] %v14288_v22  ;;  %v5274_v62 = vsel %vm138_vm1, %v5190_v41, 0.0  ;;  %v5079_v57 = vsel %vm138_vm1, %v14133_v24, 0.0 }
 0x4e6   :  { %v4919_v17 = vpop.f32.mrf.mxu1  ;;  %v5083_v41 = vsel %vm138_vm1, %v14137_v50, 0.0 }
 0x4e7   :  { %v5074_v60 = vadd.f32 %v5073_v44, %v5072_v30  ;;  %v5269_v35 = vadd.f32 %v5268_v45, %v5267_v1  ;;  %v5276_v45 = vsel %vm138_vm1, %v5191_v19, 0.0  ;;  %v5081_v44 = vsel %vm138_vm1, %v14135_v3, 0.0 }
 0x4e8   :  { %v14300_v33 = vpop.f32.mrf.mxu1  ;;  %v5194_v17 = vmul.f32 %v14139_v27, %v14139_v27  ;;  %v5085_v19 = vsel %vm138_vm1, %v14139_v27, 0.0 }
 0x4e9   :  { %v5076_v51 = vadd.f32 %v5075_v26, %v5074_v60  ;;  %v5271_v12 = vadd.f32 %v5270_v8, %v5269_v35  ;;  %18104 = vst [vmem:[#allocation60_spill] sm:$0xff] %v14300_v33  ;;  %v5278_v26 = vsel %vm138_vm1, %v5192_v21, 0.0 }
 0x4ea   :  { %v4924_v52 = vpop.f32.mrf.mxu1  ;;  %v5282_v21 = vsel %vm138_vm1, %v5194_v17, 0.0 }
 0x4eb   :  { %v5078_v7 = vadd.f32 %v5077_v29, %v5076_v51  ;;  %v5273_v10 = vadd.f32 %v5272_v18, %v5271_v12  ;;  %v5280_v29 = vsel %vm138_vm1, %v5193_v13, 0.0  ;;  %v5087_v52 = vsel %vm138_vm1, %v14141_v6, 0.0 }
 0x4ec   :  { %v14312_v60 = vpop.f32.mrf.mxu1 }
 0x4ed   :  { %v5275_v30 = vadd.f32 %v5274_v62, %v5273_v10  ;;  %v5080_v1 = vadd.f32 %v5079_v57, %v5078_v7  ;;  %18105 = vst [vmem:[#allocation225_spill] sm:$0xff] %v14312_v60  ;;  %v5195_v7 = vmul.f32 %v14141_v6, %v14141_v6 }
 0x4ee   :  { %v4929_v51 = vpop.f32.mrf.mxu1 }
 0x4ef   :  { %v5082_v35 = vadd.f32 %v5081_v44, %v5080_v1  ;;  %v5277_v8 = vadd.f32 %v5276_v45, %v5275_v30  ;;  %v5196_v30 = vmul.f32 %v14145_v58, %v14145_v58  ;;  %v5284_v13 = vsel %vm138_vm1, %v5195_v7, 0.0 }
 0x4f0   :  { %v14324_v10 = vpop.f32.mrf.mxu1 }
 0x4f1   :  { %v5084_v12 = vadd.f32 %v5083_v41, %v5082_v35  ;;  %v5279_v18 = vadd.f32 %v5278_v26, %v5277_v8  ;;  %18106 = vst [vmem:[#allocation188_spill] sm:$0xff] %v14324_v10  ;;  %v5089_v35 = vsel %vm138_vm1, %v14145_v58, 0.0  ;;  %v5197_v8 = vmul.f32 %v14149_v59, %v14149_v59 }
 0x4f2   :  { %v4934_v1 = vpop.f32.mrf.mxu1  ;;  %v5286_v51 = vsel %vm138_vm1, %v5196_v30, 0.0 }
 0x4f3   :  { %v5086_v62 = vadd.f32 %v5085_v19, %v5084_v12  ;;  %v5281_v57 = vadd.f32 %v5280_v29, %v5279_v18  ;;  %v5091_v12 = vsel %vm138_vm1, %v14149_v59, 0.0  ;;  %v5198_v18 = vmul.f32 %v14153_v55, %v14153_v55 }
 0x4f4   :  { %v14336_v26 = vpop.f32.mrf.mxu1 }
 0x4f5   :  { %v5088_v45 = vadd.f32 %v5087_v52, %v5086_v62  ;;  %v5283_v44 = vadd.f32 %v5282_v21, %v5281_v57  ;;  %18107 = vst [vmem:[#allocation121_spill] sm:$0xff] %v14336_v26  ;;  %v5288_v62 = vsel %vm138_vm1, %v5197_v8, 0.0  ;;  %v5093_v57 = vsel %vm138_vm1, %v14153_v55, 0.0 }
 0x4f6   :  { %v4939_v29 = vpop.f32.mrf.mxu1  ;;  %v5199_v21 = vmul.f32 %v14157_v48, %v14157_v48 }
 0x4f7   :  { %v5090_v41 = vadd.f32 %v5089_v35, %v5088_v45  ;;  %v5285_v17 = vadd.f32 %v5284_v13, %v5283_v44  ;;  %v5290_v45 = vsel %vm138_vm1, %v5198_v18, 0.0  ;;  %v5095_v44 = vsel %vm138_vm1, %v14157_v48, 0.0 }
 0x4f8   :  { %v14348_v52 = vpop.f32.mrf.mxu1  ;;  %v5200_v13 = vmul.f32 %v14163_v43, %v14163_v43 }
 0x4f9   :  { %v5092_v19 = vadd.f32 %v5091_v12, %v5090_v41  ;;  %v5287_v7 = vadd.f32 %v5286_v51, %v5285_v17  ;;  %18108 = vst [vmem:[#allocation120_spill] sm:$0xff] %v14348_v52  ;;  %v5292_v17 = vsel %vm138_vm1, %v5199_v21, 0.0  ;;  %v5097_v51 = vsel %vm138_vm1, %v14163_v43, 0.0 }
 0x4fa   :  { %v4944_v35 = vpop.f32.mrf.mxu1  ;;  %v5201_v12 = vmul.f32 %v14180_v46, %v14180_v46 }
 0x4fb   :  { %v5094_v30 = vadd.f32 %v5093_v57, %v5092_v19  ;;  %v5289_v1 = vadd.f32 %v5288_v62, %v5287_v7  ;;  %v5294_v7 = vsel %vm138_vm1, %v5200_v13, 0.0  ;;  %v5099_v62 = vsel %vm138_vm1, %v14180_v46, 0.0 }
 0x4fc   :  { %v14360_v29 = vpop.f32.mrf.mxu1  ;;  %v5202_v57 = vmul.f32 %v14195_v38, %v14195_v38  ;;  %v5203_v35 = vmul.f32 %v14207_v15, %v14207_v15 }
 0x4fd   :  { %v5096_v8 = vadd.f32 %v5095_v44, %v5094_v30  ;;  %v5291_v41 = vadd.f32 %v5290_v45, %v5289_v1  ;;  %18109 = vst [vmem:[#allocation110_spill] sm:$0xff] %v14360_v29  ;;  %v5296_v45 = vsel %vm138_vm1, %v5201_v12, 0.0  ;;  %v5101_v44 = vsel %vm138_vm1, %v14195_v38, 0.0 }
 0x4fe   :  { %v4949_v30 = vpop.f32.mrf.mxu1 }
 0x4ff   :  { %v5098_v18 = vadd.f32 %v5097_v51, %v5096_v8  ;;  %v5293_v19 = vadd.f32 %v5292_v17, %v5291_v41  ;;  %v5298_v17 = vsel %vm138_vm1, %v5202_v57, 0.0  ;;  %v5103_v51 = vsel %vm138_vm1, %v14207_v15, 0.0 }
 0x500   :  { %v14372_v8 = vpop.f32.mrf.mxu1  ;;  %v5105_v30 = vsel %vm138_vm1, %v14217_v4, 0.0  ;;  %v5107_v15 = vsel %vm138_vm1, %v14240_v20, 0.0 }
 0x501   :  { %v5100_v21 = vadd.f32 %v5099_v62, %v5098_v18  ;;  %v5295_v1 = vadd.f32 %v5294_v7, %v5293_v19  ;;  %18110 = vst [vmem:[#allocation138_spill] sm:$0xff] %v14372_v8  ;;  %v5204_v18 = vmul.f32 %v14217_v4, %v14217_v4  ;;  %v5300_v62 = vsel %vm138_vm1, %v5203_v35, 0.0 }
 0x502   :  { %v4954_v19 = vpop.f32.mrf.mxu1 }
 0x503   :  { %v5102_v13 = vadd.f32 %v5101_v44, %v5100_v21  ;;  %v5297_v41 = vadd.f32 %v5296_v45, %v5295_v1  ;;  %v5205_v21 = vmul.f32 %v14240_v20, %v14240_v20  ;;  %v5302_v44 = vsel %vm138_vm1, %v5204_v18, 0.0 }
 0x504   :  { %v14384_v1 = vpop.f32.mrf.mxu1  ;;  %v5109_v19 = vsel %vm138_vm1, %v14252_v37, 0.0  ;;  %v5111_v20 = vsel %vm138_vm1, %v14264_v40, 0.0 }
 0x505   :  { %v5104_v12 = vadd.f32 %v5103_v51, %v5102_v13  ;;  %v5299_v7 = vadd.f32 %v5298_v17, %v5297_v41  ;;  %18111 = vst [vmem:[#allocation257_spill] sm:$0xff] %v14384_v1  ;;  %v5206_v13 = vmul.f32 %v14252_v37, %v14252_v37  ;;  %v5304_v51 = vsel %vm138_vm1, %v5205_v21, 0.0 }
 0x506   :  { %v4959_v41 = vpop.f32.mrf.mxu1 }
 0x507   :  { %v5106_v57 = vadd.f32 %v5105_v30, %v5104_v12  ;;  %v5301_v45 = vadd.f32 %v5300_v62, %v5299_v7  ;;  %v5207_v12 = vmul.f32 %v14264_v40, %v14264_v40  ;;  %v5306_v30 = vsel %vm138_vm1, %v5206_v13, 0.0 }
 0x508   :  { %v14396_v7 = vpop.f32.mrf.mxu1  ;;  %v5113_v41 = vsel %vm138_vm1, %v14276_v47, 0.0  ;;  %v5115_v40 = vsel %vm138_vm1, %v14288_v22, 0.0 }
 0x509   :  { %v5303_v35 = vadd.f32 %v5302_v44, %v5301_v45  ;;  %v5108_v17 = vadd.f32 %v5107_v15, %v5106_v57  ;;  %18112 = vst [vmem:[#allocation154_spill] sm:$0xff] %v14396_v7  ;;  %v5208_v15 = vmul.f32 %v14276_v47, %v14276_v47  ;;  %v5308_v44 = vsel %vm138_vm1, %v5207_v12, 0.0  ;;  %v18127_v47 = vld [vmem:[#allocation22_spill] sm:$0xff] }
 0x50a   :  { %v4964_v57 = vpop.f32.mrf.mxu1  ;;  %v18128_v37 = vrot.slane %v18127_v47, 1 }
 0x50b   :  { %v5305_v18 = vadd.f32 %v5304_v51, %v5303_v35  ;;  %v5110_v62 = vadd.f32 %v5109_v19, %v5108_v17  ;;  %v5209_v35 = vmul.f32 %v14288_v22, %v14288_v22  ;;  %v5310_v19 = vsel %vm138_vm1, %v5208_v15, 0.0 }
 0x50c   :  { %v14408_v17 = vpop.f32.mrf.mxu1  ;;  %v5117_v57 = vsel %vm138_vm1, %v14300_v33, 0.0  ;;  %v5119_v22 = vsel %vm138_vm1, %v14312_v60, 0.0 }
 0x50d   :  { %v5307_v21 = vadd.f32 %v5306_v30, %v5305_v18  ;;  %v5112_v45 = vadd.f32 %v5111_v20, %v5110_v62  ;;  %18113 = vst [vmem:[#allocation38_spill] sm:$0xff] %v14408_v17  ;;  %v5210_v20 = vmul.f32 %v14300_v33, %v14300_v33  ;;  %v5312_v30 = vsel %vm138_vm1, %v5209_v35, 0.0 }
 0x50e   :  { %v4969_v18 = vpop.f32.mrf.mxu1 }
 0x50f   :  { %v5309_v13 = vadd.f32 %v5308_v44, %v5307_v21  ;;  %v5114_v51 = vadd.f32 %v5113_v41, %v5112_v45  ;;  %v5211_v21 = vmul.f32 %v14312_v60, %v14312_v60  ;;  %v5314_v41 = vsel %vm138_vm1, %v5210_v20, 0.0 }
 0x510   :  { %v14420_v45 = vpop.f32.mrf.mxu1  ;;  %v5121_v18 = vsel %vm138_vm1, %v14324_v10, 0.0  ;;  %v5123_v60 = vsel %vm138_vm1, %v14336_v26, 0.0 }
 0x511   :  { %v5311_v12 = vadd.f32 %v5310_v19, %v5309_v13  ;;  %v5116_v62 = vadd.f32 %v5115_v40, %v5114_v51  ;;  %18114 = vst [vmem:[#allocation75_spill] sm:$0xff] %v14420_v45  ;;  %v5212_v40 = vmul.f32 %v14324_v10, %v14324_v10  ;;  %v5316_v19 = vsel %vm138_vm1, %v5211_v21, 0.0 }
 0x512   :  { %v4974_v13 = vpop.f32.mrf.mxu1 }
 0x513   :  { %v5313_v15 = vadd.f32 %v5312_v30, %v5311_v12  ;;  %v5118_v44 = vadd.f32 %v5117_v57, %v5116_v62  ;;  %v5213_v12 = vmul.f32 %v14336_v26, %v14336_v26  ;;  %v5318_v57 = vsel %vm138_vm1, %v5212_v40, 0.0 }
 0x514   :  { %v14432_v62 = vpop.f32.mrf.mxu1  ;;  %v5125_v13 = vsel %vm138_vm1, %v14348_v52, 0.0  ;;  %v5127_v26 = vsel %vm138_vm1, %v14360_v29, 0.0 }
 0x515   :  { %v5315_v35 = vadd.f32 %v5314_v41, %v5313_v15  ;;  %v5120_v51 = vadd.f32 %v5119_v22, %v5118_v44  ;;  %18115 = vst [vmem:[#allocation182_spill] sm:$0xff] %v14432_v62  ;;  %v5214_v22 = vmul.f32 %v14348_v52, %v14348_v52  ;;  %v5320_v41 = vsel %vm138_vm1, %v5213_v12, 0.0 }
 0x516   :  { %v4979_v15 = vpop.f32.mrf.mxu1 }
 0x517   :  { %v5317_v20 = vadd.f32 %v5316_v19, %v5315_v35  ;;  %v5122_v30 = vadd.f32 %v5121_v18, %v5120_v51  ;;  %v5215_v35 = vmul.f32 %v14360_v29, %v14360_v29  ;;  %v5322_v18 = vsel %vm138_vm1, %v5214_v22, 0.0 }
 0x518   :  { %v14444_v51 = vpop.f32.mrf.mxu1  ;;  %v5129_v15 = vsel %vm138_vm1, %v14372_v8, 0.0  ;;  %v5131_v29 = vsel %vm138_vm1, %v14384_v1, 0.0 }
 0x519   :  { %v5319_v21 = vadd.f32 %v5318_v57, %v5317_v20  ;;  %v5124_v44 = vadd.f32 %v5123_v60, %v5122_v30  ;;  %18116 = vst [vmem:[#allocation260_spill] sm:$0xff] %v14444_v51  ;;  %v5216_v60 = vmul.f32 %v14372_v8, %v14372_v8  ;;  %v5324_v57 = vsel %vm138_vm1, %v5215_v35, 0.0 }
 0x51a   :  { %v4984_v20 = vpop.f32.mrf.mxu1 }
 0x51b   :  { %v5321_v40 = vadd.f32 %v5320_v41, %v5319_v21  ;;  %v5126_v19 = vadd.f32 %v5125_v13, %v5124_v44  ;;  %v5217_v21 = vmul.f32 %v14384_v1, %v14384_v1  ;;  %v5326_v13 = vsel %vm138_vm1, %v5216_v60, 0.0 }
 0x51c   :  { %v14456_v44 = vpop.f32.mrf.mxu1  ;;  %v5133_v20 = vsel %vm138_vm1, %v14396_v7, 0.0  ;;  %v5135_v1 = vsel %vm138_vm1, %v14408_v17, 0.0 }
 0x51d   :  { %v5323_v12 = vadd.f32 %v5322_v18, %v5321_v40  ;;  %v5128_v30 = vadd.f32 %v5127_v26, %v5126_v19  ;;  %18117 = vst [vmem:[#allocation39_spill] sm:$0xff] %v14456_v44  ;;  %v5218_v26 = vmul.f32 %v14396_v7, %v14396_v7  ;;  %v5328_v18 = vsel %vm138_vm1, %v5217_v21, 0.0 }
 0x51e   :  { %v4989_v40 = vpop.f32.mrf.mxu1 }
 0x51f   :  { %v5325_v22 = vadd.f32 %v5324_v57, %v5323_v12  ;;  %v5130_v41 = vadd.f32 %v5129_v15, %v5128_v30  ;;  %v5219_v12 = vmul.f32 %v14408_v17, %v14408_v17  ;;  %v5330_v15 = vsel %vm138_vm1, %v5218_v26, 0.0 }
 0x520   :  { %v14468_v30 = vpop.f32.mrf.mxu1  ;;  %v5137_v40 = vsel %vm138_vm1, %v14420_v45, 0.0  ;;  %v5139_v17 = vsel %vm138_vm1, %v14432_v62, 0.0 }
 0x521   :  { %v5327_v35 = vadd.f32 %v5326_v13, %v5325_v22  ;;  %v5132_v19 = vadd.f32 %v5131_v29, %v5130_v41  ;;  %18118 = vst [vmem:[#allocation227_spill] sm:$0xff] %v14468_v30  ;;  %v5220_v29 = vmul.f32 %v14420_v45, %v14420_v45  ;;  %v5332_v13 = vsel %vm138_vm1, %v5219_v12, 0.0 }
 0x522   :  { %v4994_v22 = vpop.f32.mrf.mxu1 }
 0x523   :  { %v5329_v60 = vadd.f32 %v5328_v18, %v5327_v35  ;;  %v5134_v57 = vadd.f32 %v5133_v20, %v5132_v19  ;;  %v5221_v35 = vmul.f32 %v14432_v62, %v14432_v62  ;;  %v5334_v20 = vsel %vm138_vm1, %v5220_v29, 0.0 }
 0x524   :  { %v14480_v19 = vpop.f32.mrf.mxu1  ;;  %v5141_v22 = vsel %vm138_vm1, %v14444_v51, 0.0  ;;  %v5143_v62 = vsel %vm138_vm1, %v14456_v44, 0.0 }
 0x525   :  { %v5331_v21 = vadd.f32 %v5330_v15, %v5329_v60  ;;  %v5136_v41 = vadd.f32 %v5135_v1, %v5134_v57  ;;  %18119 = vst [vmem:[#allocation195_spill] sm:$0xff] %v14480_v19  ;;  %v5222_v1 = vmul.f32 %v14444_v51, %v14444_v51  ;;  %v5336_v15 = vsel %vm138_vm1, %v5221_v35, 0.0 }
 0x526   :  { %v4999_v60 = vpop.f32.mrf.mxu1 }
 0x527   :  { %v5333_v26 = vadd.f32 %v5332_v13, %v5331_v21  ;;  %v5138_v18 = vadd.f32 %v5137_v40, %v5136_v41  ;;  %v5223_v21 = vmul.f32 %v14456_v44, %v14456_v44  ;;  %v5338_v40 = vsel %vm138_vm1, %v5222_v1, 0.0 }
 0x528   :  { %v14492_v41 = vpop.f32.mrf.mxu1  ;;  %v5145_v60 = vsel %vm138_vm1, %v14468_v30, 0.0  ;;  %v5147_v44 = vsel %vm138_vm1, %v14480_v19, 0.0 }
 0x529   :  { %v5335_v12 = vadd.f32 %v5334_v20, %v5333_v26  ;;  %v5140_v57 = vadd.f32 %v5139_v17, %v5138_v18  ;;  %18120 = vst [vmem:[#allocation85_spill] sm:$0xff] %v14492_v41  ;;  %v5224_v17 = vmul.f32 %v14468_v30, %v14468_v30  ;;  %v5340_v20 = vsel %vm138_vm1, %v5223_v21, 0.0 }
 0x52a   :  { %v5004_v26 = vpop.f32.mrf.mxu1 }
 0x52b   :  { %v5337_v29 = vadd.f32 %v5336_v15, %v5335_v12  ;;  %v5142_v13 = vadd.f32 %v5141_v22, %v5140_v57  ;;  %v5225_v12 = vmul.f32 %v14480_v19, %v14480_v19  ;;  %v5342_v22 = vsel %vm138_vm1, %v5224_v17, 0.0  ;;  %v18198_v19 = vld [vmem:[#allocation227_spill] sm:$0xff] }
 0x52c   :  { %v14504_v57 = vpop.f32.mrf.mxu1  ;;  %v5149_v26 = vsel %vm138_vm1, %v14492_v41, 0.0 }
 0x52d   :  { %v5339_v35 = vadd.f32 %v5338_v40, %v5337_v29  ;;  %v5144_v18 = vadd.f32 %v5143_v62, %v5142_v13  ;;  %18121 = vst [vmem:[#allocation89_spill] sm:$0xff] %v14504_v57  ;;  %v5226_v62 = vmul.f32 %v14492_v41, %v14492_v41  ;;  %v5344_v40 = vsel %vm138_vm1, %v5225_v12, 0.0  ;;  %v18197_v41 = vld [vmem:[#allocation39_spill] sm:$0xff] }
 0x52e   :  { %v5009_v29 = vpop.f32.mrf.mxu1  ;;  %v5151_v30 = vsel %vm138_vm1, %v14504_v57, 0.0 }
 0x52f   :  { %v5341_v1 = vadd.f32 %v5340_v20, %v5339_v35  ;;  %v5146_v15 = vadd.f32 %v5145_v60, %v5144_v18  ;;  %v5227_v35 = vmul.f32 %v14504_v57, %v14504_v57  ;;  %v5346_v60 = vsel %vm138_vm1, %v5226_v62, 0.0  ;;  %v18196_v57 = vld [vmem:[#allocation260_spill] sm:$0xff] }
 0x530   :  { %v14516_v18 = vpop.f32.mrf.mxu1 }
 0x531   :  { %v5343_v21 = vadd.f32 %v5342_v22, %v5341_v1  ;;  %v5148_v13 = vadd.f32 %v5147_v44, %v5146_v15  ;;  %18122 = vst [vmem:[#allocation61_spill] sm:$0xff] %v14516_v18  ;;  %v5228_v44 = vmul.f32 %v14516_v18, %v14516_v18  ;;  %v5348_v22 = vsel %vm138_vm1, %v5227_v35, 0.0 }
 0x532   :  { %v5014_v1 = vpop.f32.mrf.mxu1  ;;  %v5153_v29 = vsel %vm138_vm1, %v14516_v18, 0.0 }
 0x533   :  { %v5345_v17 = vadd.f32 %v5344_v40, %v5343_v21  ;;  %v5150_v20 = vadd.f32 %v5149_v26, %v5148_v13  ;;  %v5350_v21 = vsel %vm138_vm1, %v5228_v44, 0.0 }
 0x535   :  { %v5347_v12 = vadd.f32 %v5346_v60, %v5345_v17  ;;  %v5152_v15 = vadd.f32 %v5151_v30, %v5150_v20 }
 0x537   :  { %v5349_v51 = vadd.f32 %v5348_v22, %v5347_v12  ;;  %v5154_v45 = vadd.f32 %v5153_v29, %v5152_v15  ;;  %v14527_v62 = vpop.f32.mrf.mxu1 }
 0x538   :  { %18123 = vst [vmem:[#allocation111_spill] sm:$0xff] %v14527_v62  ;;  %v5229_v26 = vmul.f32 %v14527_v62, %v14527_v62  ;;  %v5155_v30 = vsel %vm138_vm1, %v14527_v62, 0.0 }
 0x539   :  { %v5351_v13 = vadd.f32 %v5350_v21, %v5349_v51  ;;  %v5019_v40 = vpop.f32.mrf.mxu1  ;;  %v5156_v60 = vadd.f32 %v5155_v30, %v5154_v45 }
 0x53a   :  { %v5352_v20 = vsel %vm138_vm1, %v5229_v26, 0.0 }
 0x53b   :  { %v14531_v7 = vpop.f32.mrf.mxu1  ;;  %v5353_v22 = vadd.f32 %v5352_v20, %v5351_v13 }
 0x53c   :  { %18124 = vst [vmem:[#allocation137_spill] sm:$0xff] %v14531_v7  ;;  %v5230_v35 = vmul.f32 %v14531_v7, %v14531_v7  ;;  %v5157_v51 = vsel %vm138_vm1, %v14531_v7, 0.0 }
 0x53d   :  { %v5024_v17 = vpop.f32.mrf.mxu1  ;;  %v5158_v29 = vadd.f32 %v5157_v51, %v5156_v60  ;;  %v7607_v51 = vld [vmem:[%s16114_s0 + $0x148] sm:$0xff] }
 0x53e   :  { %v5354_v1 = vsel %vm138_vm1, %v5230_v35, 0.0  ;;  %v5705_v60 = vrot.slane %v7607_v51, 1  ;;  %v7614_v51 = vld [vmem:[%s16114_s0 + $0x180] sm:$0xff] }
 0x53f   :  { %v14540_v44 = vpop.f32.mrf.mxu1  ;;  %v5355_v26 = vadd.f32 %v5354_v1, %v5353_v22  ;;  %v7608_v1 = vld [vmem:[%s16114_s0 + $0x150] sm:$0xff] }
 0x540   :  { %18125 = vst [vmem:[#allocation30_spill] sm:$0xff] %v14540_v44  ;;  %v5159_v12 = vsel %vm138_vm1, %v14540_v44, 0.0  ;;  %v5231_v15 = vmul.f32 %v14540_v44, %v14540_v44 }
 0x541   :  { %v5029_v21 = vpop.f32.mrf.mxu1  ;;  %v5160_v17 = vadd.f32 %v5159_v12, %v5158_v29  ;;  %v5707_v12 = vrot.slane %v7608_v1, 1  ;;  %v7611_v29 = vld [vmem:[%s16114_s0 + $0x168] sm:$0xff]  ;;  %v5717_v1 = vrot.slane %v7614_v51, 1 }
 0x542   :  { %v5356_v40 = vsel %vm138_vm1, %v5231_v15, 0.0  ;;  %v7609_v15 = vld [vmem:[%s16114_s0 + $0x158] sm:$0xff]  ;;  %v5712_v21 = vrot.slane %v7611_v29, 1  ;;  %v7617_v51 = vld [vmem:[%s16114_s0 + $0x1c8] sm:$0xff] }
 0x543   :  { %v5357_v35 = vadd.f32 %v5356_v40, %v5355_v26  ;;  %v5708_v22 = vrot.slane %v7609_v15, 1  ;;  %v7612_v40 = vld [vmem:[%s16114_s0 + $0x170] sm:$0xff]  ;;  %v7615_v15 = vld [vmem:[%s16114_s0 + $0x188] sm:$0xff]  ;;  %v5722_v4 = vrot.slane %v7617_v51, 1 }
 0x544   :  { %v14548_v8 = vpop.f32.mrf.mxu1  ;;  %v5713_v26 = vrot.slane %v7612_v40, 1 }
 0x545   :  { %18126 = vst [vmem:[#allocation261_spill] sm:$0xff] %v14548_v8  ;;  %v5161_v45 = vsel %vm138_vm1, %v14548_v8, 0.0  ;;  %v5232_v30 = vmul.f32 %v14548_v8, %v14548_v8  ;;  %v14600_v47 = vsel %vm2333_vm2, %v5707_v12, %v5708_v22  ;;  %v7620_v12 = vld [vmem:[%s16114_s0 + $0x1e0] sm:$0xff] }
 0x546   :  { %v5162_v52 = vadd.f32 %v5161_v45, %v5160_v17  ;;  %v5034_v10 = vpop.f32.mrf.mxu1  ;;  %18130 = vst [vmem:[#allocation66_spill] sm:$0xff] %v14600_v47  ;;  %v14606_v51 = vsel %vm2333_vm2, %v5712_v21, %v5713_v26 }
 0x547   :  { %v5358_v33 = vsel %vm138_vm1, %v5232_v30, 0.0  ;;  %v7610_v10 = vld [vmem:[%s16114_s0 + $0x160] sm:$0xff]  ;;  %v7613_v30 = vld [vmem:[%s16114_s0 + $0x178] sm:$0xff]  ;;  %18132 = vst [vmem:[#allocation168_spill] sm:$0xff] %v14606_v51 }
 0x548   :  { %v5163_v13 = vrot.slane %v5162_v52, 4  ;;  %v5359_v20 = vadd.f32 %v5358_v33, %v5357_v35  ;;  %v5710_v33 = vrot.slane %v7610_v10, 1  ;;  %v5715_v35 = vrot.slane %v7613_v30, 1 }
 0x549   :  { %v5718_v10 = vrot.slane %v7615_v15, 1  ;;  %v14588_v30 = vsel %vm2333_vm2, %v18128_v37, %v5705_v60  ;;  %v7618_v15 = vld [vmem:[%s16114_s0 + $0x1d0] sm:$0xff] }
 0x54a   :  { %v5164_v17 = vadd.f32 %v5163_v13, %v5162_v52  ;;  %v5360_v45 = vrot.slane %v5359_v20, 4  ;;  %v7616_v52 = vld [vmem:[%s16114_s0 + $0x190] sm:$0xff]  ;;  %18129 = vst [vmem:[#allocation151_spill] sm:$0xff] %v14588_v30  ;;  %v5723_v38 = vrot.slane %v7618_v15, 1  ;;  %v14603_v37 = vsel %vm2333_vm2, %v5708_v22, %v5710_v33  ;;  %v7621_v33 = vld [vmem:[%s16114_s0 + $0x1e8] sm:$0xff] }
 0x54b   :  { %v5720_v13 = vrot.slane %v7616_v52, 1  ;;  %v7619_v52 = vld [vmem:[%s16114_s0 + $0x1d8] sm:$0xff]  ;;  %18131 = vst [vmem:[#allocation72_spill] sm:$0xff] %v14603_v37  ;;  %v14609_v30 = vsel %vm2333_vm2, %v5713_v26, %v5715_v35  ;;  %v14612_v15 = vsel %vm2333_vm2, %v5717_v1, %v5718_v10  ;;  %v5727_v22 = vrot.slane %v7620_v12, 1  ;;  %v7622_v1 = vld [vmem:[%s16114_s0 + $0x1f0] sm:$0xff] }
 0x54c   :  { %v5165_v29 = vrot.slane %v5164_v17, 2  ;;  %v5361_v40 = vadd.f32 %v5360_v45, %v5359_v20  ;;  %v5725_v20 = vrot.slane %v7619_v52, 1  ;;  %18133 = vst [vmem:[#allocation46_spill] sm:$0xff] %v14609_v30  ;;  %18134 = vst [vmem:[#allocation33_spill] sm:$0xff] %v14612_v15  ;;  %v5728_v21 = vrot.slane %v7621_v33, 1  ;;  %v7626_v33 = vld [vmem:[%s16114_s0 + $0x210] sm:$0xff] }
 0x54d   :  { %v14615_v46 = vsel %vm2333_vm2, %v5718_v10, %v5720_v13  ;;  %v14624_v26 = vsel %vm2333_vm2, %v5722_v4, %v5723_v38  ;;  %v5730_v10 = vrot.slane %v7622_v1, 1  ;;  %v7623_v13 = vld [vmem:[%s16114_s0 + $0x1f8] sm:$0xff]  ;;  %v5737_v1 = vrot.slane %v7626_v33, 1 }
 0x54e   :  { %v5166_v60 = vadd.f32 %v5165_v29, %v5164_v17  ;;  %v5362_v45 = vrot.slane %v5361_v40, 2  ;;  %18135 = vst [vmem:[#allocation153_spill] sm:$0xff] %v14615_v46  ;;  %18136 = vst [vmem:[#allocation230_spill] sm:$0xff] %v14624_v26  ;;  %v14627_v35 = vsel %vm2333_vm2, %v5723_v38, %v5725_v20  ;;  %v5732_v52 = vrot.slane %v7623_v13, 1  ;;  %v7625_v38 = vld [vmem:[%s16114_s0 + $0x208] sm:$0xff]  ;;  %v7627_v13 = vld [vmem:[%s16114_s0 + $0x218] sm:$0xff] }
 0x54f   :  { %18137 = vst [vmem:[#allocation79_spill] sm:$0xff] %v14627_v35  ;;  %v5735_v4 = vrot.slane %v7625_v38, 1  ;;  %v5738_v35 = vrot.slane %v7627_v13, 1  ;;  %v7630_v38 = vld [vmem:[%s16114_s0 + $0x230] sm:$0xff]  ;;  %v7631_v46 = vld [vmem:[%s16114_s0 + $0x238] sm:$0xff]  ;;  %v14686_v48 = vsel %vm2333_vm2, %v5727_v22, %v5728_v21 }
 0x550   :  { %v5167_v17 = vrot.slane %v5166_v60, 1  ;;  %v5363_v29 = vadd.f32 %v5362_v45, %v5361_v40  ;;  %v7624_v40 = vld [vmem:[%s16114_s0 + $0x200] sm:$0xff]  ;;  %v5743_v33 = vrot.slane %v7630_v38, 1  ;;  %v5745_v13 = vrot.slane %v7631_v46, 1  ;;  %v7634_v38 = vld [vmem:[%s16114_s0 + $0x250] sm:$0xff]  ;;  %v7635_v46 = vld [vmem:[%s16114_s0 + $0x258] sm:$0xff] }
 0x551   :  { %v5733_v45 = vrot.slane %v7624_v40, 1  ;;  %v7628_v40 = vld [vmem:[%s16114_s0 + $0x220] sm:$0xff]  ;;  %v5750_v47 = vrot.slane %v7634_v38, 1  ;;  %18139 = vst [vmem:[#allocation115_spill] sm:$0xff] %v14686_v48  ;;  %v14704_v22 = vsel %vm2333_vm2, %v5737_v1, %v5738_v35 }
 0x552   :  { %v5168_v20 = vadd.f32 %v5167_v17, %v5166_v60  ;;  %v5364_v12 = vrot.slane %v5363_v29, 1  ;;  %v5740_v26 = vrot.slane %v7628_v40, 1  ;;  %v7629_v60 = vld [vmem:[%s16114_s0 + $0x228] sm:$0xff]  ;;  %v7632_v40 = vld [vmem:[%s16114_s0 + $0x240] sm:$0xff]  ;;  %18143 = vst [vmem:[#allocation169_spill] sm:$0xff] %v14704_v22 }
 0x553   :  { %v5742_v17 = vrot.slane %v7629_v60, 1  ;;  %v5747_v51 = vrot.slane %v7632_v40, 1  ;;  %v7633_v60 = vld [vmem:[%s16114_s0 + $0x248] sm:$0xff]  ;;  %v14698_v59 = vsel %vm2333_vm2, %v5732_v52, %v5733_v45  ;;  %v14701_v58 = vsel %vm2333_vm2, %v5733_v45, %v5735_v4 }
 0x554   :  { %v5365_v15 = vadd.f32 %v5364_v12, %v5363_v29  ;;  %v14659_v30 = vmul.f32 0.001953125, %v5168_v20  ;;  %v5748_v37 = vrot.slane %v7633_v60, 1  ;;  %v5752_v29 = vrot.slane %v7635_v46, 1  ;;  %v7636_v20 = vld [vmem:[%s16114_s0 + $0x260] sm:$0xff]  ;;  %v7637_v40 = vld [vmem:[%s16114_s0 + $0x268] sm:$0xff]  ;;  %18141 = vst [vmem:[#allocation140_spill] sm:$0xff] %v14698_v59 }
 0x555   :  { %v5753_v12 = vrot.slane %v7636_v20, 1  ;;  %v5755_v60 = vrot.slane %v7637_v40, 1  ;;  %v14689_v46 = vsel %vm2333_vm2, %v5728_v21, %v5730_v10  ;;  %v7638_v20 = vld [vmem:[%s16114_s0 + $0x270] sm:$0xff]  ;;  %18142 = vst [vmem:[#allocation119_spill] sm:$0xff] %v14701_v58  ;;  %v14709_v10 = vsel %vm2333_vm2, %v5738_v35, %v5740_v26  ;;  %v7640_v26 = vld [vmem:[%s16114_s0 + $0x280] sm:$0xff]  ;;  %v7647_v21 = vld [vmem:[%s16114_s0 + $0x2b8] sm:$0xff] }
 0x556   :  { %18138 = vst [vmem:[#allocation76_spill] sm:$0xff] %v14659_v30  ;;  %v14679_v43 = vmul.f32 0.001953125, %v5365_v15  ;;  %v14683_v38 = vmul.f32 %v14659_v30, %v14659_v30  ;;  %18140 = vst [vmem:[#allocation114_spill] sm:$0xff] %v14689_v46  ;;  %v5757_v55 = vrot.slane %v7638_v20, 1  ;;  %v7639_v15 = vld [vmem:[%s16114_s0 + $0x278] sm:$0xff]  ;;  %v14712_v20 = vsel %vm2333_vm2, %v5742_v17, %v5743_v33 }
 0x557   :  { %v5758_v40 = vrot.slane %v7639_v15, 1  ;;  %18144 = vst [vmem:[#allocation125_spill] sm:$0xff] %v14709_v10  ;;  %18145 = vst [vmem:[#allocation163_spill] sm:$0xff] %v14712_v20  ;;  %v14715_v15 = vsel %vm2333_vm2, %v5743_v33, %v5745_v13  ;;  %v14718_v52 = vsel %vm2333_vm2, %v5747_v51, %v5748_v37  ;;  %v14721_v45 = vsel %vm2333_vm2, %v5748_v37, %v5750_v47  ;;  %v7641_v51 = vld [vmem:[%s16114_s0 + $0x288] sm:$0xff]  ;;  %v7642_v37 = vld [vmem:[%s16114_s0 + $0x290] sm:$0xff] }
 0x558   :  { %18146 = vst [vmem:[#allocation196_spill] sm:$0xff] %v14715_v15  ;;  %18147 = vst [vmem:[#allocation74_spill] sm:$0xff] %v14718_v52  ;;  %v14724_v4 = vsel %vm2333_vm2, %v5752_v29, %v5753_v12  ;;  %v14727_v1 = vsel %vm2333_vm2, %v5753_v12, %v5755_v60  ;;  %v5760_v35 = vrot.slane %v7640_v26, 1  ;;  %v5762_v47 = vrot.slane %v7641_v51, 1  ;;  %v7643_v13 = vld [vmem:[%s16114_s0 + $0x298] sm:$0xff]  ;;  %v7645_v60 = vld [vmem:[%s16114_s0 + $0x2a8] sm:$0xff] }
 0x559   :  { %18148 = vst [vmem:[#allocation266_spill] sm:$0xff] %v14721_v45  ;;  %18149 = vst [vmem:[#allocation118_spill] sm:$0xff] %v14724_v4  ;;  %v14733_v17 = vsel %vm2333_vm2, %v5757_v55, %v5758_v40  ;;  %v5763_v33 = vrot.slane %v7642_v37, 1  ;;  %v5765_v29 = vrot.slane %v7643_v13, 1  ;;  %v7644_v55 = vld [vmem:[%s16114_s0 + $0x2a0] sm:$0xff]  ;;  %v5768_v26 = vrot.slane %v7645_v60, 1 }
 0x55a   :  { %18150 = vst [vmem:[#allocation232_spill] sm:$0xff] %v14727_v1  ;;  %18151 = vst [vmem:[#allocation197_spill] sm:$0xff] %v14733_v17  ;;  %v5767_v12 = vrot.slane %v7644_v55, 1  ;;  %v7646_v51 = vld [vmem:[%s16114_s0 + $0x2b0] sm:$0xff]  ;;  %v5772_v13 = vrot.slane %v7647_v21, 1  ;;  %v7648_v17 = vld [vmem:[%s16114_s0 + $0x2c0] sm:$0xff]  ;;  %v14781_v22 = vsel %vm2333_vm2, %v5758_v40, %v5760_v35 }
 0x55b   :  { %v5770_v37 = vrot.slane %v7646_v51, 1  ;;  %v5773_v55 = vrot.slane %v7648_v17, 1  ;;  %v7649_v1 = vld [vmem:[%s16114_s0 + $0x2c8] sm:$0xff]  ;;  %v7650_v4 = vld [vmem:[%s16114_s0 + $0x2d0] sm:$0xff]  ;;  %v7651_v45 = vld [vmem:[%s16114_s0 + $0x2d8] sm:$0xff]  ;;  %18152 = vst [vmem:[#allocation123_spill] sm:$0xff] %v14781_v22  ;;  %v14787_v58 = vsel %vm2333_vm2, %v5763_v33, %v5765_v29 }
 0x55c   :  { %v5775_v60 = vrot.slane %v7649_v1, 1  ;;  %v5777_v51 = vrot.slane %v7650_v4, 1  ;;  %v5778_v21 = vrot.slane %v7651_v45, 1  ;;  %v7652_v52 = vld [vmem:[%s16114_s0 + $0x2e0] sm:$0xff]  ;;  %v7653_v15 = vld [vmem:[%s16114_s0 + $0x2e8] sm:$0xff]  ;;  %v7654_v20 = vld [vmem:[%s16114_s0 + $0x2f0] sm:$0xff] }
 0x55d   :  { %v5780_v17 = vrot.slane %v7652_v52, 1  ;;  %v5782_v1 = vrot.slane %v7653_v15, 1  ;;  %v5783_v4 = vrot.slane %v7654_v20, 1  ;;  %v7655_v10 = vld [vmem:[%s16114_s0 + $0x2f8] sm:$0xff]  ;;  %v14784_v52 = vsel %vm2333_vm2, %v5762_v47, %v5763_v33  ;;  %18154 = vst [vmem:[#allocation126_spill] sm:$0xff] %v14787_v58  ;;  %v7656_v15 = vld [vmem:[%s16114_s0 + $0x300] sm:$0xff] }
 0x55e   :  { %v5785_v45 = vrot.slane %v7655_v10, 1  ;;  %18153 = vst [vmem:[#allocation122_spill] sm:$0xff] %v14784_v52  ;;  %v5787_v59 = vrot.slane %v7656_v15, 1  ;;  %v7657_v20 = vld [vmem:[%s16114_s0 + $0x308] sm:$0xff]  ;;  %v7658_v40 = vld [vmem:[%s16114_s0 + $0x310] sm:$0xff]  ;;  %v7659_v35 = vld [vmem:[%s16114_s0 + $0x318] sm:$0xff]  ;;  %v14805_v15 = vsel %vm2333_vm2, %v5767_v12, %v5768_v26  ;;  %v14811_v58 = vsel %vm2333_vm2, %v5772_v13, %v5773_v55 }
 0x55f   :  { %v5788_v46 = vrot.slane %v7657_v20, 1  ;;  %v5790_v10 = vrot.slane %v7658_v40, 1  ;;  %v5792_v47 = vrot.slane %v7659_v35, 1  ;;  %v7660_v33 = vld [vmem:[%s16114_s0 + $0x320] sm:$0xff]  ;;  %18155 = vst [vmem:[#allocation127_spill] sm:$0xff] %v14805_v15  ;;  %v14808_v20 = vsel %vm2333_vm2, %v5768_v26, %v5770_v37  ;;  %18157 = vst [vmem:[#allocation156_spill] sm:$0xff] %v14811_v58 }
 0x560   :  { %v5793_v29 = vrot.slane %v7660_v33, 1  ;;  %18156 = vst [vmem:[#allocation139_spill] sm:$0xff] %v14808_v20  ;;  %v14814_v40 = vsel %vm2333_vm2, %v5773_v55, %v5775_v60  ;;  %v14817_v52 = vsel %vm2333_vm2, %v5777_v51, %v5778_v21  ;;  %v14820_v35 = vsel %vm2333_vm2, %v5778_v21, %v5780_v17  ;;  %v7661_v26 = vld [vmem:[%s16114_s0 + $0x328] sm:$0xff]  ;;  %v7662_v13 = vld [vmem:[%s16114_s0 + $0x330] sm:$0xff]  ;;  %v7663_v60 = vld [vmem:[%s16114_s0 + $0x338] sm:$0xff] }
 0x561   :  { %18158 = vst [vmem:[#allocation173_spill] sm:$0xff] %v14814_v40  ;;  %18159 = vst [vmem:[#allocation88_spill] sm:$0xff] %v14817_v52  ;;  %v14823_v33 = vsel %vm2333_vm2, %v5782_v1, %v5783_v4  ;;  %v14826_v12 = vsel %vm2333_vm2, %v5783_v4, %v5785_v45  ;;  %v5795_v37 = vrot.slane %v7661_v26, 1  ;;  %v5797_v55 = vrot.slane %v7662_v13, 1  ;;  %v7664_v21 = vld [vmem:[%s16114_s0 + $0x340] sm:$0xff] }
 0x562   :  { %18160 = vst [vmem:[#allocation235_spill] sm:$0xff] %v14820_v35  ;;  %18161 = vst [vmem:[#allocation98_spill] sm:$0xff] %v14823_v33  ;;  %v5798_v51 = vrot.slane %v7663_v60, 1  ;;  %v5800_v17 = vrot.slane %v7664_v21, 1  ;;  %v14841_v1 = vsel %vm2333_vm2, %v5787_v59, %v5788_v46  ;;  %v14844_v4 = vsel %vm2333_vm2, %v5788_v46, %v5790_v10 }
 0x563   :  { %18162 = vst [vmem:[#allocation132_spill] sm:$0xff] %v14826_v12  ;;  %18163 = vst [vmem:[#allocation254_spill] sm:$0xff] %v14841_v1  ;;  %v14847_v45 = vsel %vm2333_vm2, %v5792_v47, %v5793_v29  ;;  %v18166_v13 = vsub.f32 %v14679_v43, %v14683_v38  ;;  %v14869_v60 = vsel %vm2333_vm2, %v5793_v29, %v5795_v37 }
 0x564   :  { %18164 = vst [vmem:[#allocation236_spill] sm:$0xff] %v14844_v4  ;;  %18165 = vst [vmem:[#allocation28_spill] sm:$0xff] %v14847_v45  ;;  %v14872_v21 = vsel %vm2333_vm2, %v5797_v55, %v5798_v51  ;;  %v14875_v59 = vsel %vm2333_vm2, %v5798_v51, %v5800_v17  ;;  %v5370_v46 = vsub.f32 %v14143_v25, %v14659_v30 }
 0x565   :  { %v5434_v26 = vadd.f32 1e-05, %v18166_v13  ;;  %18167 = vst [vmem:[#allocation91_spill] sm:$0xff] %v14869_v60  ;;  %18168 = vst [vmem:[#allocation165_spill] sm:$0xff] %v14872_v21  ;;  %v5371_v10 = vsub.f32 %v14147_v0, %v14659_v30  ;;  %v5372_v47 = vsub.f32 %v14151_v2, %v14659_v30  ;;  %v5373_v43 = vsub.f32 %v14155_v9, %v14659_v30 }
 0x566   :  { %18169 = vst [vmem:[#allocation141_spill] sm:$0xff] %v14875_v59  ;;  %v5374_v38 = vsub.f32 %v14161_v34, %v14659_v30  ;;  %v5375_v29 = vsub.f32 %v14178_v31, %v14659_v30  ;;  %v5376_v37 = vsub.f32 %v14193_v49, %v14659_v30  ;;  %v5377_v25 = vsub.f32 %v14205_v54, %v14659_v30 }
 0x567   :  { %7599 = vrsqrt.f32 %v5434_v26  ;;  %v5378_v0 = vsub.f32 %v14215_v36, %v14659_v30  ;;  %v5379_v2 = vsub.f32 %v14035_v28, %v14659_v30  ;;  %v5380_v9 = vsub.f32 %v14046_v61, %v14659_v30 }
 0x568   :  { %v5381_v34 = vsub.f32 %v14059_v32, %v14659_v30  ;;  %v5382_v31 = vsub.f32 %v14070_v53, %v14659_v30  ;;  %v5383_v49 = vsub.f32 %v14081_v16, %v14659_v30  ;;  %v5384_v54 = vsub.f32 %v14098_v11, %v14659_v30 }
 0x569   :  { %v5385_v36 = vsub.f32 %v14111_v5, %v14659_v30  ;;  %v5386_v28 = vsub.f32 %v14119_v23, %v14659_v30  ;;  %v5387_v61 = vsub.f32 %v14123_v63, %v14659_v30  ;;  %v5388_v32 = vsub.f32 %v14125_v39, %v14659_v30 }
 0x56a   :  { %v5389_v53 = vsub.f32 %v14127_v14, %v14659_v30  ;;  %v5390_v16 = vsub.f32 %v14129_v42, %v14659_v30  ;;  %v5391_v11 = vsub.f32 %v14131_v56, %v14659_v30  ;;  %v5392_v5 = vsub.f32 %v14133_v24, %v14659_v30  ;;  %v18170_v42 = vld [vmem:[#allocation82_spill] sm:$0xff]  ;;  %v18172_v24 = vld [vmem:[#allocation84_spill] sm:$0xff] }
 0x56b   :  { %v5393_v23 = vsub.f32 %v14135_v3, %v14659_v30  ;;  %v5394_v63 = vsub.f32 %v14137_v50, %v14659_v30  ;;  %v5395_v39 = vsub.f32 %v14139_v27, %v14659_v30  ;;  %v5396_v14 = vsub.f32 %v14141_v6, %v14659_v30  ;;  %v18171_v56 = vld [vmem:[#allocation86_spill] sm:$0xff]  ;;  %v18173_v3 = vld [vmem:[#allocation191_spill] sm:$0xff]  ;;  %v18175_v27 = vld [vmem:[#allocation109_spill] sm:$0xff] }
 0x56c   :  { %v5397_v55 = vsub.f32 %v18170_v42, %v14659_v30  ;;  %v5398_v51 = vsub.f32 %v18171_v56, %v14659_v30  ;;  %v5399_v17 = vsub.f32 %v18172_v24, %v14659_v30  ;;  %v5400_v26 = vsub.f32 %v18173_v3, %v14659_v30  ;;  %v18174_v50 = vld [vmem:[#allocation70_spill] sm:$0xff]  ;;  %v18176_v6 = vld [vmem:[#allocation108_spill] sm:$0xff]  ;;  %v18179_v24 = vld [vmem:[#allocation113_spill] sm:$0xff] }
 0x56d   :  { %v5401_v13 = vsub.f32 %v18174_v50, %v14659_v30  ;;  %v5402_v59 = vsub.f32 %v18175_v27, %v14659_v30  ;;  %v5403_v21 = vsub.f32 %v18176_v6, %v14659_v30  ;;  %v18177_v42 = vld [vmem:[#allocation134_spill] sm:$0xff]  ;;  %v18178_v56 = vld [vmem:[#allocation56_spill] sm:$0xff]  ;;  %v5406_v4 = vsub.f32 %v18179_v24, %v14659_v30  ;;  %v18181_v50 = vld [vmem:[#allocation133_spill] sm:$0xff] }
 0x56e   :  { %v5404_v60 = vsub.f32 %v18177_v42, %v14659_v30  ;;  %v5405_v45 = vsub.f32 %v18178_v56, %v14659_v30  ;;  %v18180_v3 = vld [vmem:[#allocation112_spill] sm:$0xff]  ;;  %v5408_v12 = vsub.f32 %v18181_v50, %v14659_v30  ;;  %v18182_v27 = vld [vmem:[#allocation117_spill] sm:$0xff] }
 0x56f   :  { %v5407_v1 = vsub.f32 %v18180_v3, %v14659_v30  ;;  %v5409_v33 = vsub.f32 %v18182_v27, %v14659_v30  ;;  %v18183_v6 = vld [vmem:[#allocation116_spill] sm:$0xff]  ;;  %v18185_v56 = vld [vmem:[#allocation225_spill] sm:$0xff]  ;;  %v18189_v27 = vld [vmem:[#allocation110_spill] sm:$0xff] }
 0x570   :  { %v5410_v35 = vsub.f32 %v18183_v6, %v14659_v30  ;;  %v18184_v42 = vld [vmem:[#allocation60_spill] sm:$0xff]  ;;  %v5412_v40 = vsub.f32 %v18185_v56, %v14659_v30  ;;  %v18187_v3 = vld [vmem:[#allocation121_spill] sm:$0xff]  ;;  %v5416_v22 = vsub.f32 %v18189_v27, %v14659_v30  ;;  %v18190_v6 = vld [vmem:[#allocation138_spill] sm:$0xff] }
 0x571   :  { %v5411_v52 = vsub.f32 %v18184_v42, %v14659_v30  ;;  %v18186_v24 = vld [vmem:[#allocation188_spill] sm:$0xff]  ;;  %v5414_v20 = vsub.f32 %v18187_v3, %v14659_v30  ;;  %v5417_v48 = vsub.f32 %v18190_v6, %v14659_v30  ;;  %v18191_v42 = vld [vmem:[#allocation257_spill] sm:$0xff]  ;;  %v18192_v56 = vld [vmem:[#allocation154_spill] sm:$0xff]  ;;  %v5423_v6 = vsub.f32 %v18196_v57, %v14659_v30 }
 0x572   :  { %v5413_v58 = vsub.f32 %v18186_v24, %v14659_v30  ;;  %v18188_v50 = vld [vmem:[#allocation120_spill] sm:$0xff]  ;;  %v5418_v8 = vsub.f32 %v18191_v42, %v14659_v30  ;;  %v5419_v44 = vsub.f32 %v18192_v56, %v14659_v30  ;;  %v18193_v24 = vld [vmem:[#allocation38_spill] sm:$0xff]  ;;  %v18194_v3 = vld [vmem:[#allocation75_spill] sm:$0xff]  ;;  %v5424_v42 = vsub.f32 %v18197_v41, %v14659_v30 }
 0x573   :  { %v5415_v15 = vsub.f32 %v18188_v50, %v14659_v30  ;;  %v5420_v7 = vsub.f32 %v18193_v24, %v14659_v30  ;;  %v5421_v62 = vsub.f32 %v18194_v3, %v14659_v30  ;;  %v18195_v50 = vld [vmem:[#allocation182_spill] sm:$0xff]  ;;  %v5425_v56 = vsub.f32 %v18198_v19, %v14659_v30 }
 0x574   :  { %v14981_v18 = vpop.eup %7599  ;;  %v5422_v27 = vsub.f32 %v18195_v50, %v14659_v30 }
 0x575   :  { %v14992_v24 = vmul.f32 %v14981_v18, %v5370_v46  ;;  %v14995_v3 = vmul.f32 %v14981_v18, %v5371_v10  ;;  %v14998_v50 = vmul.f32 %v14981_v18, %v5372_v47  ;;  %v15001_v57 = vmul.f32 %v14981_v18, %v5373_v43 }
 0x576   :  { %v15004_v41 = vmul.f32 %v14981_v18, %v5374_v38  ;;  %v15007_v19 = vmul.f32 %v14981_v18, %v5375_v29  ;;  %v15010_v30 = vmul.f32 %v14981_v18, %v5376_v37  ;;  %v15013_v46 = vmul.f32 %v14981_v18, %v5377_v25 }
 0x577   :  { %v15016_v10 = vmul.f32 %v14981_v18, %v5378_v0  ;;  %v15019_v47 = vmul.f32 %v14981_v18, %v5379_v2  ;;  %v15022_v43 = vmul.f32 %v14981_v18, %v5380_v9  ;;  %v15025_v38 = vmul.f32 %v14981_v18, %v5381_v34 }
 0x578   :  { %v15028_v29 = vmul.f32 %v14981_v18, %v5382_v31  ;;  %v15031_v37 = vmul.f32 %v14981_v18, %v5383_v49  ;;  %v15034_v25 = vmul.f32 %v14981_v18, %v5384_v54  ;;  %v15037_v0 = vmul.f32 %v14981_v18, %v5385_v36 }
 0x579   :  { %v15040_v2 = vmul.f32 %v14981_v18, %v5386_v28  ;;  %v15043_v9 = vmul.f32 %v14981_v18, %v5387_v61  ;;  %v15046_v34 = vmul.f32 %v14981_v18, %v5388_v32  ;;  %v15049_v31 = vmul.f32 %v14981_v18, %v5389_v53 }
 0x57a   :  { %v15052_v49 = vmul.f32 %v14981_v18, %v5390_v16  ;;  %v15055_v54 = vmul.f32 %v14981_v18, %v5391_v11  ;;  %v15058_v36 = vmul.f32 %v14981_v18, %v5392_v5  ;;  %v15061_v28 = vmul.f32 %v14981_v18, %v5393_v23 }
 0x57b   :  { %v15064_v61 = vmul.f32 %v14981_v18, %v5394_v63  ;;  %v15067_v32 = vmul.f32 %v14981_v18, %v5395_v39  ;;  %v15070_v53 = vmul.f32 %v14981_v18, %v5396_v14  ;;  %v15073_v16 = vmul.f32 %v14981_v18, %v5397_v55 }
 0x57c   :  { %v15076_v11 = vmul.f32 %v14981_v18, %v5398_v51  ;;  %v15079_v5 = vmul.f32 %v14981_v18, %v5399_v17  ;;  %v15082_v23 = vmul.f32 %v14981_v18, %v5400_v26  ;;  %v15085_v63 = vmul.f32 %v14981_v18, %v5401_v13 }
 0x57d   :  { %v15088_v39 = vmul.f32 %v14981_v18, %v5402_v59  ;;  %v15091_v14 = vmul.f32 %v14981_v18, %v5403_v21  ;;  %v15094_v55 = vmul.f32 %v14981_v18, %v5404_v60  ;;  %v15097_v51 = vmul.f32 %v14981_v18, %v5405_v45 }
 0x57e   :  { %v15100_v17 = vmul.f32 %v14981_v18, %v5406_v4  ;;  %v15103_v26 = vmul.f32 %v14981_v18, %v5407_v1  ;;  %v15106_v13 = vmul.f32 %v14981_v18, %v5408_v12  ;;  %v15109_v59 = vmul.f32 %v14981_v18, %v5409_v33 }
 0x57f   :  { %v15112_v21 = vmul.f32 %v14981_v18, %v5410_v35  ;;  %v15115_v60 = vmul.f32 %v14981_v18, %v5411_v52  ;;  %v15118_v45 = vmul.f32 %v14981_v18, %v5412_v40  ;;  %v15121_v4 = vmul.f32 %v14981_v18, %v5413_v58 }
 0x580   :  { %v15124_v1 = vmul.f32 %v14981_v18, %v5414_v20  ;;  %v15127_v12 = vmul.f32 %v14981_v18, %v5415_v15  ;;  %v15130_v33 = vmul.f32 %v14981_v18, %v5416_v22  ;;  %v15133_v35 = vmul.f32 %v14981_v18, %v5417_v48 }
 0x581   :  { %v15136_v52 = vmul.f32 %v14981_v18, %v5418_v8  ;;  %v15139_v40 = vmul.f32 %v14981_v18, %v5419_v44  ;;  %v15142_v58 = vmul.f32 %v14981_v18, %v5420_v7  ;;  %v15145_v20 = vmul.f32 %v14981_v18, %v5421_v62  ;;  %v15162_v7 = vld [vmem:[%s16119_s6] ss:$0 sm:$0xff]  ;;  %v18205_v44 = vld [vmem:[#allocation195_spill] sm:$0xff]  ;;  %v18206_v62 = vld [vmem:[#allocation76_spill] sm:$0xff] }
 0x582   :  { %v15148_v15 = vmul.f32 %v14981_v18, %v5422_v27  ;;  %v15151_v22 = vmul.f32 %v14981_v18, %v5423_v6  ;;  %v15154_v48 = vmul.f32 %v14981_v18, %v5424_v42  ;;  %v15157_v8 = vmul.f32 %v14981_v18, %v5425_v56 }
 0x583   :  { %18199 = vst [vmem:[#allocation170_spill] sm:$0xff] %v15142_v58  ;;  %18200 = vst [vmem:[#allocation167_spill] sm:$0xff] %v15145_v20  ;;  %v18207_v20 = vsub.f32 %v18205_v44, %v18206_v62 }
 0x584   :  { %18201 = vst [vmem:[#allocation201_spill] sm:$0xff] %v15148_v15  ;;  %18202 = vst [vmem:[#allocation176_spill] sm:$0xff] %v15151_v22  ;;  %v18209_v15 = vld [vmem:[#allocation85_spill] sm:$0xff] }
 0x585   :  { %18203 = vst [vmem:[#allocation192_spill] sm:$0xff] %v15154_v48  ;;  %18204 = vst [vmem:[#allocation237_spill] sm:$0xff] %v15157_v8  ;;  %v15168_v27 = vmul.f32 %v14981_v18, %v18207_v20  ;;  %v18210_v6 = vsub.f32 %v18209_v15, %v18206_v62  ;;  %v18212_v48 = vld [vmem:[#allocation89_spill] sm:$0xff]  ;;  %v18218_v20 = vld [vmem:[#allocation111_spill] sm:$0xff] }
 0x586   :  { %v18213_v56 = vsub.f32 %v18212_v48, %v18206_v62  ;;  %v18215_v22 = vld [vmem:[#allocation61_spill] sm:$0xff] }
 0x587   :  { %18208 = vst [vmem:[#allocation202_spill] sm:$0xff] %v15168_v27  ;;  %v15174_v42 = vmul.f32 %v14981_v18, %v18210_v6  ;;  %v18216_v58 = vsub.f32 %v18215_v22, %v18206_v62  ;;  %v18219_v27 = vsub.f32 %v18218_v20, %v18206_v62  ;;  %v18220_v6 = vld [vmem:[#allocation137_spill] sm:$0xff] }
 0x588   :  { %v15180_v8 = vmul.f32 %v14981_v18, %v18213_v56  ;;  %v18222_v56 = vld [vmem:[#allocation30_spill] sm:$0xff] }
 0x589   :  { %18211 = vst [vmem:[#allocation166_spill] sm:$0xff] %v15174_v42  ;;  %v15186_v44 = vmul.f32 %v14981_v18, %v18216_v58  ;;  %v15192_v15 = vmul.f32 %v14981_v18, %v18219_v27  ;;  %v18221_v42 = vsub.f32 %v18220_v6, %v18206_v62  ;;  %v18224_v58 = vld [vmem:[#allocation261_spill] sm:$0xff]  ;;  %v15214_v27 = vmul.f32 %v15162_v7, %v14992_v24 }
 0x58a   :  { %18214 = vst [vmem:[#allocation175_spill] sm:$0xff] %v15180_v8  ;;  %v18223_v8 = vsub.f32 %v18222_v56, %v18206_v62  ;;  %v15222_v6 = vmul.f32 %v15162_v7, %v14998_v50  ;;  %v15234_v24 = vmul.f32 %v15162_v7, %v15007_v19  ;;  %v15242_v50 = vmul.f32 %v15162_v7, %v15013_v46 }
 0x58b   :  { %18217 = vst [vmem:[#allocation83_spill] sm:$0xff] %v15186_v44  ;;  %v15198_v48 = vmul.f32 %v14981_v18, %v18221_v42  ;;  %v18225_v44 = vsub.f32 %v18224_v58, %v18206_v62  ;;  %v15218_v42 = vmul.f32 %v15162_v7, %v14995_v3  ;;  %v15238_v3 = vmul.f32 %v15162_v7, %v15010_v30  ;;  %v18228_v62 = vld [vmem:[#allocation170_spill] sm:$0xff]  ;;  %v18231_v56 = vld [vmem:[#allocation201_spill] sm:$0xff]  ;;  %v18233_v58 = vld [vmem:[#allocation176_spill] sm:$0xff] }
 0x58c   :  { %v15204_v22 = vmul.f32 %v14981_v18, %v18223_v8  ;;  %v15226_v8 = vmul.f32 %v15162_v7, %v15001_v57  ;;  %v15246_v57 = vmul.f32 %v15162_v7, %v15016_v10  ;;  %v15254_v19 = vmul.f32 %v15162_v7, %v15022_v43 }
 0x58d   :  { %v15210_v20 = vmul.f32 %v14981_v18, %v18225_v44  ;;  %v15230_v18 = vmul.f32 %v15162_v7, %v15004_v41  ;;  %v15250_v41 = vmul.f32 %v15162_v7, %v15019_v47  ;;  %v15258_v30 = vmul.f32 %v15162_v7, %v15025_v38  ;;  %v18229_v44 = vld [vmem:[#allocation167_spill] sm:$0xff] }
 0x58e   :  { %v15262_v46 = vmul.f32 %v15162_v7, %v15028_v29  ;;  %v15266_v10 = vmul.f32 %v15162_v7, %v15031_v37  ;;  %v15270_v47 = vmul.f32 %v15162_v7, %v15034_v25  ;;  %v15274_v43 = vmul.f32 %v15162_v7, %v15037_v0 }
 0x58f   :  { %v15278_v38 = vmul.f32 %v15162_v7, %v15040_v2  ;;  %v15282_v29 = vmul.f32 %v15162_v7, %v15043_v9  ;;  %v15286_v37 = vmul.f32 %v15162_v7, %v15046_v34  ;;  %v15290_v25 = vmul.f32 %v15162_v7, %v15049_v31 }
 0x590   :  { %v15294_v0 = vmul.f32 %v15162_v7, %v15052_v49  ;;  %v15298_v2 = vmul.f32 %v15162_v7, %v15055_v54  ;;  %v15302_v9 = vmul.f32 %v15162_v7, %v15058_v36  ;;  %v15306_v34 = vmul.f32 %v15162_v7, %v15061_v28 }
 0x591   :  { %v15310_v31 = vmul.f32 %v15162_v7, %v15064_v61  ;;  %v15314_v49 = vmul.f32 %v15162_v7, %v15067_v32  ;;  %v15318_v54 = vmul.f32 %v15162_v7, %v15070_v53  ;;  %v15322_v36 = vmul.f32 %v15162_v7, %v15073_v16 }
 0x592   :  { %v15326_v28 = vmul.f32 %v15162_v7, %v15076_v11  ;;  %v15330_v61 = vmul.f32 %v15162_v7, %v15079_v5  ;;  %v15334_v32 = vmul.f32 %v15162_v7, %v15082_v23  ;;  %v15338_v53 = vmul.f32 %v15162_v7, %v15085_v63 }
 0x593   :  { %v15342_v16 = vmul.f32 %v15162_v7, %v15088_v39  ;;  %v15346_v11 = vmul.f32 %v15162_v7, %v15091_v14  ;;  %v15350_v5 = vmul.f32 %v15162_v7, %v15094_v55  ;;  %v15354_v23 = vmul.f32 %v15162_v7, %v15097_v51 }
 0x594   :  { %v15358_v63 = vmul.f32 %v15162_v7, %v15100_v17  ;;  %v15362_v39 = vmul.f32 %v15162_v7, %v15103_v26  ;;  %v15366_v14 = vmul.f32 %v15162_v7, %v15106_v13  ;;  %v15370_v55 = vmul.f32 %v15162_v7, %v15109_v59 }
 0x595   :  { %v15374_v51 = vmul.f32 %v15162_v7, %v15112_v21  ;;  %v15378_v17 = vmul.f32 %v15162_v7, %v15115_v60  ;;  %v15382_v26 = vmul.f32 %v15162_v7, %v15118_v45  ;;  %v15386_v13 = vmul.f32 %v15162_v7, %v15121_v4 }
 0x596   :  { %v15390_v59 = vmul.f32 %v15162_v7, %v15124_v1  ;;  %v15394_v21 = vmul.f32 %v15162_v7, %v15127_v12  ;;  %v15398_v60 = vmul.f32 %v15162_v7, %v15130_v33  ;;  %v15402_v45 = vmul.f32 %v15162_v7, %v15133_v35 }
 0x597   :  { %v15406_v4 = vmul.f32 %v15162_v7, %v15136_v52  ;;  %v15410_v1 = vmul.f32 %v15162_v7, %v15139_v40  ;;  %v15414_v12 = vmul.f32 %v15162_v7, %v18228_v62  ;;  %v15418_v33 = vmul.f32 %v15162_v7, %v18229_v44  ;;  %v15439_v44 = vld [vmem:[%s16120_s7] ss:$0 sm:$0xff] }
 0x598   :  { %v15422_v35 = vmul.f32 %v15162_v7, %v18231_v56  ;;  %v15426_v52 = vmul.f32 %v15162_v7, %v18233_v58 }
 0x599   :  { %18226 = vst [vmem:[#allocation90_spill] sm:$0xff] %v15406_v4  ;;  %18227 = vst [vmem:[#allocation106_spill] sm:$0xff] %v15410_v1  ;;  %v18235_v4 = vld [vmem:[#allocation192_spill] sm:$0xff]  ;;  %v18237_v1 = vld [vmem:[#allocation237_spill] sm:$0xff] }
 0x59a   :  { %18230 = vst [vmem:[#allocation199_spill] sm:$0xff] %v15418_v33  ;;  %18232 = vst [vmem:[#allocation240_spill] sm:$0xff] %v15422_v35  ;;  %v15430_v40 = vmul.f32 %v15162_v7, %v18235_v4  ;;  %v15434_v62 = vmul.f32 %v15162_v7, %v18237_v1  ;;  %v18239_v33 = vld [vmem:[#allocation202_spill] sm:$0xff] }
 0x59b   :  { %18234 = vst [vmem:[#allocation212_spill] sm:$0xff] %v15426_v52  ;;  %v15443_v56 = vmul.f32 %v15162_v7, %v18239_v33  ;;  %v18240_v35 = vld [vmem:[#allocation166_spill] sm:$0xff]  ;;  %v18241_v52 = vld [vmem:[#allocation175_spill] sm:$0xff]  ;;  %v15463_v33 = vmul.f32 %v15162_v7, %v15198_v48  ;;  %v15483_v48 = vadd.f32 %v15439_v44, %v15222_v6  ;;  %v15507_v6 = vadd.f32 %v15439_v44, %v15246_v57 }
 0x59c   :  { %18236 = vst [vmem:[#allocation29_spill] sm:$0xff] %v15430_v40  ;;  %18238 = vst [vmem:[#allocation93_spill] sm:$0xff] %v15434_v62  ;;  %v15447_v58 = vmul.f32 %v15162_v7, %v18240_v35  ;;  %v15451_v4 = vmul.f32 %v15162_v7, %v18241_v52  ;;  %v18242_v40 = vld [vmem:[#allocation83_spill] sm:$0xff]  ;;  %v15459_v62 = vmul.f32 %v15162_v7, %v15192_v15 }
 0x59d   :  { %v15455_v1 = vmul.f32 %v15162_v7, %v18242_v40  ;;  %v15467_v35 = vmul.f32 %v15162_v7, %v15204_v22  ;;  %v15471_v52 = vmul.f32 %v15162_v7, %v15210_v20  ;;  %v15475_v40 = vadd.f32 %v15439_v44, %v15214_v27 }
 0x59e   :  { %v15479_v15 = vadd.f32 %v15439_v44, %v15218_v42  ;;  %v15487_v22 = vadd.f32 %v15439_v44, %v15226_v8  ;;  %v15491_v7 = vadd.f32 %v15439_v44, %v15230_v18  ;;  %v15495_v20 = vadd.f32 %v15439_v44, %v15234_v24 }
 0x59f   :  { %v15499_v27 = vadd.f32 %v15439_v44, %v15238_v3  ;;  %v15503_v42 = vadd.f32 %v15439_v44, %v15242_v50  ;;  %v15511_v8 = vadd.f32 %v15439_v44, %v15250_v41  ;;  %v15515_v18 = vadd.f32 %v15439_v44, %v15254_v19 }
 0x5a0   :  { %v15519_v24 = vadd.f32 %v15439_v44, %v15258_v30  ;;  %v15523_v3 = vadd.f32 %v15439_v44, %v15262_v46  ;;  %v15527_v50 = vadd.f32 %v15439_v44, %v15266_v10  ;;  %v15531_v57 = vadd.f32 %v15439_v44, %v15270_v47 }
 0x5a1   :  { %v15535_v41 = vadd.f32 %v15439_v44, %v15274_v43  ;;  %v15539_v19 = vadd.f32 %v15439_v44, %v15278_v38  ;;  %v15543_v30 = vadd.f32 %v15439_v44, %v15282_v29  ;;  %v15547_v46 = vadd.f32 %v15439_v44, %v15286_v37 }
 0x5a2   :  { %v15551_v10 = vadd.f32 %v15439_v44, %v15290_v25  ;;  %v15555_v47 = vadd.f32 %v15439_v44, %v15294_v0  ;;  %v15559_v43 = vadd.f32 %v15439_v44, %v15298_v2  ;;  %v15563_v38 = vadd.f32 %v15439_v44, %v15302_v9 }
 0x5a3   :  { %v15567_v29 = vadd.f32 %v15439_v44, %v15306_v34  ;;  %v15571_v37 = vadd.f32 %v15439_v44, %v15310_v31  ;;  %v15575_v25 = vadd.f32 %v15439_v44, %v15314_v49  ;;  %v15579_v0 = vadd.f32 %v15439_v44, %v15318_v54 }
 0x5a4   :  { %v15583_v2 = vadd.f32 %v15439_v44, %v15322_v36  ;;  %v15587_v9 = vadd.f32 %v15439_v44, %v15326_v28  ;;  %v15591_v34 = vadd.f32 %v15439_v44, %v15330_v61  ;;  %v15595_v31 = vadd.f32 %v15439_v44, %v15334_v32 }
 0x5a5   :  { %v15599_v49 = vadd.f32 %v15439_v44, %v15338_v53  ;;  %v15603_v54 = vadd.f32 %v15439_v44, %v15342_v16  ;;  %v15607_v36 = vadd.f32 %v15439_v44, %v15346_v11  ;;  %v15611_v28 = vadd.f32 %v15439_v44, %v15350_v5 }
 0x5a6   :  { %v15615_v61 = vadd.f32 %v15439_v44, %v15354_v23  ;;  %v15619_v32 = vadd.f32 %v15439_v44, %v15358_v63  ;;  %v15623_v53 = vadd.f32 %v15439_v44, %v15362_v39  ;;  %v15627_v16 = vadd.f32 %v15439_v44, %v15366_v14 }
 0x5a7   :  { %v15631_v11 = vadd.f32 %v15439_v44, %v15370_v55  ;;  %v15635_v5 = vadd.f32 %v15439_v44, %v15374_v51  ;;  %v15639_v23 = vadd.f32 %v15439_v44, %v15378_v17  ;;  %v15643_v63 = vadd.f32 %v15439_v44, %v15382_v26  ;;  %v18247_v26 = vld [vmem:[#allocation90_spill] sm:$0xff] }
 0x5a8   :  { %v15647_v39 = vadd.f32 %v15439_v44, %v15386_v13  ;;  %v15651_v14 = vadd.f32 %v15439_v44, %v15390_v59  ;;  %v15655_v55 = vadd.f32 %v15439_v44, %v15394_v21  ;;  %v15659_v51 = vadd.f32 %v15439_v44, %v15398_v60 }
 0x5a9   :  { %v15663_v17 = vadd.f32 %v15439_v44, %v15402_v45  ;;  %v15667_v13 = vadd.f32 %v15439_v44, %v18247_v26  ;;  %v15675_v21 = vadd.f32 %v15439_v44, %v15414_v12 }
 0x5aa   :  { %18243 = vst [vmem:[#allocation65_spill] sm:$0xff] %v15647_v39  ;;  %18244 = vst [vmem:[#allocation241_spill] sm:$0xff] %v15655_v55  ;;  %v18249_v39 = vld [vmem:[#allocation106_spill] sm:$0xff]  ;;  %v18251_v55 = vld [vmem:[#allocation199_spill] sm:$0xff] }
 0x5ab   :  { %18245 = vst [vmem:[#allocation145_spill] sm:$0xff] %v15659_v51  ;;  %18246 = vst [vmem:[#allocation184_spill] sm:$0xff] %v15663_v17  ;;  %v15671_v59 = vadd.f32 %v15439_v44, %v18249_v39  ;;  %v15679_v60 = vadd.f32 %v15439_v44, %v18251_v55  ;;  %v18252_v51 = vld [vmem:[#allocation240_spill] sm:$0xff]  ;;  %v15699_v55 = vadd.f32 %v15439_v44, %v15443_v56 }
 0x5ac   :  { %18248 = vst [vmem:[#allocation172_spill] sm:$0xff] %v15667_v13  ;;  %v15683_v45 = vadd.f32 %v15439_v44, %v18252_v51  ;;  %v18253_v17 = vld [vmem:[#allocation212_spill] sm:$0xff]  ;;  %v18254_v13 = vld [vmem:[#allocation29_spill] sm:$0xff]  ;;  %v15703_v51 = vadd.f32 %v15439_v44, %v15447_v58  ;;  %v15719_v56 = vadd.f32 %v15439_v44, %v15463_v33  ;;  %v15723_v58 = vadd.f32 %v15439_v44, %v15467_v35 }
 0x5ad   :  { %18250 = vst [vmem:[#allocation206_spill] sm:$0xff] %v15671_v59  ;;  %v15687_v26 = vadd.f32 %v15439_v44, %v18253_v17  ;;  %v15691_v39 = vadd.f32 %v15439_v44, %v18254_v13  ;;  %v18255_v59 = vld [vmem:[#allocation93_spill] sm:$0xff]  ;;  %18257 = vst [vmem:[#allocation100_spill] sm:$0xff] %v15699_v55  ;;  %v15707_v17 = vadd.f32 %v15439_v44, %v15451_v4  ;;  %v18268_v55 = vld [vmem:[#allocation6_spill] sm:$0xff] }
 0x5ae   :  { %v15695_v12 = vadd.f32 %v15439_v44, %v18255_v59  ;;  %18258 = vst [vmem:[#allocation68_spill] sm:$0xff] %v15703_v51  ;;  %v15711_v13 = vadd.f32 %v15439_v44, %v15455_v1  ;;  %v15715_v59 = vadd.f32 %v15439_v44, %v15459_v62  ;;  %18262 = vst [vmem:[#allocation102_spill] sm:$0xff] %v15719_v56  ;;  %v18266_v62 = vld [vmem:[#allocation4_spill] sm:$0xff]  ;;  %v18267_v33 = vld [vmem:[#allocation5_spill] sm:$0xff] }
 0x5af   :  { %18259 = vst [vmem:[#allocation242_spill] sm:$0xff] %v15707_v17  ;;  %18263 = vst [vmem:[#allocation143_spill] sm:$0xff] %v15723_v58  ;;  %v15727_v4 = vadd.f32 %v15439_v44, %v15471_v52  ;;  %v18264_v17 = vld [vmem:[#allocation2_spill] sm:$0xff]  ;;  %v5869_v56 = vadd.f32 %v18267_v33, %v15487_v22  ;;  %v5870_v35 = vadd.f32 %v18268_v55, %v15491_v7  ;;  %v18269_v58 = vld [vmem:[#allocation7_spill] sm:$0xff] }
 0x5b0   :  { %18256 = vst [vmem:[#allocation96_spill] sm:$0xff] %v15695_v12  ;;  %18260 = vst [vmem:[#allocation207_spill] sm:$0xff] %v15711_v13  ;;  %v5866_v1 = vadd.f32 %v18264_v17, %v15475_v40  ;;  %v18265_v13 = vld [vmem:[#allocation3_spill] sm:$0xff]  ;;  %v5871_v12 = vadd.f32 %v18269_v58, %v15495_v20  ;;  %v18270_v44 = vld [vmem:[#allocation8_spill] sm:$0xff] }
 0x5b1   :  { %18261 = vst [vmem:[#allocation162_spill] sm:$0xff] %v15715_v59  ;;  %v5867_v51 = vadd.f32 %v18265_v13, %v15479_v15  ;;  %v5868_v59 = vadd.f32 %v18266_v62, %v15483_v48  ;;  %v5872_v52 = vadd.f32 %v18270_v44, %v15499_v27  ;;  %v18271_v40 = vld [vmem:[#allocation9_spill] sm:$0xff]  ;;  %v18272_v15 = vld [vmem:[#allocation10_spill] sm:$0xff]  ;;  %v18273_v48 = vld [vmem:[#allocation11_spill] sm:$0xff] }
 0x5b2   :  { %v5873_v17 = vadd.f32 %v18271_v40, %v15503_v42  ;;  %v5874_v13 = vadd.f32 %v18272_v15, %v15507_v6  ;;  %v5875_v62 = vadd.f32 %v18273_v48, %v15511_v8  ;;  %v18274_v22 = vld [vmem:[#allocation12_spill] sm:$0xff]  ;;  %v18275_v7 = vld [vmem:[#allocation13_spill] sm:$0xff]  ;;  %5930 = vst.msk [vmem:[%s16121_s8] sm:$0xff] %vm138_vm1, %v5866_v1  ;;  %5933 = vst.msk [vmem:[%s16121_s8 + $0x18] sm:$0xff] %vm138_vm1, %v5869_v56 }
 0x5b3   :  { %v5876_v33 = vadd.f32 %v18274_v22, %v15515_v18  ;;  %v5877_v55 = vadd.f32 %v18275_v7, %v15519_v24  ;;  %5931 = vst.msk [vmem:[%s16121_s8 + $0x8] sm:$0xff] %vm138_vm1, %v5867_v51  ;;  %5932 = vst.msk [vmem:[%s16121_s8 + $0x10] sm:$0xff] %vm138_vm1, %v5868_v59  ;;  %v18276_v20 = vld [vmem:[#allocation14_spill] sm:$0xff]  ;;  %v18277_v42 = vld [vmem:[#allocation15_spill] sm:$0xff] }
 0x5b4   :  { %v5878_v27 = vadd.f32 %v18276_v20, %v15523_v3  ;;  %v5879_v6 = vadd.f32 %v18277_v42, %v15527_v50  ;;  %v18278_v8 = vld [vmem:[#allocation16_spill] sm:$0xff]  ;;  %v18279_v24 = vld [vmem:[#allocation17_spill] sm:$0xff]  ;;  %5934 = vst.msk [vmem:[%s16121_s8 + $0x20] sm:$0xff] %vm138_vm1, %v5870_v35  ;;  %5935 = vst.msk [vmem:[%s16121_s8 + $0x28] sm:$0xff] %vm138_vm1, %v5871_v12 }
 0x5b5   :  { %v5880_v18 = vadd.f32 %v18278_v8, %v15531_v57  ;;  %v5881_v51 = vadd.f32 %v18279_v24, %v15535_v41  ;;  %5936 = vst.msk [vmem:[%s16121_s8 + $0x30] sm:$0xff] %vm138_vm1, %v5872_v52  ;;  %5937 = vst.msk [vmem:[%s16121_s8 + $0x38] sm:$0xff] %vm138_vm1, %v5873_v17  ;;  %v18280_v3 = vld [vmem:[#allocation18_spill] sm:$0xff]  ;;  %v18281_v57 = vld [vmem:[#allocation19_spill] sm:$0xff] }
 0x5b6   :  { %v5882_v50 = vadd.f32 %v18280_v3, %v15539_v19  ;;  %v5883_v41 = vadd.f32 %v18281_v57, %v15543_v30  ;;  %v18282_v59 = vld [vmem:[#allocation20_spill] sm:$0xff]  ;;  %v18283_v12 = vld [vmem:[#allocation21_spill] sm:$0xff]  ;;  %5938 = vst.msk [vmem:[%s16121_s8 + $0x40] sm:$0xff] %vm138_vm1, %v5874_v13  ;;  %5939 = vst.msk [vmem:[%s16121_s8 + $0x48] sm:$0xff] %vm138_vm1, %v5875_v62 }
 0x5b7   :  { %v5884_v56 = vadd.f32 %v18282_v59, %v15547_v46  ;;  %v5885_v58 = vadd.f32 %v18283_v12, %v15551_v10  ;;  %5940 = vst.msk [vmem:[%s16121_s8 + $0x50] sm:$0xff] %vm138_vm1, %v5876_v33  ;;  %5941 = vst.msk [vmem:[%s16121_s8 + $0x58] sm:$0xff] %vm138_vm1, %v5877_v55  ;;  %v18284_v19 = vld [vmem:[#allocation23_spill] sm:$0xff]  ;;  %v18285_v46 = vld [vmem:[#allocation24_spill] sm:$0xff] }
 0x5b8   :  { %v5886_v30 = vadd.f32 %v18284_v19, %v15555_v47  ;;  %v5887_v10 = vadd.f32 %v18285_v46, %v15559_v43  ;;  %v18286_v1 = vld [vmem:[#allocation25_spill] sm:$0xff]  ;;  %v18287_v44 = vld [vmem:[#allocation26_spill] sm:$0xff]  ;;  %5942 = vst.msk [vmem:[%s16121_s8 + $0x60] sm:$0xff] %vm138_vm1, %v5878_v27  ;;  %5943 = vst.msk [vmem:[%s16121_s8 + $0x68] sm:$0xff] %vm138_vm1, %v5879_v6 }
 0x5b9   :  { %v5888_v35 = vadd.f32 %v18286_v1, %v15563_v38  ;;  %v5889_v52 = vadd.f32 %v18287_v44, %v15567_v29  ;;  %5944 = vst.msk [vmem:[%s16121_s8 + $0x70] sm:$0xff] %vm138_vm1, %v5880_v18  ;;  %5945 = vst.msk [vmem:[%s16121_s8 + $0x78] sm:$0xff] %vm138_vm1, %v5881_v51  ;;  %v18288_v47 = vld [vmem:[#allocation27_spill] sm:$0xff]  ;;  %v18290_v40 = vld [vmem:[#allocation66_spill] sm:$0xff] }
 0x5ba   :  { %v5890_v43 = vadd.f32 %v18288_v47, %v15571_v37  ;;  %v18289_v38 = vld [vmem:[#allocation151_spill] sm:$0xff]  ;;  %v5892_v17 = vadd.f32 %v18290_v40, %v15579_v0  ;;  %v18291_v15 = vld [vmem:[#allocation72_spill] sm:$0xff]  ;;  %5946 = vst.msk [vmem:[%s16121_s8 + $0x80] sm:$0xff] %vm138_vm1, %v5882_v50  ;;  %5947 = vst.msk [vmem:[%s16121_s8 + $0x88] sm:$0xff] %vm138_vm1, %v5883_v41 }
 0x5bb   :  { %v5891_v29 = vadd.f32 %v18289_v38, %v15575_v25  ;;  %v5893_v13 = vadd.f32 %v18291_v15, %v15583_v2  ;;  %5948 = vst.msk [vmem:[%s16121_s8 + $0x90] sm:$0xff] %vm138_vm1, %v5884_v56  ;;  %5949 = vst.msk [vmem:[%s16121_s8 + $0x98] sm:$0xff] %vm138_vm1, %v5885_v58  ;;  %v18292_v37 = vld [vmem:[#allocation168_spill] sm:$0xff]  ;;  %v18293_v0 = vld [vmem:[#allocation46_spill] sm:$0xff] }
 0x5bc   :  { %v5894_v25 = vadd.f32 %v18292_v37, %v15587_v9  ;;  %v5895_v2 = vadd.f32 %v18293_v0, %v15591_v34  ;;  %v18294_v48 = vld [vmem:[#allocation33_spill] sm:$0xff]  ;;  %5950 = vst.msk [vmem:[%s16121_s8 + $0xa0] sm:$0xff] %vm138_vm1, %v5886_v30  ;;  %5951 = vst.msk [vmem:[%s16121_s8 + $0xa8] sm:$0xff] %vm138_vm1, %v5887_v10  ;;  %v18296_v9 = vld [vmem:[#allocation230_spill] sm:$0xff] }
 0x5bd   :  { %v5896_v62 = vadd.f32 %v18294_v48, %v15595_v31  ;;  %v18295_v22 = vld [vmem:[#allocation153_spill] sm:$0xff]  ;;  %5952 = vst.msk [vmem:[%s16121_s8 + $0xb0] sm:$0xff] %vm138_vm1, %v5888_v35  ;;  %5953 = vst.msk [vmem:[%s16121_s8 + $0xb8] sm:$0xff] %vm138_vm1, %v5889_v52  ;;  %v5898_v34 = vadd.f32 %v18296_v9, %v15603_v54  ;;  %v18297_v31 = vld [vmem:[#allocation79_spill] sm:$0xff] }
 0x5be   :  { %v5897_v33 = vadd.f32 %v18295_v22, %v15599_v49  ;;  %v5899_v49 = vadd.f32 %v18297_v31, %v15607_v36  ;;  %v18298_v7 = vld [vmem:[#allocation115_spill] sm:$0xff]  ;;  %v18299_v20 = vld [vmem:[#allocation114_spill] sm:$0xff]  ;;  %5954 = vst.msk [vmem:[%s16121_s8 + $0xc0] sm:$0xff] %vm138_vm1, %v5890_v43  ;;  %5955 = vst.msk [vmem:[%s16121_s8 + $0xc8] sm:$0xff] %vm138_vm1, %v5891_v29 }
 0x5bf   :  { %v5900_v55 = vadd.f32 %v18298_v7, %v15611_v28  ;;  %v5901_v27 = vadd.f32 %v18299_v20, %v15615_v61  ;;  %5956 = vst.msk [vmem:[%s16121_s8 + $0xd0] sm:$0xff] %vm138_vm1, %v5892_v17  ;;  %5957 = vst.msk [vmem:[%s16121_s8 + $0xd8] sm:$0xff] %vm138_vm1, %v5893_v13  ;;  %v18300_v54 = vld [vmem:[#allocation140_spill] sm:$0xff]  ;;  %v18301_v28 = vld [vmem:[#allocation119_spill] sm:$0xff] }
 0x5c0   :  { %v5902_v36 = vadd.f32 %v18300_v54, %v15619_v32  ;;  %v5903_v61 = vadd.f32 %v18301_v28, %v15623_v53  ;;  %v18302_v42 = vld [vmem:[#allocation169_spill] sm:$0xff]  ;;  %5958 = vst.msk [vmem:[%s16121_s8 + $0xe0] sm:$0xff] %vm138_vm1, %v5894_v25  ;;  %5959 = vst.msk [vmem:[%s16121_s8 + $0xe8] sm:$0xff] %vm138_vm1, %v5895_v2  ;;  %v18304_v32 = vld [vmem:[#allocation163_spill] sm:$0xff] }
 0x5c1   :  { %v5904_v6 = vadd.f32 %v18302_v42, %v15627_v16  ;;  %v18303_v8 = vld [vmem:[#allocation125_spill] sm:$0xff]  ;;  %5960 = vst.msk [vmem:[%s16121_s8 + $0xf0] sm:$0xff] %vm138_vm1, %v5896_v62  ;;  %5961 = vst.msk [vmem:[%s16121_s8 + $0xf8] sm:$0xff] %vm138_vm1, %v5897_v33  ;;  %v5906_v53 = vadd.f32 %v18304_v32, %v15635_v5  ;;  %v18305_v16 = vld [vmem:[#allocation196_spill] sm:$0xff] }
 0x5c2   :  { %v5905_v18 = vadd.f32 %v18303_v8, %v15631_v11  ;;  %v5907_v11 = vadd.f32 %v18305_v16, %v15639_v23  ;;  %v18306_v24 = vld [vmem:[#allocation74_spill] sm:$0xff]  ;;  %v18307_v3 = vld [vmem:[#allocation65_spill] sm:$0xff]  ;;  %5962 = vst.msk [vmem:[%s16121_s8 + $0x100] sm:$0xff] %vm138_vm1, %v5898_v34  ;;  %5963 = vst.msk [vmem:[%s16121_s8 + $0x108] sm:$0xff] %vm138_vm1, %v5899_v49 }
 0x5c3   :  { %v5908_v51 = vadd.f32 %v18306_v24, %v15643_v63  ;;  %v18308_v50 = vld [vmem:[#allocation266_spill] sm:$0xff]  ;;  %5964 = vst.msk [vmem:[%s16121_s8 + $0x110] sm:$0xff] %vm138_vm1, %v5900_v55  ;;  %5965 = vst.msk [vmem:[%s16121_s8 + $0x118] sm:$0xff] %vm138_vm1, %v5901_v27  ;;  %v18310_v63 = vld [vmem:[#allocation241_spill] sm:$0xff] }
 0x5c4   :  { %v5909_v57 = vadd.f32 %v18308_v50, %v18307_v3  ;;  %v18309_v5 = vld [vmem:[#allocation118_spill] sm:$0xff]  ;;  %v18311_v41 = vld [vmem:[#allocation232_spill] sm:$0xff]  ;;  %v18312_v56 = vld [vmem:[#allocation145_spill] sm:$0xff]  ;;  %5966 = vst.msk [vmem:[%s16121_s8 + $0x120] sm:$0xff] %vm138_vm1, %v5902_v36 }
 0x5c5   :  { %v5910_v23 = vadd.f32 %v18309_v5, %v15651_v14  ;;  %v5911_v59 = vadd.f32 %v18311_v41, %v18310_v63  ;;  %v18313_v12 = vld [vmem:[#allocation197_spill] sm:$0xff]  ;;  %v18314_v19 = vld [vmem:[#allocation184_spill] sm:$0xff]  ;;  %v18315_v30 = vld [vmem:[#allocation123_spill] sm:$0xff]  ;;  %5967 = vst.msk [vmem:[%s16121_s8 + $0x128] sm:$0xff] %vm138_vm1, %v5903_v61 }
 0x5c6   :  { %v5912_v58 = vadd.f32 %v18313_v12, %v18312_v56  ;;  %v5913_v46 = vadd.f32 %v18315_v30, %v18314_v19  ;;  %5968 = vst.msk [vmem:[%s16121_s8 + $0x130] sm:$0xff] %vm138_vm1, %v5904_v6  ;;  %5969 = vst.msk [vmem:[%s16121_s8 + $0x138] sm:$0xff] %vm138_vm1, %v5905_v18  ;;  %v18316_v14 = vld [vmem:[#allocation172_spill] sm:$0xff]  ;;  %v18317_v10 = vld [vmem:[#allocation122_spill] sm:$0xff] }
 0x5c7   :  { %v5914_v1 = vadd.f32 %v18317_v10, %v18316_v14  ;;  %v18318_v35 = vld [vmem:[#allocation206_spill] sm:$0xff]  ;;  %v18320_v47 = vld [vmem:[#allocation127_spill] sm:$0xff]  ;;  %5970 = vst.msk [vmem:[%s16121_s8 + $0x140] sm:$0xff] %vm138_vm1, %v5906_v53  ;;  %5971 = vst.msk [vmem:[%s16121_s8 + $0x148] sm:$0xff] %vm138_vm1, %v5907_v11 }
 0x5c8   :  { %v18319_v44 = vld [vmem:[#allocation126_spill] sm:$0xff]  ;;  %v5916_v43 = vadd.f32 %v18320_v47, %v15675_v21  ;;  %v18321_v38 = vld [vmem:[#allocation139_spill] sm:$0xff]  ;;  %5972 = vst.msk [vmem:[%s16121_s8 + $0x150] sm:$0xff] %vm138_vm1, %v5908_v51  ;;  %5973 = vst.msk [vmem:[%s16121_s8 + $0x158] sm:$0xff] %vm138_vm1, %v5909_v57 }
 0x5c9   :  { %v5915_v52 = vadd.f32 %v18319_v44, %v18318_v35  ;;  %v5917_v29 = vadd.f32 %v18321_v38, %v15679_v60  ;;  %v18322_v21 = vld [vmem:[#allocation156_spill] sm:$0xff]  ;;  %v18323_v40 = vld [vmem:[#allocation173_spill] sm:$0xff]  ;;  %v18326_v25 = vld [vmem:[#allocation235_spill] sm:$0xff]  ;;  %5974 = vst.msk [vmem:[%s16121_s8 + $0x160] sm:$0xff] %vm138_vm1, %v5910_v23 }
 0x5ca   :  { %v5918_v60 = vadd.f32 %v18322_v21, %v15683_v45  ;;  %v5919_v17 = vadd.f32 %v18323_v40, %v15687_v26  ;;  %v18324_v15 = vld [vmem:[#allocation88_spill] sm:$0xff]  ;;  %5975 = vst.msk [vmem:[%s16121_s8 + $0x168] sm:$0xff] %vm138_vm1, %v5911_v59  ;;  %5976 = vst.msk [vmem:[%s16121_s8 + $0x170] sm:$0xff] %vm138_vm1, %v5912_v58  ;;  %v18328_v26 = vld [vmem:[#allocation98_spill] sm:$0xff] }
 0x5cb   :  { %v5920_v13 = vadd.f32 %v18324_v15, %v15691_v39  ;;  %v18325_v37 = vld [vmem:[#allocation96_spill] sm:$0xff]  ;;  %5977 = vst.msk [vmem:[%s16121_s8 + $0x178] sm:$0xff] %vm138_vm1, %v5913_v46  ;;  %v18331_v22 = vld [vmem:[#allocation242_spill] sm:$0xff]  ;;  %v18333_v34 = vld [vmem:[#allocation207_spill] sm:$0xff] }
 0x5cc   :  { %v5921_v0 = vadd.f32 %v18326_v25, %v18325_v37  ;;  %v18327_v45 = vld [vmem:[#allocation100_spill] sm:$0xff]  ;;  %v18332_v33 = vld [vmem:[#allocation254_spill] sm:$0xff]  ;;  %5978 = vst.msk [vmem:[%s16121_s8 + $0x180] sm:$0xff] %vm138_vm1, %v5914_v1  ;;  %5979 = vst.msk [vmem:[%s16121_s8 + $0x188] sm:$0xff] %vm138_vm1, %v5915_v52 }
 0x5cd   :  { %v5922_v39 = vadd.f32 %v18328_v26, %v18327_v45  ;;  %v18329_v2 = vld [vmem:[#allocation68_spill] sm:$0xff]  ;;  %v5924_v9 = vadd.f32 %v18332_v33, %v18331_v22  ;;  %5980 = vst.msk [vmem:[%s16121_s8 + $0x190] sm:$0xff] %vm138_vm1, %v5916_v43  ;;  %5981 = vst.msk [vmem:[%s16121_s8 + $0x198] sm:$0xff] %vm138_vm1, %v5917_v29  ;;  %v18335_v7 = vld [vmem:[#allocation162_spill] sm:$0xff] }
 0x5ce   :  { %v18330_v48 = vld [vmem:[#allocation132_spill] sm:$0xff]  ;;  %v18337_v27 = vld [vmem:[#allocation102_spill] sm:$0xff]  ;;  %v18338_v54 = vld [vmem:[#allocation91_spill] sm:$0xff]  ;;  %5982 = vst.msk [vmem:[%s16121_s8 + $0x1a0] sm:$0xff] %vm138_vm1, %v5918_v60 }
 0x5cf   :  { %v5923_v62 = vadd.f32 %v18330_v48, %v18329_v2  ;;  %v18334_v31 = vld [vmem:[#allocation236_spill] sm:$0xff]  ;;  %v5927_v36 = vadd.f32 %v18338_v54, %v18337_v27  ;;  %v18339_v28 = vld [vmem:[#allocation143_spill] sm:$0xff]  ;;  %v18340_v61 = vld [vmem:[#allocation165_spill] sm:$0xff]  ;;  %5983 = vst.msk [vmem:[%s16121_s8 + $0x1a8] sm:$0xff] %vm138_vm1, %v5919_v17 }
 0x5d0   :  { %v5925_v49 = vadd.f32 %v18334_v31, %v18333_v34  ;;  %v18336_v55 = vld [vmem:[#allocation28_spill] sm:$0xff]  ;;  %v5928_v42 = vadd.f32 %v18340_v61, %v18339_v28  ;;  %v18341_v6 = vld [vmem:[#allocation141_spill] sm:$0xff]  ;;  %5984 = vst.msk [vmem:[%s16121_s8 + $0x1b0] sm:$0xff] %vm138_vm1, %v5920_v13  ;;  %5985 = vst.msk [vmem:[%s16121_s8 + $0x1b8] sm:$0xff] %vm138_vm1, %v5921_v0 }
 0x5d1   :  { %v5926_v20 = vadd.f32 %v18336_v55, %v18335_v7  ;;  %v5929_v8 = vadd.f32 %v18341_v6, %v15727_v4  ;;  %5986 = vst.msk [vmem:[%s16121_s8 + $0x1c0] sm:$0xff] %vm138_vm1, %v5922_v39  ;;  %5987 = vst.msk [vmem:[%s16121_s8 + $0x1c8] sm:$0xff] %vm138_vm1, %v5923_v62 }
 0x5d2   :  { %5988 = vst.msk [vmem:[%s16121_s8 + $0x1d0] sm:$0xff] %vm138_vm1, %v5924_v9  ;;  %5989 = vst.msk [vmem:[%s16121_s8 + $0x1d8] sm:$0xff] %vm138_vm1, %v5925_v49 }
 0x5d3   :  { %5990 = vst.msk [vmem:[%s16121_s8 + $0x1e0] sm:$0xff] %vm138_vm1, %v5926_v20  ;;  %5991 = vst.msk [vmem:[%s16121_s8 + $0x1e8] sm:$0xff] %vm138_vm1, %v5927_v36 }
 0x5d4   :  { %5992 = vst.msk [vmem:[%s16121_s8 + $0x1f0] sm:$0xff] %vm138_vm1, %v5928_v42  ;;  %5993 = vst.msk [vmem:[%s16121_s8 + $0x1f8] sm:$0xff] %vm138_vm1, %v5929_v8 }

</bundles_post_ra>
